<compile_context>
chip_gen: v6e
topology: v6e:2x2x1
jax: 0.10.0
libtpu: 0.0.40
codegen_flags: <defaults>
</compile_context>

<pallas_src>
import functools
import math

import jax
import jax.numpy as jnp
from jax import lax
from jax.experimental import pallas as pl
from jax.experimental.pallas import tpu as pltpu

VMEM_SPEC = pl.BlockSpec(memory_space=pltpu.MemorySpace.VMEM)

_HID = 64          # fc1 hidden width (fixed by the module)
_NOUT = 2          # fc2 output width; the module's concats require n_outputs == 2
_OUT_LANES = 128   # lane-dense kernel output; host slices [:, :10]


def _round_up(n, m):
    return (n + m - 1) // m * m


# ---------------------------------------------------------------------------
# Weight-slab layouts, shared by the host packer and the in-kernel unpacker.
# Every section's first row is 8-aligned so static in-kernel slices are
# sublane-aligned.
# ---------------------------------------------------------------------------
def _enc_w_names(C):       # per-layer MXU weights (bf16 slab)
    return [("wqkv", C, 3 * C), ("wo", C, C), ("w1", C, 4 * C), ("w2", 4 * C, C)]


def _enc_v_names(C):       # per-layer biases / LayerNorm params (f32 slab)
    return [("bqkv", 1, 3 * C), ("bo", 1, C), ("b1", 1, 4 * C), ("b2", 1, C),
            ("ln1g", 1, C), ("ln1b", 1, C), ("ln2g", 1, C), ("ln2b", 1, C)]


def _head_w_names(C, n_enc):   # shared MXU weights (bf16 slab)
    return [("in_w", n_enc, C), ("paw_x", n_enc, C), ("pbw_x", n_enc, C),
            ("pew_x", n_enc, C), ("fc1_w", C, _HID),
            ("fc2_w", _HID, _NOUT), ("fc3_w", _HID, 1), ("fce_w", _HID, 5)]


def _head_v_names(C):          # shared biases / pos row / K<=2 projection rows (f32)
    return [("pos0", 1, C), ("in_b", 1, C),
            ("paw_a", _NOUT, C), ("pa_b", 1, C),
            ("pbw_a", _NOUT, C), ("pbw_b", _NOUT, C), ("pb_b", 1, C),
            ("pew_a", _NOUT, C), ("pew_b", _NOUT, C), ("pew_c", 1, C), ("pe_b", 1, C),
            ("fc1_b", 1, _HID), ("fc2_b", 1, _NOUT), ("fc3_b", 1, 1), ("fce_b", 1, 5)]


def _layout(names, align=8):
    offs, r = {}, 0
    for name, nr, nc in names:
        offs[name] = (r, nr, nc)
        r += _round_up(nr, align)
    return offs, _round_up(r, 8)


def _pack(arrays, offsets, total_rows, lane, dtype):
    slab = jnp.zeros((total_rows, lane), dtype)
    for name, (r, nr, nc) in offsets.items():
        a = jnp.asarray(arrays[name], jnp.float32)
        assert a.shape == (nr, nc), (name, a.shape, (nr, nc))
        slab = slab.at[r:r + nr, 0:nc].set(a.astype(dtype))
    return slab


# ---------------------------------------------------------------------------
# Single fused kernel: full Spec2HRd_err forward
# ---------------------------------------------------------------------------
def _spec2hrd_kernel(x_ref, encw_ref, encv_ref, headw_ref, headv_ref, o_ref, *,
                     n_layers, n_heads, channels,
                     offs_ew, offs_ev, offs_hw, offs_hv):
    C = channels
    H = n_heads
    dh = C // H
    x2d = x_ref[...]                                    # (S, n_enc) f32
    S = x2d.shape[0]

    # ---- static slab views (offsets are compile-time Python ints) ----------
    def hw(name):
        r, nr, nc = offs_hw[name]
        return headw_ref[r:r + nr, 0:nc]                # bf16

    def hv(name):
        r, nr, nc = offs_hv[name]
        return headv_ref[r:r + nr, 0:nc]                # f32

    def ew(l, name):
        r, nr, nc = offs_ew[name]
        return encw_ref[l, r:r + nr, 0:nc]              # bf16

    def ev(l, name):
        r, nr, nc = offs_ev[name]
        return encv_ref[l, r:r + nr, 0:nc]              # f32

    def mxu(a, w):
        # bf16 operands, f32 accumulation (single MXU pass on v5e/v6e/v7x).
        return jnp.dot(a.astype(jnp.bfloat16), w.astype(jnp.bfloat16),
                       preferred_element_type=jnp.float32)

    def layernorm(z, g, b):
        # var = E[z^2] - mu^2: the two XLU reductions are independent.
        mu = jnp.mean(z, axis=-1, keepdims=True)
        ms = jnp.mean(z * z, axis=-1, keepdims=True)
        return (z - mu) * lax.rsqrt(ms - mu * mu + 1e-5) * g + b

    def encoder_layer(x, l):
        # Fused QKV projection (1/sqrt(dh) folded into the Q third host-side).
        qkv = mxu(x, ew(l, "wqkv")) + ev(l, "bqkv")      # (S, 3C) f32
        ctx_parts = []
        for h in range(H):                               # static head unroll
            qh = qkv[:, h * dh:(h + 1) * dh]             # (S, dh)
            kh = qkv[:, C + h * dh:C + (h + 1) * dh]
            vh = qkv[:, 2 * C + h * dh:2 * C + (h + 1) * dh]
            s = jnp.dot(qh, kh.T, preferred_element_type=jnp.float32)   # (S, S)
            s = s - jnp.max(s, axis=-1, keepdims=True)
            p = jnp.exp(s)
            # EUP reciprocal; switch approx=False for bit-level softmax parity.
            p = p * pl.reciprocal(jnp.sum(p, axis=-1, keepdims=True), approx=True)
            ctx_parts.append(jnp.dot(p, vh, preferred_element_type=jnp.float32))
        ctx = jnp.concatenate(ctx_parts, axis=-1)        # (S, H*dh) lane concat
        sa = mxu(ctx, ew(l, "wo")) + ev(l, "bo")         # single output proj

        # post-norm residual + ReLU feed-forward; dropout == identity (eval)
        x1 = layernorm(x + sa, ev(l, "ln1g"), ev(l, "ln1b"))
        hmid = mxu(x1, ew(l, "w1")) + ev(l, "b1")
        ff = mxu(jnp.maximum(hmid, 0.0), ew(l, "w2")) + ev(l, "b2")
        return layernorm(x1 + ff, ev(l, "ln2g"), ev(l, "ln2b"))

    pos = hv("pos0")                                     # (1, C), broadcasts

    def encode(src_start):
        # src = encoder(src_start + pos) + src_start  (encode_src / decode_src)
        src = src_start + pos
        for l in range(n_layers):
            src = encoder_layer(src, l)
        return src + src_start

    fc1_w = hw("fc1_w")
    fc1_b = hv("fc1_b")

    def head(src, w_name, b_name):
        # fc_out(relu(fc1(src)))
        h1 = jnp.maximum(mxu(src, fc1_w) + fc1_b, 0.0)
        return mxu(h1, hw(w_name)) + hv(b_name)

    def rank1(acc, t, w_rows):
        # K<=2 "concat" projections as VPU rank-1 broadcast FMAs (no MXU push).
        for j in range(t.shape[1]):
            acc = acc + t[:, j:j + 1] * w_rows[j:j + 1, :]
        return acc

    # -- stage 1: encode_src(x) -> fc2(relu(fc1(.))) -> tgt_a ----------------
    start = mxu(x2d, hw("in_w")) + hv("in_b")
    tgt_a = head(encode(start), "fc2_w", "fc2_b")                  # (S, 2)

    # -- stage 2: decode_src(concat(x, tgt_a)) -> tgt_b ----------------------
    start = rank1(mxu(x2d, hw("paw_x")) + hv("pa_b"), tgt_a, hv("paw_a"))
    tgt_b = head(encode(start), "fc2_w", "fc2_b")                  # (S, 2)

    # -- stage 3: decode_src(concat(x, tgt_a, tgt_b)) -> fc3 -> tgt_c --------
    start = mxu(x2d, hw("pbw_x")) + hv("pb_b")
    start = rank1(rank1(start, tgt_a, hv("pbw_a")), tgt_b, hv("pbw_b"))
    tgt_c = head(encode(start), "fc3_w", "fc3_b")                  # (S, 1)

    # -- stage 4: decode_src(concat(x, tgt_a, tgt_b, tgt_c)) -> fc_err -------
    start = mxu(x2d, hw("pew_x")) + hv("pe_b")
    start = rank1(rank1(rank1(start, tgt_a, hv("pew_a")),
                        tgt_b, hv("pew_b")),
                  tgt_c, hv("pew_c"))
    e_out = head(encode(start), "fce_w", "fce_b")                  # (S, 5)

    # One lane-dense store: [tgt_a | tgt_b | tgt_c | e_out | 0-pad] -> (S, 128)
    o_ref[...] = jnp.concatenate(
        [tgt_a, tgt_b, tgt_c, e_out,
         jnp.zeros((S, _OUT_LANES - 10), jnp.float32)], axis=-1)


# ---------------------------------------------------------------------------
# Host-side wrapper
# ---------------------------------------------------------------------------
def spec2hrd_err_forward(x, slabs, *, channels, n_heads, n_encoder_inputs):
    b = x.shape[0]
    x2d = x.reshape(b, -1).astype(jnp.float32)       # (B, 1, n_enc) -> (B, n_enc)
    C = channels
    n_layers = slabs["enc_w"].shape[0]

    offs_ew, _ = _layout(_enc_w_names(C))
    offs_ev, _ = _layout(_enc_v_names(C))
    offs_hw, _ = _layout(_head_w_names(C, n_encoder_inputs))
    offs_hv, _ = _layout(_head_v_names(C))

    kernel = functools.partial(
        _spec2hrd_kernel, n_layers=n_layers, n_heads=n_heads, channels=C,
        offs_ew=offs_ew, offs_ev=offs_ev, offs_hw=offs_hw, offs_hv=offs_hv)

    out = pl.pallas_call(
        kernel,
        out_shape=jax.ShapeDtypeStruct((b, _OUT_LANES), jnp.float32),
        in_specs=[VMEM_SPEC] * 5,
        out_specs=VMEM_SPEC,
    )(x2d, slabs["enc_w"], slabs["enc_v"], slabs["head_w"], slabs["head_v"])
    return out[:, :10]


# ---------------------------------------------------------------------------
# Parameter preparation: PyTorch-style layout -> 4 packed kernel slabs
# ---------------------------------------------------------------------------
def prepare_kernel_params(p, *, n_heads, n_encoder_inputs):
    layers = p["enc_layers"]
    C = p["in_proj_w"].shape[1]
    dh = C // n_heads
    scale = 1.0 / math.sqrt(dh)
    n_enc = n_encoder_inputs

    offs_ew, rew = _layout(_enc_w_names(C))
    offs_ev, rev = _layout(_enc_v_names(C))
    offs_hw, rhw = _layout(_head_w_names(C, n_enc))
    offs_hv, rhv = _layout(_head_v_names(C))

    enc_lane = _round_up(4 * C, 128)
    head_lane = _round_up(max(C, _HID), 128)

    enc_w_slabs, enc_v_slabs = [], []
    for lyr in layers:
        wqkv = jnp.asarray(lyr["wqkv"], jnp.float32).at[:, :C].multiply(scale)
        bqkv = jnp.asarray(lyr["bqkv"], jnp.float32).at[:, :C].multiply(scale)
        enc_w_slabs.append(_pack(
            dict(wqkv=wqkv, wo=lyr["wo"], w1=lyr["w1"], w2=lyr["w2"]),
            offs_ew, rew, enc_lane, jnp.bfloat16))
        enc_v_slabs.append(_pack(
            dict(bqkv=bqkv, bo=lyr["bo"], b1=lyr["b1"], b2=lyr["b2"],
                 ln1g=lyr["ln1_g"], ln1b=lyr["ln1_b"],
                 ln2g=lyr["ln2_g"], ln2b=lyr["ln2_b"]),
            offs_ev, rev, enc_lane, jnp.float32))

    pa_w, pb_w, pe_w = p["proj_a_w"], p["proj_b_w"], p["proj_err_w"]
    head_w = _pack(dict(
        in_w=p["in_proj_w"],
        paw_x=pa_w[:n_enc], pbw_x=pb_w[:n_enc], pew_x=pe_w[:n_enc],
        fc1_w=p["fc1_w"], fc2_w=p["fc2_w"], fc3_w=p["fc3_w"], fce_w=p["fc_err_w"],
    ), offs_hw, rhw, head_lane, jnp.bfloat16)

    head_v = _pack(dict(
        pos0=p["pos_emb"][0:1], in_b=p["in_proj_b"],
        paw_a=pa_w[n_enc:n_enc + 2], pa_b=p["proj_a_b"],
        pbw_a=pb_w[n_enc:n_enc + 2], pbw_b=pb_w[n_enc + 2:n_enc + 4],
        pb_b=p["proj_b_b"],
        pew_a=pe_w[n_enc:n_enc + 2], pew_b=pe_w[n_enc + 2:n_enc + 4],
        pew_c=pe_w[n_enc + 4:n_enc + 5], pe_b=p["proj_err_b"],
        fc1_b=p["fc1_b"], fc2_b=p["fc2_b"], fc3_b=p["fc3_b"], fce_b=p["fc_err_b"],
    ), offs_hv, rhv, head_lane, jnp.float32)

    return dict(enc_w=jnp.stack(enc_w_slabs, axis=0),
                enc_v=jnp.stack(enc_v_slabs, axis=0),
                head_w=head_w, head_v=head_v)


# ---------------------------------------------------------------------------
# Deterministic synthetic parameters (weights in (in, out) layout)
# ---------------------------------------------------------------------------
def init_params(key, n_enc, n_dec, n_out, channels, n_layers):
    keys = iter(jax.random.split(key, 16 * n_layers + 64))

    def lin(in_d, out_d):
        w = jax.random.normal(next(keys), (in_d, out_d), jnp.float32) / math.sqrt(in_d)
        b = jax.random.normal(next(keys), (1, out_d), jnp.float32) * 0.01
        return w, b

    enc_layers = []
    for _ in range(n_layers):
        wqkv, bqkv = lin(channels, 3 * channels)
        wo, bo = lin(channels, channels)
        w1, b1 = lin(channels, 4 * channels)
        w2, b2 = lin(4 * channels, channels)
        enc_layers.append(dict(
            wqkv=wqkv, bqkv=bqkv, wo=wo, bo=bo, w1=w1, b1=b1, w2=w2, b2=b2,
            ln1_g=jnp.ones((1, channels), jnp.float32),
            ln1_b=jnp.zeros((1, channels), jnp.float32),
            ln2_g=jnp.ones((1, channels), jnp.float32),
            ln2_b=jnp.zeros((1, channels), jnp.float32)))

    in_proj_w, in_proj_b = lin(n_enc, channels)
    proj_a_w, proj_a_b = lin(n_dec, channels)
    proj_b_w, proj_b_b = lin(n_dec + 2, channels)
    proj_err_w, proj_err_b = lin(n_dec + 3, channels)
    fc1_w, fc1_b = lin(channels, _HID)
    fc2_w, fc2_b = lin(_HID, n_out)
    fc3_w, fc3_b = lin(_HID, 1)
    fc_err_w, fc_err_b = lin(_HID, 5)
    pos_emb = jax.random.normal(next(keys), (1024, channels), jnp.float32) * 0.02
    # TODO(synk): target_pos_embedding exists in __init__ but is unused in forward.

    return dict(
        enc_layers=enc_layers,
        in_proj_w=in_proj_w, in_proj_b=in_proj_b,
        proj_a_w=proj_a_w, proj_a_b=proj_a_b,
        proj_b_w=proj_b_w, proj_b_b=proj_b_b,
        proj_err_w=proj_err_w, proj_err_b=proj_err_b,
        fc1_w=fc1_w, fc1_b=fc1_b, fc2_w=fc2_w, fc2_b=fc2_b,
        fc3_w=fc3_w, fc3_b=fc3_b, fc_err_w=fc_err_w, fc_err_b=fc_err_b,
        pos_emb=pos_emb,
    )


if __name__ == "__main__":
    # n_outputs must be 2 and n_decoder_inputs == n_encoder_inputs + 2 for the
    # module's concatenations to line up.
    n_encoder_inputs = 16
    n_decoder_inputs = 18
    n_outputs = 2
    channels = 32
    n_heads = 4
    n_layers = 2
    batch = 8

    key = jax.random.PRNGKey(0)
    kparam_key, kx = jax.random.split(key)
    params = init_params(kparam_key, n_encoder_inputs, n_decoder_inputs,
                         n_outputs, channels, n_layers)
    slabs = prepare_kernel_params(params, n_heads=n_heads,
                                  n_encoder_inputs=n_encoder_inputs)
    x = jax.random.normal(kx, (batch, 1, n_encoder_inputs), jnp.float32)

    fwd = jax.jit(functools.partial(
        spec2hrd_err_forward, channels=channels, n_heads=n_heads,
        n_encoder_inputs=n_encoder_inputs))
    y = fwd(x, slabs)
    jax.block_until_ready(y)
    assert y.shape == (batch, 10), y.shape
    assert bool(jnp.all(jnp.isfinite(y)))
    print("KERNEL_OK")
</pallas_src>

<mosaic_0001>
module attributes {stable_mosaic.version = 11 : i64} {
  func.func @_spec2hrd_kernel(%arg0: memref<8x16xf32, #tpu.memory_space<vmem>>, %arg1: memref<2x224x128xbf16, #tpu.memory_space<vmem>>, %arg2: memref<2x64x128xf32, #tpu.memory_space<vmem>>, %arg3: memref<288x128xbf16, #tpu.memory_space<vmem>>, %arg4: memref<120x128xf32, #tpu.memory_space<vmem>>, %arg5: memref<8x128xf32, #tpu.memory_space<vmem>>) attributes {dimension_semantics = [], scalar_prefetch = 0 : i64, scratch_operands = 0 : i64, tpu.core_type = #tpu.core_type<tc>} {
    %c0 = arith.constant 0 : index
    %c0_0 = arith.constant 0 : index
    %0 = vector.load %arg0[%c0, %c0_0] : memref<8x16xf32, #tpu.memory_space<vmem>>, vector<8x16xf32>
    %c0_1 = arith.constant 0 : index
    %c0_2 = arith.constant 0 : index
    %1 = vector.load %arg4[%c0_1, %c0_2] : memref<120x128xf32, #tpu.memory_space<vmem>>, vector<1x32xf32>
    %c64 = arith.constant 64 : index
    %c0_3 = arith.constant 0 : index
    %2 = vector.load %arg3[%c64, %c0_3] : memref<288x128xbf16, #tpu.memory_space<vmem>>, vector<32x64xbf16>
    %c88 = arith.constant 88 : index
    %c0_4 = arith.constant 0 : index
    %3 = vector.load %arg4[%c88, %c0_4] : memref<120x128xf32, #tpu.memory_space<vmem>>, vector<1x64xf32>
    %c0_5 = arith.constant 0 : index
    %c0_6 = arith.constant 0 : index
    %4 = vector.load %arg3[%c0_5, %c0_6] : memref<288x128xbf16, #tpu.memory_space<vmem>>, vector<16x32xbf16>
    %5 = arith.truncf %0 : vector<8x16xf32> to vector<8x16xbf16>
    %cst = arith.constant dense<0.000000e+00> : vector<8x32xf32>
    %6 = tpu.matmul %5, %4, %cst {dimension_numbers = #tpu.dot_dimension_numbers<[1], [0], [0], [1], [0, 0, 1, 1], [], []>} : vector<8x16xbf16>, vector<16x32xbf16>, vector<8x32xf32> -> vector<8x32xf32>
    %c8 = arith.constant 8 : index
    %c0_7 = arith.constant 0 : index
    %7 = vector.load %arg4[%c8, %c0_7] : memref<120x128xf32, #tpu.memory_space<vmem>>, vector<1x32xf32>
    %8 = vector.broadcast %7 : vector<1x32xf32> to vector<8x32xf32>
    %9 = arith.addf %6, %8 : vector<8x32xf32>
    %10 = vector.broadcast %1 : vector<1x32xf32> to vector<8x32xf32>
    %11 = arith.addf %9, %10 : vector<8x32xf32>
    %c0_8 = arith.constant 0 : index
    %c0_9 = arith.constant 0 : index
    %c0_10 = arith.constant 0 : index
    %12 = vector.load %arg1[%c0_8, %c0_9, %c0_10] : memref<2x224x128xbf16, #tpu.memory_space<vmem>>, vector<1x32x96xbf16>
    %13 = vector.shape_cast %12 : vector<1x32x96xbf16> to vector<32x96xbf16>
    %14 = arith.truncf %11 : vector<8x32xf32> to vector<8x32xbf16>
    %cst_11 = arith.constant dense<0.000000e+00> : vector<8x96xf32>
    %15 = tpu.matmul %14, %13, %cst_11 {dimension_numbers = #tpu.dot_dimension_numbers<[1], [0], [0], [1], [0, 0, 1, 1], [], []>} : vector<8x32xbf16>, vector<32x96xbf16>, vector<8x96xf32> -> vector<8x96xf32>
    %c0_12 = arith.constant 0 : index
    %c0_13 = arith.constant 0 : index
    %c0_14 = arith.constant 0 : index
    %16 = vector.load %arg2[%c0_12, %c0_13, %c0_14] : memref<2x64x128xf32, #tpu.memory_space<vmem>>, vector<1x1x96xf32>
    %17 = vector.shape_cast %16 : vector<1x1x96xf32> to vector<1x96xf32>
    %18 = vector.broadcast %17 : vector<1x96xf32> to vector<8x96xf32>
    %19 = arith.addf %15, %18 : vector<8x96xf32>
    %20 = vector.extract_strided_slice %19 {offsets = [0, 0], sizes = [8, 8], strides = [1, 1]} : vector<8x96xf32> to vector<8x8xf32>
    %21 = vector.extract_strided_slice %19 {offsets = [0, 32], sizes = [8, 8], strides = [1, 1]} : vector<8x96xf32> to vector<8x8xf32>
    %22 = vector.extract_strided_slice %19 {offsets = [0, 64], sizes = [8, 8], strides = [1, 1]} : vector<8x96xf32> to vector<8x8xf32>
    %23 = tpu.transpose %21, [1, 0] : vector<8x8xf32> -> vector<8x8xf32>
    %cst_15 = arith.constant dense<0.000000e+00> : vector<8x8xf32>
    %24 = tpu.matmul %20, %23, %cst_15 {dimension_numbers = #tpu.dot_dimension_numbers<[1], [0], [0], [1], [0, 0, 1, 1], [], []>} : vector<8x8xf32>, vector<8x8xf32>, vector<8x8xf32> -> vector<8x8xf32>
    %cst_16 = arith.constant dense<0xFF800000> : vector<8xf32>
    %25 = vector.multi_reduction <maximumf>, %24, %cst_16 [1] : vector<8x8xf32> to vector<8xf32>
    %26 = vector.shape_cast %25 : vector<8xf32> to vector<8x1xf32>
    %27 = vector.broadcast %26 : vector<8x1xf32> to vector<8x8xf32>
    %28 = arith.subf %24, %27 : vector<8x8xf32>
    %29 = math.exp %28 : vector<8x8xf32>
    %cst_17 = arith.constant dense<0.000000e+00> : vector<8xf32>
    %30 = vector.multi_reduction <add>, %29, %cst_17 [1] : vector<8x8xf32> to vector<8xf32>
    %31 = vector.shape_cast %30 : vector<8xf32> to vector<8x1xf32>
    %32 = tpu.reciprocal %31 {approx = true} : vector<8x1xf32> -> vector<8x1xf32>
    %33 = vector.broadcast %32 : vector<8x1xf32> to vector<8x8xf32>
    %34 = arith.mulf %29, %33 : vector<8x8xf32>
    %cst_18 = arith.constant dense<0.000000e+00> : vector<8x8xf32>
    %35 = tpu.matmul %34, %22, %cst_18 {dimension_numbers = #tpu.dot_dimension_numbers<[1], [0], [0], [1], [0, 0, 1, 1], [], []>} : vector<8x8xf32>, vector<8x8xf32>, vector<8x8xf32> -> vector<8x8xf32>
    %36 = vector.extract_strided_slice %19 {offsets = [0, 8], sizes = [8, 8], strides = [1, 1]} : vector<8x96xf32> to vector<8x8xf32>
    %37 = vector.extract_strided_slice %19 {offsets = [0, 40], sizes = [8, 8], strides = [1, 1]} : vector<8x96xf32> to vector<8x8xf32>
    %38 = vector.extract_strided_slice %19 {offsets = [0, 72], sizes = [8, 8], strides = [1, 1]} : vector<8x96xf32> to vector<8x8xf32>
    %39 = tpu.transpose %37, [1, 0] : vector<8x8xf32> -> vector<8x8xf32>
    %cst_19 = arith.constant dense<0.000000e+00> : vector<8x8xf32>
    %40 = tpu.matmul %36, %39, %cst_19 {dimension_numbers = #tpu.dot_dimension_numbers<[1], [0], [0], [1], [0, 0, 1, 1], [], []>} : vector<8x8xf32>, vector<8x8xf32>, vector<8x8xf32> -> vector<8x8xf32>
    %cst_20 = arith.constant dense<0xFF800000> : vector<8xf32>
    %41 = vector.multi_reduction <maximumf>, %40, %cst_20 [1] : vector<8x8xf32> to vector<8xf32>
    %42 = vector.shape_cast %41 : vector<8xf32> to vector<8x1xf32>
    %43 = vector.broadcast %42 : vector<8x1xf32> to vector<8x8xf32>
    %44 = arith.subf %40, %43 : vector<8x8xf32>
    %45 = math.exp %44 : vector<8x8xf32>
    %cst_21 = arith.constant dense<0.000000e+00> : vector<8xf32>
    %46 = vector.multi_reduction <add>, %45, %cst_21 [1] : vector<8x8xf32> to vector<8xf32>
    %47 = vector.shape_cast %46 : vector<8xf32> to vector<8x1xf32>
    %48 = tpu.reciprocal %47 {approx = true} : vector<8x1xf32> -> vector<8x1xf32>
    %49 = vector.broadcast %48 : vector<8x1xf32> to vector<8x8xf32>
    %50 = arith.mulf %45, %49 : vector<8x8xf32>
    %cst_22 = arith.constant dense<0.000000e+00> : vector<8x8xf32>
    %51 = tpu.matmul %50, %38, %cst_22 {dimension_numbers = #tpu.dot_dimension_numbers<[1], [0], [0], [1], [0, 0, 1, 1], [], []>} : vector<8x8xf32>, vector<8x8xf32>, vector<8x8xf32> -> vector<8x8xf32>
    %52 = vector.extract_strided_slice %19 {offsets = [0, 16], sizes = [8, 8], strides = [1, 1]} : vector<8x96xf32> to vector<8x8xf32>
    %53 = vector.extract_strided_slice %19 {offsets = [0, 48], sizes = [8, 8], strides = [1, 1]} : vector<8x96xf32> to vector<8x8xf32>
    %54 = vector.extract_strided_slice %19 {offsets = [0, 80], sizes = [8, 8], strides = [1, 1]} : vector<8x96xf32> to vector<8x8xf32>
    %55 = tpu.transpose %53, [1, 0] : vector<8x8xf32> -> vector<8x8xf32>
    %cst_23 = arith.constant dense<0.000000e+00> : vector<8x8xf32>
    %56 = tpu.matmul %52, %55, %cst_23 {dimension_numbers = #tpu.dot_dimension_numbers<[1], [0], [0], [1], [0, 0, 1, 1], [], []>} : vector<8x8xf32>, vector<8x8xf32>, vector<8x8xf32> -> vector<8x8xf32>
    %cst_24 = arith.constant dense<0xFF800000> : vector<8xf32>
    %57 = vector.multi_reduction <maximumf>, %56, %cst_24 [1] : vector<8x8xf32> to vector<8xf32>
    %58 = vector.shape_cast %57 : vector<8xf32> to vector<8x1xf32>
    %59 = vector.broadcast %58 : vector<8x1xf32> to vector<8x8xf32>
    %60 = arith.subf %56, %59 : vector<8x8xf32>
    %61 = math.exp %60 : vector<8x8xf32>
    %cst_25 = arith.constant dense<0.000000e+00> : vector<8xf32>
    %62 = vector.multi_reduction <add>, %61, %cst_25 [1] : vector<8x8xf32> to vector<8xf32>
    %63 = vector.shape_cast %62 : vector<8xf32> to vector<8x1xf32>
    %64 = tpu.reciprocal %63 {approx = true} : vector<8x1xf32> -> vector<8x1xf32>
    %65 = vector.broadcast %64 : vector<8x1xf32> to vector<8x8xf32>
    %66 = arith.mulf %61, %65 : vector<8x8xf32>
    %cst_26 = arith.constant dense<0.000000e+00> : vector<8x8xf32>
    %67 = tpu.matmul %66, %54, %cst_26 {dimension_numbers = #tpu.dot_dimension_numbers<[1], [0], [0], [1], [0, 0, 1, 1], [], []>} : vector<8x8xf32>, vector<8x8xf32>, vector<8x8xf32> -> vector<8x8xf32>
    %68 = vector.extract_strided_slice %19 {offsets = [0, 24], sizes = [8, 8], strides = [1, 1]} : vector<8x96xf32> to vector<8x8xf32>
    %69 = vector.extract_strided_slice %19 {offsets = [0, 56], sizes = [8, 8], strides = [1, 1]} : vector<8x96xf32> to vector<8x8xf32>
    %70 = vector.extract_strided_slice %19 {offsets = [0, 88], sizes = [8, 8], strides = [1, 1]} : vector<8x96xf32> to vector<8x8xf32>
    %71 = tpu.transpose %69, [1, 0] : vector<8x8xf32> -> vector<8x8xf32>
    %cst_27 = arith.constant dense<0.000000e+00> : vector<8x8xf32>
    %72 = tpu.matmul %68, %71, %cst_27 {dimension_numbers = #tpu.dot_dimension_numbers<[1], [0], [0], [1], [0, 0, 1, 1], [], []>} : vector<8x8xf32>, vector<8x8xf32>, vector<8x8xf32> -> vector<8x8xf32>
    %cst_28 = arith.constant dense<0xFF800000> : vector<8xf32>
    %73 = vector.multi_reduction <maximumf>, %72, %cst_28 [1] : vector<8x8xf32> to vector<8xf32>
    %74 = vector.shape_cast %73 : vector<8xf32> to vector<8x1xf32>
    %75 = vector.broadcast %74 : vector<8x1xf32> to vector<8x8xf32>
    %76 = arith.subf %72, %75 : vector<8x8xf32>
    %77 = math.exp %76 : vector<8x8xf32>
    %cst_29 = arith.constant dense<0.000000e+00> : vector<8xf32>
    %78 = vector.multi_reduction <add>, %77, %cst_29 [1] : vector<8x8xf32> to vector<8xf32>
    %79 = vector.shape_cast %78 : vector<8xf32> to vector<8x1xf32>
    %80 = tpu.reciprocal %79 {approx = true} : vector<8x1xf32> -> vector<8x1xf32>
    %81 = vector.broadcast %80 : vector<8x1xf32> to vector<8x8xf32>
    %82 = arith.mulf %77, %81 : vector<8x8xf32>
    %cst_30 = arith.constant dense<0.000000e+00> : vector<8x8xf32>
    %83 = tpu.matmul %82, %70, %cst_30 {dimension_numbers = #tpu.dot_dimension_numbers<[1], [0], [0], [1], [0, 0, 1, 1], [], []>} : vector<8x8xf32>, vector<8x8xf32>, vector<8x8xf32> -> vector<8x8xf32>
    %84 = tpu.concatenate %35, %51, %67, %83 in 1 : vector<8x8xf32>, vector<8x8xf32>, vector<8x8xf32>, vector<8x8xf32> -> vector<8x32xf32>
    %c0_31 = arith.constant 0 : index
    %c32 = arith.constant 32 : index
    %c0_32 = arith.constant 0 : index
    %85 = vector.load %arg1[%c0_31, %c32, %c0_32] : memref<2x224x128xbf16, #tpu.memory_space<vmem>>, vector<1x32x32xbf16>
    %86 = vector.shape_cast %85 : vector<1x32x32xbf16> to vector<32x32xbf16>
    %87 = arith.truncf %84 : vector<8x32xf32> to vector<8x32xbf16>
    %cst_33 = arith.constant dense<0.000000e+00> : vector<8x32xf32>
    %88 = tpu.matmul %87, %86, %cst_33 {dimension_numbers = #tpu.dot_dimension_numbers<[1], [0], [0], [1], [0, 0, 1, 1], [], []>} : vector<8x32xbf16>, vector<32x32xbf16>, vector<8x32xf32> -> vector<8x32xf32>
    %c0_34 = arith.constant 0 : index
    %c8_35 = arith.constant 8 : index
    %c0_36 = arith.constant 0 : index
    %89 = vector.load %arg2[%c0_34, %c8_35, %c0_36] : memref<2x64x128xf32, #tpu.memory_space<vmem>>, vector<1x1x32xf32>
    %90 = vector.shape_cast %89 : vector<1x1x32xf32> to vector<1x32xf32>
    %91 = vector.broadcast %90 : vector<1x32xf32> to vector<8x32xf32>
    %92 = arith.addf %88, %91 : vector<8x32xf32>
    %93 = arith.addf %11, %92 : vector<8x32xf32>
    %c0_37 = arith.constant 0 : index
    %c32_38 = arith.constant 32 : index
    %c0_39 = arith.constant 0 : index
    %94 = vector.load %arg2[%c0_37, %c32_38, %c0_39] : memref<2x64x128xf32, #tpu.memory_space<vmem>>, vector<1x1x32xf32>
    %95 = vector.shape_cast %94 : vector<1x1x32xf32> to vector<1x32xf32>
    %c0_40 = arith.constant 0 : index
    %c40 = arith.constant 40 : index
    %c0_41 = arith.constant 0 : index
    %96 = vector.load %arg2[%c0_40, %c40, %c0_41] : memref<2x64x128xf32, #tpu.memory_space<vmem>>, vector<1x1x32xf32>
    %97 = vector.shape_cast %96 : vector<1x1x32xf32> to vector<1x32xf32>
    %cst_42 = arith.constant dense<0.000000e+00> : vector<8xf32>
    %98 = vector.multi_reduction <add>, %93, %cst_42 [1] : vector<8x32xf32> to vector<8xf32>
    %99 = vector.shape_cast %98 : vector<8xf32> to vector<8x1xf32>
    %cst_43 = arith.constant 3.200000e+01 : f32
    %100 = vector.broadcast %cst_43 : f32 to vector<8x1xf32>
    %101 = arith.divf %99, %100 : vector<8x1xf32>
    %102 = arith.mulf %93, %93 : vector<8x32xf32>
    %cst_44 = arith.constant dense<0.000000e+00> : vector<8xf32>
    %103 = vector.multi_reduction <add>, %102, %cst_44 [1] : vector<8x32xf32> to vector<8xf32>
    %104 = vector.shape_cast %103 : vector<8xf32> to vector<8x1xf32>
    %cst_45 = arith.constant 3.200000e+01 : f32
    %105 = vector.broadcast %cst_45 : f32 to vector<8x1xf32>
    %106 = arith.divf %104, %105 : vector<8x1xf32>
    %107 = vector.broadcast %101 : vector<8x1xf32> to vector<8x32xf32>
    %108 = arith.subf %93, %107 : vector<8x32xf32>
    %109 = arith.mulf %101, %101 : vector<8x1xf32>
    %110 = arith.subf %106, %109 : vector<8x1xf32>
    %cst_46 = arith.constant 9.99999974E-6 : f32
    %111 = vector.broadcast %cst_46 : f32 to vector<8x1xf32>
    %112 = arith.addf %110, %111 : vector<8x1xf32>
    %113 = math.rsqrt %112 : vector<8x1xf32>
    %114 = vector.broadcast %113 : vector<8x1xf32> to vector<8x32xf32>
    %115 = arith.mulf %108, %114 : vector<8x32xf32>
    %116 = vector.broadcast %95 : vector<1x32xf32> to vector<8x32xf32>
    %117 = arith.mulf %115, %116 : vector<8x32xf32>
    %118 = vector.broadcast %97 : vector<1x32xf32> to vector<8x32xf32>
    %119 = arith.addf %117, %118 : vector<8x32xf32>
    %c0_47 = arith.constant 0 : index
    %c64_48 = arith.constant 64 : index
    %c0_49 = arith.constant 0 : index
    %120 = vector.load %arg1[%c0_47, %c64_48, %c0_49] : memref<2x224x128xbf16, #tpu.memory_space<vmem>>, vector<1x32x128xbf16>
    %121 = vector.shape_cast %120 : vector<1x32x128xbf16> to vector<32x128xbf16>
    %122 = arith.truncf %119 : vector<8x32xf32> to vector<8x32xbf16>
    %cst_50 = arith.constant dense<0.000000e+00> : vector<8x128xf32>
    %123 = tpu.matmul %122, %121, %cst_50 {dimension_numbers = #tpu.dot_dimension_numbers<[1], [0], [0], [1], [0, 0, 1, 1], [], []>} : vector<8x32xbf16>, vector<32x128xbf16>, vector<8x128xf32> -> vector<8x128xf32>
    %c0_51 = arith.constant 0 : index
    %c16 = arith.constant 16 : index
    %c0_52 = arith.constant 0 : index
    %124 = vector.load %arg2[%c0_51, %c16, %c0_52] : memref<2x64x128xf32, #tpu.memory_space<vmem>>, vector<1x1x128xf32>
    %125 = vector.shape_cast %124 : vector<1x1x128xf32> to vector<1x128xf32>
    %126 = vector.broadcast %125 : vector<1x128xf32> to vector<8x128xf32>
    %127 = arith.addf %123, %126 : vector<8x128xf32>
    %cst_53 = arith.constant 0.000000e+00 : f32
    %128 = vector.broadcast %cst_53 : f32 to vector<8x128xf32>
    %129 = arith.maximumf %127, %128 : vector<8x128xf32>
    %c0_54 = arith.constant 0 : index
    %c96 = arith.constant 96 : index
    %c0_55 = arith.constant 0 : index
    %130 = vector.load %arg1[%c0_54, %c96, %c0_55] : memref<2x224x128xbf16, #tpu.memory_space<vmem>>, vector<1x128x32xbf16>
    %131 = vector.shape_cast %130 : vector<1x128x32xbf16> to vector<128x32xbf16>
    %132 = arith.truncf %129 : vector<8x128xf32> to vector<8x128xbf16>
    %cst_56 = arith.constant dense<0.000000e+00> : vector<8x32xf32>
    %133 = tpu.matmul %132, %131, %cst_56 {dimension_numbers = #tpu.dot_dimension_numbers<[1], [0], [0], [1], [0, 0, 1, 1], [], []>} : vector<8x128xbf16>, vector<128x32xbf16>, vector<8x32xf32> -> vector<8x32xf32>
    %c0_57 = arith.constant 0 : index
    %c24 = arith.constant 24 : index
    %c0_58 = arith.constant 0 : index
    %134 = vector.load %arg2[%c0_57, %c24, %c0_58] : memref<2x64x128xf32, #tpu.memory_space<vmem>>, vector<1x1x32xf32>
    %135 = vector.shape_cast %134 : vector<1x1x32xf32> to vector<1x32xf32>
    %136 = vector.broadcast %135 : vector<1x32xf32> to vector<8x32xf32>
    %137 = arith.addf %133, %136 : vector<8x32xf32>
    %138 = arith.addf %119, %137 : vector<8x32xf32>
    %c0_59 = arith.constant 0 : index
    %c48 = arith.constant 48 : index
    %c0_60 = arith.constant 0 : index
    %139 = vector.load %arg2[%c0_59, %c48, %c0_60] : memref<2x64x128xf32, #tpu.memory_space<vmem>>, vector<1x1x32xf32>
    %140 = vector.shape_cast %139 : vector<1x1x32xf32> to vector<1x32xf32>
    %c0_61 = arith.constant 0 : index
    %c56 = arith.constant 56 : index
    %c0_62 = arith.constant 0 : index
    %141 = vector.load %arg2[%c0_61, %c56, %c0_62] : memref<2x64x128xf32, #tpu.memory_space<vmem>>, vector<1x1x32xf32>
    %142 = vector.shape_cast %141 : vector<1x1x32xf32> to vector<1x32xf32>
    %cst_63 = arith.constant dense<0.000000e+00> : vector<8xf32>
    %143 = vector.multi_reduction <add>, %138, %cst_63 [1] : vector<8x32xf32> to vector<8xf32>
    %144 = vector.shape_cast %143 : vector<8xf32> to vector<8x1xf32>
    %cst_64 = arith.constant 3.200000e+01 : f32
    %145 = vector.broadcast %cst_64 : f32 to vector<8x1xf32>
    %146 = arith.divf %144, %145 : vector<8x1xf32>
    %147 = arith.mulf %138, %138 : vector<8x32xf32>
    %cst_65 = arith.constant dense<0.000000e+00> : vector<8xf32>
    %148 = vector.multi_reduction <add>, %147, %cst_65 [1] : vector<8x32xf32> to vector<8xf32>
    %149 = vector.shape_cast %148 : vector<8xf32> to vector<8x1xf32>
    %cst_66 = arith.constant 3.200000e+01 : f32
    %150 = vector.broadcast %cst_66 : f32 to vector<8x1xf32>
    %151 = arith.divf %149, %150 : vector<8x1xf32>
    %152 = vector.broadcast %146 : vector<8x1xf32> to vector<8x32xf32>
    %153 = arith.subf %138, %152 : vector<8x32xf32>
    %154 = arith.mulf %146, %146 : vector<8x1xf32>
    %155 = arith.subf %151, %154 : vector<8x1xf32>
    %cst_67 = arith.constant 9.99999974E-6 : f32
    %156 = vector.broadcast %cst_67 : f32 to vector<8x1xf32>
    %157 = arith.addf %155, %156 : vector<8x1xf32>
    %158 = math.rsqrt %157 : vector<8x1xf32>
    %159 = vector.broadcast %158 : vector<8x1xf32> to vector<8x32xf32>
    %160 = arith.mulf %153, %159 : vector<8x32xf32>
    %161 = vector.broadcast %140 : vector<1x32xf32> to vector<8x32xf32>
    %162 = arith.mulf %160, %161 : vector<8x32xf32>
    %163 = vector.broadcast %142 : vector<1x32xf32> to vector<8x32xf32>
    %164 = arith.addf %162, %163 : vector<8x32xf32>
    %c1 = arith.constant 1 : index
    %c0_68 = arith.constant 0 : index
    %c0_69 = arith.constant 0 : index
    %165 = vector.load %arg1[%c1, %c0_68, %c0_69] : memref<2x224x128xbf16, #tpu.memory_space<vmem>>, vector<1x32x96xbf16>
    %166 = vector.shape_cast %165 : vector<1x32x96xbf16> to vector<32x96xbf16>
    %167 = arith.truncf %164 : vector<8x32xf32> to vector<8x32xbf16>
    %cst_70 = arith.constant dense<0.000000e+00> : vector<8x96xf32>
    %168 = tpu.matmul %167, %166, %cst_70 {dimension_numbers = #tpu.dot_dimension_numbers<[1], [0], [0], [1], [0, 0, 1, 1], [], []>} : vector<8x32xbf16>, vector<32x96xbf16>, vector<8x96xf32> -> vector<8x96xf32>
    %c1_71 = arith.constant 1 : index
    %c0_72 = arith.constant 0 : index
    %c0_73 = arith.constant 0 : index
    %169 = vector.load %arg2[%c1_71, %c0_72, %c0_73] : memref<2x64x128xf32, #tpu.memory_space<vmem>>, vector<1x1x96xf32>
    %170 = vector.shape_cast %169 : vector<1x1x96xf32> to vector<1x96xf32>
    %171 = vector.broadcast %170 : vector<1x96xf32> to vector<8x96xf32>
    %172 = arith.addf %168, %171 : vector<8x96xf32>
    %173 = vector.extract_strided_slice %172 {offsets = [0, 0], sizes = [8, 8], strides = [1, 1]} : vector<8x96xf32> to vector<8x8xf32>
    %174 = vector.extract_strided_slice %172 {offsets = [0, 32], sizes = [8, 8], strides = [1, 1]} : vector<8x96xf32> to vector<8x8xf32>
    %175 = vector.extract_strided_slice %172 {offsets = [0, 64], sizes = [8, 8], strides = [1, 1]} : vector<8x96xf32> to vector<8x8xf32>
    %176 = tpu.transpose %174, [1, 0] : vector<8x8xf32> -> vector<8x8xf32>
    %cst_74 = arith.constant dense<0.000000e+00> : vector<8x8xf32>
    %177 = tpu.matmul %173, %176, %cst_74 {dimension_numbers = #tpu.dot_dimension_numbers<[1], [0], [0], [1], [0, 0, 1, 1], [], []>} : vector<8x8xf32>, vector<8x8xf32>, vector<8x8xf32> -> vector<8x8xf32>
    %cst_75 = arith.constant dense<0xFF800000> : vector<8xf32>
    %178 = vector.multi_reduction <maximumf>, %177, %cst_75 [1] : vector<8x8xf32> to vector<8xf32>
    %179 = vector.shape_cast %178 : vector<8xf32> to vector<8x1xf32>
    %180 = vector.broadcast %179 : vector<8x1xf32> to vector<8x8xf32>
    %181 = arith.subf %177, %180 : vector<8x8xf32>
    %182 = math.exp %181 : vector<8x8xf32>
    %cst_76 = arith.constant dense<0.000000e+00> : vector<8xf32>
    %183 = vector.multi_reduction <add>, %182, %cst_76 [1] : vector<8x8xf32> to vector<8xf32>
    %184 = vector.shape_cast %183 : vector<8xf32> to vector<8x1xf32>
    %185 = tpu.reciprocal %184 {approx = true} : vector<8x1xf32> -> vector<8x1xf32>
    %186 = vector.broadcast %185 : vector<8x1xf32> to vector<8x8xf32>
    %187 = arith.mulf %182, %186 : vector<8x8xf32>
    %cst_77 = arith.constant dense<0.000000e+00> : vector<8x8xf32>
    %188 = tpu.matmul %187, %175, %cst_77 {dimension_numbers = #tpu.dot_dimension_numbers<[1], [0], [0], [1], [0, 0, 1, 1], [], []>} : vector<8x8xf32>, vector<8x8xf32>, vector<8x8xf32> -> vector<8x8xf32>
    %189 = vector.extract_strided_slice %172 {offsets = [0, 8], sizes = [8, 8], strides = [1, 1]} : vector<8x96xf32> to vector<8x8xf32>
    %190 = vector.extract_strided_slice %172 {offsets = [0, 40], sizes = [8, 8], strides = [1, 1]} : vector<8x96xf32> to vector<8x8xf32>
    %191 = vector.extract_strided_slice %172 {offsets = [0, 72], sizes = [8, 8], strides = [1, 1]} : vector<8x96xf32> to vector<8x8xf32>
    %192 = tpu.transpose %190, [1, 0] : vector<8x8xf32> -> vector<8x8xf32>
    %cst_78 = arith.constant dense<0.000000e+00> : vector<8x8xf32>
    %193 = tpu.matmul %189, %192, %cst_78 {dimension_numbers = #tpu.dot_dimension_numbers<[1], [0], [0], [1], [0, 0, 1, 1], [], []>} : vector<8x8xf32>, vector<8x8xf32>, vector<8x8xf32> -> vector<8x8xf32>
    %cst_79 = arith.constant dense<0xFF800000> : vector<8xf32>
    %194 = vector.multi_reduction <maximumf>, %193, %cst_79 [1] : vector<8x8xf32> to vector<8xf32>
    %195 = vector.shape_cast %194 : vector<8xf32> to vector<8x1xf32>
    %196 = vector.broadcast %195 : vector<8x1xf32> to vector<8x8xf32>
    %197 = arith.subf %193, %196 : vector<8x8xf32>
    %198 = math.exp %197 : vector<8x8xf32>
    %cst_80 = arith.constant dense<0.000000e+00> : vector<8xf32>
    %199 = vector.multi_reduction <add>, %198, %cst_80 [1] : vector<8x8xf32> to vector<8xf32>
    %200 = vector.shape_cast %199 : vector<8xf32> to vector<8x1xf32>
    %201 = tpu.reciprocal %200 {approx = true} : vector<8x1xf32> -> vector<8x1xf32>
    %202 = vector.broadcast %201 : vector<8x1xf32> to vector<8x8xf32>
    %203 = arith.mulf %198, %202 : vector<8x8xf32>
    %cst_81 = arith.constant dense<0.000000e+00> : vector<8x8xf32>
    %204 = tpu.matmul %203, %191, %cst_81 {dimension_numbers = #tpu.dot_dimension_numbers<[1], [0], [0], [1], [0, 0, 1, 1], [], []>} : vector<8x8xf32>, vector<8x8xf32>, vector<8x8xf32> -> vector<8x8xf32>
    %205 = vector.extract_strided_slice %172 {offsets = [0, 16], sizes = [8, 8], strides = [1, 1]} : vector<8x96xf32> to vector<8x8xf32>
    %206 = vector.extract_strided_slice %172 {offsets = [0, 48], sizes = [8, 8], strides = [1, 1]} : vector<8x96xf32> to vector<8x8xf32>
    %207 = vector.extract_strided_slice %172 {offsets = [0, 80], sizes = [8, 8], strides = [1, 1]} : vector<8x96xf32> to vector<8x8xf32>
    %208 = tpu.transpose %206, [1, 0] : vector<8x8xf32> -> vector<8x8xf32>
    %cst_82 = arith.constant dense<0.000000e+00> : vector<8x8xf32>
    %209 = tpu.matmul %205, %208, %cst_82 {dimension_numbers = #tpu.dot_dimension_numbers<[1], [0], [0], [1], [0, 0, 1, 1], [], []>} : vector<8x8xf32>, vector<8x8xf32>, vector<8x8xf32> -> vector<8x8xf32>
    %cst_83 = arith.constant dense<0xFF800000> : vector<8xf32>
    %210 = vector.multi_reduction <maximumf>, %209, %cst_83 [1] : vector<8x8xf32> to vector<8xf32>
    %211 = vector.shape_cast %210 : vector<8xf32> to vector<8x1xf32>
    %212 = vector.broadcast %211 : vector<8x1xf32> to vector<8x8xf32>
    %213 = arith.subf %209, %212 : vector<8x8xf32>
    %214 = math.exp %213 : vector<8x8xf32>
    %cst_84 = arith.constant dense<0.000000e+00> : vector<8xf32>
    %215 = vector.multi_reduction <add>, %214, %cst_84 [1] : vector<8x8xf32> to vector<8xf32>
    %216 = vector.shape_cast %215 : vector<8xf32> to vector<8x1xf32>
    %217 = tpu.reciprocal %216 {approx = true} : vector<8x1xf32> -> vector<8x1xf32>
    %218 = vector.broadcast %217 : vector<8x1xf32> to vector<8x8xf32>
    %219 = arith.mulf %214, %218 : vector<8x8xf32>
    %cst_85 = arith.constant dense<0.000000e+00> : vector<8x8xf32>
    %220 = tpu.matmul %219, %207, %cst_85 {dimension_numbers = #tpu.dot_dimension_numbers<[1], [0], [0], [1], [0, 0, 1, 1], [], []>} : vector<8x8xf32>, vector<8x8xf32>, vector<8x8xf32> -> vector<8x8xf32>
    %221 = vector.extract_strided_slice %172 {offsets = [0, 24], sizes = [8, 8], strides = [1, 1]} : vector<8x96xf32> to vector<8x8xf32>
    %222 = vector.extract_strided_slice %172 {offsets = [0, 56], sizes = [8, 8], strides = [1, 1]} : vector<8x96xf32> to vector<8x8xf32>
    %223 = vector.extract_strided_slice %172 {offsets = [0, 88], sizes = [8, 8], strides = [1, 1]} : vector<8x96xf32> to vector<8x8xf32>
    %224 = tpu.transpose %222, [1, 0] : vector<8x8xf32> -> vector<8x8xf32>
    %cst_86 = arith.constant dense<0.000000e+00> : vector<8x8xf32>
    %225 = tpu.matmul %221, %224, %cst_86 {dimension_numbers = #tpu.dot_dimension_numbers<[1], [0], [0], [1], [0, 0, 1, 1], [], []>} : vector<8x8xf32>, vector<8x8xf32>, vector<8x8xf32> -> vector<8x8xf32>
    %cst_87 = arith.constant dense<0xFF800000> : vector<8xf32>
    %226 = vector.multi_reduction <maximumf>, %225, %cst_87 [1] : vector<8x8xf32> to vector<8xf32>
    %227 = vector.shape_cast %226 : vector<8xf32> to vector<8x1xf32>
    %228 = vector.broadcast %227 : vector<8x1xf32> to vector<8x8xf32>
    %229 = arith.subf %225, %228 : vector<8x8xf32>
    %230 = math.exp %229 : vector<8x8xf32>
    %cst_88 = arith.constant dense<0.000000e+00> : vector<8xf32>
    %231 = vector.multi_reduction <add>, %230, %cst_88 [1] : vector<8x8xf32> to vector<8xf32>
    %232 = vector.shape_cast %231 : vector<8xf32> to vector<8x1xf32>
    %233 = tpu.reciprocal %232 {approx = true} : vector<8x1xf32> -> vector<8x1xf32>
    %234 = vector.broadcast %233 : vector<8x1xf32> to vector<8x8xf32>
    %235 = arith.mulf %230, %234 : vector<8x8xf32>
    %cst_89 = arith.constant dense<0.000000e+00> : vector<8x8xf32>
    %236 = tpu.matmul %235, %223, %cst_89 {dimension_numbers = #tpu.dot_dimension_numbers<[1], [0], [0], [1], [0, 0, 1, 1], [], []>} : vector<8x8xf32>, vector<8x8xf32>, vector<8x8xf32> -> vector<8x8xf32>
    %237 = tpu.concatenate %188, %204, %220, %236 in 1 : vector<8x8xf32>, vector<8x8xf32>, vector<8x8xf32>, vector<8x8xf32> -> vector<8x32xf32>
    %c1_90 = arith.constant 1 : index
    %c32_91 = arith.constant 32 : index
    %c0_92 = arith.constant 0 : index
    %238 = vector.load %arg1[%c1_90, %c32_91, %c0_92] : memref<2x224x128xbf16, #tpu.memory_space<vmem>>, vector<1x32x32xbf16>
    %239 = vector.shape_cast %238 : vector<1x32x32xbf16> to vector<32x32xbf16>
    %240 = arith.truncf %237 : vector<8x32xf32> to vector<8x32xbf16>
    %cst_93 = arith.constant dense<0.000000e+00> : vector<8x32xf32>
    %241 = tpu.matmul %240, %239, %cst_93 {dimension_numbers = #tpu.dot_dimension_numbers<[1], [0], [0], [1], [0, 0, 1, 1], [], []>} : vector<8x32xbf16>, vector<32x32xbf16>, vector<8x32xf32> -> vector<8x32xf32>
    %c1_94 = arith.constant 1 : index
    %c8_95 = arith.constant 8 : index
    %c0_96 = arith.constant 0 : index
    %242 = vector.load %arg2[%c1_94, %c8_95, %c0_96] : memref<2x64x128xf32, #tpu.memory_space<vmem>>, vector<1x1x32xf32>
    %243 = vector.shape_cast %242 : vector<1x1x32xf32> to vector<1x32xf32>
    %244 = vector.broadcast %243 : vector<1x32xf32> to vector<8x32xf32>
    %245 = arith.addf %241, %244 : vector<8x32xf32>
    %246 = arith.addf %164, %245 : vector<8x32xf32>
    %c1_97 = arith.constant 1 : index
    %c32_98 = arith.constant 32 : index
    %c0_99 = arith.constant 0 : index
    %247 = vector.load %arg2[%c1_97, %c32_98, %c0_99] : memref<2x64x128xf32, #tpu.memory_space<vmem>>, vector<1x1x32xf32>
    %248 = vector.shape_cast %247 : vector<1x1x32xf32> to vector<1x32xf32>
    %c1_100 = arith.constant 1 : index
    %c40_101 = arith.constant 40 : index
    %c0_102 = arith.constant 0 : index
    %249 = vector.load %arg2[%c1_100, %c40_101, %c0_102] : memref<2x64x128xf32, #tpu.memory_space<vmem>>, vector<1x1x32xf32>
    %250 = vector.shape_cast %249 : vector<1x1x32xf32> to vector<1x32xf32>
    %cst_103 = arith.constant dense<0.000000e+00> : vector<8xf32>
    %251 = vector.multi_reduction <add>, %246, %cst_103 [1] : vector<8x32xf32> to vector<8xf32>
    %252 = vector.shape_cast %251 : vector<8xf32> to vector<8x1xf32>
    %cst_104 = arith.constant 3.200000e+01 : f32
    %253 = vector.broadcast %cst_104 : f32 to vector<8x1xf32>
    %254 = arith.divf %252, %253 : vector<8x1xf32>
    %255 = arith.mulf %246, %246 : vector<8x32xf32>
    %cst_105 = arith.constant dense<0.000000e+00> : vector<8xf32>
    %256 = vector.multi_reduction <add>, %255, %cst_105 [1] : vector<8x32xf32> to vector<8xf32>
    %257 = vector.shape_cast %256 : vector<8xf32> to vector<8x1xf32>
    %cst_106 = arith.constant 3.200000e+01 : f32
    %258 = vector.broadcast %cst_106 : f32 to vector<8x1xf32>
    %259 = arith.divf %257, %258 : vector<8x1xf32>
    %260 = vector.broadcast %254 : vector<8x1xf32> to vector<8x32xf32>
    %261 = arith.subf %246, %260 : vector<8x32xf32>
    %262 = arith.mulf %254, %254 : vector<8x1xf32>
    %263 = arith.subf %259, %262 : vector<8x1xf32>
    %cst_107 = arith.constant 9.99999974E-6 : f32
    %264 = vector.broadcast %cst_107 : f32 to vector<8x1xf32>
    %265 = arith.addf %263, %264 : vector<8x1xf32>
    %266 = math.rsqrt %265 : vector<8x1xf32>
    %267 = vector.broadcast %266 : vector<8x1xf32> to vector<8x32xf32>
    %268 = arith.mulf %261, %267 : vector<8x32xf32>
    %269 = vector.broadcast %248 : vector<1x32xf32> to vector<8x32xf32>
    %270 = arith.mulf %268, %269 : vector<8x32xf32>
    %271 = vector.broadcast %250 : vector<1x32xf32> to vector<8x32xf32>
    %272 = arith.addf %270, %271 : vector<8x32xf32>
    %c1_108 = arith.constant 1 : index
    %c64_109 = arith.constant 64 : index
    %c0_110 = arith.constant 0 : index
    %273 = vector.load %arg1[%c1_108, %c64_109, %c0_110] : memref<2x224x128xbf16, #tpu.memory_space<vmem>>, vector<1x32x128xbf16>
    %274 = vector.shape_cast %273 : vector<1x32x128xbf16> to vector<32x128xbf16>
    %275 = arith.truncf %272 : vector<8x32xf32> to vector<8x32xbf16>
    %cst_111 = arith.constant dense<0.000000e+00> : vector<8x128xf32>
    %276 = tpu.matmul %275, %274, %cst_111 {dimension_numbers = #tpu.dot_dimension_numbers<[1], [0], [0], [1], [0, 0, 1, 1], [], []>} : vector<8x32xbf16>, vector<32x128xbf16>, vector<8x128xf32> -> vector<8x128xf32>
    %c1_112 = arith.constant 1 : index
    %c16_113 = arith.constant 16 : index
    %c0_114 = arith.constant 0 : index
    %277 = vector.load %arg2[%c1_112, %c16_113, %c0_114] : memref<2x64x128xf32, #tpu.memory_space<vmem>>, vector<1x1x128xf32>
    %278 = vector.shape_cast %277 : vector<1x1x128xf32> to vector<1x128xf32>
    %279 = vector.broadcast %278 : vector<1x128xf32> to vector<8x128xf32>
    %280 = arith.addf %276, %279 : vector<8x128xf32>
    %cst_115 = arith.constant 0.000000e+00 : f32
    %281 = vector.broadcast %cst_115 : f32 to vector<8x128xf32>
    %282 = arith.maximumf %280, %281 : vector<8x128xf32>
    %c1_116 = arith.constant 1 : index
    %c96_117 = arith.constant 96 : index
    %c0_118 = arith.constant 0 : index
    %283 = vector.load %arg1[%c1_116, %c96_117, %c0_118] : memref<2x224x128xbf16, #tpu.memory_space<vmem>>, vector<1x128x32xbf16>
    %284 = vector.shape_cast %283 : vector<1x128x32xbf16> to vector<128x32xbf16>
    %285 = arith.truncf %282 : vector<8x128xf32> to vector<8x128xbf16>
    %cst_119 = arith.constant dense<0.000000e+00> : vector<8x32xf32>
    %286 = tpu.matmul %285, %284, %cst_119 {dimension_numbers = #tpu.dot_dimension_numbers<[1], [0], [0], [1], [0, 0, 1, 1], [], []>} : vector<8x128xbf16>, vector<128x32xbf16>, vector<8x32xf32> -> vector<8x32xf32>
    %c1_120 = arith.constant 1 : index
    %c24_121 = arith.constant 24 : index
    %c0_122 = arith.constant 0 : index
    %287 = vector.load %arg2[%c1_120, %c24_121, %c0_122] : memref<2x64x128xf32, #tpu.memory_space<vmem>>, vector<1x1x32xf32>
    %288 = vector.shape_cast %287 : vector<1x1x32xf32> to vector<1x32xf32>
    %289 = vector.broadcast %288 : vector<1x32xf32> to vector<8x32xf32>
    %290 = arith.addf %286, %289 : vector<8x32xf32>
    %291 = arith.addf %272, %290 : vector<8x32xf32>
    %c1_123 = arith.constant 1 : index
    %c48_124 = arith.constant 48 : index
    %c0_125 = arith.constant 0 : index
    %292 = vector.load %arg2[%c1_123, %c48_124, %c0_125] : memref<2x64x128xf32, #tpu.memory_space<vmem>>, vector<1x1x32xf32>
    %293 = vector.shape_cast %292 : vector<1x1x32xf32> to vector<1x32xf32>
    %c1_126 = arith.constant 1 : index
    %c56_127 = arith.constant 56 : index
    %c0_128 = arith.constant 0 : index
    %294 = vector.load %arg2[%c1_126, %c56_127, %c0_128] : memref<2x64x128xf32, #tpu.memory_space<vmem>>, vector<1x1x32xf32>
    %295 = vector.shape_cast %294 : vector<1x1x32xf32> to vector<1x32xf32>
    %cst_129 = arith.constant dense<0.000000e+00> : vector<8xf32>
    %296 = vector.multi_reduction <add>, %291, %cst_129 [1] : vector<8x32xf32> to vector<8xf32>
    %297 = vector.shape_cast %296 : vector<8xf32> to vector<8x1xf32>
    %cst_130 = arith.constant 3.200000e+01 : f32
    %298 = vector.broadcast %cst_130 : f32 to vector<8x1xf32>
    %299 = arith.divf %297, %298 : vector<8x1xf32>
    %300 = arith.mulf %291, %291 : vector<8x32xf32>
    %cst_131 = arith.constant dense<0.000000e+00> : vector<8xf32>
    %301 = vector.multi_reduction <add>, %300, %cst_131 [1] : vector<8x32xf32> to vector<8xf32>
    %302 = vector.shape_cast %301 : vector<8xf32> to vector<8x1xf32>
    %cst_132 = arith.constant 3.200000e+01 : f32
    %303 = vector.broadcast %cst_132 : f32 to vector<8x1xf32>
    %304 = arith.divf %302, %303 : vector<8x1xf32>
    %305 = vector.broadcast %299 : vector<8x1xf32> to vector<8x32xf32>
    %306 = arith.subf %291, %305 : vector<8x32xf32>
    %307 = arith.mulf %299, %299 : vector<8x1xf32>
    %308 = arith.subf %304, %307 : vector<8x1xf32>
    %cst_133 = arith.constant 9.99999974E-6 : f32
    %309 = vector.broadcast %cst_133 : f32 to vector<8x1xf32>
    %310 = arith.addf %308, %309 : vector<8x1xf32>
    %311 = math.rsqrt %310 : vector<8x1xf32>
    %312 = vector.broadcast %311 : vector<8x1xf32> to vector<8x32xf32>
    %313 = arith.mulf %306, %312 : vector<8x32xf32>
    %314 = vector.broadcast %293 : vector<1x32xf32> to vector<8x32xf32>
    %315 = arith.mulf %313, %314 : vector<8x32xf32>
    %316 = vector.broadcast %295 : vector<1x32xf32> to vector<8x32xf32>
    %317 = arith.addf %315, %316 : vector<8x32xf32>
    %318 = arith.addf %317, %9 : vector<8x32xf32>
    %319 = arith.truncf %318 : vector<8x32xf32> to vector<8x32xbf16>
    %cst_134 = arith.constant dense<0.000000e+00> : vector<8x64xf32>
    %320 = tpu.matmul %319, %2, %cst_134 {dimension_numbers = #tpu.dot_dimension_numbers<[1], [0], [0], [1], [0, 0, 1, 1], [], []>} : vector<8x32xbf16>, vector<32x64xbf16>, vector<8x64xf32> -> vector<8x64xf32>
    %321 = vector.broadcast %3 : vector<1x64xf32> to vector<8x64xf32>
    %322 = arith.addf %320, %321 : vector<8x64xf32>
    %cst_135 = arith.constant 0.000000e+00 : f32
    %323 = vector.broadcast %cst_135 : f32 to vector<8x64xf32>
    %324 = arith.maximumf %322, %323 : vector<8x64xf32>
    %c96_136 = arith.constant 96 : index
    %c0_137 = arith.constant 0 : index
    %325 = vector.load %arg3[%c96_136, %c0_137] : memref<288x128xbf16, #tpu.memory_space<vmem>>, vector<64x2xbf16>
    %326 = arith.truncf %324 : vector<8x64xf32> to vector<8x64xbf16>
    %cst_138 = arith.constant dense<0.000000e+00> : vector<8x2xf32>
    %327 = tpu.matmul %326, %325, %cst_138 {dimension_numbers = #tpu.dot_dimension_numbers<[1], [0], [0], [1], [0, 0, 1, 1], [], []>} : vector<8x64xbf16>, vector<64x2xbf16>, vector<8x2xf32> -> vector<8x2xf32>
    %c96_139 = arith.constant 96 : index
    %c0_140 = arith.constant 0 : index
    %328 = vector.load %arg4[%c96_139, %c0_140] : memref<120x128xf32, #tpu.memory_space<vmem>>, vector<1x2xf32>
    %329 = vector.broadcast %328 : vector<1x2xf32> to vector<8x2xf32>
    %330 = arith.addf %327, %329 : vector<8x2xf32>
    %c16_141 = arith.constant 16 : index
    %c0_142 = arith.constant 0 : index
    %331 = vector.load %arg3[%c16_141, %c0_142] : memref<288x128xbf16, #tpu.memory_space<vmem>>, vector<16x32xbf16>
    %332 = arith.truncf %0 : vector<8x16xf32> to vector<8x16xbf16>
    %cst_143 = arith.constant dense<0.000000e+00> : vector<8x32xf32>
    %333 = tpu.matmul %332, %331, %cst_143 {dimension_numbers = #tpu.dot_dimension_numbers<[1], [0], [0], [1], [0, 0, 1, 1], [], []>} : vector<8x16xbf16>, vector<16x32xbf16>, vector<8x32xf32> -> vector<8x32xf32>
    %c24_144 = arith.constant 24 : index
    %c0_145 = arith.constant 0 : index
    %334 = vector.load %arg4[%c24_144, %c0_145] : memref<120x128xf32, #tpu.memory_space<vmem>>, vector<1x32xf32>
    %335 = vector.broadcast %334 : vector<1x32xf32> to vector<8x32xf32>
    %336 = arith.addf %333, %335 : vector<8x32xf32>
    %c16_146 = arith.constant 16 : index
    %c0_147 = arith.constant 0 : index
    %337 = vector.load %arg4[%c16_146, %c0_147] : memref<120x128xf32, #tpu.memory_space<vmem>>, vector<2x32xf32>
    %338 = vector.extract_strided_slice %330 {offsets = [0, 0], sizes = [8, 1], strides = [1, 1]} : vector<8x2xf32> to vector<8x1xf32>
    %339 = vector.extract_strided_slice %337 {offsets = [0, 0], sizes = [1, 32], strides = [1, 1]} : vector<2x32xf32> to vector<1x32xf32>
    %340 = vector.broadcast %338 : vector<8x1xf32> to vector<8x32xf32>
    %341 = vector.broadcast %339 : vector<1x32xf32> to vector<8x32xf32>
    %342 = arith.mulf %340, %341 : vector<8x32xf32>
    %343 = arith.addf %336, %342 : vector<8x32xf32>
    %344 = vector.extract_strided_slice %330 {offsets = [0, 1], sizes = [8, 1], strides = [1, 1]} : vector<8x2xf32> to vector<8x1xf32>
    %345 = vector.extract_strided_slice %337 {offsets = [1, 0], sizes = [1, 32], strides = [1, 1]} : vector<2x32xf32> to vector<1x32xf32>
    %346 = vector.broadcast %344 : vector<8x1xf32> to vector<8x32xf32>
    %347 = vector.broadcast %345 : vector<1x32xf32> to vector<8x32xf32>
    %348 = arith.mulf %346, %347 : vector<8x32xf32>
    %349 = arith.addf %343, %348 : vector<8x32xf32>
    %350 = vector.broadcast %1 : vector<1x32xf32> to vector<8x32xf32>
    %351 = arith.addf %349, %350 : vector<8x32xf32>
    %c0_148 = arith.constant 0 : index
    %c0_149 = arith.constant 0 : index
    %c0_150 = arith.constant 0 : index
    %352 = vector.load %arg1[%c0_148, %c0_149, %c0_150] : memref<2x224x128xbf16, #tpu.memory_space<vmem>>, vector<1x32x96xbf16>
    %353 = vector.shape_cast %352 : vector<1x32x96xbf16> to vector<32x96xbf16>
    %354 = arith.truncf %351 : vector<8x32xf32> to vector<8x32xbf16>
    %cst_151 = arith.constant dense<0.000000e+00> : vector<8x96xf32>
    %355 = tpu.matmul %354, %353, %cst_151 {dimension_numbers = #tpu.dot_dimension_numbers<[1], [0], [0], [1], [0, 0, 1, 1], [], []>} : vector<8x32xbf16>, vector<32x96xbf16>, vector<8x96xf32> -> vector<8x96xf32>
    %c0_152 = arith.constant 0 : index
    %c0_153 = arith.constant 0 : index
    %c0_154 = arith.constant 0 : index
    %356 = vector.load %arg2[%c0_152, %c0_153, %c0_154] : memref<2x64x128xf32, #tpu.memory_space<vmem>>, vector<1x1x96xf32>
    %357 = vector.shape_cast %356 : vector<1x1x96xf32> to vector<1x96xf32>
    %358 = vector.broadcast %357 : vector<1x96xf32> to vector<8x96xf32>
    %359 = arith.addf %355, %358 : vector<8x96xf32>
    %360 = vector.extract_strided_slice %359 {offsets = [0, 0], sizes = [8, 8], strides = [1, 1]} : vector<8x96xf32> to vector<8x8xf32>
    %361 = vector.extract_strided_slice %359 {offsets = [0, 32], sizes = [8, 8], strides = [1, 1]} : vector<8x96xf32> to vector<8x8xf32>
    %362 = vector.extract_strided_slice %359 {offsets = [0, 64], sizes = [8, 8], strides = [1, 1]} : vector<8x96xf32> to vector<8x8xf32>
    %363 = tpu.transpose %361, [1, 0] : vector<8x8xf32> -> vector<8x8xf32>
    %cst_155 = arith.constant dense<0.000000e+00> : vector<8x8xf32>
    %364 = tpu.matmul %360, %363, %cst_155 {dimension_numbers = #tpu.dot_dimension_numbers<[1], [0], [0], [1], [0, 0, 1, 1], [], []>} : vector<8x8xf32>, vector<8x8xf32>, vector<8x8xf32> -> vector<8x8xf32>
    %cst_156 = arith.constant dense<0xFF800000> : vector<8xf32>
    %365 = vector.multi_reduction <maximumf>, %364, %cst_156 [1] : vector<8x8xf32> to vector<8xf32>
    %366 = vector.shape_cast %365 : vector<8xf32> to vector<8x1xf32>
    %367 = vector.broadcast %366 : vector<8x1xf32> to vector<8x8xf32>
    %368 = arith.subf %364, %367 : vector<8x8xf32>
    %369 = math.exp %368 : vector<8x8xf32>
    %cst_157 = arith.constant dense<0.000000e+00> : vector<8xf32>
    %370 = vector.multi_reduction <add>, %369, %cst_157 [1] : vector<8x8xf32> to vector<8xf32>
    %371 = vector.shape_cast %370 : vector<8xf32> to vector<8x1xf32>
    %372 = tpu.reciprocal %371 {approx = true} : vector<8x1xf32> -> vector<8x1xf32>
    %373 = vector.broadcast %372 : vector<8x1xf32> to vector<8x8xf32>
    %374 = arith.mulf %369, %373 : vector<8x8xf32>
    %cst_158 = arith.constant dense<0.000000e+00> : vector<8x8xf32>
    %375 = tpu.matmul %374, %362, %cst_158 {dimension_numbers = #tpu.dot_dimension_numbers<[1], [0], [0], [1], [0, 0, 1, 1], [], []>} : vector<8x8xf32>, vector<8x8xf32>, vector<8x8xf32> -> vector<8x8xf32>
    %376 = vector.extract_strided_slice %359 {offsets = [0, 8], sizes = [8, 8], strides = [1, 1]} : vector<8x96xf32> to vector<8x8xf32>
    %377 = vector.extract_strided_slice %359 {offsets = [0, 40], sizes = [8, 8], strides = [1, 1]} : vector<8x96xf32> to vector<8x8xf32>
    %378 = vector.extract_strided_slice %359 {offsets = [0, 72], sizes = [8, 8], strides = [1, 1]} : vector<8x96xf32> to vector<8x8xf32>
    %379 = tpu.transpose %377, [1, 0] : vector<8x8xf32> -> vector<8x8xf32>
    %cst_159 = arith.constant dense<0.000000e+00> : vector<8x8xf32>
    %380 = tpu.matmul %376, %379, %cst_159 {dimension_numbers = #tpu.dot_dimension_numbers<[1], [0], [0], [1], [0, 0, 1, 1], [], []>} : vector<8x8xf32>, vector<8x8xf32>, vector<8x8xf32> -> vector<8x8xf32>
    %cst_160 = arith.constant dense<0xFF800000> : vector<8xf32>
    %381 = vector.multi_reduction <maximumf>, %380, %cst_160 [1] : vector<8x8xf32> to vector<8xf32>
    %382 = vector.shape_cast %381 : vector<8xf32> to vector<8x1xf32>
    %383 = vector.broadcast %382 : vector<8x1xf32> to vector<8x8xf32>
    %384 = arith.subf %380, %383 : vector<8x8xf32>
    %385 = math.exp %384 : vector<8x8xf32>
    %cst_161 = arith.constant dense<0.000000e+00> : vector<8xf32>
    %386 = vector.multi_reduction <add>, %385, %cst_161 [1] : vector<8x8xf32> to vector<8xf32>
    %387 = vector.shape_cast %386 : vector<8xf32> to vector<8x1xf32>
    %388 = tpu.reciprocal %387 {approx = true} : vector<8x1xf32> -> vector<8x1xf32>
    %389 = vector.broadcast %388 : vector<8x1xf32> to vector<8x8xf32>
    %390 = arith.mulf %385, %389 : vector<8x8xf32>
    %cst_162 = arith.constant dense<0.000000e+00> : vector<8x8xf32>
    %391 = tpu.matmul %390, %378, %cst_162 {dimension_numbers = #tpu.dot_dimension_numbers<[1], [0], [0], [1], [0, 0, 1, 1], [], []>} : vector<8x8xf32>, vector<8x8xf32>, vector<8x8xf32> -> vector<8x8xf32>
    %392 = vector.extract_strided_slice %359 {offsets = [0, 16], sizes = [8, 8], strides = [1, 1]} : vector<8x96xf32> to vector<8x8xf32>
    %393 = vector.extract_strided_slice %359 {offsets = [0, 48], sizes = [8, 8], strides = [1, 1]} : vector<8x96xf32> to vector<8x8xf32>
    %394 = vector.extract_strided_slice %359 {offsets = [0, 80], sizes = [8, 8], strides = [1, 1]} : vector<8x96xf32> to vector<8x8xf32>
    %395 = tpu.transpose %393, [1, 0] : vector<8x8xf32> -> vector<8x8xf32>
    %cst_163 = arith.constant dense<0.000000e+00> : vector<8x8xf32>
    %396 = tpu.matmul %392, %395, %cst_163 {dimension_numbers = #tpu.dot_dimension_numbers<[1], [0], [0], [1], [0, 0, 1, 1], [], []>} : vector<8x8xf32>, vector<8x8xf32>, vector<8x8xf32> -> vector<8x8xf32>
    %cst_164 = arith.constant dense<0xFF800000> : vector<8xf32>
    %397 = vector.multi_reduction <maximumf>, %396, %cst_164 [1] : vector<8x8xf32> to vector<8xf32>
    %398 = vector.shape_cast %397 : vector<8xf32> to vector<8x1xf32>
    %399 = vector.broadcast %398 : vector<8x1xf32> to vector<8x8xf32>
    %400 = arith.subf %396, %399 : vector<8x8xf32>
    %401 = math.exp %400 : vector<8x8xf32>
    %cst_165 = arith.constant dense<0.000000e+00> : vector<8xf32>
    %402 = vector.multi_reduction <add>, %401, %cst_165 [1] : vector<8x8xf32> to vector<8xf32>
    %403 = vector.shape_cast %402 : vector<8xf32> to vector<8x1xf32>
    %404 = tpu.reciprocal %403 {approx = true} : vector<8x1xf32> -> vector<8x1xf32>
    %405 = vector.broadcast %404 : vector<8x1xf32> to vector<8x8xf32>
    %406 = arith.mulf %401, %405 : vector<8x8xf32>
    %cst_166 = arith.constant dense<0.000000e+00> : vector<8x8xf32>
    %407 = tpu.matmul %406, %394, %cst_166 {dimension_numbers = #tpu.dot_dimension_numbers<[1], [0], [0], [1], [0, 0, 1, 1], [], []>} : vector<8x8xf32>, vector<8x8xf32>, vector<8x8xf32> -> vector<8x8xf32>
    %408 = vector.extract_strided_slice %359 {offsets = [0, 24], sizes = [8, 8], strides = [1, 1]} : vector<8x96xf32> to vector<8x8xf32>
    %409 = vector.extract_strided_slice %359 {offsets = [0, 56], sizes = [8, 8], strides = [1, 1]} : vector<8x96xf32> to vector<8x8xf32>
    %410 = vector.extract_strided_slice %359 {offsets = [0, 88], sizes = [8, 8], strides = [1, 1]} : vector<8x96xf32> to vector<8x8xf32>
    %411 = tpu.transpose %409, [1, 0] : vector<8x8xf32> -> vector<8x8xf32>
    %cst_167 = arith.constant dense<0.000000e+00> : vector<8x8xf32>
    %412 = tpu.matmul %408, %411, %cst_167 {dimension_numbers = #tpu.dot_dimension_numbers<[1], [0], [0], [1], [0, 0, 1, 1], [], []>} : vector<8x8xf32>, vector<8x8xf32>, vector<8x8xf32> -> vector<8x8xf32>
    %cst_168 = arith.constant dense<0xFF800000> : vector<8xf32>
    %413 = vector.multi_reduction <maximumf>, %412, %cst_168 [1] : vector<8x8xf32> to vector<8xf32>
    %414 = vector.shape_cast %413 : vector<8xf32> to vector<8x1xf32>
    %415 = vector.broadcast %414 : vector<8x1xf32> to vector<8x8xf32>
    %416 = arith.subf %412, %415 : vector<8x8xf32>
    %417 = math.exp %416 : vector<8x8xf32>
    %cst_169 = arith.constant dense<0.000000e+00> : vector<8xf32>
    %418 = vector.multi_reduction <add>, %417, %cst_169 [1] : vector<8x8xf32> to vector<8xf32>
    %419 = vector.shape_cast %418 : vector<8xf32> to vector<8x1xf32>
    %420 = tpu.reciprocal %419 {approx = true} : vector<8x1xf32> -> vector<8x1xf32>
    %421 = vector.broadcast %420 : vector<8x1xf32> to vector<8x8xf32>
    %422 = arith.mulf %417, %421 : vector<8x8xf32>
    %cst_170 = arith.constant dense<0.000000e+00> : vector<8x8xf32>
    %423 = tpu.matmul %422, %410, %cst_170 {dimension_numbers = #tpu.dot_dimension_numbers<[1], [0], [0], [1], [0, 0, 1, 1], [], []>} : vector<8x8xf32>, vector<8x8xf32>, vector<8x8xf32> -> vector<8x8xf32>
    %424 = tpu.concatenate %375, %391, %407, %423 in 1 : vector<8x8xf32>, vector<8x8xf32>, vector<8x8xf32>, vector<8x8xf32> -> vector<8x32xf32>
    %c0_171 = arith.constant 0 : index
    %c32_172 = arith.constant 32 : index
    %c0_173 = arith.constant 0 : index
    %425 = vector.load %arg1[%c0_171, %c32_172, %c0_173] : memref<2x224x128xbf16, #tpu.memory_space<vmem>>, vector<1x32x32xbf16>
    %426 = vector.shape_cast %425 : vector<1x32x32xbf16> to vector<32x32xbf16>
    %427 = arith.truncf %424 : vector<8x32xf32> to vector<8x32xbf16>
    %cst_174 = arith.constant dense<0.000000e+00> : vector<8x32xf32>
    %428 = tpu.matmul %427, %426, %cst_174 {dimension_numbers = #tpu.dot_dimension_numbers<[1], [0], [0], [1], [0, 0, 1, 1], [], []>} : vector<8x32xbf16>, vector<32x32xbf16>, vector<8x32xf32> -> vector<8x32xf32>
    %c0_175 = arith.constant 0 : index
    %c8_176 = arith.constant 8 : index
    %c0_177 = arith.constant 0 : index
    %429 = vector.load %arg2[%c0_175, %c8_176, %c0_177] : memref<2x64x128xf32, #tpu.memory_space<vmem>>, vector<1x1x32xf32>
    %430 = vector.shape_cast %429 : vector<1x1x32xf32> to vector<1x32xf32>
    %431 = vector.broadcast %430 : vector<1x32xf32> to vector<8x32xf32>
    %432 = arith.addf %428, %431 : vector<8x32xf32>
    %433 = arith.addf %351, %432 : vector<8x32xf32>
    %c0_178 = arith.constant 0 : index
    %c32_179 = arith.constant 32 : index
    %c0_180 = arith.constant 0 : index
    %434 = vector.load %arg2[%c0_178, %c32_179, %c0_180] : memref<2x64x128xf32, #tpu.memory_space<vmem>>, vector<1x1x32xf32>
    %435 = vector.shape_cast %434 : vector<1x1x32xf32> to vector<1x32xf32>
    %c0_181 = arith.constant 0 : index
    %c40_182 = arith.constant 40 : index
    %c0_183 = arith.constant 0 : index
    %436 = vector.load %arg2[%c0_181, %c40_182, %c0_183] : memref<2x64x128xf32, #tpu.memory_space<vmem>>, vector<1x1x32xf32>
    %437 = vector.shape_cast %436 : vector<1x1x32xf32> to vector<1x32xf32>
    %cst_184 = arith.constant dense<0.000000e+00> : vector<8xf32>
    %438 = vector.multi_reduction <add>, %433, %cst_184 [1] : vector<8x32xf32> to vector<8xf32>
    %439 = vector.shape_cast %438 : vector<8xf32> to vector<8x1xf32>
    %cst_185 = arith.constant 3.200000e+01 : f32
    %440 = vector.broadcast %cst_185 : f32 to vector<8x1xf32>
    %441 = arith.divf %439, %440 : vector<8x1xf32>
    %442 = arith.mulf %433, %433 : vector<8x32xf32>
    %cst_186 = arith.constant dense<0.000000e+00> : vector<8xf32>
    %443 = vector.multi_reduction <add>, %442, %cst_186 [1] : vector<8x32xf32> to vector<8xf32>
    %444 = vector.shape_cast %443 : vector<8xf32> to vector<8x1xf32>
    %cst_187 = arith.constant 3.200000e+01 : f32
    %445 = vector.broadcast %cst_187 : f32 to vector<8x1xf32>
    %446 = arith.divf %444, %445 : vector<8x1xf32>
    %447 = vector.broadcast %441 : vector<8x1xf32> to vector<8x32xf32>
    %448 = arith.subf %433, %447 : vector<8x32xf32>
    %449 = arith.mulf %441, %441 : vector<8x1xf32>
    %450 = arith.subf %446, %449 : vector<8x1xf32>
    %cst_188 = arith.constant 9.99999974E-6 : f32
    %451 = vector.broadcast %cst_188 : f32 to vector<8x1xf32>
    %452 = arith.addf %450, %451 : vector<8x1xf32>
    %453 = math.rsqrt %452 : vector<8x1xf32>
    %454 = vector.broadcast %453 : vector<8x1xf32> to vector<8x32xf32>
    %455 = arith.mulf %448, %454 : vector<8x32xf32>
    %456 = vector.broadcast %435 : vector<1x32xf32> to vector<8x32xf32>
    %457 = arith.mulf %455, %456 : vector<8x32xf32>
    %458 = vector.broadcast %437 : vector<1x32xf32> to vector<8x32xf32>
    %459 = arith.addf %457, %458 : vector<8x32xf32>
    %c0_189 = arith.constant 0 : index
    %c64_190 = arith.constant 64 : index
    %c0_191 = arith.constant 0 : index
    %460 = vector.load %arg1[%c0_189, %c64_190, %c0_191] : memref<2x224x128xbf16, #tpu.memory_space<vmem>>, vector<1x32x128xbf16>
    %461 = vector.shape_cast %460 : vector<1x32x128xbf16> to vector<32x128xbf16>
    %462 = arith.truncf %459 : vector<8x32xf32> to vector<8x32xbf16>
    %cst_192 = arith.constant dense<0.000000e+00> : vector<8x128xf32>
    %463 = tpu.matmul %462, %461, %cst_192 {dimension_numbers = #tpu.dot_dimension_numbers<[1], [0], [0], [1], [0, 0, 1, 1], [], []>} : vector<8x32xbf16>, vector<32x128xbf16>, vector<8x128xf32> -> vector<8x128xf32>
    %c0_193 = arith.constant 0 : index
    %c16_194 = arith.constant 16 : index
    %c0_195 = arith.constant 0 : index
    %464 = vector.load %arg2[%c0_193, %c16_194, %c0_195] : memref<2x64x128xf32, #tpu.memory_space<vmem>>, vector<1x1x128xf32>
    %465 = vector.shape_cast %464 : vector<1x1x128xf32> to vector<1x128xf32>
    %466 = vector.broadcast %465 : vector<1x128xf32> to vector<8x128xf32>
    %467 = arith.addf %463, %466 : vector<8x128xf32>
    %cst_196 = arith.constant 0.000000e+00 : f32
    %468 = vector.broadcast %cst_196 : f32 to vector<8x128xf32>
    %469 = arith.maximumf %467, %468 : vector<8x128xf32>
    %c0_197 = arith.constant 0 : index
    %c96_198 = arith.constant 96 : index
    %c0_199 = arith.constant 0 : index
    %470 = vector.load %arg1[%c0_197, %c96_198, %c0_199] : memref<2x224x128xbf16, #tpu.memory_space<vmem>>, vector<1x128x32xbf16>
    %471 = vector.shape_cast %470 : vector<1x128x32xbf16> to vector<128x32xbf16>
    %472 = arith.truncf %469 : vector<8x128xf32> to vector<8x128xbf16>
    %cst_200 = arith.constant dense<0.000000e+00> : vector<8x32xf32>
    %473 = tpu.matmul %472, %471, %cst_200 {dimension_numbers = #tpu.dot_dimension_numbers<[1], [0], [0], [1], [0, 0, 1, 1], [], []>} : vector<8x128xbf16>, vector<128x32xbf16>, vector<8x32xf32> -> vector<8x32xf32>
    %c0_201 = arith.constant 0 : index
    %c24_202 = arith.constant 24 : index
    %c0_203 = arith.constant 0 : index
    %474 = vector.load %arg2[%c0_201, %c24_202, %c0_203] : memref<2x64x128xf32, #tpu.memory_space<vmem>>, vector<1x1x32xf32>
    %475 = vector.shape_cast %474 : vector<1x1x32xf32> to vector<1x32xf32>
    %476 = vector.broadcast %475 : vector<1x32xf32> to vector<8x32xf32>
    %477 = arith.addf %473, %476 : vector<8x32xf32>
    %478 = arith.addf %459, %477 : vector<8x32xf32>
    %c0_204 = arith.constant 0 : index
    %c48_205 = arith.constant 48 : index
    %c0_206 = arith.constant 0 : index
    %479 = vector.load %arg2[%c0_204, %c48_205, %c0_206] : memref<2x64x128xf32, #tpu.memory_space<vmem>>, vector<1x1x32xf32>
    %480 = vector.shape_cast %479 : vector<1x1x32xf32> to vector<1x32xf32>
    %c0_207 = arith.constant 0 : index
    %c56_208 = arith.constant 56 : index
    %c0_209 = arith.constant 0 : index
    %481 = vector.load %arg2[%c0_207, %c56_208, %c0_209] : memref<2x64x128xf32, #tpu.memory_space<vmem>>, vector<1x1x32xf32>
    %482 = vector.shape_cast %481 : vector<1x1x32xf32> to vector<1x32xf32>
    %cst_210 = arith.constant dense<0.000000e+00> : vector<8xf32>
    %483 = vector.multi_reduction <add>, %478, %cst_210 [1] : vector<8x32xf32> to vector<8xf32>
    %484 = vector.shape_cast %483 : vector<8xf32> to vector<8x1xf32>
    %cst_211 = arith.constant 3.200000e+01 : f32
    %485 = vector.broadcast %cst_211 : f32 to vector<8x1xf32>
    %486 = arith.divf %484, %485 : vector<8x1xf32>
    %487 = arith.mulf %478, %478 : vector<8x32xf32>
    %cst_212 = arith.constant dense<0.000000e+00> : vector<8xf32>
    %488 = vector.multi_reduction <add>, %487, %cst_212 [1] : vector<8x32xf32> to vector<8xf32>
    %489 = vector.shape_cast %488 : vector<8xf32> to vector<8x1xf32>
    %cst_213 = arith.constant 3.200000e+01 : f32
    %490 = vector.broadcast %cst_213 : f32 to vector<8x1xf32>
    %491 = arith.divf %489, %490 : vector<8x1xf32>
    %492 = vector.broadcast %486 : vector<8x1xf32> to vector<8x32xf32>
    %493 = arith.subf %478, %492 : vector<8x32xf32>
    %494 = arith.mulf %486, %486 : vector<8x1xf32>
    %495 = arith.subf %491, %494 : vector<8x1xf32>
    %cst_214 = arith.constant 9.99999974E-6 : f32
    %496 = vector.broadcast %cst_214 : f32 to vector<8x1xf32>
    %497 = arith.addf %495, %496 : vector<8x1xf32>
    %498 = math.rsqrt %497 : vector<8x1xf32>
    %499 = vector.broadcast %498 : vector<8x1xf32> to vector<8x32xf32>
    %500 = arith.mulf %493, %499 : vector<8x32xf32>
    %501 = vector.broadcast %480 : vector<1x32xf32> to vector<8x32xf32>
    %502 = arith.mulf %500, %501 : vector<8x32xf32>
    %503 = vector.broadcast %482 : vector<1x32xf32> to vector<8x32xf32>
    %504 = arith.addf %502, %503 : vector<8x32xf32>
    %c1_215 = arith.constant 1 : index
    %c0_216 = arith.constant 0 : index
    %c0_217 = arith.constant 0 : index
    %505 = vector.load %arg1[%c1_215, %c0_216, %c0_217] : memref<2x224x128xbf16, #tpu.memory_space<vmem>>, vector<1x32x96xbf16>
    %506 = vector.shape_cast %505 : vector<1x32x96xbf16> to vector<32x96xbf16>
    %507 = arith.truncf %504 : vector<8x32xf32> to vector<8x32xbf16>
    %cst_218 = arith.constant dense<0.000000e+00> : vector<8x96xf32>
    %508 = tpu.matmul %507, %506, %cst_218 {dimension_numbers = #tpu.dot_dimension_numbers<[1], [0], [0], [1], [0, 0, 1, 1], [], []>} : vector<8x32xbf16>, vector<32x96xbf16>, vector<8x96xf32> -> vector<8x96xf32>
    %c1_219 = arith.constant 1 : index
    %c0_220 = arith.constant 0 : index
    %c0_221 = arith.constant 0 : index
    %509 = vector.load %arg2[%c1_219, %c0_220, %c0_221] : memref<2x64x128xf32, #tpu.memory_space<vmem>>, vector<1x1x96xf32>
    %510 = vector.shape_cast %509 : vector<1x1x96xf32> to vector<1x96xf32>
    %511 = vector.broadcast %510 : vector<1x96xf32> to vector<8x96xf32>
    %512 = arith.addf %508, %511 : vector<8x96xf32>
    %513 = vector.extract_strided_slice %512 {offsets = [0, 0], sizes = [8, 8], strides = [1, 1]} : vector<8x96xf32> to vector<8x8xf32>
    %514 = vector.extract_strided_slice %512 {offsets = [0, 32], sizes = [8, 8], strides = [1, 1]} : vector<8x96xf32> to vector<8x8xf32>
    %515 = vector.extract_strided_slice %512 {offsets = [0, 64], sizes = [8, 8], strides = [1, 1]} : vector<8x96xf32> to vector<8x8xf32>
    %516 = tpu.transpose %514, [1, 0] : vector<8x8xf32> -> vector<8x8xf32>
    %cst_222 = arith.constant dense<0.000000e+00> : vector<8x8xf32>
    %517 = tpu.matmul %513, %516, %cst_222 {dimension_numbers = #tpu.dot_dimension_numbers<[1], [0], [0], [1], [0, 0, 1, 1], [], []>} : vector<8x8xf32>, vector<8x8xf32>, vector<8x8xf32> -> vector<8x8xf32>
    %cst_223 = arith.constant dense<0xFF800000> : vector<8xf32>
    %518 = vector.multi_reduction <maximumf>, %517, %cst_223 [1] : vector<8x8xf32> to vector<8xf32>
    %519 = vector.shape_cast %518 : vector<8xf32> to vector<8x1xf32>
    %520 = vector.broadcast %519 : vector<8x1xf32> to vector<8x8xf32>
    %521 = arith.subf %517, %520 : vector<8x8xf32>
    %522 = math.exp %521 : vector<8x8xf32>
    %cst_224 = arith.constant dense<0.000000e+00> : vector<8xf32>
    %523 = vector.multi_reduction <add>, %522, %cst_224 [1] : vector<8x8xf32> to vector<8xf32>
    %524 = vector.shape_cast %523 : vector<8xf32> to vector<8x1xf32>
    %525 = tpu.reciprocal %524 {approx = true} : vector<8x1xf32> -> vector<8x1xf32>
    %526 = vector.broadcast %525 : vector<8x1xf32> to vector<8x8xf32>
    %527 = arith.mulf %522, %526 : vector<8x8xf32>
    %cst_225 = arith.constant dense<0.000000e+00> : vector<8x8xf32>
    %528 = tpu.matmul %527, %515, %cst_225 {dimension_numbers = #tpu.dot_dimension_numbers<[1], [0], [0], [1], [0, 0, 1, 1], [], []>} : vector<8x8xf32>, vector<8x8xf32>, vector<8x8xf32> -> vector<8x8xf32>
    %529 = vector.extract_strided_slice %512 {offsets = [0, 8], sizes = [8, 8], strides = [1, 1]} : vector<8x96xf32> to vector<8x8xf32>
    %530 = vector.extract_strided_slice %512 {offsets = [0, 40], sizes = [8, 8], strides = [1, 1]} : vector<8x96xf32> to vector<8x8xf32>
    %531 = vector.extract_strided_slice %512 {offsets = [0, 72], sizes = [8, 8], strides = [1, 1]} : vector<8x96xf32> to vector<8x8xf32>
    %532 = tpu.transpose %530, [1, 0] : vector<8x8xf32> -> vector<8x8xf32>
    %cst_226 = arith.constant dense<0.000000e+00> : vector<8x8xf32>
    %533 = tpu.matmul %529, %532, %cst_226 {dimension_numbers = #tpu.dot_dimension_numbers<[1], [0], [0], [1], [0, 0, 1, 1], [], []>} : vector<8x8xf32>, vector<8x8xf32>, vector<8x8xf32> -> vector<8x8xf32>
    %cst_227 = arith.constant dense<0xFF800000> : vector<8xf32>
    %534 = vector.multi_reduction <maximumf>, %533, %cst_227 [1] : vector<8x8xf32> to vector<8xf32>
    %535 = vector.shape_cast %534 : vector<8xf32> to vector<8x1xf32>
    %536 = vector.broadcast %535 : vector<8x1xf32> to vector<8x8xf32>
    %537 = arith.subf %533, %536 : vector<8x8xf32>
    %538 = math.exp %537 : vector<8x8xf32>
    %cst_228 = arith.constant dense<0.000000e+00> : vector<8xf32>
    %539 = vector.multi_reduction <add>, %538, %cst_228 [1] : vector<8x8xf32> to vector<8xf32>
    %540 = vector.shape_cast %539 : vector<8xf32> to vector<8x1xf32>
    %541 = tpu.reciprocal %540 {approx = true} : vector<8x1xf32> -> vector<8x1xf32>
    %542 = vector.broadcast %541 : vector<8x1xf32> to vector<8x8xf32>
    %543 = arith.mulf %538, %542 : vector<8x8xf32>
    %cst_229 = arith.constant dense<0.000000e+00> : vector<8x8xf32>
    %544 = tpu.matmul %543, %531, %cst_229 {dimension_numbers = #tpu.dot_dimension_numbers<[1], [0], [0], [1], [0, 0, 1, 1], [], []>} : vector<8x8xf32>, vector<8x8xf32>, vector<8x8xf32> -> vector<8x8xf32>
    %545 = vector.extract_strided_slice %512 {offsets = [0, 16], sizes = [8, 8], strides = [1, 1]} : vector<8x96xf32> to vector<8x8xf32>
    %546 = vector.extract_strided_slice %512 {offsets = [0, 48], sizes = [8, 8], strides = [1, 1]} : vector<8x96xf32> to vector<8x8xf32>
    %547 = vector.extract_strided_slice %512 {offsets = [0, 80], sizes = [8, 8], strides = [1, 1]} : vector<8x96xf32> to vector<8x8xf32>
    %548 = tpu.transpose %546, [1, 0] : vector<8x8xf32> -> vector<8x8xf32>
    %cst_230 = arith.constant dense<0.000000e+00> : vector<8x8xf32>
    %549 = tpu.matmul %545, %548, %cst_230 {dimension_numbers = #tpu.dot_dimension_numbers<[1], [0], [0], [1], [0, 0, 1, 1], [], []>} : vector<8x8xf32>, vector<8x8xf32>, vector<8x8xf32> -> vector<8x8xf32>
    %cst_231 = arith.constant dense<0xFF800000> : vector<8xf32>
    %550 = vector.multi_reduction <maximumf>, %549, %cst_231 [1] : vector<8x8xf32> to vector<8xf32>
    %551 = vector.shape_cast %550 : vector<8xf32> to vector<8x1xf32>
    %552 = vector.broadcast %551 : vector<8x1xf32> to vector<8x8xf32>
    %553 = arith.subf %549, %552 : vector<8x8xf32>
    %554 = math.exp %553 : vector<8x8xf32>
    %cst_232 = arith.constant dense<0.000000e+00> : vector<8xf32>
    %555 = vector.multi_reduction <add>, %554, %cst_232 [1] : vector<8x8xf32> to vector<8xf32>
    %556 = vector.shape_cast %555 : vector<8xf32> to vector<8x1xf32>
    %557 = tpu.reciprocal %556 {approx = true} : vector<8x1xf32> -> vector<8x1xf32>
    %558 = vector.broadcast %557 : vector<8x1xf32> to vector<8x8xf32>
    %559 = arith.mulf %554, %558 : vector<8x8xf32>
    %cst_233 = arith.constant dense<0.000000e+00> : vector<8x8xf32>
    %560 = tpu.matmul %559, %547, %cst_233 {dimension_numbers = #tpu.dot_dimension_numbers<[1], [0], [0], [1], [0, 0, 1, 1], [], []>} : vector<8x8xf32>, vector<8x8xf32>, vector<8x8xf32> -> vector<8x8xf32>
    %561 = vector.extract_strided_slice %512 {offsets = [0, 24], sizes = [8, 8], strides = [1, 1]} : vector<8x96xf32> to vector<8x8xf32>
    %562 = vector.extract_strided_slice %512 {offsets = [0, 56], sizes = [8, 8], strides = [1, 1]} : vector<8x96xf32> to vector<8x8xf32>
    %563 = vector.extract_strided_slice %512 {offsets = [0, 88], sizes = [8, 8], strides = [1, 1]} : vector<8x96xf32> to vector<8x8xf32>
    %564 = tpu.transpose %562, [1, 0] : vector<8x8xf32> -> vector<8x8xf32>
    %cst_234 = arith.constant dense<0.000000e+00> : vector<8x8xf32>
    %565 = tpu.matmul %561, %564, %cst_234 {dimension_numbers = #tpu.dot_dimension_numbers<[1], [0], [0], [1], [0, 0, 1, 1], [], []>} : vector<8x8xf32>, vector<8x8xf32>, vector<8x8xf32> -> vector<8x8xf32>
    %cst_235 = arith.constant dense<0xFF800000> : vector<8xf32>
    %566 = vector.multi_reduction <maximumf>, %565, %cst_235 [1] : vector<8x8xf32> to vector<8xf32>
    %567 = vector.shape_cast %566 : vector<8xf32> to vector<8x1xf32>
    %568 = vector.broadcast %567 : vector<8x1xf32> to vector<8x8xf32>
    %569 = arith.subf %565, %568 : vector<8x8xf32>
    %570 = math.exp %569 : vector<8x8xf32>
    %cst_236 = arith.constant dense<0.000000e+00> : vector<8xf32>
    %571 = vector.multi_reduction <add>, %570, %cst_236 [1] : vector<8x8xf32> to vector<8xf32>
    %572 = vector.shape_cast %571 : vector<8xf32> to vector<8x1xf32>
    %573 = tpu.reciprocal %572 {approx = true} : vector<8x1xf32> -> vector<8x1xf32>
    %574 = vector.broadcast %573 : vector<8x1xf32> to vector<8x8xf32>
    %575 = arith.mulf %570, %574 : vector<8x8xf32>
    %cst_237 = arith.constant dense<0.000000e+00> : vector<8x8xf32>
    %576 = tpu.matmul %575, %563, %cst_237 {dimension_numbers = #tpu.dot_dimension_numbers<[1], [0], [0], [1], [0, 0, 1, 1], [], []>} : vector<8x8xf32>, vector<8x8xf32>, vector<8x8xf32> -> vector<8x8xf32>
    %577 = tpu.concatenate %528, %544, %560, %576 in 1 : vector<8x8xf32>, vector<8x8xf32>, vector<8x8xf32>, vector<8x8xf32> -> vector<8x32xf32>
    %c1_238 = arith.constant 1 : index
    %c32_239 = arith.constant 32 : index
    %c0_240 = arith.constant 0 : index
    %578 = vector.load %arg1[%c1_238, %c32_239, %c0_240] : memref<2x224x128xbf16, #tpu.memory_space<vmem>>, vector<1x32x32xbf16>
    %579 = vector.shape_cast %578 : vector<1x32x32xbf16> to vector<32x32xbf16>
    %580 = arith.truncf %577 : vector<8x32xf32> to vector<8x32xbf16>
    %cst_241 = arith.constant dense<0.000000e+00> : vector<8x32xf32>
    %581 = tpu.matmul %580, %579, %cst_241 {dimension_numbers = #tpu.dot_dimension_numbers<[1], [0], [0], [1], [0, 0, 1, 1], [], []>} : vector<8x32xbf16>, vector<32x32xbf16>, vector<8x32xf32> -> vector<8x32xf32>
    %c1_242 = arith.constant 1 : index
    %c8_243 = arith.constant 8 : index
    %c0_244 = arith.constant 0 : index
    %582 = vector.load %arg2[%c1_242, %c8_243, %c0_244] : memref<2x64x128xf32, #tpu.memory_space<vmem>>, vector<1x1x32xf32>
    %583 = vector.shape_cast %582 : vector<1x1x32xf32> to vector<1x32xf32>
    %584 = vector.broadcast %583 : vector<1x32xf32> to vector<8x32xf32>
    %585 = arith.addf %581, %584 : vector<8x32xf32>
    %586 = arith.addf %504, %585 : vector<8x32xf32>
    %c1_245 = arith.constant 1 : index
    %c32_246 = arith.constant 32 : index
    %c0_247 = arith.constant 0 : index
    %587 = vector.load %arg2[%c1_245, %c32_246, %c0_247] : memref<2x64x128xf32, #tpu.memory_space<vmem>>, vector<1x1x32xf32>
    %588 = vector.shape_cast %587 : vector<1x1x32xf32> to vector<1x32xf32>
    %c1_248 = arith.constant 1 : index
    %c40_249 = arith.constant 40 : index
    %c0_250 = arith.constant 0 : index
    %589 = vector.load %arg2[%c1_248, %c40_249, %c0_250] : memref<2x64x128xf32, #tpu.memory_space<vmem>>, vector<1x1x32xf32>
    %590 = vector.shape_cast %589 : vector<1x1x32xf32> to vector<1x32xf32>
    %cst_251 = arith.constant dense<0.000000e+00> : vector<8xf32>
    %591 = vector.multi_reduction <add>, %586, %cst_251 [1] : vector<8x32xf32> to vector<8xf32>
    %592 = vector.shape_cast %591 : vector<8xf32> to vector<8x1xf32>
    %cst_252 = arith.constant 3.200000e+01 : f32
    %593 = vector.broadcast %cst_252 : f32 to vector<8x1xf32>
    %594 = arith.divf %592, %593 : vector<8x1xf32>
    %595 = arith.mulf %586, %586 : vector<8x32xf32>
    %cst_253 = arith.constant dense<0.000000e+00> : vector<8xf32>
    %596 = vector.multi_reduction <add>, %595, %cst_253 [1] : vector<8x32xf32> to vector<8xf32>
    %597 = vector.shape_cast %596 : vector<8xf32> to vector<8x1xf32>
    %cst_254 = arith.constant 3.200000e+01 : f32
    %598 = vector.broadcast %cst_254 : f32 to vector<8x1xf32>
    %599 = arith.divf %597, %598 : vector<8x1xf32>
    %600 = vector.broadcast %594 : vector<8x1xf32> to vector<8x32xf32>
    %601 = arith.subf %586, %600 : vector<8x32xf32>
    %602 = arith.mulf %594, %594 : vector<8x1xf32>
    %603 = arith.subf %599, %602 : vector<8x1xf32>
    %cst_255 = arith.constant 9.99999974E-6 : f32
    %604 = vector.broadcast %cst_255 : f32 to vector<8x1xf32>
    %605 = arith.addf %603, %604 : vector<8x1xf32>
    %606 = math.rsqrt %605 : vector<8x1xf32>
    %607 = vector.broadcast %606 : vector<8x1xf32> to vector<8x32xf32>
    %608 = arith.mulf %601, %607 : vector<8x32xf32>
    %609 = vector.broadcast %588 : vector<1x32xf32> to vector<8x32xf32>
    %610 = arith.mulf %608, %609 : vector<8x32xf32>
    %611 = vector.broadcast %590 : vector<1x32xf32> to vector<8x32xf32>
    %612 = arith.addf %610, %611 : vector<8x32xf32>
    %c1_256 = arith.constant 1 : index
    %c64_257 = arith.constant 64 : index
    %c0_258 = arith.constant 0 : index
    %613 = vector.load %arg1[%c1_256, %c64_257, %c0_258] : memref<2x224x128xbf16, #tpu.memory_space<vmem>>, vector<1x32x128xbf16>
    %614 = vector.shape_cast %613 : vector<1x32x128xbf16> to vector<32x128xbf16>
    %615 = arith.truncf %612 : vector<8x32xf32> to vector<8x32xbf16>
    %cst_259 = arith.constant dense<0.000000e+00> : vector<8x128xf32>
    %616 = tpu.matmul %615, %614, %cst_259 {dimension_numbers = #tpu.dot_dimension_numbers<[1], [0], [0], [1], [0, 0, 1, 1], [], []>} : vector<8x32xbf16>, vector<32x128xbf16>, vector<8x128xf32> -> vector<8x128xf32>
    %c1_260 = arith.constant 1 : index
    %c16_261 = arith.constant 16 : index
    %c0_262 = arith.constant 0 : index
    %617 = vector.load %arg2[%c1_260, %c16_261, %c0_262] : memref<2x64x128xf32, #tpu.memory_space<vmem>>, vector<1x1x128xf32>
    %618 = vector.shape_cast %617 : vector<1x1x128xf32> to vector<1x128xf32>
    %619 = vector.broadcast %618 : vector<1x128xf32> to vector<8x128xf32>
    %620 = arith.addf %616, %619 : vector<8x128xf32>
    %cst_263 = arith.constant 0.000000e+00 : f32
    %621 = vector.broadcast %cst_263 : f32 to vector<8x128xf32>
    %622 = arith.maximumf %620, %621 : vector<8x128xf32>
    %c1_264 = arith.constant 1 : index
    %c96_265 = arith.constant 96 : index
    %c0_266 = arith.constant 0 : index
    %623 = vector.load %arg1[%c1_264, %c96_265, %c0_266] : memref<2x224x128xbf16, #tpu.memory_space<vmem>>, vector<1x128x32xbf16>
    %624 = vector.shape_cast %623 : vector<1x128x32xbf16> to vector<128x32xbf16>
    %625 = arith.truncf %622 : vector<8x128xf32> to vector<8x128xbf16>
    %cst_267 = arith.constant dense<0.000000e+00> : vector<8x32xf32>
    %626 = tpu.matmul %625, %624, %cst_267 {dimension_numbers = #tpu.dot_dimension_numbers<[1], [0], [0], [1], [0, 0, 1, 1], [], []>} : vector<8x128xbf16>, vector<128x32xbf16>, vector<8x32xf32> -> vector<8x32xf32>
    %c1_268 = arith.constant 1 : index
    %c24_269 = arith.constant 24 : index
    %c0_270 = arith.constant 0 : index
    %627 = vector.load %arg2[%c1_268, %c24_269, %c0_270] : memref<2x64x128xf32, #tpu.memory_space<vmem>>, vector<1x1x32xf32>
    %628 = vector.shape_cast %627 : vector<1x1x32xf32> to vector<1x32xf32>
    %629 = vector.broadcast %628 : vector<1x32xf32> to vector<8x32xf32>
    %630 = arith.addf %626, %629 : vector<8x32xf32>
    %631 = arith.addf %612, %630 : vector<8x32xf32>
    %c1_271 = arith.constant 1 : index
    %c48_272 = arith.constant 48 : index
    %c0_273 = arith.constant 0 : index
    %632 = vector.load %arg2[%c1_271, %c48_272, %c0_273] : memref<2x64x128xf32, #tpu.memory_space<vmem>>, vector<1x1x32xf32>
    %633 = vector.shape_cast %632 : vector<1x1x32xf32> to vector<1x32xf32>
    %c1_274 = arith.constant 1 : index
    %c56_275 = arith.constant 56 : index
    %c0_276 = arith.constant 0 : index
    %634 = vector.load %arg2[%c1_274, %c56_275, %c0_276] : memref<2x64x128xf32, #tpu.memory_space<vmem>>, vector<1x1x32xf32>
    %635 = vector.shape_cast %634 : vector<1x1x32xf32> to vector<1x32xf32>
    %cst_277 = arith.constant dense<0.000000e+00> : vector<8xf32>
    %636 = vector.multi_reduction <add>, %631, %cst_277 [1] : vector<8x32xf32> to vector<8xf32>
    %637 = vector.shape_cast %636 : vector<8xf32> to vector<8x1xf32>
    %cst_278 = arith.constant 3.200000e+01 : f32
    %638 = vector.broadcast %cst_278 : f32 to vector<8x1xf32>
    %639 = arith.divf %637, %638 : vector<8x1xf32>
    %640 = arith.mulf %631, %631 : vector<8x32xf32>
    %cst_279 = arith.constant dense<0.000000e+00> : vector<8xf32>
    %641 = vector.multi_reduction <add>, %640, %cst_279 [1] : vector<8x32xf32> to vector<8xf32>
    %642 = vector.shape_cast %641 : vector<8xf32> to vector<8x1xf32>
    %cst_280 = arith.constant 3.200000e+01 : f32
    %643 = vector.broadcast %cst_280 : f32 to vector<8x1xf32>
    %644 = arith.divf %642, %643 : vector<8x1xf32>
    %645 = vector.broadcast %639 : vector<8x1xf32> to vector<8x32xf32>
    %646 = arith.subf %631, %645 : vector<8x32xf32>
    %647 = arith.mulf %639, %639 : vector<8x1xf32>
    %648 = arith.subf %644, %647 : vector<8x1xf32>
    %cst_281 = arith.constant 9.99999974E-6 : f32
    %649 = vector.broadcast %cst_281 : f32 to vector<8x1xf32>
    %650 = arith.addf %648, %649 : vector<8x1xf32>
    %651 = math.rsqrt %650 : vector<8x1xf32>
    %652 = vector.broadcast %651 : vector<8x1xf32> to vector<8x32xf32>
    %653 = arith.mulf %646, %652 : vector<8x32xf32>
    %654 = vector.broadcast %633 : vector<1x32xf32> to vector<8x32xf32>
    %655 = arith.mulf %653, %654 : vector<8x32xf32>
    %656 = vector.broadcast %635 : vector<1x32xf32> to vector<8x32xf32>
    %657 = arith.addf %655, %656 : vector<8x32xf32>
    %658 = arith.addf %657, %349 : vector<8x32xf32>
    %659 = arith.truncf %658 : vector<8x32xf32> to vector<8x32xbf16>
    %cst_282 = arith.constant dense<0.000000e+00> : vector<8x64xf32>
    %660 = tpu.matmul %659, %2, %cst_282 {dimension_numbers = #tpu.dot_dimension_numbers<[1], [0], [0], [1], [0, 0, 1, 1], [], []>} : vector<8x32xbf16>, vector<32x64xbf16>, vector<8x64xf32> -> vector<8x64xf32>
    %661 = vector.broadcast %3 : vector<1x64xf32> to vector<8x64xf32>
    %662 = arith.addf %660, %661 : vector<8x64xf32>
    %cst_283 = arith.constant 0.000000e+00 : f32
    %663 = vector.broadcast %cst_283 : f32 to vector<8x64xf32>
    %664 = arith.maximumf %662, %663 : vector<8x64xf32>
    %c96_284 = arith.constant 96 : index
    %c0_285 = arith.constant 0 : index
    %665 = vector.load %arg3[%c96_284, %c0_285] : memref<288x128xbf16, #tpu.memory_space<vmem>>, vector<64x2xbf16>
    %666 = arith.truncf %664 : vector<8x64xf32> to vector<8x64xbf16>
    %cst_286 = arith.constant dense<0.000000e+00> : vector<8x2xf32>
    %667 = tpu.matmul %666, %665, %cst_286 {dimension_numbers = #tpu.dot_dimension_numbers<[1], [0], [0], [1], [0, 0, 1, 1], [], []>} : vector<8x64xbf16>, vector<64x2xbf16>, vector<8x2xf32> -> vector<8x2xf32>
    %c96_287 = arith.constant 96 : index
    %c0_288 = arith.constant 0 : index
    %668 = vector.load %arg4[%c96_287, %c0_288] : memref<120x128xf32, #tpu.memory_space<vmem>>, vector<1x2xf32>
    %669 = vector.broadcast %668 : vector<1x2xf32> to vector<8x2xf32>
    %670 = arith.addf %667, %669 : vector<8x2xf32>
    %c32_289 = arith.constant 32 : index
    %c0_290 = arith.constant 0 : index
    %671 = vector.load %arg3[%c32_289, %c0_290] : memref<288x128xbf16, #tpu.memory_space<vmem>>, vector<16x32xbf16>
    %672 = arith.truncf %0 : vector<8x16xf32> to vector<8x16xbf16>
    %cst_291 = arith.constant dense<0.000000e+00> : vector<8x32xf32>
    %673 = tpu.matmul %672, %671, %cst_291 {dimension_numbers = #tpu.dot_dimension_numbers<[1], [0], [0], [1], [0, 0, 1, 1], [], []>} : vector<8x16xbf16>, vector<16x32xbf16>, vector<8x32xf32> -> vector<8x32xf32>
    %c48_292 = arith.constant 48 : index
    %c0_293 = arith.constant 0 : index
    %674 = vector.load %arg4[%c48_292, %c0_293] : memref<120x128xf32, #tpu.memory_space<vmem>>, vector<1x32xf32>
    %675 = vector.broadcast %674 : vector<1x32xf32> to vector<8x32xf32>
    %676 = arith.addf %673, %675 : vector<8x32xf32>
    %c32_294 = arith.constant 32 : index
    %c0_295 = arith.constant 0 : index
    %677 = vector.load %arg4[%c32_294, %c0_295] : memref<120x128xf32, #tpu.memory_space<vmem>>, vector<2x32xf32>
    %678 = vector.extract_strided_slice %330 {offsets = [0, 0], sizes = [8, 1], strides = [1, 1]} : vector<8x2xf32> to vector<8x1xf32>
    %679 = vector.extract_strided_slice %677 {offsets = [0, 0], sizes = [1, 32], strides = [1, 1]} : vector<2x32xf32> to vector<1x32xf32>
    %680 = vector.broadcast %678 : vector<8x1xf32> to vector<8x32xf32>
    %681 = vector.broadcast %679 : vector<1x32xf32> to vector<8x32xf32>
    %682 = arith.mulf %680, %681 : vector<8x32xf32>
    %683 = arith.addf %676, %682 : vector<8x32xf32>
    %684 = vector.extract_strided_slice %330 {offsets = [0, 1], sizes = [8, 1], strides = [1, 1]} : vector<8x2xf32> to vector<8x1xf32>
    %685 = vector.extract_strided_slice %677 {offsets = [1, 0], sizes = [1, 32], strides = [1, 1]} : vector<2x32xf32> to vector<1x32xf32>
    %686 = vector.broadcast %684 : vector<8x1xf32> to vector<8x32xf32>
    %687 = vector.broadcast %685 : vector<1x32xf32> to vector<8x32xf32>
    %688 = arith.mulf %686, %687 : vector<8x32xf32>
    %689 = arith.addf %683, %688 : vector<8x32xf32>
    %c40_296 = arith.constant 40 : index
    %c0_297 = arith.constant 0 : index
    %690 = vector.load %arg4[%c40_296, %c0_297] : memref<120x128xf32, #tpu.memory_space<vmem>>, vector<2x32xf32>
    %691 = vector.extract_strided_slice %670 {offsets = [0, 0], sizes = [8, 1], strides = [1, 1]} : vector<8x2xf32> to vector<8x1xf32>
    %692 = vector.extract_strided_slice %690 {offsets = [0, 0], sizes = [1, 32], strides = [1, 1]} : vector<2x32xf32> to vector<1x32xf32>
    %693 = vector.broadcast %691 : vector<8x1xf32> to vector<8x32xf32>
    %694 = vector.broadcast %692 : vector<1x32xf32> to vector<8x32xf32>
    %695 = arith.mulf %693, %694 : vector<8x32xf32>
    %696 = arith.addf %689, %695 : vector<8x32xf32>
    %697 = vector.extract_strided_slice %670 {offsets = [0, 1], sizes = [8, 1], strides = [1, 1]} : vector<8x2xf32> to vector<8x1xf32>
    %698 = vector.extract_strided_slice %690 {offsets = [1, 0], sizes = [1, 32], strides = [1, 1]} : vector<2x32xf32> to vector<1x32xf32>
    %699 = vector.broadcast %697 : vector<8x1xf32> to vector<8x32xf32>
    %700 = vector.broadcast %698 : vector<1x32xf32> to vector<8x32xf32>
    %701 = arith.mulf %699, %700 : vector<8x32xf32>
    %702 = arith.addf %696, %701 : vector<8x32xf32>
    %703 = vector.broadcast %1 : vector<1x32xf32> to vector<8x32xf32>
    %704 = arith.addf %702, %703 : vector<8x32xf32>
    %c0_298 = arith.constant 0 : index
    %c0_299 = arith.constant 0 : index
    %c0_300 = arith.constant 0 : index
    %705 = vector.load %arg1[%c0_298, %c0_299, %c0_300] : memref<2x224x128xbf16, #tpu.memory_space<vmem>>, vector<1x32x96xbf16>
    %706 = vector.shape_cast %705 : vector<1x32x96xbf16> to vector<32x96xbf16>
    %707 = arith.truncf %704 : vector<8x32xf32> to vector<8x32xbf16>
    %cst_301 = arith.constant dense<0.000000e+00> : vector<8x96xf32>
    %708 = tpu.matmul %707, %706, %cst_301 {dimension_numbers = #tpu.dot_dimension_numbers<[1], [0], [0], [1], [0, 0, 1, 1], [], []>} : vector<8x32xbf16>, vector<32x96xbf16>, vector<8x96xf32> -> vector<8x96xf32>
    %c0_302 = arith.constant 0 : index
    %c0_303 = arith.constant 0 : index
    %c0_304 = arith.constant 0 : index
    %709 = vector.load %arg2[%c0_302, %c0_303, %c0_304] : memref<2x64x128xf32, #tpu.memory_space<vmem>>, vector<1x1x96xf32>
    %710 = vector.shape_cast %709 : vector<1x1x96xf32> to vector<1x96xf32>
    %711 = vector.broadcast %710 : vector<1x96xf32> to vector<8x96xf32>
    %712 = arith.addf %708, %711 : vector<8x96xf32>
    %713 = vector.extract_strided_slice %712 {offsets = [0, 0], sizes = [8, 8], strides = [1, 1]} : vector<8x96xf32> to vector<8x8xf32>
    %714 = vector.extract_strided_slice %712 {offsets = [0, 32], sizes = [8, 8], strides = [1, 1]} : vector<8x96xf32> to vector<8x8xf32>
    %715 = vector.extract_strided_slice %712 {offsets = [0, 64], sizes = [8, 8], strides = [1, 1]} : vector<8x96xf32> to vector<8x8xf32>
    %716 = tpu.transpose %714, [1, 0] : vector<8x8xf32> -> vector<8x8xf32>
    %cst_305 = arith.constant dense<0.000000e+00> : vector<8x8xf32>
    %717 = tpu.matmul %713, %716, %cst_305 {dimension_numbers = #tpu.dot_dimension_numbers<[1], [0], [0], [1], [0, 0, 1, 1], [], []>} : vector<8x8xf32>, vector<8x8xf32>, vector<8x8xf32> -> vector<8x8xf32>
    %cst_306 = arith.constant dense<0xFF800000> : vector<8xf32>
    %718 = vector.multi_reduction <maximumf>, %717, %cst_306 [1] : vector<8x8xf32> to vector<8xf32>
    %719 = vector.shape_cast %718 : vector<8xf32> to vector<8x1xf32>
    %720 = vector.broadcast %719 : vector<8x1xf32> to vector<8x8xf32>
    %721 = arith.subf %717, %720 : vector<8x8xf32>
    %722 = math.exp %721 : vector<8x8xf32>
    %cst_307 = arith.constant dense<0.000000e+00> : vector<8xf32>
    %723 = vector.multi_reduction <add>, %722, %cst_307 [1] : vector<8x8xf32> to vector<8xf32>
    %724 = vector.shape_cast %723 : vector<8xf32> to vector<8x1xf32>
    %725 = tpu.reciprocal %724 {approx = true} : vector<8x1xf32> -> vector<8x1xf32>
    %726 = vector.broadcast %725 : vector<8x1xf32> to vector<8x8xf32>
    %727 = arith.mulf %722, %726 : vector<8x8xf32>
    %cst_308 = arith.constant dense<0.000000e+00> : vector<8x8xf32>
    %728 = tpu.matmul %727, %715, %cst_308 {dimension_numbers = #tpu.dot_dimension_numbers<[1], [0], [0], [1], [0, 0, 1, 1], [], []>} : vector<8x8xf32>, vector<8x8xf32>, vector<8x8xf32> -> vector<8x8xf32>
    %729 = vector.extract_strided_slice %712 {offsets = [0, 8], sizes = [8, 8], strides = [1, 1]} : vector<8x96xf32> to vector<8x8xf32>
    %730 = vector.extract_strided_slice %712 {offsets = [0, 40], sizes = [8, 8], strides = [1, 1]} : vector<8x96xf32> to vector<8x8xf32>
    %731 = vector.extract_strided_slice %712 {offsets = [0, 72], sizes = [8, 8], strides = [1, 1]} : vector<8x96xf32> to vector<8x8xf32>
    %732 = tpu.transpose %730, [1, 0] : vector<8x8xf32> -> vector<8x8xf32>
    %cst_309 = arith.constant dense<0.000000e+00> : vector<8x8xf32>
    %733 = tpu.matmul %729, %732, %cst_309 {dimension_numbers = #tpu.dot_dimension_numbers<[1], [0], [0], [1], [0, 0, 1, 1], [], []>} : vector<8x8xf32>, vector<8x8xf32>, vector<8x8xf32> -> vector<8x8xf32>
    %cst_310 = arith.constant dense<0xFF800000> : vector<8xf32>
    %734 = vector.multi_reduction <maximumf>, %733, %cst_310 [1] : vector<8x8xf32> to vector<8xf32>
    %735 = vector.shape_cast %734 : vector<8xf32> to vector<8x1xf32>
    %736 = vector.broadcast %735 : vector<8x1xf32> to vector<8x8xf32>
    %737 = arith.subf %733, %736 : vector<8x8xf32>
    %738 = math.exp %737 : vector<8x8xf32>
    %cst_311 = arith.constant dense<0.000000e+00> : vector<8xf32>
    %739 = vector.multi_reduction <add>, %738, %cst_311 [1] : vector<8x8xf32> to vector<8xf32>
    %740 = vector.shape_cast %739 : vector<8xf32> to vector<8x1xf32>
    %741 = tpu.reciprocal %740 {approx = true} : vector<8x1xf32> -> vector<8x1xf32>
    %742 = vector.broadcast %741 : vector<8x1xf32> to vector<8x8xf32>
    %743 = arith.mulf %738, %742 : vector<8x8xf32>
    %cst_312 = arith.constant dense<0.000000e+00> : vector<8x8xf32>
    %744 = tpu.matmul %743, %731, %cst_312 {dimension_numbers = #tpu.dot_dimension_numbers<[1], [0], [0], [1], [0, 0, 1, 1], [], []>} : vector<8x8xf32>, vector<8x8xf32>, vector<8x8xf32> -> vector<8x8xf32>
    %745 = vector.extract_strided_slice %712 {offsets = [0, 16], sizes = [8, 8], strides = [1, 1]} : vector<8x96xf32> to vector<8x8xf32>
    %746 = vector.extract_strided_slice %712 {offsets = [0, 48], sizes = [8, 8], strides = [1, 1]} : vector<8x96xf32> to vector<8x8xf32>
    %747 = vector.extract_strided_slice %712 {offsets = [0, 80], sizes = [8, 8], strides = [1, 1]} : vector<8x96xf32> to vector<8x8xf32>
    %748 = tpu.transpose %746, [1, 0] : vector<8x8xf32> -> vector<8x8xf32>
    %cst_313 = arith.constant dense<0.000000e+00> : vector<8x8xf32>
    %749 = tpu.matmul %745, %748, %cst_313 {dimension_numbers = #tpu.dot_dimension_numbers<[1], [0], [0], [1], [0, 0, 1, 1], [], []>} : vector<8x8xf32>, vector<8x8xf32>, vector<8x8xf32> -> vector<8x8xf32>
    %cst_314 = arith.constant dense<0xFF800000> : vector<8xf32>
    %750 = vector.multi_reduction <maximumf>, %749, %cst_314 [1] : vector<8x8xf32> to vector<8xf32>
    %751 = vector.shape_cast %750 : vector<8xf32> to vector<8x1xf32>
    %752 = vector.broadcast %751 : vector<8x1xf32> to vector<8x8xf32>
    %753 = arith.subf %749, %752 : vector<8x8xf32>
    %754 = math.exp %753 : vector<8x8xf32>
    %cst_315 = arith.constant dense<0.000000e+00> : vector<8xf32>
    %755 = vector.multi_reduction <add>, %754, %cst_315 [1] : vector<8x8xf32> to vector<8xf32>
    %756 = vector.shape_cast %755 : vector<8xf32> to vector<8x1xf32>
    %757 = tpu.reciprocal %756 {approx = true} : vector<8x1xf32> -> vector<8x1xf32>
    %758 = vector.broadcast %757 : vector<8x1xf32> to vector<8x8xf32>
    %759 = arith.mulf %754, %758 : vector<8x8xf32>
    %cst_316 = arith.constant dense<0.000000e+00> : vector<8x8xf32>
    %760 = tpu.matmul %759, %747, %cst_316 {dimension_numbers = #tpu.dot_dimension_numbers<[1], [0], [0], [1], [0, 0, 1, 1], [], []>} : vector<8x8xf32>, vector<8x8xf32>, vector<8x8xf32> -> vector<8x8xf32>
    %761 = vector.extract_strided_slice %712 {offsets = [0, 24], sizes = [8, 8], strides = [1, 1]} : vector<8x96xf32> to vector<8x8xf32>
    %762 = vector.extract_strided_slice %712 {offsets = [0, 56], sizes = [8, 8], strides = [1, 1]} : vector<8x96xf32> to vector<8x8xf32>
    %763 = vector.extract_strided_slice %712 {offsets = [0, 88], sizes = [8, 8], strides = [1, 1]} : vector<8x96xf32> to vector<8x8xf32>
    %764 = tpu.transpose %762, [1, 0] : vector<8x8xf32> -> vector<8x8xf32>
    %cst_317 = arith.constant dense<0.000000e+00> : vector<8x8xf32>
    %765 = tpu.matmul %761, %764, %cst_317 {dimension_numbers = #tpu.dot_dimension_numbers<[1], [0], [0], [1], [0, 0, 1, 1], [], []>} : vector<8x8xf32>, vector<8x8xf32>, vector<8x8xf32> -> vector<8x8xf32>
    %cst_318 = arith.constant dense<0xFF800000> : vector<8xf32>
    %766 = vector.multi_reduction <maximumf>, %765, %cst_318 [1] : vector<8x8xf32> to vector<8xf32>
    %767 = vector.shape_cast %766 : vector<8xf32> to vector<8x1xf32>
    %768 = vector.broadcast %767 : vector<8x1xf32> to vector<8x8xf32>
    %769 = arith.subf %765, %768 : vector<8x8xf32>
    %770 = math.exp %769 : vector<8x8xf32>
    %cst_319 = arith.constant dense<0.000000e+00> : vector<8xf32>
    %771 = vector.multi_reduction <add>, %770, %cst_319 [1] : vector<8x8xf32> to vector<8xf32>
    %772 = vector.shape_cast %771 : vector<8xf32> to vector<8x1xf32>
    %773 = tpu.reciprocal %772 {approx = true} : vector<8x1xf32> -> vector<8x1xf32>
    %774 = vector.broadcast %773 : vector<8x1xf32> to vector<8x8xf32>
    %775 = arith.mulf %770, %774 : vector<8x8xf32>
    %cst_320 = arith.constant dense<0.000000e+00> : vector<8x8xf32>
    %776 = tpu.matmul %775, %763, %cst_320 {dimension_numbers = #tpu.dot_dimension_numbers<[1], [0], [0], [1], [0, 0, 1, 1], [], []>} : vector<8x8xf32>, vector<8x8xf32>, vector<8x8xf32> -> vector<8x8xf32>
    %777 = tpu.concatenate %728, %744, %760, %776 in 1 : vector<8x8xf32>, vector<8x8xf32>, vector<8x8xf32>, vector<8x8xf32> -> vector<8x32xf32>
    %c0_321 = arith.constant 0 : index
    %c32_322 = arith.constant 32 : index
    %c0_323 = arith.constant 0 : index
    %778 = vector.load %arg1[%c0_321, %c32_322, %c0_323] : memref<2x224x128xbf16, #tpu.memory_space<vmem>>, vector<1x32x32xbf16>
    %779 = vector.shape_cast %778 : vector<1x32x32xbf16> to vector<32x32xbf16>
    %780 = arith.truncf %777 : vector<8x32xf32> to vector<8x32xbf16>
    %cst_324 = arith.constant dense<0.000000e+00> : vector<8x32xf32>
    %781 = tpu.matmul %780, %779, %cst_324 {dimension_numbers = #tpu.dot_dimension_numbers<[1], [0], [0], [1], [0, 0, 1, 1], [], []>} : vector<8x32xbf16>, vector<32x32xbf16>, vector<8x32xf32> -> vector<8x32xf32>
    %c0_325 = arith.constant 0 : index
    %c8_326 = arith.constant 8 : index
    %c0_327 = arith.constant 0 : index
    %782 = vector.load %arg2[%c0_325, %c8_326, %c0_327] : memref<2x64x128xf32, #tpu.memory_space<vmem>>, vector<1x1x32xf32>
    %783 = vector.shape_cast %782 : vector<1x1x32xf32> to vector<1x32xf32>
    %784 = vector.broadcast %783 : vector<1x32xf32> to vector<8x32xf32>
    %785 = arith.addf %781, %784 : vector<8x32xf32>
    %786 = arith.addf %704, %785 : vector<8x32xf32>
    %c0_328 = arith.constant 0 : index
    %c32_329 = arith.constant 32 : index
    %c0_330 = arith.constant 0 : index
    %787 = vector.load %arg2[%c0_328, %c32_329, %c0_330] : memref<2x64x128xf32, #tpu.memory_space<vmem>>, vector<1x1x32xf32>
    %788 = vector.shape_cast %787 : vector<1x1x32xf32> to vector<1x32xf32>
    %c0_331 = arith.constant 0 : index
    %c40_332 = arith.constant 40 : index
    %c0_333 = arith.constant 0 : index
    %789 = vector.load %arg2[%c0_331, %c40_332, %c0_333] : memref<2x64x128xf32, #tpu.memory_space<vmem>>, vector<1x1x32xf32>
    %790 = vector.shape_cast %789 : vector<1x1x32xf32> to vector<1x32xf32>
    %cst_334 = arith.constant dense<0.000000e+00> : vector<8xf32>
    %791 = vector.multi_reduction <add>, %786, %cst_334 [1] : vector<8x32xf32> to vector<8xf32>
    %792 = vector.shape_cast %791 : vector<8xf32> to vector<8x1xf32>
    %cst_335 = arith.constant 3.200000e+01 : f32
    %793 = vector.broadcast %cst_335 : f32 to vector<8x1xf32>
    %794 = arith.divf %792, %793 : vector<8x1xf32>
    %795 = arith.mulf %786, %786 : vector<8x32xf32>
    %cst_336 = arith.constant dense<0.000000e+00> : vector<8xf32>
    %796 = vector.multi_reduction <add>, %795, %cst_336 [1] : vector<8x32xf32> to vector<8xf32>
    %797 = vector.shape_cast %796 : vector<8xf32> to vector<8x1xf32>
    %cst_337 = arith.constant 3.200000e+01 : f32
    %798 = vector.broadcast %cst_337 : f32 to vector<8x1xf32>
    %799 = arith.divf %797, %798 : vector<8x1xf32>
    %800 = vector.broadcast %794 : vector<8x1xf32> to vector<8x32xf32>
    %801 = arith.subf %786, %800 : vector<8x32xf32>
    %802 = arith.mulf %794, %794 : vector<8x1xf32>
    %803 = arith.subf %799, %802 : vector<8x1xf32>
    %cst_338 = arith.constant 9.99999974E-6 : f32
    %804 = vector.broadcast %cst_338 : f32 to vector<8x1xf32>
    %805 = arith.addf %803, %804 : vector<8x1xf32>
    %806 = math.rsqrt %805 : vector<8x1xf32>
    %807 = vector.broadcast %806 : vector<8x1xf32> to vector<8x32xf32>
    %808 = arith.mulf %801, %807 : vector<8x32xf32>
    %809 = vector.broadcast %788 : vector<1x32xf32> to vector<8x32xf32>
    %810 = arith.mulf %808, %809 : vector<8x32xf32>
    %811 = vector.broadcast %790 : vector<1x32xf32> to vector<8x32xf32>
    %812 = arith.addf %810, %811 : vector<8x32xf32>
    %c0_339 = arith.constant 0 : index
    %c64_340 = arith.constant 64 : index
    %c0_341 = arith.constant 0 : index
    %813 = vector.load %arg1[%c0_339, %c64_340, %c0_341] : memref<2x224x128xbf16, #tpu.memory_space<vmem>>, vector<1x32x128xbf16>
    %814 = vector.shape_cast %813 : vector<1x32x128xbf16> to vector<32x128xbf16>
    %815 = arith.truncf %812 : vector<8x32xf32> to vector<8x32xbf16>
    %cst_342 = arith.constant dense<0.000000e+00> : vector<8x128xf32>
    %816 = tpu.matmul %815, %814, %cst_342 {dimension_numbers = #tpu.dot_dimension_numbers<[1], [0], [0], [1], [0, 0, 1, 1], [], []>} : vector<8x32xbf16>, vector<32x128xbf16>, vector<8x128xf32> -> vector<8x128xf32>
    %c0_343 = arith.constant 0 : index
    %c16_344 = arith.constant 16 : index
    %c0_345 = arith.constant 0 : index
    %817 = vector.load %arg2[%c0_343, %c16_344, %c0_345] : memref<2x64x128xf32, #tpu.memory_space<vmem>>, vector<1x1x128xf32>
    %818 = vector.shape_cast %817 : vector<1x1x128xf32> to vector<1x128xf32>
    %819 = vector.broadcast %818 : vector<1x128xf32> to vector<8x128xf32>
    %820 = arith.addf %816, %819 : vector<8x128xf32>
    %cst_346 = arith.constant 0.000000e+00 : f32
    %821 = vector.broadcast %cst_346 : f32 to vector<8x128xf32>
    %822 = arith.maximumf %820, %821 : vector<8x128xf32>
    %c0_347 = arith.constant 0 : index
    %c96_348 = arith.constant 96 : index
    %c0_349 = arith.constant 0 : index
    %823 = vector.load %arg1[%c0_347, %c96_348, %c0_349] : memref<2x224x128xbf16, #tpu.memory_space<vmem>>, vector<1x128x32xbf16>
    %824 = vector.shape_cast %823 : vector<1x128x32xbf16> to vector<128x32xbf16>
    %825 = arith.truncf %822 : vector<8x128xf32> to vector<8x128xbf16>
    %cst_350 = arith.constant dense<0.000000e+00> : vector<8x32xf32>
    %826 = tpu.matmul %825, %824, %cst_350 {dimension_numbers = #tpu.dot_dimension_numbers<[1], [0], [0], [1], [0, 0, 1, 1], [], []>} : vector<8x128xbf16>, vector<128x32xbf16>, vector<8x32xf32> -> vector<8x32xf32>
    %c0_351 = arith.constant 0 : index
    %c24_352 = arith.constant 24 : index
    %c0_353 = arith.constant 0 : index
    %827 = vector.load %arg2[%c0_351, %c24_352, %c0_353] : memref<2x64x128xf32, #tpu.memory_space<vmem>>, vector<1x1x32xf32>
    %828 = vector.shape_cast %827 : vector<1x1x32xf32> to vector<1x32xf32>
    %829 = vector.broadcast %828 : vector<1x32xf32> to vector<8x32xf32>
    %830 = arith.addf %826, %829 : vector<8x32xf32>
    %831 = arith.addf %812, %830 : vector<8x32xf32>
    %c0_354 = arith.constant 0 : index
    %c48_355 = arith.constant 48 : index
    %c0_356 = arith.constant 0 : index
    %832 = vector.load %arg2[%c0_354, %c48_355, %c0_356] : memref<2x64x128xf32, #tpu.memory_space<vmem>>, vector<1x1x32xf32>
    %833 = vector.shape_cast %832 : vector<1x1x32xf32> to vector<1x32xf32>
    %c0_357 = arith.constant 0 : index
    %c56_358 = arith.constant 56 : index
    %c0_359 = arith.constant 0 : index
    %834 = vector.load %arg2[%c0_357, %c56_358, %c0_359] : memref<2x64x128xf32, #tpu.memory_space<vmem>>, vector<1x1x32xf32>
    %835 = vector.shape_cast %834 : vector<1x1x32xf32> to vector<1x32xf32>
    %cst_360 = arith.constant dense<0.000000e+00> : vector<8xf32>
    %836 = vector.multi_reduction <add>, %831, %cst_360 [1] : vector<8x32xf32> to vector<8xf32>
    %837 = vector.shape_cast %836 : vector<8xf32> to vector<8x1xf32>
    %cst_361 = arith.constant 3.200000e+01 : f32
    %838 = vector.broadcast %cst_361 : f32 to vector<8x1xf32>
    %839 = arith.divf %837, %838 : vector<8x1xf32>
    %840 = arith.mulf %831, %831 : vector<8x32xf32>
    %cst_362 = arith.constant dense<0.000000e+00> : vector<8xf32>
    %841 = vector.multi_reduction <add>, %840, %cst_362 [1] : vector<8x32xf32> to vector<8xf32>
    %842 = vector.shape_cast %841 : vector<8xf32> to vector<8x1xf32>
    %cst_363 = arith.constant 3.200000e+01 : f32
    %843 = vector.broadcast %cst_363 : f32 to vector<8x1xf32>
    %844 = arith.divf %842, %843 : vector<8x1xf32>
    %845 = vector.broadcast %839 : vector<8x1xf32> to vector<8x32xf32>
    %846 = arith.subf %831, %845 : vector<8x32xf32>
    %847 = arith.mulf %839, %839 : vector<8x1xf32>
    %848 = arith.subf %844, %847 : vector<8x1xf32>
    %cst_364 = arith.constant 9.99999974E-6 : f32
    %849 = vector.broadcast %cst_364 : f32 to vector<8x1xf32>
    %850 = arith.addf %848, %849 : vector<8x1xf32>
    %851 = math.rsqrt %850 : vector<8x1xf32>
    %852 = vector.broadcast %851 : vector<8x1xf32> to vector<8x32xf32>
    %853 = arith.mulf %846, %852 : vector<8x32xf32>
    %854 = vector.broadcast %833 : vector<1x32xf32> to vector<8x32xf32>
    %855 = arith.mulf %853, %854 : vector<8x32xf32>
    %856 = vector.broadcast %835 : vector<1x32xf32> to vector<8x32xf32>
    %857 = arith.addf %855, %856 : vector<8x32xf32>
    %c1_365 = arith.constant 1 : index
    %c0_366 = arith.constant 0 : index
    %c0_367 = arith.constant 0 : index
    %858 = vector.load %arg1[%c1_365, %c0_366, %c0_367] : memref<2x224x128xbf16, #tpu.memory_space<vmem>>, vector<1x32x96xbf16>
    %859 = vector.shape_cast %858 : vector<1x32x96xbf16> to vector<32x96xbf16>
    %860 = arith.truncf %857 : vector<8x32xf32> to vector<8x32xbf16>
    %cst_368 = arith.constant dense<0.000000e+00> : vector<8x96xf32>
    %861 = tpu.matmul %860, %859, %cst_368 {dimension_numbers = #tpu.dot_dimension_numbers<[1], [0], [0], [1], [0, 0, 1, 1], [], []>} : vector<8x32xbf16>, vector<32x96xbf16>, vector<8x96xf32> -> vector<8x96xf32>
    %c1_369 = arith.constant 1 : index
    %c0_370 = arith.constant 0 : index
    %c0_371 = arith.constant 0 : index
    %862 = vector.load %arg2[%c1_369, %c0_370, %c0_371] : memref<2x64x128xf32, #tpu.memory_space<vmem>>, vector<1x1x96xf32>
    %863 = vector.shape_cast %862 : vector<1x1x96xf32> to vector<1x96xf32>
    %864 = vector.broadcast %863 : vector<1x96xf32> to vector<8x96xf32>
    %865 = arith.addf %861, %864 : vector<8x96xf32>
    %866 = vector.extract_strided_slice %865 {offsets = [0, 0], sizes = [8, 8], strides = [1, 1]} : vector<8x96xf32> to vector<8x8xf32>
    %867 = vector.extract_strided_slice %865 {offsets = [0, 32], sizes = [8, 8], strides = [1, 1]} : vector<8x96xf32> to vector<8x8xf32>
    %868 = vector.extract_strided_slice %865 {offsets = [0, 64], sizes = [8, 8], strides = [1, 1]} : vector<8x96xf32> to vector<8x8xf32>
    %869 = tpu.transpose %867, [1, 0] : vector<8x8xf32> -> vector<8x8xf32>
    %cst_372 = arith.constant dense<0.000000e+00> : vector<8x8xf32>
    %870 = tpu.matmul %866, %869, %cst_372 {dimension_numbers = #tpu.dot_dimension_numbers<[1], [0], [0], [1], [0, 0, 1, 1], [], []>} : vector<8x8xf32>, vector<8x8xf32>, vector<8x8xf32> -> vector<8x8xf32>
    %cst_373 = arith.constant dense<0xFF800000> : vector<8xf32>
    %871 = vector.multi_reduction <maximumf>, %870, %cst_373 [1] : vector<8x8xf32> to vector<8xf32>
    %872 = vector.shape_cast %871 : vector<8xf32> to vector<8x1xf32>
    %873 = vector.broadcast %872 : vector<8x1xf32> to vector<8x8xf32>
    %874 = arith.subf %870, %873 : vector<8x8xf32>
    %875 = math.exp %874 : vector<8x8xf32>
    %cst_374 = arith.constant dense<0.000000e+00> : vector<8xf32>
    %876 = vector.multi_reduction <add>, %875, %cst_374 [1] : vector<8x8xf32> to vector<8xf32>
    %877 = vector.shape_cast %876 : vector<8xf32> to vector<8x1xf32>
    %878 = tpu.reciprocal %877 {approx = true} : vector<8x1xf32> -> vector<8x1xf32>
    %879 = vector.broadcast %878 : vector<8x1xf32> to vector<8x8xf32>
    %880 = arith.mulf %875, %879 : vector<8x8xf32>
    %cst_375 = arith.constant dense<0.000000e+00> : vector<8x8xf32>
    %881 = tpu.matmul %880, %868, %cst_375 {dimension_numbers = #tpu.dot_dimension_numbers<[1], [0], [0], [1], [0, 0, 1, 1], [], []>} : vector<8x8xf32>, vector<8x8xf32>, vector<8x8xf32> -> vector<8x8xf32>
    %882 = vector.extract_strided_slice %865 {offsets = [0, 8], sizes = [8, 8], strides = [1, 1]} : vector<8x96xf32> to vector<8x8xf32>
    %883 = vector.extract_strided_slice %865 {offsets = [0, 40], sizes = [8, 8], strides = [1, 1]} : vector<8x96xf32> to vector<8x8xf32>
    %884 = vector.extract_strided_slice %865 {offsets = [0, 72], sizes = [8, 8], strides = [1, 1]} : vector<8x96xf32> to vector<8x8xf32>
    %885 = tpu.transpose %883, [1, 0] : vector<8x8xf32> -> vector<8x8xf32>
    %cst_376 = arith.constant dense<0.000000e+00> : vector<8x8xf32>
    %886 = tpu.matmul %882, %885, %cst_376 {dimension_numbers = #tpu.dot_dimension_numbers<[1], [0], [0], [1], [0, 0, 1, 1], [], []>} : vector<8x8xf32>, vector<8x8xf32>, vector<8x8xf32> -> vector<8x8xf32>
    %cst_377 = arith.constant dense<0xFF800000> : vector<8xf32>
    %887 = vector.multi_reduction <maximumf>, %886, %cst_377 [1] : vector<8x8xf32> to vector<8xf32>
    %888 = vector.shape_cast %887 : vector<8xf32> to vector<8x1xf32>
    %889 = vector.broadcast %888 : vector<8x1xf32> to vector<8x8xf32>
    %890 = arith.subf %886, %889 : vector<8x8xf32>
    %891 = math.exp %890 : vector<8x8xf32>
    %cst_378 = arith.constant dense<0.000000e+00> : vector<8xf32>
    %892 = vector.multi_reduction <add>, %891, %cst_378 [1] : vector<8x8xf32> to vector<8xf32>
    %893 = vector.shape_cast %892 : vector<8xf32> to vector<8x1xf32>
    %894 = tpu.reciprocal %893 {approx = true} : vector<8x1xf32> -> vector<8x1xf32>
    %895 = vector.broadcast %894 : vector<8x1xf32> to vector<8x8xf32>
    %896 = arith.mulf %891, %895 : vector<8x8xf32>
    %cst_379 = arith.constant dense<0.000000e+00> : vector<8x8xf32>
    %897 = tpu.matmul %896, %884, %cst_379 {dimension_numbers = #tpu.dot_dimension_numbers<[1], [0], [0], [1], [0, 0, 1, 1], [], []>} : vector<8x8xf32>, vector<8x8xf32>, vector<8x8xf32> -> vector<8x8xf32>
    %898 = vector.extract_strided_slice %865 {offsets = [0, 16], sizes = [8, 8], strides = [1, 1]} : vector<8x96xf32> to vector<8x8xf32>
    %899 = vector.extract_strided_slice %865 {offsets = [0, 48], sizes = [8, 8], strides = [1, 1]} : vector<8x96xf32> to vector<8x8xf32>
    %900 = vector.extract_strided_slice %865 {offsets = [0, 80], sizes = [8, 8], strides = [1, 1]} : vector<8x96xf32> to vector<8x8xf32>
    %901 = tpu.transpose %899, [1, 0] : vector<8x8xf32> -> vector<8x8xf32>
    %cst_380 = arith.constant dense<0.000000e+00> : vector<8x8xf32>
    %902 = tpu.matmul %898, %901, %cst_380 {dimension_numbers = #tpu.dot_dimension_numbers<[1], [0], [0], [1], [0, 0, 1, 1], [], []>} : vector<8x8xf32>, vector<8x8xf32>, vector<8x8xf32> -> vector<8x8xf32>
    %cst_381 = arith.constant dense<0xFF800000> : vector<8xf32>
    %903 = vector.multi_reduction <maximumf>, %902, %cst_381 [1] : vector<8x8xf32> to vector<8xf32>
    %904 = vector.shape_cast %903 : vector<8xf32> to vector<8x1xf32>
    %905 = vector.broadcast %904 : vector<8x1xf32> to vector<8x8xf32>
    %906 = arith.subf %902, %905 : vector<8x8xf32>
    %907 = math.exp %906 : vector<8x8xf32>
    %cst_382 = arith.constant dense<0.000000e+00> : vector<8xf32>
    %908 = vector.multi_reduction <add>, %907, %cst_382 [1] : vector<8x8xf32> to vector<8xf32>
    %909 = vector.shape_cast %908 : vector<8xf32> to vector<8x1xf32>
    %910 = tpu.reciprocal %909 {approx = true} : vector<8x1xf32> -> vector<8x1xf32>
    %911 = vector.broadcast %910 : vector<8x1xf32> to vector<8x8xf32>
    %912 = arith.mulf %907, %911 : vector<8x8xf32>
    %cst_383 = arith.constant dense<0.000000e+00> : vector<8x8xf32>
    %913 = tpu.matmul %912, %900, %cst_383 {dimension_numbers = #tpu.dot_dimension_numbers<[1], [0], [0], [1], [0, 0, 1, 1], [], []>} : vector<8x8xf32>, vector<8x8xf32>, vector<8x8xf32> -> vector<8x8xf32>
    %914 = vector.extract_strided_slice %865 {offsets = [0, 24], sizes = [8, 8], strides = [1, 1]} : vector<8x96xf32> to vector<8x8xf32>
    %915 = vector.extract_strided_slice %865 {offsets = [0, 56], sizes = [8, 8], strides = [1, 1]} : vector<8x96xf32> to vector<8x8xf32>
    %916 = vector.extract_strided_slice %865 {offsets = [0, 88], sizes = [8, 8], strides = [1, 1]} : vector<8x96xf32> to vector<8x8xf32>
    %917 = tpu.transpose %915, [1, 0] : vector<8x8xf32> -> vector<8x8xf32>
    %cst_384 = arith.constant dense<0.000000e+00> : vector<8x8xf32>
    %918 = tpu.matmul %914, %917, %cst_384 {dimension_numbers = #tpu.dot_dimension_numbers<[1], [0], [0], [1], [0, 0, 1, 1], [], []>} : vector<8x8xf32>, vector<8x8xf32>, vector<8x8xf32> -> vector<8x8xf32>
    %cst_385 = arith.constant dense<0xFF800000> : vector<8xf32>
    %919 = vector.multi_reduction <maximumf>, %918, %cst_385 [1] : vector<8x8xf32> to vector<8xf32>
    %920 = vector.shape_cast %919 : vector<8xf32> to vector<8x1xf32>
    %921 = vector.broadcast %920 : vector<8x1xf32> to vector<8x8xf32>
    %922 = arith.subf %918, %921 : vector<8x8xf32>
    %923 = math.exp %922 : vector<8x8xf32>
    %cst_386 = arith.constant dense<0.000000e+00> : vector<8xf32>
    %924 = vector.multi_reduction <add>, %923, %cst_386 [1] : vector<8x8xf32> to vector<8xf32>
    %925 = vector.shape_cast %924 : vector<8xf32> to vector<8x1xf32>
    %926 = tpu.reciprocal %925 {approx = true} : vector<8x1xf32> -> vector<8x1xf32>
    %927 = vector.broadcast %926 : vector<8x1xf32> to vector<8x8xf32>
    %928 = arith.mulf %923, %927 : vector<8x8xf32>
    %cst_387 = arith.constant dense<0.000000e+00> : vector<8x8xf32>
    %929 = tpu.matmul %928, %916, %cst_387 {dimension_numbers = #tpu.dot_dimension_numbers<[1], [0], [0], [1], [0, 0, 1, 1], [], []>} : vector<8x8xf32>, vector<8x8xf32>, vector<8x8xf32> -> vector<8x8xf32>
    %930 = tpu.concatenate %881, %897, %913, %929 in 1 : vector<8x8xf32>, vector<8x8xf32>, vector<8x8xf32>, vector<8x8xf32> -> vector<8x32xf32>
    %c1_388 = arith.constant 1 : index
    %c32_389 = arith.constant 32 : index
    %c0_390 = arith.constant 0 : index
    %931 = vector.load %arg1[%c1_388, %c32_389, %c0_390] : memref<2x224x128xbf16, #tpu.memory_space<vmem>>, vector<1x32x32xbf16>
    %932 = vector.shape_cast %931 : vector<1x32x32xbf16> to vector<32x32xbf16>
    %933 = arith.truncf %930 : vector<8x32xf32> to vector<8x32xbf16>
    %cst_391 = arith.constant dense<0.000000e+00> : vector<8x32xf32>
    %934 = tpu.matmul %933, %932, %cst_391 {dimension_numbers = #tpu.dot_dimension_numbers<[1], [0], [0], [1], [0, 0, 1, 1], [], []>} : vector<8x32xbf16>, vector<32x32xbf16>, vector<8x32xf32> -> vector<8x32xf32>
    %c1_392 = arith.constant 1 : index
    %c8_393 = arith.constant 8 : index
    %c0_394 = arith.constant 0 : index
    %935 = vector.load %arg2[%c1_392, %c8_393, %c0_394] : memref<2x64x128xf32, #tpu.memory_space<vmem>>, vector<1x1x32xf32>
    %936 = vector.shape_cast %935 : vector<1x1x32xf32> to vector<1x32xf32>
    %937 = vector.broadcast %936 : vector<1x32xf32> to vector<8x32xf32>
    %938 = arith.addf %934, %937 : vector<8x32xf32>
    %939 = arith.addf %857, %938 : vector<8x32xf32>
    %c1_395 = arith.constant 1 : index
    %c32_396 = arith.constant 32 : index
    %c0_397 = arith.constant 0 : index
    %940 = vector.load %arg2[%c1_395, %c32_396, %c0_397] : memref<2x64x128xf32, #tpu.memory_space<vmem>>, vector<1x1x32xf32>
    %941 = vector.shape_cast %940 : vector<1x1x32xf32> to vector<1x32xf32>
    %c1_398 = arith.constant 1 : index
    %c40_399 = arith.constant 40 : index
    %c0_400 = arith.constant 0 : index
    %942 = vector.load %arg2[%c1_398, %c40_399, %c0_400] : memref<2x64x128xf32, #tpu.memory_space<vmem>>, vector<1x1x32xf32>
    %943 = vector.shape_cast %942 : vector<1x1x32xf32> to vector<1x32xf32>
    %cst_401 = arith.constant dense<0.000000e+00> : vector<8xf32>
    %944 = vector.multi_reduction <add>, %939, %cst_401 [1] : vector<8x32xf32> to vector<8xf32>
    %945 = vector.shape_cast %944 : vector<8xf32> to vector<8x1xf32>
    %cst_402 = arith.constant 3.200000e+01 : f32
    %946 = vector.broadcast %cst_402 : f32 to vector<8x1xf32>
    %947 = arith.divf %945, %946 : vector<8x1xf32>
    %948 = arith.mulf %939, %939 : vector<8x32xf32>
    %cst_403 = arith.constant dense<0.000000e+00> : vector<8xf32>
    %949 = vector.multi_reduction <add>, %948, %cst_403 [1] : vector<8x32xf32> to vector<8xf32>
    %950 = vector.shape_cast %949 : vector<8xf32> to vector<8x1xf32>
    %cst_404 = arith.constant 3.200000e+01 : f32
    %951 = vector.broadcast %cst_404 : f32 to vector<8x1xf32>
    %952 = arith.divf %950, %951 : vector<8x1xf32>
    %953 = vector.broadcast %947 : vector<8x1xf32> to vector<8x32xf32>
    %954 = arith.subf %939, %953 : vector<8x32xf32>
    %955 = arith.mulf %947, %947 : vector<8x1xf32>
    %956 = arith.subf %952, %955 : vector<8x1xf32>
    %cst_405 = arith.constant 9.99999974E-6 : f32
    %957 = vector.broadcast %cst_405 : f32 to vector<8x1xf32>
    %958 = arith.addf %956, %957 : vector<8x1xf32>
    %959 = math.rsqrt %958 : vector<8x1xf32>
    %960 = vector.broadcast %959 : vector<8x1xf32> to vector<8x32xf32>
    %961 = arith.mulf %954, %960 : vector<8x32xf32>
    %962 = vector.broadcast %941 : vector<1x32xf32> to vector<8x32xf32>
    %963 = arith.mulf %961, %962 : vector<8x32xf32>
    %964 = vector.broadcast %943 : vector<1x32xf32> to vector<8x32xf32>
    %965 = arith.addf %963, %964 : vector<8x32xf32>
    %c1_406 = arith.constant 1 : index
    %c64_407 = arith.constant 64 : index
    %c0_408 = arith.constant 0 : index
    %966 = vector.load %arg1[%c1_406, %c64_407, %c0_408] : memref<2x224x128xbf16, #tpu.memory_space<vmem>>, vector<1x32x128xbf16>
    %967 = vector.shape_cast %966 : vector<1x32x128xbf16> to vector<32x128xbf16>
    %968 = arith.truncf %965 : vector<8x32xf32> to vector<8x32xbf16>
    %cst_409 = arith.constant dense<0.000000e+00> : vector<8x128xf32>
    %969 = tpu.matmul %968, %967, %cst_409 {dimension_numbers = #tpu.dot_dimension_numbers<[1], [0], [0], [1], [0, 0, 1, 1], [], []>} : vector<8x32xbf16>, vector<32x128xbf16>, vector<8x128xf32> -> vector<8x128xf32>
    %c1_410 = arith.constant 1 : index
    %c16_411 = arith.constant 16 : index
    %c0_412 = arith.constant 0 : index
    %970 = vector.load %arg2[%c1_410, %c16_411, %c0_412] : memref<2x64x128xf32, #tpu.memory_space<vmem>>, vector<1x1x128xf32>
    %971 = vector.shape_cast %970 : vector<1x1x128xf32> to vector<1x128xf32>
    %972 = vector.broadcast %971 : vector<1x128xf32> to vector<8x128xf32>
    %973 = arith.addf %969, %972 : vector<8x128xf32>
    %cst_413 = arith.constant 0.000000e+00 : f32
    %974 = vector.broadcast %cst_413 : f32 to vector<8x128xf32>
    %975 = arith.maximumf %973, %974 : vector<8x128xf32>
    %c1_414 = arith.constant 1 : index
    %c96_415 = arith.constant 96 : index
    %c0_416 = arith.constant 0 : index
    %976 = vector.load %arg1[%c1_414, %c96_415, %c0_416] : memref<2x224x128xbf16, #tpu.memory_space<vmem>>, vector<1x128x32xbf16>
    %977 = vector.shape_cast %976 : vector<1x128x32xbf16> to vector<128x32xbf16>
    %978 = arith.truncf %975 : vector<8x128xf32> to vector<8x128xbf16>
    %cst_417 = arith.constant dense<0.000000e+00> : vector<8x32xf32>
    %979 = tpu.matmul %978, %977, %cst_417 {dimension_numbers = #tpu.dot_dimension_numbers<[1], [0], [0], [1], [0, 0, 1, 1], [], []>} : vector<8x128xbf16>, vector<128x32xbf16>, vector<8x32xf32> -> vector<8x32xf32>
    %c1_418 = arith.constant 1 : index
    %c24_419 = arith.constant 24 : index
    %c0_420 = arith.constant 0 : index
    %980 = vector.load %arg2[%c1_418, %c24_419, %c0_420] : memref<2x64x128xf32, #tpu.memory_space<vmem>>, vector<1x1x32xf32>
    %981 = vector.shape_cast %980 : vector<1x1x32xf32> to vector<1x32xf32>
    %982 = vector.broadcast %981 : vector<1x32xf32> to vector<8x32xf32>
    %983 = arith.addf %979, %982 : vector<8x32xf32>
    %984 = arith.addf %965, %983 : vector<8x32xf32>
    %c1_421 = arith.constant 1 : index
    %c48_422 = arith.constant 48 : index
    %c0_423 = arith.constant 0 : index
    %985 = vector.load %arg2[%c1_421, %c48_422, %c0_423] : memref<2x64x128xf32, #tpu.memory_space<vmem>>, vector<1x1x32xf32>
    %986 = vector.shape_cast %985 : vector<1x1x32xf32> to vector<1x32xf32>
    %c1_424 = arith.constant 1 : index
    %c56_425 = arith.constant 56 : index
    %c0_426 = arith.constant 0 : index
    %987 = vector.load %arg2[%c1_424, %c56_425, %c0_426] : memref<2x64x128xf32, #tpu.memory_space<vmem>>, vector<1x1x32xf32>
    %988 = vector.shape_cast %987 : vector<1x1x32xf32> to vector<1x32xf32>
    %cst_427 = arith.constant dense<0.000000e+00> : vector<8xf32>
    %989 = vector.multi_reduction <add>, %984, %cst_427 [1] : vector<8x32xf32> to vector<8xf32>
    %990 = vector.shape_cast %989 : vector<8xf32> to vector<8x1xf32>
    %cst_428 = arith.constant 3.200000e+01 : f32
    %991 = vector.broadcast %cst_428 : f32 to vector<8x1xf32>
    %992 = arith.divf %990, %991 : vector<8x1xf32>
    %993 = arith.mulf %984, %984 : vector<8x32xf32>
    %cst_429 = arith.constant dense<0.000000e+00> : vector<8xf32>
    %994 = vector.multi_reduction <add>, %993, %cst_429 [1] : vector<8x32xf32> to vector<8xf32>
    %995 = vector.shape_cast %994 : vector<8xf32> to vector<8x1xf32>
    %cst_430 = arith.constant 3.200000e+01 : f32
    %996 = vector.broadcast %cst_430 : f32 to vector<8x1xf32>
    %997 = arith.divf %995, %996 : vector<8x1xf32>
    %998 = vector.broadcast %992 : vector<8x1xf32> to vector<8x32xf32>
    %999 = arith.subf %984, %998 : vector<8x32xf32>
    %1000 = arith.mulf %992, %992 : vector<8x1xf32>
    %1001 = arith.subf %997, %1000 : vector<8x1xf32>
    %cst_431 = arith.constant 9.99999974E-6 : f32
    %1002 = vector.broadcast %cst_431 : f32 to vector<8x1xf32>
    %1003 = arith.addf %1001, %1002 : vector<8x1xf32>
    %1004 = math.rsqrt %1003 : vector<8x1xf32>
    %1005 = vector.broadcast %1004 : vector<8x1xf32> to vector<8x32xf32>
    %1006 = arith.mulf %999, %1005 : vector<8x32xf32>
    %1007 = vector.broadcast %986 : vector<1x32xf32> to vector<8x32xf32>
    %1008 = arith.mulf %1006, %1007 : vector<8x32xf32>
    %1009 = vector.broadcast %988 : vector<1x32xf32> to vector<8x32xf32>
    %1010 = arith.addf %1008, %1009 : vector<8x32xf32>
    %1011 = arith.addf %1010, %702 : vector<8x32xf32>
    %1012 = arith.truncf %1011 : vector<8x32xf32> to vector<8x32xbf16>
    %cst_432 = arith.constant dense<0.000000e+00> : vector<8x64xf32>
    %1013 = tpu.matmul %1012, %2, %cst_432 {dimension_numbers = #tpu.dot_dimension_numbers<[1], [0], [0], [1], [0, 0, 1, 1], [], []>} : vector<8x32xbf16>, vector<32x64xbf16>, vector<8x64xf32> -> vector<8x64xf32>
    %1014 = vector.broadcast %3 : vector<1x64xf32> to vector<8x64xf32>
    %1015 = arith.addf %1013, %1014 : vector<8x64xf32>
    %cst_433 = arith.constant 0.000000e+00 : f32
    %1016 = vector.broadcast %cst_433 : f32 to vector<8x64xf32>
    %1017 = arith.maximumf %1015, %1016 : vector<8x64xf32>
    %c160 = arith.constant 160 : index
    %c0_434 = arith.constant 0 : index
    %1018 = vector.load %arg3[%c160, %c0_434] : memref<288x128xbf16, #tpu.memory_space<vmem>>, vector<64x1xbf16>
    %1019 = arith.truncf %1017 : vector<8x64xf32> to vector<8x64xbf16>
    %cst_435 = arith.constant dense<0.000000e+00> : vector<8x1xf32>
    %1020 = tpu.matmul %1019, %1018, %cst_435 {dimension_numbers = #tpu.dot_dimension_numbers<[1], [0], [0], [1], [0, 0, 1, 1], [], []>} : vector<8x64xbf16>, vector<64x1xbf16>, vector<8x1xf32> -> vector<8x1xf32>
    %c104 = arith.constant 104 : index
    %c0_436 = arith.constant 0 : index
    %1021 = vector.load %arg4[%c104, %c0_436] : memref<120x128xf32, #tpu.memory_space<vmem>>, vector<1x1xf32>
    %1022 = vector.broadcast %1021 : vector<1x1xf32> to vector<8x1xf32>
    %1023 = arith.addf %1020, %1022 : vector<8x1xf32>
    %c48_437 = arith.constant 48 : index
    %c0_438 = arith.constant 0 : index
    %1024 = vector.load %arg3[%c48_437, %c0_438] : memref<288x128xbf16, #tpu.memory_space<vmem>>, vector<16x32xbf16>
    %1025 = arith.truncf %0 : vector<8x16xf32> to vector<8x16xbf16>
    %cst_439 = arith.constant dense<0.000000e+00> : vector<8x32xf32>
    %1026 = tpu.matmul %1025, %1024, %cst_439 {dimension_numbers = #tpu.dot_dimension_numbers<[1], [0], [0], [1], [0, 0, 1, 1], [], []>} : vector<8x16xbf16>, vector<16x32xbf16>, vector<8x32xf32> -> vector<8x32xf32>
    %c80 = arith.constant 80 : index
    %c0_440 = arith.constant 0 : index
    %1027 = vector.load %arg4[%c80, %c0_440] : memref<120x128xf32, #tpu.memory_space<vmem>>, vector<1x32xf32>
    %1028 = vector.broadcast %1027 : vector<1x32xf32> to vector<8x32xf32>
    %1029 = arith.addf %1026, %1028 : vector<8x32xf32>
    %c56_441 = arith.constant 56 : index
    %c0_442 = arith.constant 0 : index
    %1030 = vector.load %arg4[%c56_441, %c0_442] : memref<120x128xf32, #tpu.memory_space<vmem>>, vector<2x32xf32>
    %1031 = vector.extract_strided_slice %330 {offsets = [0, 0], sizes = [8, 1], strides = [1, 1]} : vector<8x2xf32> to vector<8x1xf32>
    %1032 = vector.extract_strided_slice %1030 {offsets = [0, 0], sizes = [1, 32], strides = [1, 1]} : vector<2x32xf32> to vector<1x32xf32>
    %1033 = vector.broadcast %1031 : vector<8x1xf32> to vector<8x32xf32>
    %1034 = vector.broadcast %1032 : vector<1x32xf32> to vector<8x32xf32>
    %1035 = arith.mulf %1033, %1034 : vector<8x32xf32>
    %1036 = arith.addf %1029, %1035 : vector<8x32xf32>
    %1037 = vector.extract_strided_slice %330 {offsets = [0, 1], sizes = [8, 1], strides = [1, 1]} : vector<8x2xf32> to vector<8x1xf32>
    %1038 = vector.extract_strided_slice %1030 {offsets = [1, 0], sizes = [1, 32], strides = [1, 1]} : vector<2x32xf32> to vector<1x32xf32>
    %1039 = vector.broadcast %1037 : vector<8x1xf32> to vector<8x32xf32>
    %1040 = vector.broadcast %1038 : vector<1x32xf32> to vector<8x32xf32>
    %1041 = arith.mulf %1039, %1040 : vector<8x32xf32>
    %1042 = arith.addf %1036, %1041 : vector<8x32xf32>
    %c64_443 = arith.constant 64 : index
    %c0_444 = arith.constant 0 : index
    %1043 = vector.load %arg4[%c64_443, %c0_444] : memref<120x128xf32, #tpu.memory_space<vmem>>, vector<2x32xf32>
    %1044 = vector.extract_strided_slice %670 {offsets = [0, 0], sizes = [8, 1], strides = [1, 1]} : vector<8x2xf32> to vector<8x1xf32>
    %1045 = vector.extract_strided_slice %1043 {offsets = [0, 0], sizes = [1, 32], strides = [1, 1]} : vector<2x32xf32> to vector<1x32xf32>
    %1046 = vector.broadcast %1044 : vector<8x1xf32> to vector<8x32xf32>
    %1047 = vector.broadcast %1045 : vector<1x32xf32> to vector<8x32xf32>
    %1048 = arith.mulf %1046, %1047 : vector<8x32xf32>
    %1049 = arith.addf %1042, %1048 : vector<8x32xf32>
    %1050 = vector.extract_strided_slice %670 {offsets = [0, 1], sizes = [8, 1], strides = [1, 1]} : vector<8x2xf32> to vector<8x1xf32>
    %1051 = vector.extract_strided_slice %1043 {offsets = [1, 0], sizes = [1, 32], strides = [1, 1]} : vector<2x32xf32> to vector<1x32xf32>
    %1052 = vector.broadcast %1050 : vector<8x1xf32> to vector<8x32xf32>
    %1053 = vector.broadcast %1051 : vector<1x32xf32> to vector<8x32xf32>
    %1054 = arith.mulf %1052, %1053 : vector<8x32xf32>
    %1055 = arith.addf %1049, %1054 : vector<8x32xf32>
    %c72 = arith.constant 72 : index
    %c0_445 = arith.constant 0 : index
    %1056 = vector.load %arg4[%c72, %c0_445] : memref<120x128xf32, #tpu.memory_space<vmem>>, vector<1x32xf32>
    %1057 = vector.broadcast %1023 : vector<8x1xf32> to vector<8x32xf32>
    %1058 = vector.broadcast %1056 : vector<1x32xf32> to vector<8x32xf32>
    %1059 = arith.mulf %1057, %1058 : vector<8x32xf32>
    %1060 = arith.addf %1055, %1059 : vector<8x32xf32>
    %1061 = vector.broadcast %1 : vector<1x32xf32> to vector<8x32xf32>
    %1062 = arith.addf %1060, %1061 : vector<8x32xf32>
    %c0_446 = arith.constant 0 : index
    %c0_447 = arith.constant 0 : index
    %c0_448 = arith.constant 0 : index
    %1063 = vector.load %arg1[%c0_446, %c0_447, %c0_448] : memref<2x224x128xbf16, #tpu.memory_space<vmem>>, vector<1x32x96xbf16>
    %1064 = vector.shape_cast %1063 : vector<1x32x96xbf16> to vector<32x96xbf16>
    %1065 = arith.truncf %1062 : vector<8x32xf32> to vector<8x32xbf16>
    %cst_449 = arith.constant dense<0.000000e+00> : vector<8x96xf32>
    %1066 = tpu.matmul %1065, %1064, %cst_449 {dimension_numbers = #tpu.dot_dimension_numbers<[1], [0], [0], [1], [0, 0, 1, 1], [], []>} : vector<8x32xbf16>, vector<32x96xbf16>, vector<8x96xf32> -> vector<8x96xf32>
    %c0_450 = arith.constant 0 : index
    %c0_451 = arith.constant 0 : index
    %c0_452 = arith.constant 0 : index
    %1067 = vector.load %arg2[%c0_450, %c0_451, %c0_452] : memref<2x64x128xf32, #tpu.memory_space<vmem>>, vector<1x1x96xf32>
    %1068 = vector.shape_cast %1067 : vector<1x1x96xf32> to vector<1x96xf32>
    %1069 = vector.broadcast %1068 : vector<1x96xf32> to vector<8x96xf32>
    %1070 = arith.addf %1066, %1069 : vector<8x96xf32>
    %1071 = vector.extract_strided_slice %1070 {offsets = [0, 0], sizes = [8, 8], strides = [1, 1]} : vector<8x96xf32> to vector<8x8xf32>
    %1072 = vector.extract_strided_slice %1070 {offsets = [0, 32], sizes = [8, 8], strides = [1, 1]} : vector<8x96xf32> to vector<8x8xf32>
    %1073 = vector.extract_strided_slice %1070 {offsets = [0, 64], sizes = [8, 8], strides = [1, 1]} : vector<8x96xf32> to vector<8x8xf32>
    %1074 = tpu.transpose %1072, [1, 0] : vector<8x8xf32> -> vector<8x8xf32>
    %cst_453 = arith.constant dense<0.000000e+00> : vector<8x8xf32>
    %1075 = tpu.matmul %1071, %1074, %cst_453 {dimension_numbers = #tpu.dot_dimension_numbers<[1], [0], [0], [1], [0, 0, 1, 1], [], []>} : vector<8x8xf32>, vector<8x8xf32>, vector<8x8xf32> -> vector<8x8xf32>
    %cst_454 = arith.constant dense<0xFF800000> : vector<8xf32>
    %1076 = vector.multi_reduction <maximumf>, %1075, %cst_454 [1] : vector<8x8xf32> to vector<8xf32>
    %1077 = vector.shape_cast %1076 : vector<8xf32> to vector<8x1xf32>
    %1078 = vector.broadcast %1077 : vector<8x1xf32> to vector<8x8xf32>
    %1079 = arith.subf %1075, %1078 : vector<8x8xf32>
    %1080 = math.exp %1079 : vector<8x8xf32>
    %cst_455 = arith.constant dense<0.000000e+00> : vector<8xf32>
    %1081 = vector.multi_reduction <add>, %1080, %cst_455 [1] : vector<8x8xf32> to vector<8xf32>
    %1082 = vector.shape_cast %1081 : vector<8xf32> to vector<8x1xf32>
    %1083 = tpu.reciprocal %1082 {approx = true} : vector<8x1xf32> -> vector<8x1xf32>
    %1084 = vector.broadcast %1083 : vector<8x1xf32> to vector<8x8xf32>
    %1085 = arith.mulf %1080, %1084 : vector<8x8xf32>
    %cst_456 = arith.constant dense<0.000000e+00> : vector<8x8xf32>
    %1086 = tpu.matmul %1085, %1073, %cst_456 {dimension_numbers = #tpu.dot_dimension_numbers<[1], [0], [0], [1], [0, 0, 1, 1], [], []>} : vector<8x8xf32>, vector<8x8xf32>, vector<8x8xf32> -> vector<8x8xf32>
    %1087 = vector.extract_strided_slice %1070 {offsets = [0, 8], sizes = [8, 8], strides = [1, 1]} : vector<8x96xf32> to vector<8x8xf32>
    %1088 = vector.extract_strided_slice %1070 {offsets = [0, 40], sizes = [8, 8], strides = [1, 1]} : vector<8x96xf32> to vector<8x8xf32>
    %1089 = vector.extract_strided_slice %1070 {offsets = [0, 72], sizes = [8, 8], strides = [1, 1]} : vector<8x96xf32> to vector<8x8xf32>
    %1090 = tpu.transpose %1088, [1, 0] : vector<8x8xf32> -> vector<8x8xf32>
    %cst_457 = arith.constant dense<0.000000e+00> : vector<8x8xf32>
    %1091 = tpu.matmul %1087, %1090, %cst_457 {dimension_numbers = #tpu.dot_dimension_numbers<[1], [0], [0], [1], [0, 0, 1, 1], [], []>} : vector<8x8xf32>, vector<8x8xf32>, vector<8x8xf32> -> vector<8x8xf32>
    %cst_458 = arith.constant dense<0xFF800000> : vector<8xf32>
    %1092 = vector.multi_reduction <maximumf>, %1091, %cst_458 [1] : vector<8x8xf32> to vector<8xf32>
    %1093 = vector.shape_cast %1092 : vector<8xf32> to vector<8x1xf32>
    %1094 = vector.broadcast %1093 : vector<8x1xf32> to vector<8x8xf32>
    %1095 = arith.subf %1091, %1094 : vector<8x8xf32>
    %1096 = math.exp %1095 : vector<8x8xf32>
    %cst_459 = arith.constant dense<0.000000e+00> : vector<8xf32>
    %1097 = vector.multi_reduction <add>, %1096, %cst_459 [1] : vector<8x8xf32> to vector<8xf32>
    %1098 = vector.shape_cast %1097 : vector<8xf32> to vector<8x1xf32>
    %1099 = tpu.reciprocal %1098 {approx = true} : vector<8x1xf32> -> vector<8x1xf32>
    %1100 = vector.broadcast %1099 : vector<8x1xf32> to vector<8x8xf32>
    %1101 = arith.mulf %1096, %1100 : vector<8x8xf32>
    %cst_460 = arith.constant dense<0.000000e+00> : vector<8x8xf32>
    %1102 = tpu.matmul %1101, %1089, %cst_460 {dimension_numbers = #tpu.dot_dimension_numbers<[1], [0], [0], [1], [0, 0, 1, 1], [], []>} : vector<8x8xf32>, vector<8x8xf32>, vector<8x8xf32> -> vector<8x8xf32>
    %1103 = vector.extract_strided_slice %1070 {offsets = [0, 16], sizes = [8, 8], strides = [1, 1]} : vector<8x96xf32> to vector<8x8xf32>
    %1104 = vector.extract_strided_slice %1070 {offsets = [0, 48], sizes = [8, 8], strides = [1, 1]} : vector<8x96xf32> to vector<8x8xf32>
    %1105 = vector.extract_strided_slice %1070 {offsets = [0, 80], sizes = [8, 8], strides = [1, 1]} : vector<8x96xf32> to vector<8x8xf32>
    %1106 = tpu.transpose %1104, [1, 0] : vector<8x8xf32> -> vector<8x8xf32>
    %cst_461 = arith.constant dense<0.000000e+00> : vector<8x8xf32>
    %1107 = tpu.matmul %1103, %1106, %cst_461 {dimension_numbers = #tpu.dot_dimension_numbers<[1], [0], [0], [1], [0, 0, 1, 1], [], []>} : vector<8x8xf32>, vector<8x8xf32>, vector<8x8xf32> -> vector<8x8xf32>
    %cst_462 = arith.constant dense<0xFF800000> : vector<8xf32>
    %1108 = vector.multi_reduction <maximumf>, %1107, %cst_462 [1] : vector<8x8xf32> to vector<8xf32>
    %1109 = vector.shape_cast %1108 : vector<8xf32> to vector<8x1xf32>
    %1110 = vector.broadcast %1109 : vector<8x1xf32> to vector<8x8xf32>
    %1111 = arith.subf %1107, %1110 : vector<8x8xf32>
    %1112 = math.exp %1111 : vector<8x8xf32>
    %cst_463 = arith.constant dense<0.000000e+00> : vector<8xf32>
    %1113 = vector.multi_reduction <add>, %1112, %cst_463 [1] : vector<8x8xf32> to vector<8xf32>
    %1114 = vector.shape_cast %1113 : vector<8xf32> to vector<8x1xf32>
    %1115 = tpu.reciprocal %1114 {approx = true} : vector<8x1xf32> -> vector<8x1xf32>
    %1116 = vector.broadcast %1115 : vector<8x1xf32> to vector<8x8xf32>
    %1117 = arith.mulf %1112, %1116 : vector<8x8xf32>
    %cst_464 = arith.constant dense<0.000000e+00> : vector<8x8xf32>
    %1118 = tpu.matmul %1117, %1105, %cst_464 {dimension_numbers = #tpu.dot_dimension_numbers<[1], [0], [0], [1], [0, 0, 1, 1], [], []>} : vector<8x8xf32>, vector<8x8xf32>, vector<8x8xf32> -> vector<8x8xf32>
    %1119 = vector.extract_strided_slice %1070 {offsets = [0, 24], sizes = [8, 8], strides = [1, 1]} : vector<8x96xf32> to vector<8x8xf32>
    %1120 = vector.extract_strided_slice %1070 {offsets = [0, 56], sizes = [8, 8], strides = [1, 1]} : vector<8x96xf32> to vector<8x8xf32>
    %1121 = vector.extract_strided_slice %1070 {offsets = [0, 88], sizes = [8, 8], strides = [1, 1]} : vector<8x96xf32> to vector<8x8xf32>
    %1122 = tpu.transpose %1120, [1, 0] : vector<8x8xf32> -> vector<8x8xf32>
    %cst_465 = arith.constant dense<0.000000e+00> : vector<8x8xf32>
    %1123 = tpu.matmul %1119, %1122, %cst_465 {dimension_numbers = #tpu.dot_dimension_numbers<[1], [0], [0], [1], [0, 0, 1, 1], [], []>} : vector<8x8xf32>, vector<8x8xf32>, vector<8x8xf32> -> vector<8x8xf32>
    %cst_466 = arith.constant dense<0xFF800000> : vector<8xf32>
    %1124 = vector.multi_reduction <maximumf>, %1123, %cst_466 [1] : vector<8x8xf32> to vector<8xf32>
    %1125 = vector.shape_cast %1124 : vector<8xf32> to vector<8x1xf32>
    %1126 = vector.broadcast %1125 : vector<8x1xf32> to vector<8x8xf32>
    %1127 = arith.subf %1123, %1126 : vector<8x8xf32>
    %1128 = math.exp %1127 : vector<8x8xf32>
    %cst_467 = arith.constant dense<0.000000e+00> : vector<8xf32>
    %1129 = vector.multi_reduction <add>, %1128, %cst_467 [1] : vector<8x8xf32> to vector<8xf32>
    %1130 = vector.shape_cast %1129 : vector<8xf32> to vector<8x1xf32>
    %1131 = tpu.reciprocal %1130 {approx = true} : vector<8x1xf32> -> vector<8x1xf32>
    %1132 = vector.broadcast %1131 : vector<8x1xf32> to vector<8x8xf32>
    %1133 = arith.mulf %1128, %1132 : vector<8x8xf32>
    %cst_468 = arith.constant dense<0.000000e+00> : vector<8x8xf32>
    %1134 = tpu.matmul %1133, %1121, %cst_468 {dimension_numbers = #tpu.dot_dimension_numbers<[1], [0], [0], [1], [0, 0, 1, 1], [], []>} : vector<8x8xf32>, vector<8x8xf32>, vector<8x8xf32> -> vector<8x8xf32>
    %1135 = tpu.concatenate %1086, %1102, %1118, %1134 in 1 : vector<8x8xf32>, vector<8x8xf32>, vector<8x8xf32>, vector<8x8xf32> -> vector<8x32xf32>
    %c0_469 = arith.constant 0 : index
    %c32_470 = arith.constant 32 : index
    %c0_471 = arith.constant 0 : index
    %1136 = vector.load %arg1[%c0_469, %c32_470, %c0_471] : memref<2x224x128xbf16, #tpu.memory_space<vmem>>, vector<1x32x32xbf16>
    %1137 = vector.shape_cast %1136 : vector<1x32x32xbf16> to vector<32x32xbf16>
    %1138 = arith.truncf %1135 : vector<8x32xf32> to vector<8x32xbf16>
    %cst_472 = arith.constant dense<0.000000e+00> : vector<8x32xf32>
    %1139 = tpu.matmul %1138, %1137, %cst_472 {dimension_numbers = #tpu.dot_dimension_numbers<[1], [0], [0], [1], [0, 0, 1, 1], [], []>} : vector<8x32xbf16>, vector<32x32xbf16>, vector<8x32xf32> -> vector<8x32xf32>
    %c0_473 = arith.constant 0 : index
    %c8_474 = arith.constant 8 : index
    %c0_475 = arith.constant 0 : index
    %1140 = vector.load %arg2[%c0_473, %c8_474, %c0_475] : memref<2x64x128xf32, #tpu.memory_space<vmem>>, vector<1x1x32xf32>
    %1141 = vector.shape_cast %1140 : vector<1x1x32xf32> to vector<1x32xf32>
    %1142 = vector.broadcast %1141 : vector<1x32xf32> to vector<8x32xf32>
    %1143 = arith.addf %1139, %1142 : vector<8x32xf32>
    %1144 = arith.addf %1062, %1143 : vector<8x32xf32>
    %c0_476 = arith.constant 0 : index
    %c32_477 = arith.constant 32 : index
    %c0_478 = arith.constant 0 : index
    %1145 = vector.load %arg2[%c0_476, %c32_477, %c0_478] : memref<2x64x128xf32, #tpu.memory_space<vmem>>, vector<1x1x32xf32>
    %1146 = vector.shape_cast %1145 : vector<1x1x32xf32> to vector<1x32xf32>
    %c0_479 = arith.constant 0 : index
    %c40_480 = arith.constant 40 : index
    %c0_481 = arith.constant 0 : index
    %1147 = vector.load %arg2[%c0_479, %c40_480, %c0_481] : memref<2x64x128xf32, #tpu.memory_space<vmem>>, vector<1x1x32xf32>
    %1148 = vector.shape_cast %1147 : vector<1x1x32xf32> to vector<1x32xf32>
    %cst_482 = arith.constant dense<0.000000e+00> : vector<8xf32>
    %1149 = vector.multi_reduction <add>, %1144, %cst_482 [1] : vector<8x32xf32> to vector<8xf32>
    %1150 = vector.shape_cast %1149 : vector<8xf32> to vector<8x1xf32>
    %cst_483 = arith.constant 3.200000e+01 : f32
    %1151 = vector.broadcast %cst_483 : f32 to vector<8x1xf32>
    %1152 = arith.divf %1150, %1151 : vector<8x1xf32>
    %1153 = arith.mulf %1144, %1144 : vector<8x32xf32>
    %cst_484 = arith.constant dense<0.000000e+00> : vector<8xf32>
    %1154 = vector.multi_reduction <add>, %1153, %cst_484 [1] : vector<8x32xf32> to vector<8xf32>
    %1155 = vector.shape_cast %1154 : vector<8xf32> to vector<8x1xf32>
    %cst_485 = arith.constant 3.200000e+01 : f32
    %1156 = vector.broadcast %cst_485 : f32 to vector<8x1xf32>
    %1157 = arith.divf %1155, %1156 : vector<8x1xf32>
    %1158 = vector.broadcast %1152 : vector<8x1xf32> to vector<8x32xf32>
    %1159 = arith.subf %1144, %1158 : vector<8x32xf32>
    %1160 = arith.mulf %1152, %1152 : vector<8x1xf32>
    %1161 = arith.subf %1157, %1160 : vector<8x1xf32>
    %cst_486 = arith.constant 9.99999974E-6 : f32
    %1162 = vector.broadcast %cst_486 : f32 to vector<8x1xf32>
    %1163 = arith.addf %1161, %1162 : vector<8x1xf32>
    %1164 = math.rsqrt %1163 : vector<8x1xf32>
    %1165 = vector.broadcast %1164 : vector<8x1xf32> to vector<8x32xf32>
    %1166 = arith.mulf %1159, %1165 : vector<8x32xf32>
    %1167 = vector.broadcast %1146 : vector<1x32xf32> to vector<8x32xf32>
    %1168 = arith.mulf %1166, %1167 : vector<8x32xf32>
    %1169 = vector.broadcast %1148 : vector<1x32xf32> to vector<8x32xf32>
    %1170 = arith.addf %1168, %1169 : vector<8x32xf32>
    %c0_487 = arith.constant 0 : index
    %c64_488 = arith.constant 64 : index
    %c0_489 = arith.constant 0 : index
    %1171 = vector.load %arg1[%c0_487, %c64_488, %c0_489] : memref<2x224x128xbf16, #tpu.memory_space<vmem>>, vector<1x32x128xbf16>
    %1172 = vector.shape_cast %1171 : vector<1x32x128xbf16> to vector<32x128xbf16>
    %1173 = arith.truncf %1170 : vector<8x32xf32> to vector<8x32xbf16>
    %cst_490 = arith.constant dense<0.000000e+00> : vector<8x128xf32>
    %1174 = tpu.matmul %1173, %1172, %cst_490 {dimension_numbers = #tpu.dot_dimension_numbers<[1], [0], [0], [1], [0, 0, 1, 1], [], []>} : vector<8x32xbf16>, vector<32x128xbf16>, vector<8x128xf32> -> vector<8x128xf32>
    %c0_491 = arith.constant 0 : index
    %c16_492 = arith.constant 16 : index
    %c0_493 = arith.constant 0 : index
    %1175 = vector.load %arg2[%c0_491, %c16_492, %c0_493] : memref<2x64x128xf32, #tpu.memory_space<vmem>>, vector<1x1x128xf32>
    %1176 = vector.shape_cast %1175 : vector<1x1x128xf32> to vector<1x128xf32>
    %1177 = vector.broadcast %1176 : vector<1x128xf32> to vector<8x128xf32>
    %1178 = arith.addf %1174, %1177 : vector<8x128xf32>
    %cst_494 = arith.constant 0.000000e+00 : f32
    %1179 = vector.broadcast %cst_494 : f32 to vector<8x128xf32>
    %1180 = arith.maximumf %1178, %1179 : vector<8x128xf32>
    %c0_495 = arith.constant 0 : index
    %c96_496 = arith.constant 96 : index
    %c0_497 = arith.constant 0 : index
    %1181 = vector.load %arg1[%c0_495, %c96_496, %c0_497] : memref<2x224x128xbf16, #tpu.memory_space<vmem>>, vector<1x128x32xbf16>
    %1182 = vector.shape_cast %1181 : vector<1x128x32xbf16> to vector<128x32xbf16>
    %1183 = arith.truncf %1180 : vector<8x128xf32> to vector<8x128xbf16>
    %cst_498 = arith.constant dense<0.000000e+00> : vector<8x32xf32>
    %1184 = tpu.matmul %1183, %1182, %cst_498 {dimension_numbers = #tpu.dot_dimension_numbers<[1], [0], [0], [1], [0, 0, 1, 1], [], []>} : vector<8x128xbf16>, vector<128x32xbf16>, vector<8x32xf32> -> vector<8x32xf32>
    %c0_499 = arith.constant 0 : index
    %c24_500 = arith.constant 24 : index
    %c0_501 = arith.constant 0 : index
    %1185 = vector.load %arg2[%c0_499, %c24_500, %c0_501] : memref<2x64x128xf32, #tpu.memory_space<vmem>>, vector<1x1x32xf32>
    %1186 = vector.shape_cast %1185 : vector<1x1x32xf32> to vector<1x32xf32>
    %1187 = vector.broadcast %1186 : vector<1x32xf32> to vector<8x32xf32>
    %1188 = arith.addf %1184, %1187 : vector<8x32xf32>
    %1189 = arith.addf %1170, %1188 : vector<8x32xf32>
    %c0_502 = arith.constant 0 : index
    %c48_503 = arith.constant 48 : index
    %c0_504 = arith.constant 0 : index
    %1190 = vector.load %arg2[%c0_502, %c48_503, %c0_504] : memref<2x64x128xf32, #tpu.memory_space<vmem>>, vector<1x1x32xf32>
    %1191 = vector.shape_cast %1190 : vector<1x1x32xf32> to vector<1x32xf32>
    %c0_505 = arith.constant 0 : index
    %c56_506 = arith.constant 56 : index
    %c0_507 = arith.constant 0 : index
    %1192 = vector.load %arg2[%c0_505, %c56_506, %c0_507] : memref<2x64x128xf32, #tpu.memory_space<vmem>>, vector<1x1x32xf32>
    %1193 = vector.shape_cast %1192 : vector<1x1x32xf32> to vector<1x32xf32>
    %cst_508 = arith.constant dense<0.000000e+00> : vector<8xf32>
    %1194 = vector.multi_reduction <add>, %1189, %cst_508 [1] : vector<8x32xf32> to vector<8xf32>
    %1195 = vector.shape_cast %1194 : vector<8xf32> to vector<8x1xf32>
    %cst_509 = arith.constant 3.200000e+01 : f32
    %1196 = vector.broadcast %cst_509 : f32 to vector<8x1xf32>
    %1197 = arith.divf %1195, %1196 : vector<8x1xf32>
    %1198 = arith.mulf %1189, %1189 : vector<8x32xf32>
    %cst_510 = arith.constant dense<0.000000e+00> : vector<8xf32>
    %1199 = vector.multi_reduction <add>, %1198, %cst_510 [1] : vector<8x32xf32> to vector<8xf32>
    %1200 = vector.shape_cast %1199 : vector<8xf32> to vector<8x1xf32>
    %cst_511 = arith.constant 3.200000e+01 : f32
    %1201 = vector.broadcast %cst_511 : f32 to vector<8x1xf32>
    %1202 = arith.divf %1200, %1201 : vector<8x1xf32>
    %1203 = vector.broadcast %1197 : vector<8x1xf32> to vector<8x32xf32>
    %1204 = arith.subf %1189, %1203 : vector<8x32xf32>
    %1205 = arith.mulf %1197, %1197 : vector<8x1xf32>
    %1206 = arith.subf %1202, %1205 : vector<8x1xf32>
    %cst_512 = arith.constant 9.99999974E-6 : f32
    %1207 = vector.broadcast %cst_512 : f32 to vector<8x1xf32>
    %1208 = arith.addf %1206, %1207 : vector<8x1xf32>
    %1209 = math.rsqrt %1208 : vector<8x1xf32>
    %1210 = vector.broadcast %1209 : vector<8x1xf32> to vector<8x32xf32>
    %1211 = arith.mulf %1204, %1210 : vector<8x32xf32>
    %1212 = vector.broadcast %1191 : vector<1x32xf32> to vector<8x32xf32>
    %1213 = arith.mulf %1211, %1212 : vector<8x32xf32>
    %1214 = vector.broadcast %1193 : vector<1x32xf32> to vector<8x32xf32>
    %1215 = arith.addf %1213, %1214 : vector<8x32xf32>
    %c1_513 = arith.constant 1 : index
    %c0_514 = arith.constant 0 : index
    %c0_515 = arith.constant 0 : index
    %1216 = vector.load %arg1[%c1_513, %c0_514, %c0_515] : memref<2x224x128xbf16, #tpu.memory_space<vmem>>, vector<1x32x96xbf16>
    %1217 = vector.shape_cast %1216 : vector<1x32x96xbf16> to vector<32x96xbf16>
    %1218 = arith.truncf %1215 : vector<8x32xf32> to vector<8x32xbf16>
    %cst_516 = arith.constant dense<0.000000e+00> : vector<8x96xf32>
    %1219 = tpu.matmul %1218, %1217, %cst_516 {dimension_numbers = #tpu.dot_dimension_numbers<[1], [0], [0], [1], [0, 0, 1, 1], [], []>} : vector<8x32xbf16>, vector<32x96xbf16>, vector<8x96xf32> -> vector<8x96xf32>
    %c1_517 = arith.constant 1 : index
    %c0_518 = arith.constant 0 : index
    %c0_519 = arith.constant 0 : index
    %1220 = vector.load %arg2[%c1_517, %c0_518, %c0_519] : memref<2x64x128xf32, #tpu.memory_space<vmem>>, vector<1x1x96xf32>
    %1221 = vector.shape_cast %1220 : vector<1x1x96xf32> to vector<1x96xf32>
    %1222 = vector.broadcast %1221 : vector<1x96xf32> to vector<8x96xf32>
    %1223 = arith.addf %1219, %1222 : vector<8x96xf32>
    %1224 = vector.extract_strided_slice %1223 {offsets = [0, 0], sizes = [8, 8], strides = [1, 1]} : vector<8x96xf32> to vector<8x8xf32>
    %1225 = vector.extract_strided_slice %1223 {offsets = [0, 32], sizes = [8, 8], strides = [1, 1]} : vector<8x96xf32> to vector<8x8xf32>
    %1226 = vector.extract_strided_slice %1223 {offsets = [0, 64], sizes = [8, 8], strides = [1, 1]} : vector<8x96xf32> to vector<8x8xf32>
    %1227 = tpu.transpose %1225, [1, 0] : vector<8x8xf32> -> vector<8x8xf32>
    %cst_520 = arith.constant dense<0.000000e+00> : vector<8x8xf32>
    %1228 = tpu.matmul %1224, %1227, %cst_520 {dimension_numbers = #tpu.dot_dimension_numbers<[1], [0], [0], [1], [0, 0, 1, 1], [], []>} : vector<8x8xf32>, vector<8x8xf32>, vector<8x8xf32> -> vector<8x8xf32>
    %cst_521 = arith.constant dense<0xFF800000> : vector<8xf32>
    %1229 = vector.multi_reduction <maximumf>, %1228, %cst_521 [1] : vector<8x8xf32> to vector<8xf32>
    %1230 = vector.shape_cast %1229 : vector<8xf32> to vector<8x1xf32>
    %1231 = vector.broadcast %1230 : vector<8x1xf32> to vector<8x8xf32>
    %1232 = arith.subf %1228, %1231 : vector<8x8xf32>
    %1233 = math.exp %1232 : vector<8x8xf32>
    %cst_522 = arith.constant dense<0.000000e+00> : vector<8xf32>
    %1234 = vector.multi_reduction <add>, %1233, %cst_522 [1] : vector<8x8xf32> to vector<8xf32>
    %1235 = vector.shape_cast %1234 : vector<8xf32> to vector<8x1xf32>
    %1236 = tpu.reciprocal %1235 {approx = true} : vector<8x1xf32> -> vector<8x1xf32>
    %1237 = vector.broadcast %1236 : vector<8x1xf32> to vector<8x8xf32>
    %1238 = arith.mulf %1233, %1237 : vector<8x8xf32>
    %cst_523 = arith.constant dense<0.000000e+00> : vector<8x8xf32>
    %1239 = tpu.matmul %1238, %1226, %cst_523 {dimension_numbers = #tpu.dot_dimension_numbers<[1], [0], [0], [1], [0, 0, 1, 1], [], []>} : vector<8x8xf32>, vector<8x8xf32>, vector<8x8xf32> -> vector<8x8xf32>
    %1240 = vector.extract_strided_slice %1223 {offsets = [0, 8], sizes = [8, 8], strides = [1, 1]} : vector<8x96xf32> to vector<8x8xf32>
    %1241 = vector.extract_strided_slice %1223 {offsets = [0, 40], sizes = [8, 8], strides = [1, 1]} : vector<8x96xf32> to vector<8x8xf32>
    %1242 = vector.extract_strided_slice %1223 {offsets = [0, 72], sizes = [8, 8], strides = [1, 1]} : vector<8x96xf32> to vector<8x8xf32>
    %1243 = tpu.transpose %1241, [1, 0] : vector<8x8xf32> -> vector<8x8xf32>
    %cst_524 = arith.constant dense<0.000000e+00> : vector<8x8xf32>
    %1244 = tpu.matmul %1240, %1243, %cst_524 {dimension_numbers = #tpu.dot_dimension_numbers<[1], [0], [0], [1], [0, 0, 1, 1], [], []>} : vector<8x8xf32>, vector<8x8xf32>, vector<8x8xf32> -> vector<8x8xf32>
    %cst_525 = arith.constant dense<0xFF800000> : vector<8xf32>
    %1245 = vector.multi_reduction <maximumf>, %1244, %cst_525 [1] : vector<8x8xf32> to vector<8xf32>
    %1246 = vector.shape_cast %1245 : vector<8xf32> to vector<8x1xf32>
    %1247 = vector.broadcast %1246 : vector<8x1xf32> to vector<8x8xf32>
    %1248 = arith.subf %1244, %1247 : vector<8x8xf32>
    %1249 = math.exp %1248 : vector<8x8xf32>
    %cst_526 = arith.constant dense<0.000000e+00> : vector<8xf32>
    %1250 = vector.multi_reduction <add>, %1249, %cst_526 [1] : vector<8x8xf32> to vector<8xf32>
    %1251 = vector.shape_cast %1250 : vector<8xf32> to vector<8x1xf32>
    %1252 = tpu.reciprocal %1251 {approx = true} : vector<8x1xf32> -> vector<8x1xf32>
    %1253 = vector.broadcast %1252 : vector<8x1xf32> to vector<8x8xf32>
    %1254 = arith.mulf %1249, %1253 : vector<8x8xf32>
    %cst_527 = arith.constant dense<0.000000e+00> : vector<8x8xf32>
    %1255 = tpu.matmul %1254, %1242, %cst_527 {dimension_numbers = #tpu.dot_dimension_numbers<[1], [0], [0], [1], [0, 0, 1, 1], [], []>} : vector<8x8xf32>, vector<8x8xf32>, vector<8x8xf32> -> vector<8x8xf32>
    %1256 = vector.extract_strided_slice %1223 {offsets = [0, 16], sizes = [8, 8], strides = [1, 1]} : vector<8x96xf32> to vector<8x8xf32>
    %1257 = vector.extract_strided_slice %1223 {offsets = [0, 48], sizes = [8, 8], strides = [1, 1]} : vector<8x96xf32> to vector<8x8xf32>
    %1258 = vector.extract_strided_slice %1223 {offsets = [0, 80], sizes = [8, 8], strides = [1, 1]} : vector<8x96xf32> to vector<8x8xf32>
    %1259 = tpu.transpose %1257, [1, 0] : vector<8x8xf32> -> vector<8x8xf32>
    %cst_528 = arith.constant dense<0.000000e+00> : vector<8x8xf32>
    %1260 = tpu.matmul %1256, %1259, %cst_528 {dimension_numbers = #tpu.dot_dimension_numbers<[1], [0], [0], [1], [0, 0, 1, 1], [], []>} : vector<8x8xf32>, vector<8x8xf32>, vector<8x8xf32> -> vector<8x8xf32>
    %cst_529 = arith.constant dense<0xFF800000> : vector<8xf32>
    %1261 = vector.multi_reduction <maximumf>, %1260, %cst_529 [1] : vector<8x8xf32> to vector<8xf32>
    %1262 = vector.shape_cast %1261 : vector<8xf32> to vector<8x1xf32>
    %1263 = vector.broadcast %1262 : vector<8x1xf32> to vector<8x8xf32>
    %1264 = arith.subf %1260, %1263 : vector<8x8xf32>
    %1265 = math.exp %1264 : vector<8x8xf32>
    %cst_530 = arith.constant dense<0.000000e+00> : vector<8xf32>
    %1266 = vector.multi_reduction <add>, %1265, %cst_530 [1] : vector<8x8xf32> to vector<8xf32>
    %1267 = vector.shape_cast %1266 : vector<8xf32> to vector<8x1xf32>
    %1268 = tpu.reciprocal %1267 {approx = true} : vector<8x1xf32> -> vector<8x1xf32>
    %1269 = vector.broadcast %1268 : vector<8x1xf32> to vector<8x8xf32>
    %1270 = arith.mulf %1265, %1269 : vector<8x8xf32>
    %cst_531 = arith.constant dense<0.000000e+00> : vector<8x8xf32>
    %1271 = tpu.matmul %1270, %1258, %cst_531 {dimension_numbers = #tpu.dot_dimension_numbers<[1], [0], [0], [1], [0, 0, 1, 1], [], []>} : vector<8x8xf32>, vector<8x8xf32>, vector<8x8xf32> -> vector<8x8xf32>
    %1272 = vector.extract_strided_slice %1223 {offsets = [0, 24], sizes = [8, 8], strides = [1, 1]} : vector<8x96xf32> to vector<8x8xf32>
    %1273 = vector.extract_strided_slice %1223 {offsets = [0, 56], sizes = [8, 8], strides = [1, 1]} : vector<8x96xf32> to vector<8x8xf32>
    %1274 = vector.extract_strided_slice %1223 {offsets = [0, 88], sizes = [8, 8], strides = [1, 1]} : vector<8x96xf32> to vector<8x8xf32>
    %1275 = tpu.transpose %1273, [1, 0] : vector<8x8xf32> -> vector<8x8xf32>
    %cst_532 = arith.constant dense<0.000000e+00> : vector<8x8xf32>
    %1276 = tpu.matmul %1272, %1275, %cst_532 {dimension_numbers = #tpu.dot_dimension_numbers<[1], [0], [0], [1], [0, 0, 1, 1], [], []>} : vector<8x8xf32>, vector<8x8xf32>, vector<8x8xf32> -> vector<8x8xf32>
    %cst_533 = arith.constant dense<0xFF800000> : vector<8xf32>
    %1277 = vector.multi_reduction <maximumf>, %1276, %cst_533 [1] : vector<8x8xf32> to vector<8xf32>
    %1278 = vector.shape_cast %1277 : vector<8xf32> to vector<8x1xf32>
    %1279 = vector.broadcast %1278 : vector<8x1xf32> to vector<8x8xf32>
    %1280 = arith.subf %1276, %1279 : vector<8x8xf32>
    %1281 = math.exp %1280 : vector<8x8xf32>
    %cst_534 = arith.constant dense<0.000000e+00> : vector<8xf32>
    %1282 = vector.multi_reduction <add>, %1281, %cst_534 [1] : vector<8x8xf32> to vector<8xf32>
    %1283 = vector.shape_cast %1282 : vector<8xf32> to vector<8x1xf32>
    %1284 = tpu.reciprocal %1283 {approx = true} : vector<8x1xf32> -> vector<8x1xf32>
    %1285 = vector.broadcast %1284 : vector<8x1xf32> to vector<8x8xf32>
    %1286 = arith.mulf %1281, %1285 : vector<8x8xf32>
    %cst_535 = arith.constant dense<0.000000e+00> : vector<8x8xf32>
    %1287 = tpu.matmul %1286, %1274, %cst_535 {dimension_numbers = #tpu.dot_dimension_numbers<[1], [0], [0], [1], [0, 0, 1, 1], [], []>} : vector<8x8xf32>, vector<8x8xf32>, vector<8x8xf32> -> vector<8x8xf32>
    %1288 = tpu.concatenate %1239, %1255, %1271, %1287 in 1 : vector<8x8xf32>, vector<8x8xf32>, vector<8x8xf32>, vector<8x8xf32> -> vector<8x32xf32>
    %c1_536 = arith.constant 1 : index
    %c32_537 = arith.constant 32 : index
    %c0_538 = arith.constant 0 : index
    %1289 = vector.load %arg1[%c1_536, %c32_537, %c0_538] : memref<2x224x128xbf16, #tpu.memory_space<vmem>>, vector<1x32x32xbf16>
    %1290 = vector.shape_cast %1289 : vector<1x32x32xbf16> to vector<32x32xbf16>
    %1291 = arith.truncf %1288 : vector<8x32xf32> to vector<8x32xbf16>
    %cst_539 = arith.constant dense<0.000000e+00> : vector<8x32xf32>
    %1292 = tpu.matmul %1291, %1290, %cst_539 {dimension_numbers = #tpu.dot_dimension_numbers<[1], [0], [0], [1], [0, 0, 1, 1], [], []>} : vector<8x32xbf16>, vector<32x32xbf16>, vector<8x32xf32> -> vector<8x32xf32>
    %c1_540 = arith.constant 1 : index
    %c8_541 = arith.constant 8 : index
    %c0_542 = arith.constant 0 : index
    %1293 = vector.load %arg2[%c1_540, %c8_541, %c0_542] : memref<2x64x128xf32, #tpu.memory_space<vmem>>, vector<1x1x32xf32>
    %1294 = vector.shape_cast %1293 : vector<1x1x32xf32> to vector<1x32xf32>
    %1295 = vector.broadcast %1294 : vector<1x32xf32> to vector<8x32xf32>
    %1296 = arith.addf %1292, %1295 : vector<8x32xf32>
    %1297 = arith.addf %1215, %1296 : vector<8x32xf32>
    %c1_543 = arith.constant 1 : index
    %c32_544 = arith.constant 32 : index
    %c0_545 = arith.constant 0 : index
    %1298 = vector.load %arg2[%c1_543, %c32_544, %c0_545] : memref<2x64x128xf32, #tpu.memory_space<vmem>>, vector<1x1x32xf32>
    %1299 = vector.shape_cast %1298 : vector<1x1x32xf32> to vector<1x32xf32>
    %c1_546 = arith.constant 1 : index
    %c40_547 = arith.constant 40 : index
    %c0_548 = arith.constant 0 : index
    %1300 = vector.load %arg2[%c1_546, %c40_547, %c0_548] : memref<2x64x128xf32, #tpu.memory_space<vmem>>, vector<1x1x32xf32>
    %1301 = vector.shape_cast %1300 : vector<1x1x32xf32> to vector<1x32xf32>
    %cst_549 = arith.constant dense<0.000000e+00> : vector<8xf32>
    %1302 = vector.multi_reduction <add>, %1297, %cst_549 [1] : vector<8x32xf32> to vector<8xf32>
    %1303 = vector.shape_cast %1302 : vector<8xf32> to vector<8x1xf32>
    %cst_550 = arith.constant 3.200000e+01 : f32
    %1304 = vector.broadcast %cst_550 : f32 to vector<8x1xf32>
    %1305 = arith.divf %1303, %1304 : vector<8x1xf32>
    %1306 = arith.mulf %1297, %1297 : vector<8x32xf32>
    %cst_551 = arith.constant dense<0.000000e+00> : vector<8xf32>
    %1307 = vector.multi_reduction <add>, %1306, %cst_551 [1] : vector<8x32xf32> to vector<8xf32>
    %1308 = vector.shape_cast %1307 : vector<8xf32> to vector<8x1xf32>
    %cst_552 = arith.constant 3.200000e+01 : f32
    %1309 = vector.broadcast %cst_552 : f32 to vector<8x1xf32>
    %1310 = arith.divf %1308, %1309 : vector<8x1xf32>
    %1311 = vector.broadcast %1305 : vector<8x1xf32> to vector<8x32xf32>
    %1312 = arith.subf %1297, %1311 : vector<8x32xf32>
    %1313 = arith.mulf %1305, %1305 : vector<8x1xf32>
    %1314 = arith.subf %1310, %1313 : vector<8x1xf32>
    %cst_553 = arith.constant 9.99999974E-6 : f32
    %1315 = vector.broadcast %cst_553 : f32 to vector<8x1xf32>
    %1316 = arith.addf %1314, %1315 : vector<8x1xf32>
    %1317 = math.rsqrt %1316 : vector<8x1xf32>
    %1318 = vector.broadcast %1317 : vector<8x1xf32> to vector<8x32xf32>
    %1319 = arith.mulf %1312, %1318 : vector<8x32xf32>
    %1320 = vector.broadcast %1299 : vector<1x32xf32> to vector<8x32xf32>
    %1321 = arith.mulf %1319, %1320 : vector<8x32xf32>
    %1322 = vector.broadcast %1301 : vector<1x32xf32> to vector<8x32xf32>
    %1323 = arith.addf %1321, %1322 : vector<8x32xf32>
    %c1_554 = arith.constant 1 : index
    %c64_555 = arith.constant 64 : index
    %c0_556 = arith.constant 0 : index
    %1324 = vector.load %arg1[%c1_554, %c64_555, %c0_556] : memref<2x224x128xbf16, #tpu.memory_space<vmem>>, vector<1x32x128xbf16>
    %1325 = vector.shape_cast %1324 : vector<1x32x128xbf16> to vector<32x128xbf16>
    %1326 = arith.truncf %1323 : vector<8x32xf32> to vector<8x32xbf16>
    %cst_557 = arith.constant dense<0.000000e+00> : vector<8x128xf32>
    %1327 = tpu.matmul %1326, %1325, %cst_557 {dimension_numbers = #tpu.dot_dimension_numbers<[1], [0], [0], [1], [0, 0, 1, 1], [], []>} : vector<8x32xbf16>, vector<32x128xbf16>, vector<8x128xf32> -> vector<8x128xf32>
    %c1_558 = arith.constant 1 : index
    %c16_559 = arith.constant 16 : index
    %c0_560 = arith.constant 0 : index
    %1328 = vector.load %arg2[%c1_558, %c16_559, %c0_560] : memref<2x64x128xf32, #tpu.memory_space<vmem>>, vector<1x1x128xf32>
    %1329 = vector.shape_cast %1328 : vector<1x1x128xf32> to vector<1x128xf32>
    %1330 = vector.broadcast %1329 : vector<1x128xf32> to vector<8x128xf32>
    %1331 = arith.addf %1327, %1330 : vector<8x128xf32>
    %cst_561 = arith.constant 0.000000e+00 : f32
    %1332 = vector.broadcast %cst_561 : f32 to vector<8x128xf32>
    %1333 = arith.maximumf %1331, %1332 : vector<8x128xf32>
    %c1_562 = arith.constant 1 : index
    %c96_563 = arith.constant 96 : index
    %c0_564 = arith.constant 0 : index
    %1334 = vector.load %arg1[%c1_562, %c96_563, %c0_564] : memref<2x224x128xbf16, #tpu.memory_space<vmem>>, vector<1x128x32xbf16>
    %1335 = vector.shape_cast %1334 : vector<1x128x32xbf16> to vector<128x32xbf16>
    %1336 = arith.truncf %1333 : vector<8x128xf32> to vector<8x128xbf16>
    %cst_565 = arith.constant dense<0.000000e+00> : vector<8x32xf32>
    %1337 = tpu.matmul %1336, %1335, %cst_565 {dimension_numbers = #tpu.dot_dimension_numbers<[1], [0], [0], [1], [0, 0, 1, 1], [], []>} : vector<8x128xbf16>, vector<128x32xbf16>, vector<8x32xf32> -> vector<8x32xf32>
    %c1_566 = arith.constant 1 : index
    %c24_567 = arith.constant 24 : index
    %c0_568 = arith.constant 0 : index
    %1338 = vector.load %arg2[%c1_566, %c24_567, %c0_568] : memref<2x64x128xf32, #tpu.memory_space<vmem>>, vector<1x1x32xf32>
    %1339 = vector.shape_cast %1338 : vector<1x1x32xf32> to vector<1x32xf32>
    %1340 = vector.broadcast %1339 : vector<1x32xf32> to vector<8x32xf32>
    %1341 = arith.addf %1337, %1340 : vector<8x32xf32>
    %1342 = arith.addf %1323, %1341 : vector<8x32xf32>
    %c1_569 = arith.constant 1 : index
    %c48_570 = arith.constant 48 : index
    %c0_571 = arith.constant 0 : index
    %1343 = vector.load %arg2[%c1_569, %c48_570, %c0_571] : memref<2x64x128xf32, #tpu.memory_space<vmem>>, vector<1x1x32xf32>
    %1344 = vector.shape_cast %1343 : vector<1x1x32xf32> to vector<1x32xf32>
    %c1_572 = arith.constant 1 : index
    %c56_573 = arith.constant 56 : index
    %c0_574 = arith.constant 0 : index
    %1345 = vector.load %arg2[%c1_572, %c56_573, %c0_574] : memref<2x64x128xf32, #tpu.memory_space<vmem>>, vector<1x1x32xf32>
    %1346 = vector.shape_cast %1345 : vector<1x1x32xf32> to vector<1x32xf32>
    %cst_575 = arith.constant dense<0.000000e+00> : vector<8xf32>
    %1347 = vector.multi_reduction <add>, %1342, %cst_575 [1] : vector<8x32xf32> to vector<8xf32>
    %1348 = vector.shape_cast %1347 : vector<8xf32> to vector<8x1xf32>
    %cst_576 = arith.constant 3.200000e+01 : f32
    %1349 = vector.broadcast %cst_576 : f32 to vector<8x1xf32>
    %1350 = arith.divf %1348, %1349 : vector<8x1xf32>
    %1351 = arith.mulf %1342, %1342 : vector<8x32xf32>
    %cst_577 = arith.constant dense<0.000000e+00> : vector<8xf32>
    %1352 = vector.multi_reduction <add>, %1351, %cst_577 [1] : vector<8x32xf32> to vector<8xf32>
    %1353 = vector.shape_cast %1352 : vector<8xf32> to vector<8x1xf32>
    %cst_578 = arith.constant 3.200000e+01 : f32
    %1354 = vector.broadcast %cst_578 : f32 to vector<8x1xf32>
    %1355 = arith.divf %1353, %1354 : vector<8x1xf32>
    %1356 = vector.broadcast %1350 : vector<8x1xf32> to vector<8x32xf32>
    %1357 = arith.subf %1342, %1356 : vector<8x32xf32>
    %1358 = arith.mulf %1350, %1350 : vector<8x1xf32>
    %1359 = arith.subf %1355, %1358 : vector<8x1xf32>
    %cst_579 = arith.constant 9.99999974E-6 : f32
    %1360 = vector.broadcast %cst_579 : f32 to vector<8x1xf32>
    %1361 = arith.addf %1359, %1360 : vector<8x1xf32>
    %1362 = math.rsqrt %1361 : vector<8x1xf32>
    %1363 = vector.broadcast %1362 : vector<8x1xf32> to vector<8x32xf32>
    %1364 = arith.mulf %1357, %1363 : vector<8x32xf32>
    %1365 = vector.broadcast %1344 : vector<1x32xf32> to vector<8x32xf32>
    %1366 = arith.mulf %1364, %1365 : vector<8x32xf32>
    %1367 = vector.broadcast %1346 : vector<1x32xf32> to vector<8x32xf32>
    %1368 = arith.addf %1366, %1367 : vector<8x32xf32>
    %1369 = arith.addf %1368, %1060 : vector<8x32xf32>
    %1370 = arith.truncf %1369 : vector<8x32xf32> to vector<8x32xbf16>
    %cst_580 = arith.constant dense<0.000000e+00> : vector<8x64xf32>
    %1371 = tpu.matmul %1370, %2, %cst_580 {dimension_numbers = #tpu.dot_dimension_numbers<[1], [0], [0], [1], [0, 0, 1, 1], [], []>} : vector<8x32xbf16>, vector<32x64xbf16>, vector<8x64xf32> -> vector<8x64xf32>
    %1372 = vector.broadcast %3 : vector<1x64xf32> to vector<8x64xf32>
    %1373 = arith.addf %1371, %1372 : vector<8x64xf32>
    %cst_581 = arith.constant 0.000000e+00 : f32
    %1374 = vector.broadcast %cst_581 : f32 to vector<8x64xf32>
    %1375 = arith.maximumf %1373, %1374 : vector<8x64xf32>
    %c224 = arith.constant 224 : index
    %c0_582 = arith.constant 0 : index
    %1376 = vector.load %arg3[%c224, %c0_582] : memref<288x128xbf16, #tpu.memory_space<vmem>>, vector<64x5xbf16>
    %1377 = arith.truncf %1375 : vector<8x64xf32> to vector<8x64xbf16>
    %cst_583 = arith.constant dense<0.000000e+00> : vector<8x5xf32>
    %1378 = tpu.matmul %1377, %1376, %cst_583 {dimension_numbers = #tpu.dot_dimension_numbers<[1], [0], [0], [1], [0, 0, 1, 1], [], []>} : vector<8x64xbf16>, vector<64x5xbf16>, vector<8x5xf32> -> vector<8x5xf32>
    %c112 = arith.constant 112 : index
    %c0_584 = arith.constant 0 : index
    %1379 = vector.load %arg4[%c112, %c0_584] : memref<120x128xf32, #tpu.memory_space<vmem>>, vector<1x5xf32>
    %1380 = vector.broadcast %1379 : vector<1x5xf32> to vector<8x5xf32>
    %1381 = arith.addf %1378, %1380 : vector<8x5xf32>
    %cst_585 = arith.constant 0.000000e+00 : f32
    %1382 = vector.broadcast %cst_585 : f32 to vector<8x118xf32>
    %1383 = tpu.concatenate %330, %670, %1023, %1381, %1382 in 1 : vector<8x2xf32>, vector<8x2xf32>, vector<8x1xf32>, vector<8x5xf32>, vector<8x118xf32> -> vector<8x128xf32>
    %c0_586 = arith.constant 0 : index
    %c0_587 = arith.constant 0 : index
    %1384 = vector.load %arg5[%c0_586, %c0_587] : memref<8x128xf32, #tpu.memory_space<vmem>>, vector<8x128xf32>
    tpu.vector_store %arg5[%c0_586, %c0_587], %1383 {strides = array<i32>} : memref<8x128xf32, #tpu.memory_space<vmem>>, vector<8x128xf32>,
    return
  }
}

</mosaic_0001>

<bundles_post_ra>
// kernel: spec2hrd_err_forward.1
= control target key start
LH: loop header
LB: loop body
LE: loop exit
PB: predicated region body
PF: predicated region fallthrough
CT: control target
= control target key end

     0   :  { %10 = vsyncpa [#allocation3], 0  ;;  %s11260_s0 = inlined_call_operand.hbm [shape: f32[8,16], index: 0, kind: input, shape index: {}]   ;;  %s11261_s1 = inlined_call_operand.hbm [shape: bf16[2,224,128], index: 1, kind: input, shape index: {}]   ;;  %s11262_s2 = inlined_call_operand.hbm [shape: f32[2,64,128], index: 2, kind: input, shape index: {}]   ;;  %s11263_s3 = inlined_call_operand.hbm [shape: bf16[288,128], index: 3, kind: input, shape index: {}]   ;;  %s11264_s4 = inlined_call_operand.hbm [shape: f32[120,128], index: 4, kind: input, shape index: {}]   ;;  %s11265_s5 = inlined_call_operand.hbm [shape: f32[8,128], index: 5, kind: output, shape index: {}]  }
   0x1   :  { %11 = vsyncpa [#allocation6], 0 }
   0x2   :  { %12 = vsyncpa [#allocation9], 0 }
   0x3   :  { %13 = vsyncpa [#allocation4], 0  ;;  %s10117_s18 = smov [#allocation5]  }
   0x4   :  { %s29_s19 = sshll.u32 %s10117_s18, 4  ;;  %s30_s19 = int_to_ptr.vmem [resolvable:$true] %s29_s19 }
   0x5   :  { %s9997_s20 = scalar_lea.vmem %s30_s19, 3584  ;;  %p10002_p1 = scmp.lt.s32.totalorder %s30_s19, %s30_s19 }
   0x6   :  { %p9998_p0 = scmp.ne.s32.totalorder %s30_s19, %s9997_s20  ;;  %p10003_p2 = scmp.lt.s32.totalorder %s9997_s20, %s9997_s20 }
   0x8   :  { %p10004_p3 = por %p10003_p2, %p10002_p1 }
   0xa   :  { %p10005_p4 = pnand %p10004_p3, %p9998_p0 }
   0xc   :  { %10008 = shalt.err (!%p10005_p4)
}
   0xd   :  { %s10118_s21 = smov 64   ;;  %s10119_s22 = smov 4  }
   0xe   :  { %35 = dma.hbm_to_vmem [thread:$0]  %s11261_s1, 3584, %s30_s19, [#allocation6], %s10118_s21, %s10118_s21, %s10119_s22  }
   0xf   :  { %s10120_s25 = smov [#allocation8]   ;;  %s10121_s27 = smov [#allocation2]  }
  0x10   :  { %s53_s26 = sshll.u32 %s10120_s25, 4  ;;  %s20_s28 = sshll.u32 %s10121_s27, 4  ;;  %s54_s26 = int_to_ptr.vmem [resolvable:$true] %s53_s26  ;;  %s21_s28 = int_to_ptr.vmem [resolvable:$true] %s20_s28 }
  0x11   :  { %s10017_s29 = scalar_lea.vmem %s54_s26, 2304  ;;  %p10022_p6 = scmp.lt.s32.totalorder %s54_s26, %s54_s26 }
  0x12   :  { %p10018_p5 = scmp.ne.s32.totalorder %s54_s26, %s10017_s29  ;;  %p10023_p7 = scmp.lt.s32.totalorder %s10017_s29, %s10017_s29 }
  0x14   :  { %p10024_p8 = por %p10023_p7, %p10022_p6 }
  0x16   :  { %p10025_p9 = pnand %p10024_p8, %p10018_p5 }
  0x18   :  { %10028 = shalt.err (!%p10025_p9)
}
  0x19   :  { %59 = dma.hbm_to_vmem [thread:$0]  %s11263_s3, 2304, %s54_s26, [#allocation9], %s10118_s21, %s10118_s21, %s10119_s22  }
  0x1a   :  { %s10037_s1 = scalar_lea.vmem %s21_s28, 128  ;;  %p10042_p11 = scmp.lt.s32.totalorder %s21_s28, %s21_s28 }
  0x1b   :  { %p10038_p10 = scmp.ne.s32.totalorder %s21_s28, %s10037_s1  ;;  %p10043_p12 = scmp.lt.s32.totalorder %s10037_s1, %s10037_s1 }
  0x1d   :  { %p10044_p13 = por %p10043_p12, %p10042_p11 }
  0x1f   :  { %p10045_p0 = pnand %p10044_p13, %p10038_p10 }
  0x21   :  { %10048 = shalt.err (!%p10045_p0)
}
  0x22   :  { %23 = dma.hbm_to_vmem [thread:$0]  %s11260_s0, 128, %s21_s28, [#allocation3]  }
  0x23   :  { %s10122_s9 = smov [#allocation7]  }
  0x24   :  { %s41_s10 = sshll.u32 %s10122_s9, 4  ;;  %s42_s10 = int_to_ptr.vmem [resolvable:$true] %s41_s10 }
  0x25   :  { %s10057_s11 = scalar_lea.vmem %s42_s10, 2048  ;;  %p10062_p2 = scmp.lt.s32.totalorder %s42_s10, %s42_s10 }
  0x26   :  { %p10058_p1 = scmp.ne.s32.totalorder %s42_s10, %s10057_s11  ;;  %p10063_p3 = scmp.lt.s32.totalorder %s10057_s11, %s10057_s11 }
  0x28   :  { %p10064_p4 = por %p10063_p3, %p10062_p2 }
  0x2a   :  { %p10065_p5 = pnand %p10064_p4, %p10058_p1 }
  0x2c   :  { %10068 = shalt.err (!%p10065_p5)
}
  0x2d   :  { %s10123_s3 = smov 128   ;;  %s10124_s12 = smov 8  }
  0x2e   :  { %47 = dma.hbm_to_vmem [thread:$0]  %s11262_s2, 2048, %s42_s10, [#allocation6], %s10123_s3, %s10123_s3, %s10124_s12  }
  0x2f   :  { %s10125_s15 = smov [#allocation10]  }
  0x30   :  { %s65_s16 = sshll.u32 %s10125_s15, 4  ;;  %s66_s16 = int_to_ptr.vmem [resolvable:$true] %s65_s16 }
  0x31   :  { %s10077_s0 = scalar_lea.vmem %s66_s16, 1920  ;;  %p10082_p7 = scmp.lt.s32.totalorder %s66_s16, %s66_s16 }
  0x32   :  { %p10078_p6 = scmp.ne.s32.totalorder %s66_s16, %s10077_s0  ;;  %p10083_p8 = scmp.lt.s32.totalorder %s10077_s0, %s10077_s0 }
  0x34   :  { %p10084_p9 = por %p10083_p8, %p10082_p7 }
  0x36   :  { %p10085_p10 = pnand %p10084_p9, %p10078_p6 }
  0x38   :  { %10088 = shalt.err (!%p10085_p10)
}
  0x39   :  { %71 = dma.hbm_to_vmem [thread:$0]  %s11264_s4, 1920, %s66_s16, [#allocation9], %s10123_s3, %s10123_s3, %s10124_s12  }
  0x3a   :  { %10109 = dma.done.wait [#allocation3], 128  }
  0x3b   :  { %10110 = vsyncadd [#allocation3], 4294967168 }
  0x3c   :  { %10111 = dma.done.wait [#allocation6], 5632  }
  0x3d   :  { %10112 = vsyncadd [#allocation6], 4294961664 }
  0x3e   :  { %10113 = dma.done.wait [#allocation9], 4224  }
  0x3f   :  { %10114 = vsyncadd [#allocation9], 4294963072  ;;  %v10126_v0 = vmov 0.0   ;;  %vm10127_vm0 = vmmov 0   ;;  %v9644_v1 = vld [vmem:[#allocation8] sm:$0xff]   ;;  %v88_v2 = vld [vmem:[#allocation2] sm:$0xff] }
  0x40   :  { %8837 = vmatprep.subr.bf16.mxu0 %v10126_v0  ;;  %8839 = vmatprep.mubr.msk.bf16.mxu0 %vm10127_vm0, %v10126_v0  ;;  %vm109_vm1 = vcmask 130048   ;;  %v10204_v3 = vpack.c.bf16 %v88_v2, %v88_v2  ;;  %v10211_v4 = vld [vmem:[#allocation5 + $0x8] sm:$0xff]   ;;  %v10215_v5 = vld [vmem:[#allocation5] sm:$0xff]   ;;  %v8321_v6 = vld [vmem:[#allocation10 + $0x8] ss:$0 sm:$0xff]  ;;  %vm180_vm2 = vcmask 261120  }
  0x41   :  { %8843 = vmatprep.subr.bf16.mxu1 %v10126_v0  ;;  %8847 = vmatprep.mubr.msk.bf16.mxu1 %vm10127_vm0, %v10126_v0  ;;  %v8324_v7 = vld [vmem:[#allocation10] ss:$0 sm:$0xff]  ;;  %v8325_v15 = vld [vmem:[#allocation7] ss:$0 sm:$0xff]  ;;  %s10128_s2 = smov 120   ;;  %s10129_s4 = smov 96  }
  0x42   :  { %8838 = vmatpush3.bf16.msra.mxu0 %v9644_v1  ;;  %8844 = vmatpush3.bf16.msra.mxu1 %v10211_v4  ;;  %s10130_s19 = smov 80   ;;  %s10131_s20 = smov 88   ;;  %vm227_vm3 = vcmask 64512   ;;  %vm898_vm4 = vcmask 195584   ;;  %vm2336_vm5 = vcmask 523264   ;;  %vm8295_vm6 = vcmask 15360  }
  0x43   :  { %8851 = vmatprep.subr.mxu0 %v10126_v0  ;;  %8845 = vmatprep.subr.bf16.mxu1 %v10126_v0  ;;  %s10132_s23 = smov 72   ;;  %s10133_s24 = smov 112   ;;  %vm8297_vm7 = vcmask 31744   ;;  %vm8299_vm8 = vcmask 39936   ;;  %vm8301_vm9 = vcmask 80896  }
  0x44   :  { %s10134_s25 = smov 104   ;;  %s10135_s26 = smov 56  }
  0x45   :  { %8840 = vmatmul.mubr.msk.bf16.vlgmr.msra.gmra.mxu0 %vm109_vm1, %v10204_v3  ;;  %s10136_s27 = smov 48   ;;  %s10137_s28 = smov 40  }
  0x46   :  { %8853 = vmatprep.mubr.msk.f32.mxu0 %vm10127_vm0, %v10126_v0  ;;  %8846 = vmatpush3.bf16.msra.mxu1 %v10215_v5  ;;  %s10138_s29 = smov 16   ;;  %s10139_s30 = smov 24  }
  0x47   :  { %8861 = vmatprep.subr.mxu1 %v10126_v0  ;;  %s10144_s6 = smov [#allocation11]  }
  0x48   :  { %s8310_s1 = sshll.u32 %s10144_s6, 4  ;;  %s8311_s1 = int_to_ptr.vmem [resolvable:$true] %s8310_s1 }
  0x49   :  { %s10089_s7 = scalar_lea.vmem %s8311_s1, 128  ;;  %p10094_p12 = scmp.lt.s32.totalorder %s8311_s1, %s8311_s1 }
  0x4a   :  { %p10090_p11 = scmp.ne.s32.totalorder %s8311_s1, %s10089_s7  ;;  %p10095_p13 = scmp.lt.s32.totalorder %s10089_s7, %s10089_s7 }
  0x4c   :  { %p10096_p0 = por %p10095_p13, %p10094_p12 }
  0x4e   :  { %p10097_p1 = pnand %p10096_p0, %p10090_p11 }
 0x105   :  { %v147_v8 = vpop.f32.mrf.mxu0 }
 0x106   :  { %v10219_v9 = vadd.f32 %v8321_v6, %v147_v8 }
 0x107   :  { %v8841_v10 = vpop.f32.mrf.mxu0 }
 0x108   :  { %v10222_v11 = vadd.f32 %v8324_v7, %v10219_v9 }
 0x109   :  { %v150_v12 = vpop.f32.mrf.mxu0 }
 0x10a   :  { %v162_v13 = vpack.c.bf16 %v10222_v11, %v10222_v11 }
 0x10b   :  { %v8842_v14 = vpop.f32.mrf.mxu0 }
 0x10c   :  { %8848 = vmatmul.mubr.msk.bf16.vlgmr.msra.gmra.mxu1 %vm180_vm2, %v162_v13 }
 0x10d   :  { %8863 = vmatprep.mubr.msk.f32.mxu1 %vm10127_vm0, %v10126_v0 }
 0x1cc   :  { %v218_v16 = vpop.f32.mrf.mxu1 }
 0x1cd   :  { %v10229_v17 = vadd.f32 %v8325_v15, %v218_v16 }
 0x1ce   :  { %v8849_v18 = vpop.f32.mrf.mxu1 }
 0x1cf   :  { %389 = vrot.lane.b32.xlu1 %v10229_v17, %s10128_s2  ;;  %225 = vrot.lane.b32.xlu0 %v10229_v17, %s10129_s4 }
 0x1d0   :  { %v221_v19 = vpop.f32.mrf.mxu1 }
 0x1d2   :  { %v8850_v20 = vpop.f32.mrf.mxu1 }
 0x1d3   :  { %556 = vrot.lane.b32.xlu1 %v10229_v17, %s10130_s19  ;;  %391 = vrot.lane.b32.xlu0 %v10229_v17, %s10131_s20 }
 0x1d7   :  { %721 = vrot.lane.b32.xlu1 %v10229_v17, %s10132_s23  ;;  %554 = vrot.lane.b32.xlu0 %v10229_v17, %s10133_s24 }
 0x1db   :  { %719 = vrot.lane.b32.xlu0 %v10229_v17, %s10134_s25 }
 0x241   :  { %v390_v21 = vpop.permute.xlu1 %389  ;;  %v226_v22 = vpop.permute.xlu0 %225 }
 0x242   :  { %8852 = vmatpush3.xpose.msk.msra.mxu0 %vm227_vm3, %v226_v22  ;;  %v10299_v22 = vld [vmem:[#allocation5 + $0x18] sm:$0xff]  }
 0x243   :  { %8856 = vmatprep.subr.mxu0 %v10126_v0 }
 0x245   :  { %8854 = vmatmul.mubr.msk.f32.vlgmr.msra.gmra.mxu0 %vm227_vm3, %v10229_v17  ;;  %v392_v23 = vpop.permute.xlu0 %391  ;;  %v557_v24 = vpop.permute.xlu1 %556 }
 0x246   :  { %8862 = vmatpush3.xpose.msk.msra.mxu1 %vm227_vm3, %v392_v23  ;;  %8858 = vmatprep.mubr.msk.f32.mxu0 %vm10127_vm0, %v10126_v0  ;;  %v10303_v23 = vld [vmem:[#allocation5 + $0x10] sm:$0xff]  }
 0x247   :  { %8871 = vmatprep.subr.mxu1 %v10126_v0 }
 0x249   :  { %8864 = vmatmul.mubr.msk.f32.vlgmr.msra.gmra.mxu1 %vm227_vm3, %v390_v21  ;;  %v555_v25 = vpop.permute.xlu0 %554  ;;  %v722_v26 = vpop.permute.xlu1 %721 }
 0x24a   :  { %8872 = vmatpush3.xpose.msk.msra.mxu1 %vm227_vm3, %v557_v24  ;;  %8873 = vmatprep.mubr.msk.f32.mxu1 %vm10127_vm0, %v10126_v0 }
 0x24b   :  { %8881 = vmatprep.subr.mxu1 %v10126_v0 }
 0x24d   :  { %8874 = vmatmul.mubr.msk.f32.vlgmr.msra.gmra.mxu1 %vm227_vm3, %v555_v25  ;;  %v720_v27 = vpop.permute.xlu0 %719 }
 0x24e   :  { %8882 = vmatpush3.xpose.msk.msra.mxu1 %vm227_vm3, %v722_v26  ;;  %8883 = vmatprep.mubr.msk.f32.mxu1 %vm10127_vm0, %v10126_v0 }
 0x24f   :  { %8891 = vmatprep.subr.bf16.mxu1 %v10126_v0 }
 0x251   :  { %8884 = vmatmul.mubr.msk.f32.vlgmr.msra.gmra.mxu1 %vm227_vm3, %v720_v27 }
 0x252   :  { %8895 = vmatprep.mubr.msk.bf16.mxu1 %vm10127_vm0, %v10126_v0  ;;  %8892 = vmatpush3.bf16.msra.mxu1 %v10299_v22 }
 0x253   :  { %8893 = vmatprep.subr.bf16.mxu1 %v10126_v0 }
 0x256   :  { %8894 = vmatpush3.bf16.msra.mxu1 %v10303_v23 }
 0x257   :  { %8907 = vmatprep.subr.bf16.mxu1 %v10126_v0 }
 0x305   :  { %v298_v28 = vpop.f32.mrf.mxu0 }
 0x306   :  { %v302_v29 = vsel %vm227_vm3, %v298_v28, -inf }
 0x307   :  { %303 = vmax.xlane.f32.xlu1 %v302_v29  ;;  %v8855_v30 = vpop.f32.mrf.mxu0 }
 0x309   :  { %v463_v31 = vpop.f32.mrf.mxu1 }
 0x30a   :  { %v467_v32 = vsel %vm227_vm3, %v463_v31, -inf }
 0x30b   :  { %468 = vmax.xlane.f32.xlu0 %v467_v32  ;;  %v8865_v33 = vpop.f32.mrf.mxu1 }
 0x30d   :  { %v628_v34 = vpop.f32.mrf.mxu1 }
 0x30e   :  { %v632_v35 = vsel %vm227_vm3, %v628_v34, -inf }
 0x30f   :  { %633 = vmax.xlane.f32.xlu0 %v632_v35  ;;  %v8875_v36 = vpop.f32.mrf.mxu1  ;;  %v8341_v35 = vld [vmem:[#allocation7 + $0x8] ss:$0 sm:$0xff] }
 0x311   :  { %v793_v37 = vpop.f32.mrf.mxu1 }
 0x312   :  { %v797_v38 = vsel %vm227_vm3, %v793_v37, -inf }
 0x313   :  { %v8885_v39 = vpop.f32.mrf.mxu1  ;;  %798 = vmax.xlane.f32.xlu1 %v797_v38 }
 0x324   :  { %478 = vrot.lane.b32.xlu1 %v10229_v17, %s10135_s26 }
 0x390   :  { %v304_v40 = vpop.xlane.xlu1 %303 }
 0x391   :  { %v305_v41 = vsub.f32 %v298_v28, %v304_v40 }
 0x393   :  { %v306_v42 = vmul.f32 1.442695, %v305_v41 }
 0x394   :  { %v469_v43 = vpop.xlane.xlu0 %468 }
 0x395   :  { %9690 = vpow2.f32 %v306_v42  ;;  %v470_v44 = vsub.f32 %v463_v31, %v469_v43 }
 0x397   :  { %v471_v45 = vmul.f32 1.442695, %v470_v44 }
 0x398   :  { %v634_v55 = vpop.xlane.xlu0 %633 }
 0x399   :  { %9692 = vpow2.f32 %v471_v45  ;;  %v635_v56 = vsub.f32 %v628_v34, %v634_v55  ;;  %v9649_v45 = vld [vmem:[#allocation5 + $0x28] sm:$0xff]  }
 0x39b   :  { %v636_v57 = vmul.f32 1.442695, %v635_v56 }
 0x39c   :  { %v799_v46 = vpop.xlane.xlu1 %798 }
 0x39d   :  { %v800_v47 = vsub.f32 %v793_v37, %v799_v46  ;;  %v9650_v46 = vld [vmem:[#allocation5 + $0x20] sm:$0xff]  }
 0x39f   :  { %v801_v48 = vmul.f32 1.442695, %v800_v47  ;;  %v9651_v47 = vld [vmem:[#allocation5 + $0x68] sm:$0xff]  }
 0x3a0   :  { %v479_v60 = vpop.permute.xlu1 %478 }
 0x3a1   :  { %9694 = vpow2.f32 %v801_v48  ;;  %v9653_v48 = vld [vmem:[#allocation5 + $0x58] sm:$0xff]  }
 0x3a2   :  { %v9691_v49 = vpop.eup %9690  ;;  %9696 = vpow2.f32 %v636_v57 }
 0x3a3   :  { %v308_v50 = vsel %vm227_vm3, %v9691_v49, 0.0 }
 0x3a4   :  { %309 = vadd.xlane.f32.xlu0 %v308_v50  ;;  %v9655_v50 = vld [vmem:[#allocation5 + $0x48] sm:$0xff]  }
 0x3a6   :  { %v9693_v51 = vpop.eup %9692 }
 0x3a7   :  { %v473_v52 = vsel %vm227_vm3, %v9693_v51, 0.0 }
 0x3a8   :  { %474 = vadd.xlane.f32.xlu1 %v473_v52 }
 0x3ae   :  { %v9695_v53 = vpop.eup %9694 }
 0x3af   :  { %v803_v54 = vsel %vm227_vm3, %v9695_v53, 0.0  ;;  %v9697_v58 = vpop.eup %9696 }
 0x3b0   :  { %804 = vadd.xlane.f32.xlu1 %v803_v54  ;;  %v638_v59 = vsel %vm227_vm3, %v9697_v58, 0.0 }
 0x3ba   :  { %313 = vrot.lane.b32.xlu0 %v10229_v17, %s10118_s21 }
 0x3c1   :  { %643 = vrot.lane.b32.xlu1 %v10229_v17, %s10136_s27 }
 0x3d9   :  { %639 = vadd.xlane.f32.xlu0 %v638_v59 }
 0x3ef   :  { %808 = vrot.lane.b32.xlu0 %v10229_v17, %s10137_s28 }
 0x42d   :  { %v310_v61 = vpop.xlane.xlu0 %309 }
 0x42e   :  { %9698 = vrcp.f32 %v310_v61  ;;  %v8345_v61 = vld [vmem:[#allocation7 + $0x20] ss:$0 sm:$0xff] }
 0x431   :  { %v314_v62 = vpop.permute.xlu0 %313  ;;  %v475_v63 = vpop.xlane.xlu1 %474 }
 0x432   :  { %9700 = vrcp.f32 %v475_v63  ;;  %8857 = vmatpush3.msra.mxu0 %v314_v62  ;;  %v8346_v63 = vld [vmem:[#allocation7 + $0x28] ss:$0 sm:$0xff] }
 0x433   :  { %8866 = vmatprep.subr.mxu0 %v10126_v0 }
 0x439   :  { %v805_v2 = vpop.xlane.xlu1 %804 }
 0x43b   :  { %v9699_v1 = vpop.eup %9698 }
 0x43c   :  { %v312_v6 = vmul.f32 %v9699_v1, %v9691_v49  ;;  %v9654_v49 = vld [vmem:[#allocation5 + $0x50] sm:$0xff]  }
 0x43d   :  { %v644_v10 = vpop.permute.xlu1 %643 }
 0x43e   :  { %8859 = vmatmul.mubr.msk.f32.vlgmr.msra.gmra.mxu0 %vm227_vm3, %v312_v6 }
 0x43f   :  { %v9701_v7 = vpop.eup %9700  ;;  %8867 = vmatpush3.msra.mxu0 %v479_v60  ;;  %8868 = vmatprep.mubr.msk.f32.mxu0 %vm10127_vm0, %v10126_v0 }
 0x440   :  { %8876 = vmatprep.subr.mxu0 %v10126_v0  ;;  %v477_v8 = vmul.f32 %v9701_v7, %v9693_v51  ;;  %v9656_v51 = vld [vmem:[#allocation5 + $0x40] sm:$0xff]   ;;  %v9657_v7 = vld [vmem:[#allocation5 + $0x38] sm:$0xff]  }
 0x442   :  { %8869 = vmatmul.mubr.msk.f32.vlgmr.msra.gmra.mxu0 %vm227_vm3, %v477_v8  ;;  %v9658_v8 = vld [vmem:[#allocation5 + $0x30] sm:$0xff]  }
 0x443   :  { %8877 = vmatpush3.msra.mxu0 %v644_v10  ;;  %8878 = vmatprep.mubr.msk.f32.mxu0 %vm10127_vm0, %v10126_v0  ;;  %v8347_v10 = vld [vmem:[#allocation7 + $0x10] ss:$0 sm:$0xff] }
 0x444   :  { %8886 = vmatprep.subr.mxu0 %v10126_v0 }
 0x462   :  { %v640_v12 = vpop.xlane.xlu0 %639 }
 0x463   :  { %9702 = vrcp.f32 %v640_v12 }
 0x464   :  { %9704 = vrcp.f32 %v805_v2 }
 0x466   :  { %v809_v16 = vpop.permute.xlu0 %808 }
 0x470   :  { %v9703_v13 = vpop.eup %9702 }
 0x471   :  { %v642_v14 = vmul.f32 %v9703_v13, %v9697_v58  ;;  %v9705_v15 = vpop.eup %9704 }
 0x472   :  { %v807_v17 = vmul.f32 %v9705_v15, %v9695_v53 }
 0x473   :  { %8879 = vmatmul.mubr.msk.f32.vlgmr.msra.gmra.mxu0 %vm227_vm3, %v642_v14 }
 0x474   :  { %8887 = vmatpush3.msra.mxu0 %v809_v16  ;;  %8888 = vmatprep.mubr.msk.f32.mxu0 %vm10127_vm0, %v10126_v0 }
 0x475   :  { %8899 = vmatprep.subr.bf16.mxu0 %v10126_v0 }
 0x477   :  { %8889 = vmatmul.mubr.msk.f32.vlgmr.msra.gmra.mxu0 %vm227_vm3, %v807_v17 }
 0x478   :  { %8903 = vmatprep.mubr.msk.bf16.mxu0 %vm10127_vm0, %v10126_v0  ;;  %8900 = vmatpush3.bf16.msra.mxu0 %v9649_v45 }
 0x479   :  { %8901 = vmatprep.subr.bf16.mxu0 %v10126_v0 }
 0x47c   :  { %8902 = vmatpush3.bf16.msra.mxu0 %v9650_v46 }
 0x47d   :  { %8927 = vmatprep.subr.bf16.mxu0 %v10126_v0 }
 0x4fe   :  { %v385_v18 = vpop.f32.mrf.mxu0 }
 0x500   :  { %v8860_v19 = vpop.f32.mrf.mxu0 }
 0x501   :  { %v8351_v19 = vld [vmem:[#allocation7 + $0x18] ss:$0 sm:$0xff] }
 0x502   :  { %v550_v20 = vpop.f32.mrf.mxu0 }
 0x503   :  { %885 = vrot.lane.b32.xlu1 %v550_v20, %s10124_s12 }
 0x504   :  { %v8870_v21 = vpop.f32.mrf.mxu0 }
 0x533   :  { %v715_v24 = vpop.f32.mrf.mxu0 }
 0x534   :  { %889 = vrot.lane.b32.xlu0 %v715_v24, %s10138_s29 }
 0x535   :  { %v8880_v25 = vpop.f32.mrf.mxu0 }
 0x537   :  { %v880_v26 = vpop.f32.mrf.mxu0 }
 0x538   :  { %893 = vrot.lane.b32.xlu1 %v880_v26, %s10139_s30 }
 0x539   :  { %v8890_v27 = vpop.f32.mrf.mxu0 }
 0x575   :  { %v886_v28 = vpop.permute.xlu1 %885 }
 0x576   :  { %v896_v30 = vsel %vm227_vm3, %v385_v18, %v886_v28 }
 0x5a6   :  { %v890_v29 = vpop.permute.xlu0 %889 }
 0x5a7   :  { %v897_v31 = vsel %vm109_vm1, %v896_v30, %v890_v29 }
 0x5aa   :  { %v894_v32 = vpop.permute.xlu1 %893 }
 0x5ab   :  { %v899_v33 = vsel %vm898_vm4, %v897_v31, %v894_v32  ;;  %v9659_v31 = vld [vmem:[#allocation5 + $0x78] sm:$0xff]   ;;  %v9660_v32 = vld [vmem:[#allocation5 + $0x70] sm:$0xff]  }
 0x5ac   :  { %v904_v34 = vpack.c.bf16 %v899_v33, %v899_v33 }
 0x5ae   :  { %8896 = vmatmul.mubr.msk.bf16.vlgmr.msra.gmra.mxu1 %vm180_vm2, %v904_v34 }
 0x5af   :  { %8923 = vmatprep.mubr.msk.bf16.mxu1 %vm10127_vm0, %v10126_v0  ;;  %8908 = vmatpush3.bf16.msra.mxu1 %v9651_v47 }
 0x5b0   :  { %8909 = vmatprep.subr.bf16.mxu1 %v10126_v0 }
 0x66e   :  { %v959_v36 = vpop.f32.mrf.mxu1 }
 0x66f   :  { %v960_v37 = vadd.f32 %v8341_v35, %v959_v36 }
 0x670   :  { %v8897_v38 = vpop.f32.mrf.mxu1 }
 0x671   :  { %v965_v39 = vadd.f32 %v960_v37, %v10222_v11  ;;  %v9652_v11 = vld [vmem:[#allocation5 + $0x60] sm:$0xff]  }
 0x672   :  { %v962_v40 = vpop.f32.mrf.mxu1  ;;  %8910 = vmatpush3.bf16.msra.mxu1 %v9652_v11  ;;  %v8362_v11 = vld [vmem:[#allocation7 + $0x40] ss:$0 sm:$0xff] }
 0x673   :  { %v968_v41 = vsel %vm180_vm2, %v965_v39, 0.0  ;;  %v973_v42 = vmul.f32 %v965_v39, %v965_v39  ;;  %8911 = vmatprep.subr.bf16.mxu1 %v10126_v0 }
 0x674   :  { %969 = vadd.xlane.f32.xlu0 %v968_v41  ;;  %v8898_v43 = vpop.f32.mrf.mxu1 }
 0x675   :  { %v974_v44 = vsel %vm180_vm2, %v973_v42, 0.0  ;;  %v8360_v42 = vld [vmem:[#allocation7 + $0x30] ss:$0 sm:$0xff] }
 0x676   :  { %975 = vadd.xlane.f32.xlu1 %v974_v44  ;;  %8912 = vmatpush3.bf16.msra.mxu1 %v9653_v48  ;;  %v8361_v44 = vld [vmem:[#allocation7 + $0x38] ss:$0 sm:$0xff] }
 0x677   :  { %8913 = vmatprep.subr.bf16.mxu1 %v10126_v0 }
 0x67a   :  { %8914 = vmatpush3.bf16.msra.mxu1 %v9654_v49 }
 0x67b   :  { %8915 = vmatprep.subr.bf16.mxu1 %v10126_v0 }
 0x67e   :  { %8916 = vmatpush3.bf16.msra.mxu1 %v9655_v50 }
 0x67f   :  { %8917 = vmatprep.subr.bf16.mxu1 %v10126_v0 }
 0x682   :  { %8918 = vmatpush3.bf16.msra.mxu1 %v9656_v51 }
 0x683   :  { %8919 = vmatprep.subr.bf16.mxu1 %v10126_v0 }
 0x686   :  { %8920 = vmatpush3.bf16.msra.mxu1 %v9657_v7 }
 0x687   :  { %8921 = vmatprep.subr.bf16.mxu1 %v10126_v0 }
 0x68a   :  { %8922 = vmatpush3.bf16.msra.mxu1 %v9658_v8 }
 0x68b   :  { %8965 = vmatprep.subr.mxu1 %v10126_v0 }
 0x6fd   :  { %v970_v52 = vpop.xlane.xlu0 %969 }
 0x6fe   :  { %v972_v53 = vmul.f32 0.03125, %v970_v52 }
 0x6ff   :  { %v976_v54 = vpop.xlane.xlu1 %975 }
 0x700   :  { %v979_v55 = vmul.f32 %v972_v53, %v972_v53  ;;  %v977_v56 = vmul.f32 0.03125, %v976_v54  ;;  %v978_v59 = vsub.f32 %v965_v39, %v972_v53 }
 0x702   :  { %v980_v57 = vsub.f32 %v977_v56, %v979_v55 }
 0x704   :  { %v981_v58 = vadd.f32 1e-05, %v980_v57 }
 0x706   :  { %9706 = vrsqrt.f32 %v981_v58 }
 0x713   :  { %v9707_v60 = vpop.eup %9706 }
 0x714   :  { %v983_v62 = vmul.f32 %v9707_v60, %v978_v59 }
 0x716   :  { %v988_v1 = vmul.f32 %v8345_v61, %v983_v62 }
 0x718   :  { %v993_v2 = vadd.f32 %v8346_v63, %v988_v1 }
 0x71a   :  { %v998_v6 = vpack.c.bf16 %v993_v2, %v993_v2 }
 0x71c   :  { %8904 = vmatmul.mubr.msk.bf16.vlgmr.msra.gmra.mxu0 %vm180_vm2, %v998_v6 }
 0x71d   :  { %8931 = vmatprep.mubr.msk.bf16.mxu0 %vm10127_vm0, %v10126_v0  ;;  %8928 = vmatpush3.bf16.msra.mxu0 %v9659_v31 }
 0x71e   :  { %8929 = vmatprep.subr.bf16.mxu0 %v10126_v0 }
 0x721   :  { %8930 = vmatpush3.bf16.msra.mxu0 %v9660_v32 }
 0x722   :  { %8935 = vmatprep.subr.mxu0 %v10126_v0 }
 0x7dc   :  { %v1053_v12 = vpop.f32.mrf.mxu0 }
 0x7dd   :  { %v1054_v13 = vadd.f32 %v8347_v10, %v1053_v12 }
 0x7de   :  { %v8905_v14 = vpop.f32.mrf.mxu0 }
 0x7df   :  { %v1059_v15 = vmax.f32 %v1054_v13, 0.0 }
 0x7e0   :  { %v1056_v16 = vpop.f32.mrf.mxu0 }
 0x7e1   :  { %v1076_v17 = vpack.c.bf16 %v1059_v15, %v1059_v15 }
 0x7e2   :  { %v8906_v18 = vpop.f32.mrf.mxu0 }
 0x7e3   :  { %8924 = vmatmul.mubr.bf16.vlgmr.msra.gmra.mxu1 %v1076_v17 }
 0x7e4   :  { %8967 = vmatprep.mubr.msk.f32.mxu1 %vm10127_vm0, %v10126_v0 }
 0x8a3   :  { %v1164_v20 = vpop.f32.mrf.mxu1 }
 0x8a4   :  { %v1165_v21 = vadd.f32 %v8351_v19, %v1164_v20 }
 0x8a5   :  { %v8925_v24 = vpop.f32.mrf.mxu1 }
 0x8a6   :  { %v1170_v25 = vadd.f32 %v1165_v21, %v993_v2 }
 0x8a7   :  { %v1167_v26 = vpop.f32.mrf.mxu1 }
 0x8a8   :  { %v1173_v27 = vsel %vm180_vm2, %v1170_v25, 0.0  ;;  %v1177_v28 = vmul.f32 %v1170_v25, %v1170_v25 }
 0x8a9   :  { %1174 = vadd.xlane.f32.xlu0 %v1173_v27  ;;  %v8926_v29 = vpop.f32.mrf.mxu1 }
 0x8aa   :  { %v1178_v30 = vsel %vm180_vm2, %v1177_v28, 0.0 }
 0x8ad   :  { %1179 = vadd.xlane.f32.xlu0 %v1178_v30 }
 0x932   :  { %v1175_v33 = vpop.xlane.xlu0 %1174 }
 0x933   :  { %v1176_v34 = vmul.f32 0.03125, %v1175_v33 }
 0x935   :  { %v1183_v36 = vmul.f32 %v1176_v34, %v1176_v34  ;;  %v1182_v40 = vsub.f32 %v1170_v25, %v1176_v34 }
 0x936   :  { %v1180_v35 = vpop.xlane.xlu0 %1179 }
 0x937   :  { %v1181_v37 = vmul.f32 0.03125, %v1180_v35 }
 0x939   :  { %v1184_v38 = vsub.f32 %v1181_v37, %v1183_v36 }
 0x93b   :  { %v1185_v39 = vadd.f32 1e-05, %v1184_v38 }
 0x93d   :  { %9708 = vrsqrt.f32 %v1185_v39 }
 0x94a   :  { %v9709_v41 = vpop.eup %9708 }
 0x94b   :  { %v1187_v43 = vmul.f32 %v9709_v41, %v1182_v40 }
 0x94d   :  { %v1192_v45 = vmul.f32 %v8360_v42, %v1187_v43 }
 0x94f   :  { %v10337_v46 = vadd.f32 %v8361_v44, %v1192_v45 }
 0x951   :  { %v1203_v47 = vpack.c.bf16 %v10337_v46, %v10337_v46 }
 0x953   :  { %8932 = vmatmul.mubr.msk.bf16.vlgmr.msra.gmra.mxu0 %vm180_vm2, %v1203_v47 }
 0x954   :  { %8937 = vmatprep.mubr.msk.f32.mxu0 %vm10127_vm0, %v10126_v0 }
 0xa13   :  { %v1259_v48 = vpop.f32.mrf.mxu0 }
 0xa14   :  { %v10344_v49 = vadd.f32 %v8362_v11, %v1259_v48 }
 0xa15   :  { %v8933_v50 = vpop.f32.mrf.mxu0 }
 0xa16   :  { %1266 = vrot.lane.b32.xlu1 %v10344_v49, %s10129_s4 }
 0xa17   :  { %v1262_v51 = vpop.f32.mrf.mxu0 }
 0xa19   :  { %v8934_v52 = vpop.f32.mrf.mxu0 }
 0xa1a   :  { %1431 = vrot.lane.b32.xlu1 %v10344_v49, %s10131_s20 }
 0xa1e   :  { %1429 = vrot.lane.b32.xlu1 %v10344_v49, %s10128_s2 }
 0xa88   :  { %v1267_v53 = vpop.permute.xlu1 %1266 }
 0xa89   :  { %8936 = vmatpush3.xpose.msk.msra.mxu0 %vm227_vm3, %v1267_v53 }
 0xa8a   :  { %8940 = vmatprep.subr.mxu0 %v10126_v0 }
 0xa8c   :  { %8938 = vmatmul.mubr.msk.f32.vlgmr.msra.gmra.mxu0 %vm227_vm3, %v10344_v49  ;;  %v1432_v2 = vpop.permute.xlu1 %1431 }
 0xa8d   :  { %8942 = vmatprep.mubr.msk.f32.mxu0 %vm10127_vm0, %v10126_v0 }
 0xa90   :  { %v1430_v7 = vpop.permute.xlu1 %1429 }
 0xb4c   :  { %v1338_v54 = vpop.f32.mrf.mxu0 }
 0xb4d   :  { %v1342_v55 = vsel %vm227_vm3, %v1338_v54, -inf }
 0xb4e   :  { %1343 = vmax.xlane.f32.xlu0 %v1342_v55  ;;  %v8939_v56 = vpop.f32.mrf.mxu0 }
 0xbd7   :  { %v1344_v57 = vpop.xlane.xlu0 %1343 }
 0xbd8   :  { %v1345_v58 = vsub.f32 %v1338_v54, %v1344_v57  ;;  %v10420_v57 = vld [vmem:[#allocation5 + $0x80] sm:$0xff]  }
 0xbda   :  { %v1346_v59 = vmul.f32 1.442695, %v1345_v58 }
 0xbdc   :  { %9710 = vpow2.f32 %v1346_v59 }
 0xbe9   :  { %v9711_v60 = vpop.eup %9710 }
 0xbea   :  { %v1348_v61 = vsel %vm227_vm3, %v9711_v60, 0.0 }
 0xbeb   :  { %1349 = vadd.xlane.f32.xlu0 %v1348_v61 }
 0xc01   :  { %1353 = vrot.lane.b32.xlu0 %v10344_v49, %s10118_s21 }
 0xc74   :  { %v1350_v62 = vpop.xlane.xlu0 %1349 }
 0xc75   :  { %9712 = vrcp.f32 %v1350_v62 }
 0xc78   :  { %v1354_v63 = vpop.permute.xlu0 %1353 }
 0xc79   :  { %8941 = vmatpush3.msra.mxu0 %v1354_v63 }
 0xc7a   :  { %8945 = vmatprep.subr.mxu0 %v10126_v0 }
 0xc82   :  { %v9713_v1 = vpop.eup %9712 }
 0xc83   :  { %v1352_v6 = vmul.f32 %v9713_v1, %v9711_v60 }
 0xc85   :  { %8943 = vmatmul.mubr.msk.f32.vlgmr.msra.gmra.mxu0 %vm227_vm3, %v1352_v6 }
 0xc86   :  { %8946 = vmatpush3.xpose.msk.msra.mxu0 %vm227_vm3, %v1432_v2  ;;  %8947 = vmatprep.mubr.msk.f32.mxu0 %vm10127_vm0, %v10126_v0 }
 0xc87   :  { %8950 = vmatprep.subr.mxu0 %v10126_v0 }
 0xc89   :  { %8948 = vmatmul.mubr.msk.f32.vlgmr.msra.gmra.mxu0 %vm227_vm3, %v1430_v7 }
 0xc8a   :  { %8952 = vmatprep.mubr.msk.f32.mxu0 %vm10127_vm0, %v10126_v0 }
 0xd45   :  { %v10371_v8 = vpop.f32.mrf.mxu0 }
 0xd47   :  { %v8944_v10 = vpop.f32.mrf.mxu0 }
 0xd49   :  { %v1503_v12 = vpop.f32.mrf.mxu0 }
 0xd4a   :  { %v1507_v13 = vsel %vm227_vm3, %v1503_v12, -inf }
 0xd4b   :  { %1508 = vmax.xlane.f32.xlu1 %v1507_v13  ;;  %v8949_v14 = vpop.f32.mrf.mxu0 }
 0xd5c   :  { %1518 = vrot.lane.b32.xlu1 %v10344_v49, %s10135_s26 }
 0xd60   :  { %1594 = vrot.lane.b32.xlu1 %v10344_v49, %s10133_s24 }
 0xd64   :  { %1761 = vrot.lane.b32.xlu1 %v10344_v49, %s10132_s23 }
 0xdd4   :  { %v1509_v15 = vpop.xlane.xlu1 %1508 }
 0xdd5   :  { %v1510_v16 = vsub.f32 %v1503_v12, %v1509_v15  ;;  %v8378_v12 = vld [vmem:[#allocation7 + $0x48] ss:$0 sm:$0xff] }
 0xdd7   :  { %v1511_v17 = vmul.f32 1.442695, %v1510_v16 }
 0xdd8   :  { %v1519_v18 = vpop.permute.xlu1 %1518 }
 0xdd9   :  { %9714 = vpow2.f32 %v1511_v17  ;;  %8951 = vmatpush3.msra.mxu0 %v1519_v18 }
 0xdda   :  { %8955 = vmatprep.subr.mxu0 %v10126_v0 }
 0xddc   :  { %v1595_v19 = vpop.permute.xlu1 %1594 }
 0xde0   :  { %v1762_v20 = vpop.permute.xlu1 %1761 }
 0xde1   :  { %8966 = vmatpush3.xpose.msk.msra.mxu1 %vm227_vm3, %v1762_v20 }
 0xde2   :  { %8975 = vmatprep.subr.bf16.mxu1 %v10126_v0 }
 0xde6   :  { %v9715_v21 = vpop.eup %9714 }
 0xde7   :  { %v1513_v24 = vsel %vm227_vm3, %v9715_v21, 0.0 }
 0xde8   :  { %1514 = vadd.xlane.f32.xlu0 %v1513_v24  ;;  %v9664_v24 = vld [vmem:[#allocation5 + $0x90] sm:$0xff]  }
 0xdfe   :  { %1596 = vrot.lane.b32.xlu0 %v10344_v49, %s10130_s19 }
 0xe02   :  { %1759 = vrot.lane.b32.xlu0 %v10344_v49, %s10134_s25 }
 0xe71   :  { %v1515_v25 = vpop.xlane.xlu0 %1514 }
 0xe72   :  { %9716 = vrcp.f32 %v1515_v25  ;;  %v9665_v25 = vld [vmem:[#allocation5 + $0xd8] sm:$0xff]  }
 0xe75   :  { %v1597_v26 = vpop.permute.xlu0 %1596 }
 0xe79   :  { %v1760_v27 = vpop.permute.xlu0 %1759 }
 0xe7a   :  { %8968 = vmatmul.mubr.msk.f32.vlgmr.msra.gmra.mxu1 %vm227_vm3, %v1760_v27  ;;  %v9668_v27 = vld [vmem:[#allocation5 + $0xc0] sm:$0xff]  }
 0xe7b   :  { %8979 = vmatprep.mubr.msk.bf16.mxu1 %vm10127_vm0, %v10126_v0 }
 0xe7f   :  { %v9717_v28 = vpop.eup %9716 }
 0xe80   :  { %v1517_v29 = vmul.f32 %v9717_v28, %v9715_v21  ;;  %v9663_v21 = vld [vmem:[#allocation5 + $0x98] sm:$0xff]  }
 0xe81   :  { %v9669_v28 = vld [vmem:[#allocation5 + $0xb8] sm:$0xff]  }
 0xe82   :  { %8953 = vmatmul.mubr.msk.f32.vlgmr.msra.gmra.mxu0 %vm227_vm3, %v1517_v29  ;;  %v9670_v29 = vld [vmem:[#allocation5 + $0xb0] sm:$0xff]  }
 0xe83   :  { %8956 = vmatpush3.xpose.msk.msra.mxu0 %vm227_vm3, %v1597_v26  ;;  %8957 = vmatprep.mubr.msk.f32.mxu0 %vm10127_vm0, %v10126_v0  ;;  %v9667_v26 = vld [vmem:[#allocation5 + $0xc8] sm:$0xff]  }
 0xe84   :  { %8960 = vmatprep.subr.mxu0 %v10126_v0 }
 0xe86   :  { %8958 = vmatmul.mubr.msk.f32.vlgmr.msra.gmra.mxu0 %vm227_vm3, %v1595_v19 }
 0xe87   :  { %8962 = vmatprep.mubr.msk.f32.mxu0 %vm10127_vm0, %v10126_v0 }
 0xf3a   :  { %v1833_v30 = vpop.f32.mrf.mxu1 }
 0xf3b   :  { %v1837_v31 = vsel %vm227_vm3, %v1833_v30, -inf }
 0xf3c   :  { %1838 = vmax.xlane.f32.xlu0 %v1837_v31  ;;  %v8969_v32 = vpop.f32.mrf.mxu1 }
 0xf42   :  { %v1590_v33 = vpop.f32.mrf.mxu0 }
 0xf44   :  { %v8954_v34 = vpop.f32.mrf.mxu0 }
 0xf46   :  { %v1668_v35 = vpop.f32.mrf.mxu0 }
 0xf47   :  { %v1672_v36 = vsel %vm227_vm3, %v1668_v35, -inf }
 0xf48   :  { %1673 = vmax.xlane.f32.xlu1 %v1672_v36  ;;  %v8959_v37 = vpop.f32.mrf.mxu0 }
 0xfc5   :  { %v1839_v38 = vpop.xlane.xlu0 %1838 }
 0xfc6   :  { %v1840_v39 = vsub.f32 %v1833_v30, %v1839_v38 }
 0xfc8   :  { %v1841_v40 = vmul.f32 1.442695, %v1840_v39  ;;  %v8382_v39 = vld [vmem:[#allocation7 + $0x60] ss:$0 sm:$0xff] }
 0xfca   :  { %9718 = vpow2.f32 %v1841_v40 }
 0xfd1   :  { %v1674_v41 = vpop.xlane.xlu1 %1673 }
 0xfd2   :  { %v1675_v42 = vsub.f32 %v1668_v35, %v1674_v41  ;;  %v8383_v41 = vld [vmem:[#allocation7 + $0x68] ss:$0 sm:$0xff] }
 0xfd4   :  { %v1676_v43 = vmul.f32 1.442695, %v1675_v42 }
 0xfd6   :  { %9720 = vpow2.f32 %v1676_v43 }
 0xfd7   :  { %v9719_v44 = vpop.eup %9718 }
 0xfd8   :  { %v1843_v45 = vsel %vm227_vm3, %v9719_v44, 0.0 }
 0xfd9   :  { %1844 = vadd.xlane.f32.xlu1 %v1843_v45  ;;  %v10447_v45 = vld [vmem:[#allocation5 + $0xa8] sm:$0xff]  }
 0xfe3   :  { %v9721_v47 = vpop.eup %9720 }
 0xfe4   :  { %v1678_v11 = vsel %vm227_vm3, %v9721_v47, 0.0 }
 0xfe5   :  { %1679 = vadd.xlane.f32.xlu0 %v1678_v11  ;;  %v8384_v11 = vld [vmem:[#allocation7 + $0x50] ss:$0 sm:$0xff] }
 0xfea   :  { %1848 = vrot.lane.b32.xlu1 %v10344_v49, %s10137_s28 }
 0xfee   :  { %1925 = vrot.lane.b32.xlu1 %v1590_v33, %s10124_s12 }
 0xffb   :  { %1683 = vrot.lane.b32.xlu0 %v10344_v49, %s10136_s27  ;;  %v10416_v49 = vld [vmem:[#allocation5 + $0x88] sm:$0xff]  }
 0xffc   :  { %8976 = vmatpush3.bf16.msra.mxu1 %v10416_v49 }
 0xffd   :  { %8977 = vmatprep.subr.bf16.mxu1 %v10126_v0 }
0x1000   :  { %8978 = vmatpush3.bf16.msra.mxu1 %v10420_v57 }
0x1001   :  { %8991 = vmatprep.subr.bf16.mxu1 %v10126_v0 }
0x1062   :  { %v1845_v48 = vpop.xlane.xlu1 %1844 }
0x1066   :  { %v1849_v55 = vpop.permute.xlu1 %1848 }
0x106a   :  { %v1926_v62 = vpop.permute.xlu1 %1925 }
0x106b   :  { %v1936_v1 = vsel %vm227_vm3, %v10371_v8, %v1926_v62 }
0x106e   :  { %v1680_v50 = vpop.xlane.xlu0 %1679 }
0x106f   :  { %9722 = vrcp.f32 %v1680_v50 }
0x1070   :  { %9724 = vrcp.f32 %v1845_v48 }
0x1072   :  { %v1684_v51 = vpop.permute.xlu0 %1683 }
0x1073   :  { %8961 = vmatpush3.msra.mxu0 %v1684_v51 }
0x1074   :  { %8970 = vmatprep.subr.mxu0 %v10126_v0 }
0x107c   :  { %v9723_v52 = vpop.eup %9722 }
0x107d   :  { %v1682_v53 = vmul.f32 %v9723_v52, %v9721_v47  ;;  %v9725_v54 = vpop.eup %9724  ;;  %v10451_v47 = vld [vmem:[#allocation5 + $0xa0] sm:$0xff]  }
0x107e   :  { %v1847_v56 = vmul.f32 %v9725_v54, %v9719_v44 }
0x107f   :  { %8963 = vmatmul.mubr.msk.f32.vlgmr.msra.gmra.mxu0 %vm227_vm3, %v1682_v53 }
0x1080   :  { %8971 = vmatpush3.msra.mxu0 %v1849_v55  ;;  %8972 = vmatprep.mubr.msk.f32.mxu0 %vm10127_vm0, %v10126_v0 }
0x1081   :  { %8983 = vmatprep.subr.bf16.mxu0 %v10126_v0 }
0x1083   :  { %8973 = vmatmul.mubr.msk.f32.vlgmr.msra.gmra.mxu0 %vm227_vm3, %v1847_v56  ;;  %v8388_v56 = vld [vmem:[#allocation7 + $0x58] ss:$0 sm:$0xff] }
0x1084   :  { %8987 = vmatprep.mubr.msk.bf16.mxu0 %vm10127_vm0, %v10126_v0  ;;  %8984 = vmatpush3.bf16.msra.mxu0 %v9663_v21 }
0x1085   :  { %8985 = vmatprep.subr.bf16.mxu0 %v10126_v0 }
0x1088   :  { %8986 = vmatpush3.bf16.msra.mxu0 %v9664_v24 }
0x1089   :  { %9011 = vmatprep.subr.bf16.mxu0 %v10126_v0 }
0x113f   :  { %v1755_v58 = vpop.f32.mrf.mxu0 }
0x1140   :  { %1929 = vrot.lane.b32.xlu0 %v1755_v58, %s10138_s29 }
0x1141   :  { %v8964_v59 = vpop.f32.mrf.mxu0 }
0x1143   :  { %v1920_v60 = vpop.f32.mrf.mxu0 }
0x1144   :  { %1933 = vrot.lane.b32.xlu1 %v1920_v60, %s10139_s30 }
0x1145   :  { %v8974_v61 = vpop.f32.mrf.mxu0 }
0x11b2   :  { %v1930_v63 = vpop.permute.xlu0 %1929 }
0x11b3   :  { %v1937_v2 = vsel %vm109_vm1, %v1936_v1, %v1930_v63 }
0x11b6   :  { %v1934_v6 = vpop.permute.xlu1 %1933 }
0x11b7   :  { %v1938_v7 = vsel %vm898_vm4, %v1937_v2, %v1934_v6  ;;  %v10463_v6 = vld [vmem:[#allocation8 + $0x28] sm:$0xff]  }
0x11b8   :  { %v1943_v10 = vpack.c.bf16 %v1938_v7, %v1938_v7 }
0x11ba   :  { %8980 = vmatmul.mubr.msk.bf16.vlgmr.msra.gmra.mxu1 %vm180_vm2, %v1943_v10 }
0x11bb   :  { %9007 = vmatprep.mubr.msk.bf16.mxu1 %vm10127_vm0, %v10126_v0  ;;  %8992 = vmatpush3.bf16.msra.mxu1 %v9665_v25 }
0x11bc   :  { %8993 = vmatprep.subr.bf16.mxu1 %v10126_v0 }
0x127a   :  { %v1998_v13 = vpop.f32.mrf.mxu1 }
0x127b   :  { %v1999_v14 = vadd.f32 %v8378_v12, %v1998_v13 }
0x127c   :  { %v8981_v15 = vpop.f32.mrf.mxu1 }
0x127d   :  { %v2004_v16 = vadd.f32 %v1999_v14, %v10337_v46  ;;  %v9666_v46 = vld [vmem:[#allocation5 + $0xd0] sm:$0xff]  }
0x127e   :  { %v2001_v17 = vpop.f32.mrf.mxu1  ;;  %8994 = vmatpush3.bf16.msra.mxu1 %v9666_v46  ;;  %v9675_v46 = vld [vmem:[#allocation8 + $0x48] sm:$0xff]  }
0x127f   :  { %v2007_v8 = vsel %vm180_vm2, %v2004_v16, 0.0  ;;  %v2011_v18 = vmul.f32 %v2004_v16, %v2004_v16  ;;  %8995 = vmatprep.subr.bf16.mxu1 %v10126_v0 }
0x1280   :  { %2008 = vadd.xlane.f32.xlu0 %v2007_v8  ;;  %v8982_v19 = vpop.f32.mrf.mxu1 }
0x1281   :  { %v2012_v20 = vsel %vm180_vm2, %v2011_v18, 0.0  ;;  %v8397_v18 = vld [vmem:[#allocation7 + $0x70] ss:$0 sm:$0xff] }
0x1282   :  { %2013 = vadd.xlane.f32.xlu1 %v2012_v20  ;;  %8996 = vmatpush3.bf16.msra.mxu1 %v9667_v26  ;;  %v8398_v20 = vld [vmem:[#allocation7 + $0x78] ss:$0 sm:$0xff] }
0x1283   :  { %8997 = vmatprep.subr.bf16.mxu1 %v10126_v0 }
0x1286   :  { %8998 = vmatpush3.bf16.msra.mxu1 %v9668_v27  ;;  %v9676_v27 = vld [vmem:[#allocation8 + $0x40] sm:$0xff]  }
0x1287   :  { %8999 = vmatprep.subr.bf16.mxu1 %v10126_v0 }
0x128a   :  { %9000 = vmatpush3.bf16.msra.mxu1 %v9669_v28  ;;  %v9677_v28 = vld [vmem:[#allocation8 + $0x38] sm:$0xff]  }
0x128b   :  { %9001 = vmatprep.subr.bf16.mxu1 %v10126_v0 }
0x128e   :  { %9002 = vmatpush3.bf16.msra.mxu1 %v9670_v29  ;;  %v9678_v29 = vld [vmem:[#allocation8 + $0x30] sm:$0xff]  }
0x128f   :  { %9003 = vmatprep.subr.bf16.mxu1 %v10126_v0 }
0x1292   :  { %9004 = vmatpush3.bf16.msra.mxu1 %v10447_v45 }
0x1293   :  { %9005 = vmatprep.subr.bf16.mxu1 %v10126_v0 }
0x1296   :  { %9006 = vmatpush3.bf16.msra.mxu1 %v10451_v47 }
0x1297   :  { %9037 = vmatprep.subr.bf16.mxu1 %v10126_v0 }
0x1309   :  { %v2009_v30 = vpop.xlane.xlu0 %2008 }
0x130a   :  { %v2010_v31 = vmul.f32 0.03125, %v2009_v30 }
0x130b   :  { %v2014_v32 = vpop.xlane.xlu1 %2013 }
0x130c   :  { %v2017_v33 = vmul.f32 %v2010_v31, %v2010_v31  ;;  %v2015_v34 = vmul.f32 0.03125, %v2014_v32  ;;  %v2016_v37 = vsub.f32 %v2004_v16, %v2010_v31 }
0x130e   :  { %v2018_v35 = vsub.f32 %v2015_v34, %v2017_v33 }
0x1310   :  { %v2019_v36 = vadd.f32 1e-05, %v2018_v35  ;;  %v9679_v35 = vld [vmem:[#allocation8 + $0x8] sm:$0xff]  }
0x1312   :  { %9726 = vrsqrt.f32 %v2019_v36 }
0x131f   :  { %v9727_v38 = vpop.eup %9726 }
0x1320   :  { %v2021_v40 = vmul.f32 %v9727_v38, %v2016_v37  ;;  %v10140_v38 = vmov 1  }
0x1321   :  { %9642 = vset.pattern.permute.xlu0 %v10140_v38 }
0x1322   :  { %v2026_v42 = vmul.f32 %v8382_v39, %v2021_v40  ;;  %v10141_v39 = vmov 0   ;;  %v8403_v40 = vld [vmem:[#allocation10 + $0x60] ss:$0 sm:$0xff] }
0x1323   :  { %9641 = vset.pattern.permute.xlu1 %v10141_v39 }
0x1324   :  { %v2031_v43 = vadd.f32 %v8383_v41, %v2026_v42 }
0x1326   :  { %v2036_v44 = vpack.c.bf16 %v2031_v43, %v2031_v43 }
0x1328   :  { %8988 = vmatmul.mubr.msk.bf16.vlgmr.msra.gmra.mxu0 %vm180_vm2, %v2036_v44 }
0x1329   :  { %9015 = vmatprep.mubr.msk.bf16.mxu0 %vm10127_vm0, %v10126_v0  ;;  %9012 = vmatpush3.bf16.msra.mxu0 %v10463_v6 }
0x132a   :  { %9013 = vmatprep.subr.bf16.mxu0 %v10126_v0 }
0x13e8   :  { %v2091_v48 = vpop.f32.mrf.mxu0 }
0x13e9   :  { %v2092_v50 = vadd.f32 %v8384_v11, %v2091_v48 }
0x13ea   :  { %v8989_v51 = vpop.f32.mrf.mxu0 }
0x13eb   :  { %v2097_v52 = vmax.f32 %v2092_v50, 0.0 }
0x13ec   :  { %v2094_v53 = vpop.f32.mrf.mxu0 }
0x13ed   :  { %v2114_v54 = vpack.c.bf16 %v2097_v52, %v2097_v52  ;;  %v2439_v53 = vlaneseq }
0x13ee   :  { %v8990_v55 = vpop.f32.mrf.mxu0 }
0x13ef   :  { %9008 = vmatmul.mubr.bf16.vlgmr.msra.gmra.mxu1 %v2114_v54  ;;  %v2440_v54 = vshrl.u32 %v2439_v53, 7 }
0x13f0   :  { %9038 = vmatpush3.bf16.msra.mxu1 %v10211_v4  ;;  %9041 = vmatprep.mubr.msk.bf16.mxu1 %vm10127_vm0, %v10126_v0 }
0x13f1   :  { %9039 = vmatprep.subr.bf16.mxu1 %v10126_v0  ;;  %v10492_v55 = vsub.s32 0, %v2440_v54 }
0x13f4   :  { %9040 = vmatpush3.bf16.msra.mxu1 %v10215_v5  ;;  %v10466_v5 = vld [vmem:[#allocation8 + $0x20] sm:$0xff]  }
0x13f5   :  { %9055 = vmatprep.subr.mxu1 %v10126_v0  ;;  %9014 = vmatpush3.bf16.msra.mxu0 %v10466_v5 }
0x13f6   :  { %9019 = vmatprep.subr.bf16.mxu0 %v10126_v0 }
0x14af   :  { %v2202_v58 = vpop.f32.mrf.mxu1 }
0x14b0   :  { %v2203_v59 = vadd.f32 %v8388_v56, %v2202_v58  ;;  %v2433_v56 = vld [vmem:[#allocation10 + $0x10] sm:$0x3]  ;;  %v10494_v58 = vsub.s32 1, %v2440_v54 }
0x14b1   :  { %v9009_v60 = vpop.f32.mrf.mxu1 }
0x14b2   :  { %v2208_v61 = vadd.f32 %v2203_v59, %v2031_v43  ;;  %v8409_v59 = vld [vmem:[#allocation10 + $0x18] ss:$0 sm:$0xff]  ;;  %v2442_v60 = vrot.slane %v2433_v56, %v10492_v55 }
0x14b3   :  { %v2205_v62 = vpop.f32.mrf.mxu1 }
0x14b4   :  { %v2211_v63 = vsel %vm180_vm2, %v2208_v61, 0.0  ;;  %v2215_v1 = vmul.f32 %v2208_v61, %v2208_v61  ;;  %v2452_v62 = vrot.slane %v2433_v56, %v10494_v58 }
0x14b5   :  { %2212 = vadd.xlane.f32.xlu0 %v2211_v63  ;;  %v9010_v4 = vpop.f32.mrf.mxu1 }
0x14b6   :  { %v2216_v2 = vsel %vm180_vm2, %v2215_v1, 0.0 }
0x14b9   :  { %2217 = vadd.xlane.f32.xlu0 %v2216_v2 }
0x153e   :  { %v2213_v7 = vpop.xlane.xlu0 %2212 }
0x153f   :  { %v2214_v10 = vmul.f32 0.03125, %v2213_v7 }
0x1541   :  { %v2221_v13 = vmul.f32 %v2214_v10, %v2214_v10  ;;  %v2220_v17 = vsub.f32 %v2208_v61, %v2214_v10 }
0x1542   :  { %v2218_v12 = vpop.xlane.xlu0 %2217 }
0x1543   :  { %v2219_v14 = vmul.f32 0.03125, %v2218_v12  ;;  %v9850_v12 = vld [vmem:[#allocation10] ss:$0 sm:$0xff] }
0x1545   :  { %v2222_v15 = vsub.f32 %v2219_v14, %v2221_v13 }
0x1547   :  { %v2223_v16 = vadd.f32 1e-05, %v2222_v15 }
0x1549   :  { %9728 = vrsqrt.f32 %v2223_v16  ;;  %v9851_v16 = vld [vmem:[#allocation7] ss:$0 sm:$0xff] }
0x1556   :  { %v9729_v8 = vpop.eup %9728 }
0x1557   :  { %v2225_v19 = vmul.f32 %v9729_v8, %v2220_v17 }
0x1559   :  { %v2230_v21 = vmul.f32 %v8397_v18, %v2225_v19 }
0x155b   :  { %v2235_v24 = vadd.f32 %v8398_v20, %v2230_v21 }
0x155d   :  { %v2236_v25 = vadd.f32 %v2235_v24, %v10219_v9  ;;  %v8399_v9 = vld [vmem:[#allocation10 + $0x58] ss:$0 sm:$0xff] }
0x155f   :  { %v2237_v26 = vpack.c.bf16 %v2236_v25, %v2236_v25 }
0x1561   :  { %9016 = vmatmul.mubr.msk.bf16.vlgmr.msra.gmra.mxu0 %vm180_vm2, %v2237_v26 }
0x1562   :  { %9020 = vmatpush3.bf16.msra.mxu0 %v9675_v46  ;;  %9027 = vmatprep.mubr.msk.bf16.mxu0 %vm10127_vm0, %v10126_v0 }
0x1563   :  { %9021 = vmatprep.subr.bf16.mxu0 %v10126_v0 }
0x1566   :  { %9022 = vmatpush3.bf16.msra.mxu0 %v9676_v27 }
0x1567   :  { %9023 = vmatprep.subr.bf16.mxu0 %v10126_v0 }
0x156a   :  { %9024 = vmatpush3.bf16.msra.mxu0 %v9677_v28 }
0x156b   :  { %9025 = vmatprep.subr.bf16.mxu0 %v10126_v0 }
0x156e   :  { %9026 = vmatpush3.bf16.msra.mxu0 %v9678_v29 }
0x156f   :  { %9031 = vmatprep.subr.bf16.mxu0 %v10126_v0 }
0x1621   :  { %v2291_v30 = vpop.f32.mrf.mxu0 }
0x1622   :  { %v2292_v31 = vadd.f32 %v8399_v9, %v2291_v30 }
0x1623   :  { %v9017_v32 = vpop.f32.mrf.mxu0 }
0x1624   :  { %v2297_v33 = vmax.f32 %v2292_v31, 0.0 }
0x1625   :  { %v2294_v34 = vpop.f32.mrf.mxu0 }
0x1626   :  { %v2306_v36 = vpack.c.bf16 %v2297_v33, %v2297_v33 }
0x1627   :  { %v9018_v37 = vpop.f32.mrf.mxu0 }
0x1628   :  { %9028 = vmatmul.mubr.msk.bf16.vlgmr.msra.gmra.mxu0 %vm2336_vm5, %v2306_v36 }
0x1629   :  { %9032 = vmatpush3.bf16.msra.mxu0 %v9679_v35  ;;  %9033 = vmatprep.mubr.msk.bf16.mxu0 %vm10127_vm0, %v10126_v0 }
0x162a   :  { %9045 = vmatprep.subr.mxu0 %v10126_v0 }
0x1630   :  { %9034 = vmatmul.mubr.msk.bf16.vlgmr.msra.gmra.mxu0 %vm109_vm1, %v10204_v3 }
0x1631   :  { %9047 = vmatprep.mubr.msk.f32.mxu0 %vm10127_vm0, %v10126_v0 }
0x16e8   :  { %v2374_v41 = vpop.f32.mrf.mxu0 }
0x16e9   :  { %v10488_v42 = vadd.f32 %v8403_v40, %v2374_v41 }
0x16ea   :  { %v9029_v43 = vpop.f32.mrf.mxu0 }
0x16eb   :  { %2446 = vperm.xlu0 %9642, %v10488_v42   ;;  %2436 = vperm.xlu1 %9641, %v10488_v42  }
0x16ec   :  { %v2377_v44 = vpop.f32.mrf.mxu0 }
0x16ee   :  { %v9030_v11 = vpop.f32.mrf.mxu0 }
0x16f0   :  { %v2427_v48 = vpop.f32.mrf.mxu0 }
0x16f1   :  { %v2428_v61 = vadd.f32 %v8409_v59, %v2427_v48 }
0x16f2   :  { %v9035_v50 = vpop.f32.mrf.mxu0 }
0x16f4   :  { %v2430_v51 = vpop.f32.mrf.mxu0 }
0x16f6   :  { %v9036_v52 = vpop.f32.mrf.mxu0 }
0x1766   :  { %v10498_v63 = vpop.permute.xlu0 %2446  ;;  %v10500_v1 = vpop.permute.xlu1 %2436 }
0x1767   :  { %v2443_v4 = vmul.f32 %v2442_v60, %v10500_v1  ;;  %v2453_v2 = vmul.f32 %v2452_v62, %v10498_v63 }
0x1769   :  { %v2444_v7 = vadd.f32 %v2443_v4, %v2428_v61 }
0x176b   :  { %v10504_v10 = vadd.f32 %v2453_v2, %v2444_v7 }
0x176d   :  { %v10507_v13 = vadd.f32 %v9850_v12, %v10504_v10 }
0x176f   :  { %v2456_v14 = vpack.c.bf16 %v10507_v13, %v10507_v13 }
0x1771   :  { %9042 = vmatmul.mubr.msk.bf16.vlgmr.msra.gmra.mxu1 %vm180_vm2, %v2456_v14 }
0x1772   :  { %9057 = vmatprep.mubr.msk.f32.mxu1 %vm10127_vm0, %v10126_v0 }
0x1831   :  { %v2494_v15 = vpop.f32.mrf.mxu1 }
0x1832   :  { %v10514_v17 = vadd.f32 %v9851_v16, %v2494_v15 }
0x1833   :  { %v9043_v8 = vpop.f32.mrf.mxu1 }
0x1834   :  { %2501 = vrot.lane.b32.xlu1 %v10514_v17, %s10129_s4 }
0x1835   :  { %v2497_v18 = vpop.f32.mrf.mxu1 }
0x1837   :  { %v9044_v19 = vpop.f32.mrf.mxu1 }
0x1838   :  { %2666 = vrot.lane.b32.xlu1 %v10514_v17, %s10131_s20 }
0x183c   :  { %2664 = vrot.lane.b32.xlu1 %v10514_v17, %s10128_s2 }
0x1840   :  { %2831 = vrot.lane.b32.xlu1 %v10514_v17, %s10130_s19 }
0x1844   :  { %2829 = vrot.lane.b32.xlu1 %v10514_v17, %s10133_s24 }
0x1848   :  { %2996 = vrot.lane.b32.xlu1 %v10514_v17, %s10132_s23 }
0x184c   :  { %2994 = vrot.lane.b32.xlu1 %v10514_v17, %s10134_s25 }
0x18a6   :  { %v2502_v20 = vpop.permute.xlu1 %2501 }
0x18a7   :  { %9046 = vmatpush3.xpose.msk.msra.mxu0 %vm227_vm3, %v2502_v20 }
0x18a8   :  { %9050 = vmatprep.subr.mxu0 %v10126_v0 }
0x18aa   :  { %9048 = vmatmul.mubr.msk.f32.vlgmr.msra.gmra.mxu0 %vm227_vm3, %v10514_v17  ;;  %v2667_v21 = vpop.permute.xlu1 %2666 }
0x18ab   :  { %9056 = vmatpush3.xpose.msk.msra.mxu1 %vm227_vm3, %v2667_v21  ;;  %9052 = vmatprep.mubr.msk.f32.mxu0 %vm10127_vm0, %v10126_v0 }
0x18ac   :  { %9065 = vmatprep.subr.mxu1 %v10126_v0 }
0x18ae   :  { %v2665_v24 = vpop.permute.xlu1 %2664 }
0x18af   :  { %9058 = vmatmul.mubr.msk.f32.vlgmr.msra.gmra.mxu1 %vm227_vm3, %v2665_v24 }
0x18b0   :  { %9067 = vmatprep.mubr.msk.f32.mxu1 %vm10127_vm0, %v10126_v0 }
0x18b2   :  { %v2832_v25 = vpop.permute.xlu1 %2831 }
0x18b3   :  { %9066 = vmatpush3.xpose.msk.msra.mxu1 %vm227_vm3, %v2832_v25 }
0x18b4   :  { %9075 = vmatprep.subr.mxu1 %v10126_v0 }
0x18b6   :  { %v2830_v46 = vpop.permute.xlu1 %2829 }
0x18b7   :  { %9068 = vmatmul.mubr.msk.f32.vlgmr.msra.gmra.mxu1 %vm227_vm3, %v2830_v46 }
0x18b8   :  { %9077 = vmatprep.mubr.msk.f32.mxu1 %vm10127_vm0, %v10126_v0 }
0x18ba   :  { %v2997_v26 = vpop.permute.xlu1 %2996 }
0x18bb   :  { %9076 = vmatpush3.xpose.msk.msra.mxu1 %vm227_vm3, %v2997_v26 }
0x18bc   :  { %9085 = vmatprep.subr.bf16.mxu1 %v10126_v0 }
0x18be   :  { %v2995_v27 = vpop.permute.xlu1 %2994 }
0x18bf   :  { %9078 = vmatmul.mubr.msk.f32.vlgmr.msra.gmra.mxu1 %vm227_vm3, %v2995_v27 }
0x18c0   :  { %9086 = vmatpush3.bf16.msra.mxu1 %v10299_v22  ;;  %9089 = vmatprep.mubr.msk.bf16.mxu1 %vm10127_vm0, %v10126_v0 }
0x18c1   :  { %9087 = vmatprep.subr.bf16.mxu1 %v10126_v0 }
0x18c4   :  { %9088 = vmatpush3.bf16.msra.mxu1 %v10303_v23 }
0x18c5   :  { %9101 = vmatprep.subr.bf16.mxu1 %v10126_v0 }
0x196a   :  { %v2573_v28 = vpop.f32.mrf.mxu0 }
0x196b   :  { %v2577_v29 = vsel %vm227_vm3, %v2573_v28, -inf }
0x196c   :  { %2578 = vmax.xlane.f32.xlu1 %v2577_v29  ;;  %v9049_v9 = vpop.f32.mrf.mxu0  ;;  %v9853_v29 = vld [vmem:[#allocation5 + $0x20] sm:$0xff]  }
0x196f   :  { %v2738_v30 = vpop.f32.mrf.mxu1 }
0x1970   :  { %v2742_v31 = vsel %vm227_vm3, %v2738_v30, -inf }
0x1971   :  { %2743 = vmax.xlane.f32.xlu0 %v2742_v31  ;;  %v9059_v32 = vpop.f32.mrf.mxu1 }
0x1977   :  { %v2903_v22 = vpop.f32.mrf.mxu1 }
0x1978   :  { %v2907_v33 = vsel %vm227_vm3, %v2903_v22, -inf }
0x1979   :  { %2908 = vmax.xlane.f32.xlu0 %v2907_v33  ;;  %v9069_v34 = vpop.f32.mrf.mxu1 }
0x197f   :  { %v3068_v35 = vpop.f32.mrf.mxu1 }
0x1980   :  { %v3072_v23 = vsel %vm227_vm3, %v3068_v35, -inf }
0x1981   :  { %v9079_v36 = vpop.f32.mrf.mxu1  ;;  %3073 = vmax.xlane.f32.xlu1 %v3072_v23 }
0x1992   :  { %2753 = vrot.lane.b32.xlu1 %v10514_v17, %s10135_s26 }
0x19f5   :  { %v2579_v37 = vpop.xlane.xlu1 %2578 }
0x19f6   :  { %v2580_v38 = vsub.f32 %v2573_v28, %v2579_v37  ;;  %v9852_v28 = vld [vmem:[#allocation5 + $0x28] sm:$0xff]  }
0x19f8   :  { %v2581_v40 = vmul.f32 1.442695, %v2580_v38 }
0x19fa   :  { %9730 = vpow2.f32 %v2581_v40  ;;  %v2744_v41 = vpop.xlane.xlu0 %2743 }
0x19fb   :  { %v2745_v43 = vsub.f32 %v2738_v30, %v2744_v41 }
0x19fd   :  { %v2746_v44 = vmul.f32 1.442695, %v2745_v43 }
0x19ff   :  { %9732 = vpow2.f32 %v2746_v44  ;;  %v9854_v44 = vld [vmem:[#allocation5 + $0x68] sm:$0xff]  }
0x1a02   :  { %v2909_v60 = vpop.xlane.xlu0 %2908 }
0x1a03   :  { %v2910_v61 = vsub.f32 %v2903_v22, %v2909_v60 }
0x1a05   :  { %v2911_v62 = vmul.f32 1.442695, %v2910_v61 }
0x1a07   :  { %v9731_v11 = vpop.eup %9730 }
0x1a08   :  { %v2583_v48 = vsel %vm227_vm3, %v9731_v11, 0.0 }
0x1a09   :  { %2584 = vadd.xlane.f32.xlu0 %v2583_v48  ;;  %v9856_v48 = vld [vmem:[#allocation5 + $0x58] sm:$0xff]  }
0x1a0a   :  { %v3074_v50 = vpop.xlane.xlu1 %3073 }
0x1a0b   :  { %v3075_v51 = vsub.f32 %v3068_v35, %v3074_v50  ;;  %v9857_v50 = vld [vmem:[#allocation5 + $0x50] sm:$0xff]  }
0x1a0c   :  { %v9733_v52 = vpop.eup %9732 }
0x1a0d   :  { %v3076_v53 = vmul.f32 1.442695, %v3075_v51  ;;  %v2748_v54 = vsel %vm227_vm3, %v9733_v52, 0.0  ;;  %v9858_v51 = vld [vmem:[#allocation5 + $0x48] sm:$0xff]  }
0x1a0e   :  { %2749 = vadd.xlane.f32.xlu1 %v2748_v54  ;;  %v2754_v12 = vpop.permute.xlu1 %2753  ;;  %v9861_v54 = vld [vmem:[#allocation5 + $0x30] sm:$0xff]  }
0x1a0f   :  { %9734 = vpow2.f32 %v3076_v53  ;;  %v9860_v53 = vld [vmem:[#allocation5 + $0x38] sm:$0xff]  }
0x1a10   :  { %9736 = vpow2.f32 %v2911_v62 }
0x1a1c   :  { %v9735_v56 = vpop.eup %9734 }
0x1a1d   :  { %v3078_v59 = vsel %vm227_vm3, %v9735_v56, 0.0  ;;  %v9737_v4 = vpop.eup %9736 }
0x1a1e   :  { %3079 = vadd.xlane.f32.xlu1 %v3078_v59  ;;  %v2913_v2 = vsel %vm227_vm3, %v9737_v4, 0.0  ;;  %v9862_v59 = vld [vmem:[#allocation7 + $0x8] ss:$0 sm:$0xff] }
0x1a1f   :  { %2588 = vrot.lane.b32.xlu0 %v10514_v17, %s10118_s21 }
0x1a2f   :  { %2918 = vrot.lane.b32.xlu1 %v10514_v17, %s10136_s27 }
0x1a3e   :  { %2914 = vadd.xlane.f32.xlu0 %v2913_v2 }
0x1a54   :  { %3083 = vrot.lane.b32.xlu0 %v10514_v17, %s10137_s28 }
0x1a92   :  { %v2585_v7 = vpop.xlane.xlu0 %2584 }
0x1a93   :  { %9738 = vrcp.f32 %v2585_v7 }
0x1a96   :  { %v2589_v14 = vpop.permute.xlu0 %2588 }
0x1a97   :  { %9051 = vmatpush3.msra.mxu0 %v2589_v14  ;;  %v2750_v15 = vpop.xlane.xlu1 %2749 }
0x1a98   :  { %9740 = vrcp.f32 %v2750_v15  ;;  %9060 = vmatprep.subr.mxu0 %v10126_v0 }
0x1aa0   :  { %v9739_v16 = vpop.eup %9738 }
0x1aa1   :  { %v2587_v8 = vmul.f32 %v9739_v16, %v9731_v11  ;;  %v9855_v11 = vld [vmem:[#allocation5 + $0x60] sm:$0xff]  }
0x1aa3   :  { %9053 = vmatmul.mubr.msk.f32.vlgmr.msra.gmra.mxu0 %vm227_vm3, %v2587_v8 }
0x1aa4   :  { %9061 = vmatpush3.msra.mxu0 %v2754_v12  ;;  %9062 = vmatprep.mubr.msk.f32.mxu0 %vm10127_vm0, %v10126_v0 }
0x1aa5   :  { %v9741_v18 = vpop.eup %9740  ;;  %9070 = vmatprep.subr.mxu0 %v10126_v0 }
0x1aa6   :  { %v2752_v17 = vmul.f32 %v9741_v18, %v9733_v52  ;;  %v9859_v52 = vld [vmem:[#allocation5 + $0x40] sm:$0xff]  }
0x1aa7   :  { %v3080_v19 = vpop.xlane.xlu1 %3079 }
0x1aa8   :  { %9063 = vmatmul.mubr.msk.f32.vlgmr.msra.gmra.mxu0 %vm227_vm3, %v2752_v17 }
0x1aa9   :  { %9072 = vmatprep.mubr.msk.f32.mxu0 %vm10127_vm0, %v10126_v0 }
0x1aab   :  { %v2919_v20 = vpop.permute.xlu1 %2918 }
0x1aac   :  { %9071 = vmatpush3.msra.mxu0 %v2919_v20 }
0x1aad   :  { %9080 = vmatprep.subr.mxu0 %v10126_v0 }
0x1ac7   :  { %v2915_v21 = vpop.xlane.xlu0 %2914 }
0x1ac8   :  { %9742 = vrcp.f32 %v2915_v21 }
0x1ac9   :  { %9744 = vrcp.f32 %v3080_v19 }
0x1acb   :  { %v3084_v26 = vpop.permute.xlu0 %3083 }
0x1ad5   :  { %v9743_v24 = vpop.eup %9742 }
0x1ad6   :  { %v2917_v25 = vmul.f32 %v9743_v24, %v9737_v4  ;;  %v9745_v46 = vpop.eup %9744 }
0x1ad7   :  { %v3082_v27 = vmul.f32 %v9745_v46, %v9735_v56 }
0x1ad8   :  { %9073 = vmatmul.mubr.msk.f32.vlgmr.msra.gmra.mxu0 %vm227_vm3, %v2917_v25  ;;  %v9863_v25 = vld [vmem:[#allocation7 + $0x20] ss:$0 sm:$0xff] }
0x1ad9   :  { %9081 = vmatpush3.msra.mxu0 %v3084_v26  ;;  %9082 = vmatprep.mubr.msk.f32.mxu0 %vm10127_vm0, %v10126_v0  ;;  %v9864_v26 = vld [vmem:[#allocation7 + $0x28] ss:$0 sm:$0xff] }
0x1ada   :  { %9093 = vmatprep.subr.bf16.mxu0 %v10126_v0 }
0x1adc   :  { %9083 = vmatmul.mubr.msk.f32.vlgmr.msra.gmra.mxu0 %vm227_vm3, %v3082_v27 }
0x1add   :  { %9094 = vmatpush3.bf16.msra.mxu0 %v9852_v28  ;;  %9097 = vmatprep.mubr.msk.bf16.mxu0 %vm10127_vm0, %v10126_v0 }
0x1ade   :  { %9095 = vmatprep.subr.bf16.mxu0 %v10126_v0 }
0x1ae1   :  { %9096 = vmatpush3.bf16.msra.mxu0 %v9853_v29  ;;  %v9865_v29 = vld [vmem:[#allocation5 + $0x78] sm:$0xff]  }
0x1ae2   :  { %9121 = vmatprep.subr.bf16.mxu0 %v10126_v0 }
0x1b63   :  { %v2660_v9 = vpop.f32.mrf.mxu0 }
0x1b65   :  { %v9054_v30 = vpop.f32.mrf.mxu0 }
0x1b68   :  { %v2825_v31 = vpop.f32.mrf.mxu0 }
0x1b69   :  { %3160 = vrot.lane.b32.xlu1 %v2825_v31, %s10124_s12  ;;  %v9867_v31 = vld [vmem:[#allocation7 + $0x10] ss:$0 sm:$0xff] }
0x1b6a   :  { %v9064_v32 = vpop.f32.mrf.mxu0 }
0x1b98   :  { %v2990_v22 = vpop.f32.mrf.mxu0 }
0x1b99   :  { %3164 = vrot.lane.b32.xlu0 %v2990_v22, %s10138_s29 }
0x1b9a   :  { %v9074_v33 = vpop.f32.mrf.mxu0 }
0x1b9c   :  { %v3155_v34 = vpop.f32.mrf.mxu0 }
0x1b9d   :  { %3168 = vrot.lane.b32.xlu1 %v3155_v34, %s10139_s30 }
0x1b9e   :  { %v9084_v35 = vpop.f32.mrf.mxu0 }
0x1bdb   :  { %v3161_v23 = vpop.permute.xlu1 %3160 }
0x1bdc   :  { %v3171_v37 = vsel %vm227_vm3, %v2660_v9, %v3161_v23  ;;  %v9866_v9 = vld [vmem:[#allocation5 + $0x70] sm:$0xff]  }
0x1c0b   :  { %v3165_v36 = vpop.permute.xlu0 %3164 }
0x1c0c   :  { %v3172_v38 = vsel %vm109_vm1, %v3171_v37, %v3165_v36  ;;  %v9868_v37 = vld [vmem:[#allocation7 + $0x18] ss:$0 sm:$0xff] }
0x1c0f   :  { %v3169_v40 = vpop.permute.xlu1 %3168 }
0x1c10   :  { %v3173_v41 = vsel %vm898_vm4, %v3172_v38, %v3169_v40 }
0x1c11   :  { %v3174_v43 = vpack.c.bf16 %v3173_v41, %v3173_v41 }
0x1c13   :  { %9090 = vmatmul.mubr.msk.bf16.vlgmr.msra.gmra.mxu1 %vm180_vm2, %v3174_v43 }
0x1c14   :  { %9102 = vmatpush3.bf16.msra.mxu1 %v9854_v44  ;;  %9117 = vmatprep.mubr.msk.bf16.mxu1 %vm10127_vm0, %v10126_v0 }
0x1c15   :  { %9103 = vmatprep.subr.bf16.mxu1 %v10126_v0 }
0x1c18   :  { %9104 = vmatpush3.bf16.msra.mxu1 %v9855_v11 }
0x1c19   :  { %9105 = vmatprep.subr.bf16.mxu1 %v10126_v0 }
0x1c1c   :  { %9106 = vmatpush3.bf16.msra.mxu1 %v9856_v48 }
0x1c1d   :  { %9107 = vmatprep.subr.bf16.mxu1 %v10126_v0 }
0x1c20   :  { %9108 = vmatpush3.bf16.msra.mxu1 %v9857_v50 }
0x1c21   :  { %9109 = vmatprep.subr.bf16.mxu1 %v10126_v0 }
0x1c24   :  { %9110 = vmatpush3.bf16.msra.mxu1 %v9858_v51 }
0x1c25   :  { %9111 = vmatprep.subr.bf16.mxu1 %v10126_v0 }
0x1c28   :  { %9112 = vmatpush3.bf16.msra.mxu1 %v9859_v52 }
0x1c29   :  { %9113 = vmatprep.subr.bf16.mxu1 %v10126_v0 }
0x1c2c   :  { %9114 = vmatpush3.bf16.msra.mxu1 %v9860_v53 }
0x1c2d   :  { %9115 = vmatprep.subr.bf16.mxu1 %v10126_v0 }
0x1c30   :  { %9116 = vmatpush3.bf16.msra.mxu1 %v9861_v54 }
0x1c31   :  { %9159 = vmatprep.subr.mxu1 %v10126_v0 }
0x1cd3   :  { %v3212_v56 = vpop.f32.mrf.mxu1 }
0x1cd4   :  { %v3213_v60 = vadd.f32 %v9862_v59, %v3212_v56 }
0x1cd5   :  { %v9091_v61 = vpop.f32.mrf.mxu1 }
0x1cd6   :  { %v3218_v62 = vadd.f32 %v3213_v60, %v10507_v13 }
0x1cd7   :  { %v3215_v4 = vpop.f32.mrf.mxu1 }
0x1cd8   :  { %v3219_v2 = vsel %vm180_vm2, %v3218_v62, 0.0  ;;  %v3223_v7 = vmul.f32 %v3218_v62, %v3218_v62 }
0x1cd9   :  { %3220 = vadd.xlane.f32.xlu0 %v3219_v2  ;;  %v9092_v12 = vpop.f32.mrf.mxu1  ;;  %v9869_v2 = vld [vmem:[#allocation7 + $0x30] ss:$0 sm:$0xff] }
0x1cda   :  { %v3224_v14 = vsel %vm180_vm2, %v3223_v7, 0.0  ;;  %v9870_v12 = vld [vmem:[#allocation7 + $0x38] ss:$0 sm:$0xff] }
0x1cdb   :  { %3225 = vadd.xlane.f32.xlu1 %v3224_v14 }
0x1d62   :  { %v3221_v15 = vpop.xlane.xlu0 %3220 }
0x1d63   :  { %v3222_v16 = vmul.f32 0.03125, %v3221_v15 }
0x1d64   :  { %v3226_v8 = vpop.xlane.xlu1 %3225 }
0x1d65   :  { %v3229_v18 = vmul.f32 %v3222_v16, %v3222_v16  ;;  %v3227_v17 = vmul.f32 0.03125, %v3226_v8  ;;  %v3228_v21 = vsub.f32 %v3218_v62, %v3222_v16  ;;  %v9871_v8 = vld [vmem:[#allocation7 + $0x40] ss:$0 sm:$0xff] }
0x1d67   :  { %v3230_v19 = vsub.f32 %v3227_v17, %v3229_v18 }
0x1d69   :  { %v3231_v20 = vadd.f32 1e-05, %v3230_v19 }
0x1d6b   :  { %9746 = vrsqrt.f32 %v3231_v20 }
0x1d78   :  { %v9747_v24 = vpop.eup %9746 }
0x1d79   :  { %v3233_v13 = vmul.f32 %v9747_v24, %v3228_v21 }
0x1d7b   :  { %v3234_v46 = vmul.f32 %v9863_v25, %v3233_v13 }
0x1d7d   :  { %v3235_v27 = vadd.f32 %v9864_v26, %v3234_v46 }
0x1d7f   :  { %v3236_v28 = vpack.c.bf16 %v3235_v27, %v3235_v27 }
0x1d81   :  { %9098 = vmatmul.mubr.msk.bf16.vlgmr.msra.gmra.mxu0 %vm180_vm2, %v3236_v28 }
0x1d82   :  { %9122 = vmatpush3.bf16.msra.mxu0 %v9865_v29  ;;  %9125 = vmatprep.mubr.msk.bf16.mxu0 %vm10127_vm0, %v10126_v0 }
0x1d83   :  { %9123 = vmatprep.subr.bf16.mxu0 %v10126_v0 }
0x1d86   :  { %9124 = vmatpush3.bf16.msra.mxu0 %v9866_v9 }
0x1d87   :  { %9129 = vmatprep.subr.mxu0 %v10126_v0 }
0x1e41   :  { %v3274_v30 = vpop.f32.mrf.mxu0 }
0x1e42   :  { %v3275_v32 = vadd.f32 %v9867_v31, %v3274_v30 }
0x1e43   :  { %v9099_v22 = vpop.f32.mrf.mxu0 }
0x1e44   :  { %v3280_v33 = vmax.f32 %v3275_v32, 0.0 }
0x1e45   :  { %v3277_v34 = vpop.f32.mrf.mxu0 }
0x1e46   :  { %v3281_v35 = vpack.c.bf16 %v3280_v33, %v3280_v33 }
0x1e47   :  { %v9100_v23 = vpop.f32.mrf.mxu0 }
0x1e48   :  { %9118 = vmatmul.mubr.bf16.vlgmr.msra.gmra.mxu1 %v3281_v35 }
0x1e49   :  { %9161 = vmatprep.mubr.msk.f32.mxu1 %vm10127_vm0, %v10126_v0 }
0x1f08   :  { %v3316_v36 = vpop.f32.mrf.mxu1 }
0x1f09   :  { %v3317_v38 = vadd.f32 %v9868_v37, %v3316_v36 }
0x1f0a   :  { %v9119_v40 = vpop.f32.mrf.mxu1 }
0x1f0b   :  { %v3322_v41 = vadd.f32 %v3317_v38, %v3235_v27 }
0x1f0c   :  { %v3319_v43 = vpop.f32.mrf.mxu1 }
0x1f0d   :  { %v3323_v44 = vsel %vm180_vm2, %v3322_v41, 0.0  ;;  %v3327_v11 = vmul.f32 %v3322_v41, %v3322_v41 }
0x1f0e   :  { %3324 = vadd.xlane.f32.xlu0 %v3323_v44  ;;  %v9120_v48 = vpop.f32.mrf.mxu1 }
0x1f0f   :  { %v3328_v50 = vsel %vm180_vm2, %v3327_v11, 0.0 }
0x1f12   :  { %3329 = vadd.xlane.f32.xlu0 %v3328_v50 }
0x1f97   :  { %v3325_v51 = vpop.xlane.xlu0 %3324 }
0x1f98   :  { %v3326_v52 = vmul.f32 0.03125, %v3325_v51 }
0x1f9a   :  { %v3333_v54 = vmul.f32 %v3326_v52, %v3326_v52  ;;  %v3332_v61 = vsub.f32 %v3322_v41, %v3326_v52 }
0x1f9b   :  { %v3330_v53 = vpop.xlane.xlu0 %3329 }
0x1f9c   :  { %v3331_v56 = vmul.f32 0.03125, %v3330_v53 }
0x1f9e   :  { %v3334_v59 = vsub.f32 %v3331_v56, %v3333_v54 }
0x1fa0   :  { %v3335_v60 = vadd.f32 1e-05, %v3334_v59 }
0x1fa2   :  { %9748 = vrsqrt.f32 %v3335_v60 }
0x1faf   :  { %v9749_v62 = vpop.eup %9748 }
0x1fb0   :  { %v3337_v4 = vmul.f32 %v9749_v62, %v3332_v61 }
0x1fb2   :  { %v3338_v7 = vmul.f32 %v9869_v2, %v3337_v4 }
0x1fb4   :  { %v10618_v14 = vadd.f32 %v9870_v12, %v3338_v7 }
0x1fb6   :  { %v3340_v15 = vpack.c.bf16 %v10618_v14, %v10618_v14 }
0x1fb8   :  { %9126 = vmatmul.mubr.msk.bf16.vlgmr.msra.gmra.mxu0 %vm180_vm2, %v3340_v15 }
0x1fb9   :  { %9131 = vmatprep.mubr.msk.f32.mxu0 %vm10127_vm0, %v10126_v0 }
0x2078   :  { %v3378_v16 = vpop.f32.mrf.mxu0 }
0x2079   :  { %v10625_v18 = vadd.f32 %v9871_v8, %v3378_v16 }
0x207a   :  { %v9127_v17 = vpop.f32.mrf.mxu0 }
0x207b   :  { %3385 = vrot.lane.b32.xlu1 %v10625_v18, %s10129_s4 }
0x207c   :  { %v3381_v19 = vpop.f32.mrf.mxu0 }
0x207e   :  { %v9128_v20 = vpop.f32.mrf.mxu0 }
0x207f   :  { %3550 = vrot.lane.b32.xlu1 %v10625_v18, %s10131_s20 }
0x2083   :  { %3548 = vrot.lane.b32.xlu1 %v10625_v18, %s10128_s2 }
0x20ed   :  { %v3386_v21 = vpop.permute.xlu1 %3385 }
0x20ee   :  { %9130 = vmatpush3.xpose.msk.msra.mxu0 %vm227_vm3, %v3386_v21 }
0x20ef   :  { %9134 = vmatprep.subr.mxu0 %v10126_v0 }
0x20f1   :  { %9132 = vmatmul.mubr.msk.f32.vlgmr.msra.gmra.mxu0 %vm227_vm3, %v10625_v18  ;;  %v3551_v32 = vpop.permute.xlu1 %3550 }
0x20f2   :  { %9136 = vmatprep.mubr.msk.f32.mxu0 %vm10127_vm0, %v10126_v0 }
0x20f5   :  { %v3549_v33 = vpop.permute.xlu1 %3548 }
0x21b1   :  { %v3457_v24 = vpop.f32.mrf.mxu0 }
0x21b2   :  { %v3461_v13 = vsel %vm227_vm3, %v3457_v24, -inf }
0x21b3   :  { %3462 = vmax.xlane.f32.xlu0 %v3461_v13  ;;  %v9133_v25 = vpop.f32.mrf.mxu0 }
0x223c   :  { %v3463_v46 = vpop.xlane.xlu0 %3462 }
0x223d   :  { %v3464_v26 = vsub.f32 %v3457_v24, %v3463_v46 }
0x223f   :  { %v3465_v27 = vmul.f32 1.442695, %v3464_v26 }
0x2241   :  { %9750 = vpow2.f32 %v3465_v27 }
0x224e   :  { %v9751_v28 = vpop.eup %9750 }
0x224f   :  { %v3467_v29 = vsel %vm227_vm3, %v9751_v28, 0.0 }
0x2250   :  { %3468 = vadd.xlane.f32.xlu0 %v3467_v29 }
0x2266   :  { %3472 = vrot.lane.b32.xlu0 %v10625_v18, %s10118_s21 }
0x22d9   :  { %v3469_v9 = vpop.xlane.xlu0 %3468 }
0x22da   :  { %9752 = vrcp.f32 %v3469_v9 }
0x22dd   :  { %v3473_v30 = vpop.permute.xlu0 %3472 }
0x22de   :  { %9135 = vmatpush3.msra.mxu0 %v3473_v30  ;;  %v9873_v30 = vld [vmem:[#allocation5 + $0x90] sm:$0xff]  }
0x22df   :  { %9139 = vmatprep.subr.mxu0 %v10126_v0 }
0x22e7   :  { %v9753_v31 = vpop.eup %9752 }
0x22e8   :  { %v3471_v22 = vmul.f32 %v9753_v31, %v9751_v28 }
0x22ea   :  { %9137 = vmatmul.mubr.msk.f32.vlgmr.msra.gmra.mxu0 %vm227_vm3, %v3471_v22 }
0x22eb   :  { %9140 = vmatpush3.xpose.msk.msra.mxu0 %vm227_vm3, %v3551_v32  ;;  %9141 = vmatprep.mubr.msk.f32.mxu0 %vm10127_vm0, %v10126_v0 }
0x22ec   :  { %9144 = vmatprep.subr.mxu0 %v10126_v0 }
0x22ee   :  { %9142 = vmatmul.mubr.msk.f32.vlgmr.msra.gmra.mxu0 %vm227_vm3, %v3549_v33 }
0x22ef   :  { %9146 = vmatprep.mubr.msk.f32.mxu0 %vm10127_vm0, %v10126_v0 }
0x23aa   :  { %v10652_v34 = vpop.f32.mrf.mxu0 }
0x23ac   :  { %v9138_v35 = vpop.f32.mrf.mxu0 }
0x23ae   :  { %v3622_v23 = vpop.f32.mrf.mxu0 }
0x23af   :  { %v3626_v36 = vsel %vm227_vm3, %v3622_v23, -inf }
0x23b0   :  { %3627 = vmax.xlane.f32.xlu1 %v3626_v36  ;;  %v9143_v37 = vpop.f32.mrf.mxu0 }
0x23c1   :  { %3637 = vrot.lane.b32.xlu1 %v10625_v18, %s10135_s26 }
0x23c5   :  { %3713 = vrot.lane.b32.xlu1 %v10625_v18, %s10133_s24 }
0x23c9   :  { %3880 = vrot.lane.b32.xlu1 %v10625_v18, %s10132_s23 }
0x2439   :  { %v3628_v38 = vpop.xlane.xlu1 %3627 }
0x243a   :  { %v3629_v40 = vsub.f32 %v3622_v23, %v3628_v38 }
0x243c   :  { %v3630_v41 = vmul.f32 1.442695, %v3629_v40 }
0x243d   :  { %v3638_v43 = vpop.permute.xlu1 %3637 }
0x243e   :  { %9754 = vpow2.f32 %v3630_v41  ;;  %9145 = vmatpush3.msra.mxu0 %v3638_v43  ;;  %v9874_v43 = vld [vmem:[#allocation5 + $0xd8] sm:$0xff]  }
0x243f   :  { %9149 = vmatprep.subr.mxu0 %v10126_v0 }
0x2441   :  { %v3714_v44 = vpop.permute.xlu1 %3713 }
0x2445   :  { %v3881_v11 = vpop.permute.xlu1 %3880 }
0x2446   :  { %9160 = vmatpush3.xpose.msk.msra.mxu1 %vm227_vm3, %v3881_v11  ;;  %v9877_v11 = vld [vmem:[#allocation5 + $0xc0] sm:$0xff]  }
0x2447   :  { %9169 = vmatprep.subr.bf16.mxu1 %v10126_v0 }
0x244b   :  { %v9755_v48 = vpop.eup %9754 }
0x244c   :  { %v3632_v50 = vsel %vm227_vm3, %v9755_v48, 0.0 }
0x244d   :  { %3633 = vadd.xlane.f32.xlu0 %v3632_v50  ;;  %v9879_v50 = vld [vmem:[#allocation5 + $0xb0] sm:$0xff]  }
0x2463   :  { %3715 = vrot.lane.b32.xlu0 %v10625_v18, %s10130_s19 }
0x2467   :  { %3878 = vrot.lane.b32.xlu0 %v10625_v18, %s10134_s25 }
0x24d6   :  { %v3634_v51 = vpop.xlane.xlu0 %3633 }
0x24d7   :  { %9756 = vrcp.f32 %v3634_v51 }
0x24da   :  { %v3716_v52 = vpop.permute.xlu0 %3715 }
0x24de   :  { %v3879_v53 = vpop.permute.xlu0 %3878 }
0x24df   :  { %9162 = vmatmul.mubr.msk.f32.vlgmr.msra.gmra.mxu1 %vm227_vm3, %v3879_v53 }
0x24e0   :  { %9170 = vmatpush3.bf16.msra.mxu1 %v10416_v49  ;;  %9173 = vmatprep.mubr.msk.bf16.mxu1 %vm10127_vm0, %v10126_v0 }
0x24e1   :  { %9171 = vmatprep.subr.bf16.mxu1 %v10126_v0 }
0x24e4   :  { %v9757_v54 = vpop.eup %9756  ;;  %9172 = vmatpush3.bf16.msra.mxu1 %v10420_v57 }
0x24e5   :  { %v3636_v56 = vmul.f32 %v9757_v54, %v9755_v48  ;;  %9185 = vmatprep.subr.bf16.mxu1 %v10126_v0  ;;  %v9878_v48 = vld [vmem:[#allocation5 + $0xb8] sm:$0xff]  }
0x24e7   :  { %9147 = vmatmul.mubr.msk.f32.vlgmr.msra.gmra.mxu0 %vm227_vm3, %v3636_v56 }
0x24e8   :  { %9150 = vmatpush3.xpose.msk.msra.mxu0 %vm227_vm3, %v3716_v52  ;;  %9151 = vmatprep.mubr.msk.f32.mxu0 %vm10127_vm0, %v10126_v0  ;;  %v9880_v52 = vld [vmem:[#allocation7 + $0x48] ss:$0 sm:$0xff] }
0x24e9   :  { %9154 = vmatprep.subr.mxu0 %v10126_v0 }
0x24eb   :  { %9152 = vmatmul.mubr.msk.f32.vlgmr.msra.gmra.mxu0 %vm227_vm3, %v3714_v44  ;;  %v9875_v44 = vld [vmem:[#allocation5 + $0xd0] sm:$0xff]  }
0x24ec   :  { %9156 = vmatprep.mubr.msk.f32.mxu0 %vm10127_vm0, %v10126_v0 }
0x259f   :  { %v3952_v49 = vpop.f32.mrf.mxu1 }
0x25a0   :  { %v3956_v57 = vsel %vm227_vm3, %v3952_v49, -inf }
0x25a1   :  { %3957 = vmax.xlane.f32.xlu0 %v3956_v57  ;;  %v9163_v59 = vpop.f32.mrf.mxu1 }
0x25a7   :  { %v3709_v60 = vpop.f32.mrf.mxu0 }
0x25a9   :  { %v9148_v61 = vpop.f32.mrf.mxu0 }
0x25ab   :  { %v3787_v62 = vpop.f32.mrf.mxu0 }
0x25ac   :  { %v3791_v4 = vsel %vm227_vm3, %v3787_v62, -inf }
0x25ad   :  { %3792 = vmax.xlane.f32.xlu1 %v3791_v4  ;;  %v9153_v2 = vpop.f32.mrf.mxu0 }
0x262a   :  { %v3958_v7 = vpop.xlane.xlu0 %3957 }
0x262b   :  { %v3959_v12 = vsub.f32 %v3952_v49, %v3958_v7 }
0x262d   :  { %v3960_v15 = vmul.f32 1.442695, %v3959_v12 }
0x262f   :  { %9758 = vpow2.f32 %v3960_v15 }
0x2636   :  { %v3793_v16 = vpop.xlane.xlu1 %3792 }
0x2637   :  { %v3794_v8 = vsub.f32 %v3787_v62, %v3793_v16 }
0x2639   :  { %v3795_v17 = vmul.f32 1.442695, %v3794_v8  ;;  %v9881_v8 = vld [vmem:[#allocation7 + $0x60] ss:$0 sm:$0xff] }
0x263b   :  { %9760 = vpow2.f32 %v3795_v17 }
0x263c   :  { %v9759_v19 = vpop.eup %9758 }
0x263d   :  { %v3962_v20 = vsel %vm227_vm3, %v9759_v19, 0.0 }
0x263e   :  { %3963 = vadd.xlane.f32.xlu1 %v3962_v20 }
0x2648   :  { %v9761_v21 = vpop.eup %9760 }
0x2649   :  { %v3797_v24 = vsel %vm227_vm3, %v9761_v21, 0.0 }
0x264a   :  { %3798 = vadd.xlane.f32.xlu0 %v3797_v24 }
0x264f   :  { %3967 = vrot.lane.b32.xlu1 %v10625_v18, %s10137_s28 }
0x2653   :  { %4044 = vrot.lane.b32.xlu1 %v3709_v60, %s10124_s12 }
0x2660   :  { %3802 = vrot.lane.b32.xlu0 %v10625_v18, %s10136_s27  ;;  %v9872_v18 = vld [vmem:[#allocation5 + $0x98] sm:$0xff]  }
0x26c7   :  { %v3964_v13 = vpop.xlane.xlu1 %3963 }
0x26cb   :  { %v3968_v29 = vpop.permute.xlu1 %3967 }
0x26cf   :  { %v4045_v35 = vpop.permute.xlu1 %4044 }
0x26d0   :  { %v4055_v36 = vsel %vm227_vm3, %v10652_v34, %v4045_v35  ;;  %v9876_v34 = vld [vmem:[#allocation5 + $0xc8] sm:$0xff]  }
0x26d3   :  { %v3799_v25 = vpop.xlane.xlu0 %3798 }
0x26d4   :  { %9762 = vrcp.f32 %v3799_v25 }
0x26d5   :  { %9764 = vrcp.f32 %v3964_v13  ;;  %v9883_v13 = vld [vmem:[#allocation7 + $0x50] ss:$0 sm:$0xff] }
0x26d7   :  { %v3803_v46 = vpop.permute.xlu0 %3802 }
0x26d8   :  { %9155 = vmatpush3.msra.mxu0 %v3803_v46 }
0x26d9   :  { %9164 = vmatprep.subr.mxu0 %v10126_v0 }
0x26e1   :  { %v9763_v26 = vpop.eup %9762 }
0x26e2   :  { %v3801_v27 = vmul.f32 %v9763_v26, %v9761_v21  ;;  %v9765_v28 = vpop.eup %9764 }
0x26e3   :  { %v3966_v9 = vmul.f32 %v9765_v28, %v9759_v19  ;;  %v9882_v19 = vld [vmem:[#allocation7 + $0x68] ss:$0 sm:$0xff] }
0x26e4   :  { %9157 = vmatmul.mubr.msk.f32.vlgmr.msra.gmra.mxu0 %vm227_vm3, %v3801_v27 }
0x26e5   :  { %9165 = vmatpush3.msra.mxu0 %v3968_v29  ;;  %9166 = vmatprep.mubr.msk.f32.mxu0 %vm10127_vm0, %v10126_v0 }
0x26e6   :  { %9177 = vmatprep.subr.bf16.mxu0 %v10126_v0 }
0x26e8   :  { %9167 = vmatmul.mubr.msk.f32.vlgmr.msra.gmra.mxu0 %vm227_vm3, %v3966_v9  ;;  %v9884_v9 = vld [vmem:[#allocation5 + $0x8] sm:$0xff]  }
0x26e9   :  { %9178 = vmatpush3.bf16.msra.mxu0 %v9872_v18  ;;  %9181 = vmatprep.mubr.msk.bf16.mxu0 %vm10127_vm0, %v10126_v0  ;;  %v9886_v18 = vld [vmem:[#allocation7 + $0x58] ss:$0 sm:$0xff] }
0x26ea   :  { %9179 = vmatprep.subr.bf16.mxu0 %v10126_v0 }
0x26ed   :  { %9180 = vmatpush3.bf16.msra.mxu0 %v9873_v30 }
0x26ee   :  { %9205 = vmatprep.subr.bf16.mxu0 %v10126_v0 }
0x27a4   :  { %v3874_v31 = vpop.f32.mrf.mxu0 }
0x27a5   :  { %4048 = vrot.lane.b32.xlu0 %v3874_v31, %s10138_s29 }
0x27a6   :  { %v9158_v32 = vpop.f32.mrf.mxu0 }
0x27a8   :  { %v4039_v22 = vpop.f32.mrf.mxu0 }
0x27a9   :  { %4052 = vrot.lane.b32.xlu1 %v4039_v22, %s10139_s30 }
0x27aa   :  { %v9168_v33 = vpop.f32.mrf.mxu0 }
0x2817   :  { %v4049_v23 = vpop.permute.xlu0 %4048 }
0x2818   :  { %v4056_v37 = vsel %vm109_vm1, %v4055_v36, %v4049_v23 }
0x281b   :  { %v4053_v38 = vpop.permute.xlu1 %4052 }
0x281c   :  { %v4057_v40 = vsel %vm898_vm4, %v4056_v37, %v4053_v38 }
0x281d   :  { %v4058_v41 = vpack.c.bf16 %v4057_v40, %v4057_v40 }
0x281f   :  { %9174 = vmatmul.mubr.msk.bf16.vlgmr.msra.gmra.mxu1 %vm180_vm2, %v4058_v41 }
0x2820   :  { %9186 = vmatpush3.bf16.msra.mxu1 %v9874_v43  ;;  %9201 = vmatprep.mubr.msk.bf16.mxu1 %vm10127_vm0, %v10126_v0 }
0x2821   :  { %9187 = vmatprep.subr.bf16.mxu1 %v10126_v0 }
0x2824   :  { %9188 = vmatpush3.bf16.msra.mxu1 %v9875_v44 }
0x2825   :  { %9189 = vmatprep.subr.bf16.mxu1 %v10126_v0 }
0x2828   :  { %9190 = vmatpush3.bf16.msra.mxu1 %v9876_v34 }
0x2829   :  { %9191 = vmatprep.subr.bf16.mxu1 %v10126_v0 }
0x282c   :  { %9192 = vmatpush3.bf16.msra.mxu1 %v9877_v11 }
0x282d   :  { %9193 = vmatprep.subr.bf16.mxu1 %v10126_v0 }
0x2830   :  { %9194 = vmatpush3.bf16.msra.mxu1 %v9878_v48 }
0x2831   :  { %9195 = vmatprep.subr.bf16.mxu1 %v10126_v0 }
0x2834   :  { %9196 = vmatpush3.bf16.msra.mxu1 %v9879_v50 }
0x2835   :  { %9197 = vmatprep.subr.bf16.mxu1 %v10126_v0 }
0x2838   :  { %9198 = vmatpush3.bf16.msra.mxu1 %v10447_v45 }
0x2839   :  { %9199 = vmatprep.subr.bf16.mxu1 %v10126_v0 }
0x283c   :  { %9200 = vmatpush3.bf16.msra.mxu1 %v10451_v47 }
0x283d   :  { %9231 = vmatprep.subr.bf16.mxu1 %v10126_v0 }
0x28df   :  { %v4096_v51 = vpop.f32.mrf.mxu1 }
0x28e0   :  { %v4097_v53 = vadd.f32 %v9880_v52, %v4096_v51  ;;  %v9887_v51 = vld [vmem:[#allocation7 + $0x70] ss:$0 sm:$0xff] }
0x28e1   :  { %v9175_v54 = vpop.f32.mrf.mxu1 }
0x28e2   :  { %v4102_v56 = vadd.f32 %v4097_v53, %v10618_v14  ;;  %v9888_v53 = vld [vmem:[#allocation7 + $0x78] ss:$0 sm:$0xff] }
0x28e3   :  { %v4099_v49 = vpop.f32.mrf.mxu1 }
0x28e4   :  { %v4103_v57 = vsel %vm180_vm2, %v4102_v56, 0.0  ;;  %v4107_v59 = vmul.f32 %v4102_v56, %v4102_v56 }
0x28e5   :  { %4104 = vadd.xlane.f32.xlu0 %v4103_v57  ;;  %v9176_v60 = vpop.f32.mrf.mxu1  ;;  %v9889_v57 = vld [vmem:[#allocation8 + $0x48] sm:$0xff]  }
0x28e6   :  { %v4108_v45 = vsel %vm180_vm2, %v4107_v59, 0.0  ;;  %v9890_v59 = vld [vmem:[#allocation8 + $0x40] sm:$0xff]   ;;  %v9891_v60 = vld [vmem:[#allocation8 + $0x38] sm:$0xff]  }
0x28e7   :  { %4109 = vadd.xlane.f32.xlu1 %v4108_v45  ;;  %v9892_v45 = vld [vmem:[#allocation8 + $0x30] sm:$0xff]  }
0x296e   :  { %v4105_v61 = vpop.xlane.xlu0 %4104 }
0x296f   :  { %v4106_v62 = vmul.f32 0.03125, %v4105_v61  ;;  %v9893_v61 = vld [vmem:[#allocation10 + $0x58] ss:$0 sm:$0xff] }
0x2970   :  { %v4110_v47 = vpop.xlane.xlu1 %4109 }
0x2971   :  { %v4113_v4 = vmul.f32 %v4106_v62, %v4106_v62  ;;  %v4111_v2 = vmul.f32 0.03125, %v4110_v47  ;;  %v4112_v15 = vsub.f32 %v4102_v56, %v4106_v62 }
0x2973   :  { %v4114_v7 = vsub.f32 %v4111_v2, %v4113_v4 }
0x2975   :  { %v4115_v12 = vadd.f32 1e-05, %v4114_v7  ;;  %v9680_v7 = vld [vmem:[#allocation8 + $0x10] sm:$0xff]  }
0x2977   :  { %9766 = vrsqrt.f32 %v4115_v12 }
0x2984   :  { %v9767_v16 = vpop.eup %9766 }
0x2985   :  { %v4117_v14 = vmul.f32 %v9767_v16, %v4112_v15 }
0x2987   :  { %v4118_v17 = vmul.f32 %v9881_v8, %v4117_v14  ;;  %v9894_v14 = vld [vmem:[#allocation10 + $0x60] ss:$0 sm:$0xff] }
0x2989   :  { %v4119_v20 = vadd.f32 %v9882_v19, %v4118_v17 }
0x298b   :  { %v4120_v21 = vpack.c.bf16 %v4119_v20, %v4119_v20 }
0x298d   :  { %9182 = vmatmul.mubr.msk.bf16.vlgmr.msra.gmra.mxu0 %vm180_vm2, %v4120_v21 }
0x298e   :  { %9206 = vmatpush3.bf16.msra.mxu0 %v10463_v6  ;;  %9209 = vmatprep.mubr.msk.bf16.mxu0 %vm10127_vm0, %v10126_v0  ;;  %v9885_v6 = vld [vmem:[#allocation5] sm:$0xff]  }
0x298f   :  { %9207 = vmatprep.subr.bf16.mxu0 %v10126_v0 }
0x2992   :  { %9208 = vmatpush3.bf16.msra.mxu0 %v10466_v5 }
0x2993   :  { %9213 = vmatprep.subr.bf16.mxu0 %v10126_v0 }
0x2a4d   :  { %v4158_v24 = vpop.f32.mrf.mxu0 }
0x2a4e   :  { %v4159_v25 = vadd.f32 %v9883_v13, %v4158_v24 }
0x2a4f   :  { %v9183_v46 = vpop.f32.mrf.mxu0 }
0x2a50   :  { %v4164_v26 = vmax.f32 %v4159_v25, 0.0  ;;  %v4367_v46 = vld [vmem:[#allocation10 + $0x20] sm:$0x3] }
0x2a51   :  { %v4161_v27 = vpop.f32.mrf.mxu0 }
0x2a52   :  { %v4165_v28 = vpack.c.bf16 %v4164_v26, %v4164_v26  ;;  %v8444_v26 = vld [vmem:[#allocation10 + $0x30] ss:$0 sm:$0xff]  ;;  %v4371_v27 = vrot.slane %v4367_v46, %v10492_v55 }
0x2a53   :  { %v9184_v29 = vpop.f32.mrf.mxu0 }
0x2a54   :  { %9202 = vmatmul.mubr.bf16.vlgmr.msra.gmra.mxu1 %v4165_v28  ;;  %v4380_v29 = vld [vmem:[#allocation10 + $0x28] sm:$0x3] }
0x2a55   :  { %9232 = vmatpush3.bf16.msra.mxu1 %v9884_v9  ;;  %9235 = vmatprep.mubr.msk.bf16.mxu1 %vm10127_vm0, %v10126_v0  ;;  %v4377_v9 = vrot.slane %v4367_v46, %v10494_v58 }
0x2a56   :  { %9233 = vmatprep.subr.bf16.mxu1 %v10126_v0 }
0x2a59   :  { %9234 = vmatpush3.bf16.msra.mxu1 %v9885_v6  ;;  %v4372_v6 = vmul.f32 %v4371_v27, %v10500_v1 }
0x2a5a   :  { %9249 = vmatprep.subr.mxu1 %v10126_v0 }
0x2b14   :  { %v4200_v5 = vpop.f32.mrf.mxu1 }
0x2b15   :  { %v4201_v30 = vadd.f32 %v9886_v18, %v4200_v5  ;;  %v4389_v18 = vrot.slane %v4380_v29, %v10492_v55 }
0x2b16   :  { %v9203_v31 = vpop.f32.mrf.mxu1 }
0x2b17   :  { %v4206_v32 = vadd.f32 %v4201_v30, %v4119_v20  ;;  %v4378_v30 = vmul.f32 %v4377_v9, %v10498_v63 }
0x2b18   :  { %v4203_v22 = vpop.f32.mrf.mxu1 }
0x2b19   :  { %v4207_v33 = vsel %vm180_vm2, %v4206_v32, 0.0  ;;  %v4211_v35 = vmul.f32 %v4206_v32, %v4206_v32 }
0x2b1a   :  { %4208 = vadd.xlane.f32.xlu0 %v4207_v33  ;;  %v9204_v23 = vpop.f32.mrf.mxu1 }
0x2b1b   :  { %v4212_v36 = vsel %vm180_vm2, %v4211_v35, 0.0 }
0x2b1e   :  { %4213 = vadd.xlane.f32.xlu0 %v4212_v36 }
0x2ba3   :  { %v4209_v37 = vpop.xlane.xlu0 %4208 }
0x2ba4   :  { %v4210_v38 = vmul.f32 0.03125, %v4209_v37  ;;  %v9895_v37 = vld [vmem:[#allocation10] ss:$0 sm:$0xff] }
0x2ba6   :  { %v4217_v41 = vmul.f32 %v4210_v38, %v4210_v38  ;;  %v4216_v11 = vsub.f32 %v4206_v32, %v4210_v38 }
0x2ba7   :  { %v4214_v40 = vpop.xlane.xlu0 %4213 }
0x2ba8   :  { %v4215_v43 = vmul.f32 0.03125, %v4214_v40 }
0x2baa   :  { %v4218_v44 = vsub.f32 %v4215_v43, %v4217_v41  ;;  %v9896_v43 = vld [vmem:[#allocation7] ss:$0 sm:$0xff] }
0x2bac   :  { %v4219_v34 = vadd.f32 1e-05, %v4218_v44 }
0x2bae   :  { %9768 = vrsqrt.f32 %v4219_v34 }
0x2bbb   :  { %v9769_v48 = vpop.eup %9768 }
0x2bbc   :  { %v4221_v50 = vmul.f32 %v9769_v48, %v4216_v11 }
0x2bbe   :  { %v4222_v52 = vmul.f32 %v9887_v51, %v4221_v50 }
0x2bc0   :  { %v4223_v54 = vadd.f32 %v9888_v53, %v4222_v52 }
0x2bc2   :  { %v4224_v56 = vadd.f32 %v4223_v54, %v10504_v10 }
0x2bc4   :  { %v4225_v49 = vpack.c.bf16 %v4224_v56, %v4224_v56 }
0x2bc6   :  { %9210 = vmatmul.mubr.msk.bf16.vlgmr.msra.gmra.mxu0 %vm180_vm2, %v4225_v49 }
0x2bc7   :  { %9214 = vmatpush3.bf16.msra.mxu0 %v9889_v57  ;;  %9221 = vmatprep.mubr.msk.bf16.mxu0 %vm10127_vm0, %v10126_v0  ;;  %v9897_v57 = vld [vmem:[#allocation5 + $0x18] sm:$0xff]  }
0x2bc8   :  { %9215 = vmatprep.subr.bf16.mxu0 %v10126_v0 }
0x2bcb   :  { %9216 = vmatpush3.bf16.msra.mxu0 %v9890_v59  ;;  %v9898_v59 = vld [vmem:[#allocation5 + $0x10] sm:$0xff]  }
0x2bcc   :  { %9217 = vmatprep.subr.bf16.mxu0 %v10126_v0 }
0x2bcf   :  { %9218 = vmatpush3.bf16.msra.mxu0 %v9891_v60 }
0x2bd0   :  { %9219 = vmatprep.subr.bf16.mxu0 %v10126_v0 }
0x2bd3   :  { %9220 = vmatpush3.bf16.msra.mxu0 %v9892_v45 }
0x2bd4   :  { %9225 = vmatprep.subr.bf16.mxu0 %v10126_v0 }
0x2c86   :  { %v4263_v10 = vpop.f32.mrf.mxu0 }
0x2c87   :  { %v4264_v62 = vadd.f32 %v9893_v61, %v4263_v10 }
0x2c88   :  { %v9211_v47 = vpop.f32.mrf.mxu0 }
0x2c89   :  { %v4269_v4 = vmax.f32 %v4264_v62, 0.0 }
0x2c8a   :  { %v4266_v2 = vpop.f32.mrf.mxu0 }
0x2c8b   :  { %v4270_v12 = vpack.c.bf16 %v4269_v4, %v4269_v4 }
0x2c8c   :  { %v9212_v15 = vpop.f32.mrf.mxu0 }
0x2c8d   :  { %9222 = vmatmul.mubr.msk.bf16.vlgmr.msra.gmra.mxu0 %vm2336_vm5, %v4270_v12 }
0x2c8e   :  { %9226 = vmatpush3.bf16.msra.mxu0 %v9680_v7  ;;  %9227 = vmatprep.mubr.msk.bf16.mxu0 %vm10127_vm0, %v10126_v0 }
0x2c8f   :  { %9239 = vmatprep.subr.mxu0 %v10126_v0 }
0x2c95   :  { %9228 = vmatmul.mubr.msk.bf16.vlgmr.msra.gmra.mxu0 %vm109_vm1, %v10204_v3 }
0x2c96   :  { %9241 = vmatprep.mubr.msk.f32.mxu0 %vm10127_vm0, %v10126_v0 }
0x2d4d   :  { %v4308_v16 = vpop.f32.mrf.mxu0 }
0x2d4e   :  { %v10754_v8 = vadd.f32 %v9894_v14, %v4308_v16 }
0x2d4f   :  { %v9223_v17 = vpop.f32.mrf.mxu0 }
0x2d50   :  { %4393 = vperm.xlu0 %9642, %v10754_v8   ;;  %4383 = vperm.xlu1 %9641, %v10754_v8  }
0x2d51   :  { %v4311_v19 = vpop.f32.mrf.mxu0 }
0x2d53   :  { %v9224_v20 = vpop.f32.mrf.mxu0 }
0x2d54   :  { %9643 = vset.pattern.permute.xlu0 %v10141_v39  ;;  %v4399_v39 = vrot.slane %v4380_v29, %v10494_v58 }
0x2d55   :  { %v4361_v21 = vpop.f32.mrf.mxu0 }
0x2d56   :  { %v4362_v28 = vadd.f32 %v8444_v26, %v4361_v21 }
0x2d57   :  { %v9229_v24 = vpop.f32.mrf.mxu0 }
0x2d58   :  { %v4373_v5 = vadd.f32 %v4372_v6, %v4362_v28 }
0x2d59   :  { %v4364_v13 = vpop.f32.mrf.mxu0 }
0x2d5a   :  { %v4379_v22 = vadd.f32 %v4378_v30, %v4373_v5 }
0x2d5b   :  { %v9230_v25 = vpop.f32.mrf.mxu0 }
0x2dcb   :  { %v10765_v31 = vpop.permute.xlu0 %4393  ;;  %v10767_v32 = vpop.permute.xlu1 %4383 }
0x2dcc   :  { %v4390_v33 = vmul.f32 %v4389_v18, %v10767_v32  ;;  %v4400_v35 = vmul.f32 %v4399_v39, %v10765_v31 }
0x2dce   :  { %v4391_v23 = vadd.f32 %v4390_v33, %v4379_v22 }
0x2dd0   :  { %v10771_v36 = vadd.f32 %v4400_v35, %v4391_v23 }
0x2dd2   :  { %v10774_v38 = vadd.f32 %v9895_v37, %v10771_v36 }
0x2dd4   :  { %v4403_v40 = vpack.c.bf16 %v10774_v38, %v10774_v38 }
0x2dd6   :  { %9236 = vmatmul.mubr.msk.bf16.vlgmr.msra.gmra.mxu1 %vm180_vm2, %v4403_v40 }
0x2dd7   :  { %9251 = vmatprep.mubr.msk.f32.mxu1 %vm10127_vm0, %v10126_v0 }
0x2e96   :  { %v4441_v41 = vpop.f32.mrf.mxu1 }
0x2e97   :  { %v10781_v44 = vadd.f32 %v9896_v43, %v4441_v41 }
0x2e98   :  { %v9237_v34 = vpop.f32.mrf.mxu1 }
0x2e99   :  { %4611 = vrot.lane.b32.xlu0 %v10781_v44, %s10128_s2  ;;  %4448 = vrot.lane.b32.xlu1 %v10781_v44, %s10129_s4 }
0x2e9a   :  { %v4444_v11 = vpop.f32.mrf.mxu1 }
0x2e9c   :  { %v9238_v48 = vpop.f32.mrf.mxu1 }
0x2e9d   :  { %4776 = vrot.lane.b32.xlu0 %v10781_v44, %s10133_s24  ;;  %4613 = vrot.lane.b32.xlu1 %v10781_v44, %s10131_s20 }
0x2ea1   :  { %4941 = vrot.lane.b32.xlu0 %v10781_v44, %s10134_s25  ;;  %4778 = vrot.lane.b32.xlu1 %v10781_v44, %s10130_s19 }
0x2ea5   :  { %4943 = vrot.lane.b32.xlu1 %v10781_v44, %s10132_s23 }
0x2f0b   :  { %v4449_v50 = vpop.permute.xlu1 %4448  ;;  %v4612_v51 = vpop.permute.xlu0 %4611 }
0x2f0c   :  { %9240 = vmatpush3.xpose.msk.msra.mxu0 %vm227_vm3, %v4449_v50 }
0x2f0d   :  { %9244 = vmatprep.subr.mxu0 %v10126_v0 }
0x2f0f   :  { %9242 = vmatmul.mubr.msk.f32.vlgmr.msra.gmra.mxu0 %vm227_vm3, %v10781_v44  ;;  %v4614_v52 = vpop.permute.xlu1 %4613  ;;  %v4777_v54 = vpop.permute.xlu0 %4776 }
0x2f10   :  { %9250 = vmatpush3.xpose.msk.msra.mxu1 %vm227_vm3, %v4614_v52  ;;  %9246 = vmatprep.mubr.msk.f32.mxu0 %vm10127_vm0, %v10126_v0 }
0x2f11   :  { %9259 = vmatprep.subr.mxu1 %v10126_v0 }
0x2f13   :  { %9252 = vmatmul.mubr.msk.f32.vlgmr.msra.gmra.mxu1 %vm227_vm3, %v4612_v51  ;;  %v4779_v53 = vpop.permute.xlu1 %4778  ;;  %v4942_v49 = vpop.permute.xlu0 %4941 }
0x2f14   :  { %9260 = vmatpush3.xpose.msk.msra.mxu1 %vm227_vm3, %v4779_v53  ;;  %9261 = vmatprep.mubr.msk.f32.mxu1 %vm10127_vm0, %v10126_v0 }
0x2f15   :  { %9269 = vmatprep.subr.mxu1 %v10126_v0 }
0x2f17   :  { %9262 = vmatmul.mubr.msk.f32.vlgmr.msra.gmra.mxu1 %vm227_vm3, %v4777_v54  ;;  %v4944_v56 = vpop.permute.xlu1 %4943 }
0x2f18   :  { %9270 = vmatpush3.xpose.msk.msra.mxu1 %vm227_vm3, %v4944_v56  ;;  %9271 = vmatprep.mubr.msk.f32.mxu1 %vm10127_vm0, %v10126_v0  ;;  %v9899_v56 = vld [vmem:[#allocation5 + $0x28] sm:$0xff]  }
0x2f19   :  { %9279 = vmatprep.subr.bf16.mxu1 %v10126_v0 }
0x2f1b   :  { %9272 = vmatmul.mubr.msk.f32.vlgmr.msra.gmra.mxu1 %vm227_vm3, %v4942_v49  ;;  %v9900_v49 = vld [vmem:[#allocation5 + $0x20] sm:$0xff]  }
0x2f1c   :  { %9280 = vmatpush3.bf16.msra.mxu1 %v9897_v57  ;;  %9283 = vmatprep.mubr.msk.bf16.mxu1 %vm10127_vm0, %v10126_v0 }
0x2f1d   :  { %9281 = vmatprep.subr.bf16.mxu1 %v10126_v0 }
0x2f20   :  { %9282 = vmatpush3.bf16.msra.mxu1 %v9898_v59 }
0x2f21   :  { %9295 = vmatprep.subr.bf16.mxu1 %v10126_v0 }
0x2fcf   :  { %v4520_v60 = vpop.f32.mrf.mxu0 }
0x2fd0   :  { %v4524_v45 = vsel %vm227_vm3, %v4520_v60, -inf }
0x2fd1   :  { %4525 = vmax.xlane.f32.xlu1 %v4524_v45  ;;  %v9243_v10 = vpop.f32.mrf.mxu0 }
0x2fd3   :  { %v4685_v61 = vpop.f32.mrf.mxu1 }
0x2fd4   :  { %v4689_v62 = vsel %vm227_vm3, %v4685_v61, -inf }
0x2fd5   :  { %4690 = vmax.xlane.f32.xlu0 %v4689_v62  ;;  %v9253_v47 = vpop.f32.mrf.mxu1 }
0x2fd7   :  { %v4850_v4 = vpop.f32.mrf.mxu1 }
0x2fd8   :  { %v4854_v2 = vsel %vm227_vm3, %v4850_v4, -inf }
0x2fd9   :  { %4855 = vmax.xlane.f32.xlu0 %v4854_v2  ;;  %v9263_v7 = vpop.f32.mrf.mxu1 }
0x2fdb   :  { %v5015_v12 = vpop.f32.mrf.mxu1 }
0x2fdc   :  { %v5019_v15 = vsel %vm227_vm3, %v5015_v12, -inf }
0x2fdd   :  { %v9273_v16 = vpop.f32.mrf.mxu1  ;;  %5020 = vmax.xlane.f32.xlu1 %v5019_v15 }
0x2fee   :  { %4700 = vrot.lane.b32.xlu1 %v10781_v44, %s10135_s26 }
0x305a   :  { %v4526_v14 = vpop.xlane.xlu1 %4525 }
0x305b   :  { %v4527_v17 = vsub.f32 %v4520_v60, %v4526_v14 }
0x305d   :  { %v4528_v19 = vmul.f32 1.442695, %v4527_v17  ;;  %v9901_v17 = vld [vmem:[#allocation5 + $0x68] sm:$0xff]  }
0x305e   :  { %v4691_v20 = vpop.xlane.xlu0 %4690 }
0x305f   :  { %9770 = vpow2.f32 %v4528_v19  ;;  %v4692_v21 = vsub.f32 %v4685_v61, %v4691_v20  ;;  %v9902_v19 = vld [vmem:[#allocation5 + $0x60] sm:$0xff]   ;;  %v9903_v20 = vld [vmem:[#allocation5 + $0x58] sm:$0xff]  }
0x3061   :  { %v4693_v24 = vmul.f32 1.442695, %v4692_v21  ;;  %v9904_v21 = vld [vmem:[#allocation5 + $0x50] sm:$0xff]  }
0x3062   :  { %v4856_v5 = vpop.xlane.xlu0 %4855 }
0x3063   :  { %9772 = vpow2.f32 %v4693_v24  ;;  %v4857_v18 = vsub.f32 %v4850_v4, %v4856_v5  ;;  %v9905_v24 = vld [vmem:[#allocation5 + $0x48] sm:$0xff]  }
0x3065   :  { %v4858_v30 = vmul.f32 1.442695, %v4857_v18 }
0x3066   :  { %v5021_v13 = vpop.xlane.xlu1 %5020 }
0x3067   :  { %v5022_v25 = vsub.f32 %v5015_v12, %v5021_v13  ;;  %v9906_v13 = vld [vmem:[#allocation5 + $0x40] sm:$0xff]  }
0x3069   :  { %v5023_v46 = vmul.f32 1.442695, %v5022_v25  ;;  %v9907_v25 = vld [vmem:[#allocation5 + $0x38] sm:$0xff]  }
0x306a   :  { %v4701_v33 = vpop.permute.xlu1 %4700 }
0x306b   :  { %9774 = vpow2.f32 %v5023_v46  ;;  %v9908_v46 = vld [vmem:[#allocation5 + $0x30] sm:$0xff]  }
0x306c   :  { %v9771_v26 = vpop.eup %9770  ;;  %9776 = vpow2.f32 %v4858_v30 }
0x306d   :  { %v4530_v27 = vsel %vm227_vm3, %v9771_v26, 0.0 }
0x306e   :  { %4531 = vadd.xlane.f32.xlu0 %v4530_v27  ;;  %v9909_v27 = vld [vmem:[#allocation7 + $0x8] ss:$0 sm:$0xff] }
0x3070   :  { %v9773_v28 = vpop.eup %9772 }
0x3071   :  { %v4695_v29 = vsel %vm227_vm3, %v9773_v28, 0.0 }
0x3072   :  { %4696 = vadd.xlane.f32.xlu1 %v4695_v29 }
0x3078   :  { %v9775_v9 = vpop.eup %9774 }
0x3079   :  { %v5025_v6 = vsel %vm227_vm3, %v9775_v9, 0.0  ;;  %v9777_v39 = vpop.eup %9776 }
0x307a   :  { %5026 = vadd.xlane.f32.xlu1 %v5025_v6  ;;  %v4860_v22 = vsel %vm227_vm3, %v9777_v39, 0.0 }
0x3084   :  { %4535 = vrot.lane.b32.xlu0 %v10781_v44, %s10118_s21 }
0x308b   :  { %4865 = vrot.lane.b32.xlu1 %v10781_v44, %s10136_s27 }
0x30a3   :  { %4861 = vadd.xlane.f32.xlu0 %v4860_v22 }
0x30b9   :  { %5030 = vrot.lane.b32.xlu0 %v10781_v44, %s10137_s28 }
0x30f7   :  { %v4532_v35 = vpop.xlane.xlu0 %4531 }
0x30f8   :  { %9778 = vrcp.f32 %v4532_v35 }
0x30fb   :  { %v4536_v23 = vpop.permute.xlu0 %4535  ;;  %v4697_v37 = vpop.xlane.xlu1 %4696 }
0x30fc   :  { %9780 = vrcp.f32 %v4697_v37  ;;  %9245 = vmatpush3.msra.mxu0 %v4536_v23 }
0x30fd   :  { %9254 = vmatprep.subr.mxu0 %v10126_v0 }
0x3103   :  { %v5027_v41 = vpop.xlane.xlu1 %5026 }
0x3105   :  { %v9779_v40 = vpop.eup %9778 }
0x3106   :  { %v4534_v43 = vmul.f32 %v9779_v40, %v9771_v26 }
0x3107   :  { %v4866_v11 = vpop.permute.xlu1 %4865 }
0x3108   :  { %9247 = vmatmul.mubr.msk.f32.vlgmr.msra.gmra.mxu0 %vm227_vm3, %v4534_v43 }
0x3109   :  { %v9781_v34 = vpop.eup %9780  ;;  %9255 = vmatpush3.msra.mxu0 %v4701_v33  ;;  %9256 = vmatprep.mubr.msk.f32.mxu0 %vm10127_vm0, %v10126_v0 }
0x310a   :  { %9264 = vmatprep.subr.mxu0 %v10126_v0  ;;  %v4699_v44 = vmul.f32 %v9781_v34, %v9773_v28 }
0x310c   :  { %9257 = vmatmul.mubr.msk.f32.vlgmr.msra.gmra.mxu0 %vm227_vm3, %v4699_v44  ;;  %v9910_v44 = vld [vmem:[#allocation7 + $0x20] ss:$0 sm:$0xff] }
0x310d   :  { %9265 = vmatpush3.msra.mxu0 %v4866_v11  ;;  %9266 = vmatprep.mubr.msk.f32.mxu0 %vm10127_vm0, %v10126_v0 }
0x310e   :  { %9274 = vmatprep.subr.mxu0 %v10126_v0 }
0x312c   :  { %v4862_v48 = vpop.xlane.xlu0 %4861 }
0x312d   :  { %9782 = vrcp.f32 %v4862_v48  ;;  %v9911_v48 = vld [vmem:[#allocation7 + $0x28] ss:$0 sm:$0xff] }
0x312e   :  { %9784 = vrcp.f32 %v5027_v41 }
0x3130   :  { %v5031_v53 = vpop.permute.xlu0 %5030 }
0x313a   :  { %v9783_v50 = vpop.eup %9782 }
0x313b   :  { %v4864_v51 = vmul.f32 %v9783_v50, %v9777_v39  ;;  %v9785_v52 = vpop.eup %9784 }
0x313c   :  { %v5029_v54 = vmul.f32 %v9785_v52, %v9775_v9  ;;  %v9912_v52 = vld [vmem:[#allocation5 + $0x78] sm:$0xff]  }
0x313d   :  { %9267 = vmatmul.mubr.msk.f32.vlgmr.msra.gmra.mxu0 %vm227_vm3, %v4864_v51 }
0x313e   :  { %9275 = vmatpush3.msra.mxu0 %v5031_v53  ;;  %9276 = vmatprep.mubr.msk.f32.mxu0 %vm10127_vm0, %v10126_v0  ;;  %v9913_v53 = vld [vmem:[#allocation5 + $0x70] sm:$0xff]  }
0x313f   :  { %9287 = vmatprep.subr.bf16.mxu0 %v10126_v0 }
0x3141   :  { %9277 = vmatmul.mubr.msk.f32.vlgmr.msra.gmra.mxu0 %vm227_vm3, %v5029_v54 }
0x3142   :  { %9288 = vmatpush3.bf16.msra.mxu0 %v9899_v56  ;;  %9291 = vmatprep.mubr.msk.bf16.mxu0 %vm10127_vm0, %v10126_v0  ;;  %v9914_v56 = vld [vmem:[#allocation7 + $0x10] ss:$0 sm:$0xff] }
0x3143   :  { %9289 = vmatprep.subr.bf16.mxu0 %v10126_v0 }
0x3146   :  { %9290 = vmatpush3.bf16.msra.mxu0 %v9900_v49 }
0x3147   :  { %9315 = vmatprep.subr.bf16.mxu0 %v10126_v0 }
0x31c8   :  { %v4607_v57 = vpop.f32.mrf.mxu0 }
0x31ca   :  { %v9248_v59 = vpop.f32.mrf.mxu0 }
0x31cc   :  { %v4772_v60 = vpop.f32.mrf.mxu0 }
0x31cd   :  { %5107 = vrot.lane.b32.xlu1 %v4772_v60, %s10124_s12 }
0x31ce   :  { %v9258_v45 = vpop.f32.mrf.mxu0 }
0x31fd   :  { %v4937_v10 = vpop.f32.mrf.mxu0 }
0x31fe   :  { %5111 = vrot.lane.b32.xlu0 %v4937_v10, %s10138_s29 }
0x31ff   :  { %v9268_v61 = vpop.f32.mrf.mxu0 }
0x3201   :  { %v5102_v62 = vpop.f32.mrf.mxu0 }
0x3202   :  { %5115 = vrot.lane.b32.xlu1 %v5102_v62, %s10139_s30  ;;  %v9915_v62 = vld [vmem:[#allocation7 + $0x18] ss:$0 sm:$0xff] }
0x3203   :  { %v9278_v47 = vpop.f32.mrf.mxu0 }
0x323f   :  { %v5108_v4 = vpop.permute.xlu1 %5107 }
0x3240   :  { %v5118_v7 = vsel %vm227_vm3, %v4607_v57, %v5108_v4 }
0x3270   :  { %v5112_v2 = vpop.permute.xlu0 %5111 }
0x3271   :  { %v5119_v12 = vsel %vm109_vm1, %v5118_v7, %v5112_v2 }
0x3274   :  { %v5116_v15 = vpop.permute.xlu1 %5115 }
0x3275   :  { %v5120_v16 = vsel %vm898_vm4, %v5119_v12, %v5116_v15 }
0x3276   :  { %v5121_v14 = vpack.c.bf16 %v5120_v16, %v5120_v16 }
0x3278   :  { %9284 = vmatmul.mubr.msk.bf16.vlgmr.msra.gmra.mxu1 %vm180_vm2, %v5121_v14 }
0x3279   :  { %9296 = vmatpush3.bf16.msra.mxu1 %v9901_v17  ;;  %9311 = vmatprep.mubr.msk.bf16.mxu1 %vm10127_vm0, %v10126_v0 }
0x327a   :  { %9297 = vmatprep.subr.bf16.mxu1 %v10126_v0 }
0x327d   :  { %9298 = vmatpush3.bf16.msra.mxu1 %v9902_v19 }
0x327e   :  { %9299 = vmatprep.subr.bf16.mxu1 %v10126_v0 }
0x3281   :  { %9300 = vmatpush3.bf16.msra.mxu1 %v9903_v20 }
0x3282   :  { %9301 = vmatprep.subr.bf16.mxu1 %v10126_v0 }
0x3285   :  { %9302 = vmatpush3.bf16.msra.mxu1 %v9904_v21 }
0x3286   :  { %9303 = vmatprep.subr.bf16.mxu1 %v10126_v0 }
0x3289   :  { %9304 = vmatpush3.bf16.msra.mxu1 %v9905_v24 }
0x328a   :  { %9305 = vmatprep.subr.bf16.mxu1 %v10126_v0 }
0x328d   :  { %9306 = vmatpush3.bf16.msra.mxu1 %v9906_v13 }
0x328e   :  { %9307 = vmatprep.subr.bf16.mxu1 %v10126_v0 }
0x3291   :  { %9308 = vmatpush3.bf16.msra.mxu1 %v9907_v25 }
0x3292   :  { %9309 = vmatprep.subr.bf16.mxu1 %v10126_v0 }
0x3295   :  { %9310 = vmatpush3.bf16.msra.mxu1 %v9908_v46 }
0x3296   :  { %9353 = vmatprep.subr.mxu1 %v10126_v0 }
0x3338   :  { %v5159_v26 = vpop.f32.mrf.mxu1 }
0x3339   :  { %v5160_v28 = vadd.f32 %v9909_v27, %v5159_v26 }
0x333a   :  { %v9285_v29 = vpop.f32.mrf.mxu1 }
0x333b   :  { %v5165_v9 = vadd.f32 %v5160_v28, %v10774_v38  ;;  %v9916_v28 = vld [vmem:[#allocation7 + $0x30] ss:$0 sm:$0xff] }
0x333c   :  { %v5162_v6 = vpop.f32.mrf.mxu1 }
0x333d   :  { %v5166_v5 = vsel %vm180_vm2, %v5165_v9, 0.0  ;;  %v5170_v18 = vmul.f32 %v5165_v9, %v5165_v9 }
0x333e   :  { %5167 = vadd.xlane.f32.xlu0 %v5166_v5  ;;  %v9286_v30 = vpop.f32.mrf.mxu1 }
0x333f   :  { %v5171_v39 = vsel %vm180_vm2, %v5170_v18, 0.0  ;;  %v9918_v30 = vld [vmem:[#allocation7 + $0x40] ss:$0 sm:$0xff] }
0x3340   :  { %5172 = vadd.xlane.f32.xlu1 %v5171_v39 }
0x33c7   :  { %v5168_v22 = vpop.xlane.xlu0 %5167 }
0x33c8   :  { %v5169_v33 = vmul.f32 0.03125, %v5168_v22 }
0x33c9   :  { %v5173_v35 = vpop.xlane.xlu1 %5172 }
0x33ca   :  { %v5176_v23 = vmul.f32 %v5169_v33, %v5169_v33  ;;  %v5174_v37 = vmul.f32 0.03125, %v5173_v35  ;;  %v5175_v43 = vsub.f32 %v5165_v9, %v5169_v33  ;;  %v9917_v9 = vld [vmem:[#allocation7 + $0x38] ss:$0 sm:$0xff] }
0x33cc   :  { %v5177_v40 = vsub.f32 %v5174_v37, %v5176_v23 }
0x33ce   :  { %v5178_v41 = vadd.f32 1e-05, %v5177_v40 }
0x33d0   :  { %9786 = vrsqrt.f32 %v5178_v41 }
0x33dd   :  { %v9787_v34 = vpop.eup %9786 }
0x33de   :  { %v5180_v38 = vmul.f32 %v9787_v34, %v5175_v43 }
0x33e0   :  { %v5181_v11 = vmul.f32 %v9910_v44, %v5180_v38 }
0x33e2   :  { %v5182_v50 = vadd.f32 %v9911_v48, %v5181_v11 }
0x33e4   :  { %v5183_v51 = vpack.c.bf16 %v5182_v50, %v5182_v50 }
0x33e6   :  { %9292 = vmatmul.mubr.msk.bf16.vlgmr.msra.gmra.mxu0 %vm180_vm2, %v5183_v51 }
0x33e7   :  { %9316 = vmatpush3.bf16.msra.mxu0 %v9912_v52  ;;  %9319 = vmatprep.mubr.msk.bf16.mxu0 %vm10127_vm0, %v10126_v0 }
0x33e8   :  { %9317 = vmatprep.subr.bf16.mxu0 %v10126_v0 }
0x33eb   :  { %9318 = vmatpush3.bf16.msra.mxu0 %v9913_v53 }
0x33ec   :  { %9323 = vmatprep.subr.mxu0 %v10126_v0 }
0x34a6   :  { %v5221_v54 = vpop.f32.mrf.mxu0 }
0x34a7   :  { %v5222_v49 = vadd.f32 %v9914_v56, %v5221_v54 }
0x34a8   :  { %v9293_v57 = vpop.f32.mrf.mxu0 }
0x34a9   :  { %v5227_v59 = vmax.f32 %v5222_v49, 0.0 }
0x34aa   :  { %v5224_v60 = vpop.f32.mrf.mxu0 }
0x34ab   :  { %v5228_v45 = vpack.c.bf16 %v5227_v59, %v5227_v59 }
0x34ac   :  { %v9294_v10 = vpop.f32.mrf.mxu0 }
0x34ad   :  { %9312 = vmatmul.mubr.bf16.vlgmr.msra.gmra.mxu1 %v5228_v45 }
0x34ae   :  { %9355 = vmatprep.mubr.msk.f32.mxu1 %vm10127_vm0, %v10126_v0 }
0x356d   :  { %v5263_v61 = vpop.f32.mrf.mxu1 }
0x356e   :  { %v5264_v47 = vadd.f32 %v9915_v62, %v5263_v61 }
0x356f   :  { %v9313_v4 = vpop.f32.mrf.mxu1 }
0x3570   :  { %v5269_v2 = vadd.f32 %v5264_v47, %v5182_v50 }
0x3571   :  { %v5266_v7 = vpop.f32.mrf.mxu1 }
0x3572   :  { %v5270_v12 = vsel %vm180_vm2, %v5269_v2, 0.0  ;;  %v5274_v15 = vmul.f32 %v5269_v2, %v5269_v2 }
0x3573   :  { %5271 = vadd.xlane.f32.xlu0 %v5270_v12  ;;  %v9314_v16 = vpop.f32.mrf.mxu1 }
0x3574   :  { %v5275_v14 = vsel %vm180_vm2, %v5274_v15, 0.0 }
0x3577   :  { %5276 = vadd.xlane.f32.xlu0 %v5275_v14  ;;  %v9919_v14 = vld [vmem:[#allocation5 + $0x88] sm:$0xff]  }
0x35fc   :  { %v5272_v17 = vpop.xlane.xlu0 %5271 }
0x35fd   :  { %v5273_v19 = vmul.f32 0.03125, %v5272_v17 }
0x35ff   :  { %v5280_v21 = vmul.f32 %v5273_v19, %v5273_v19  ;;  %v5279_v46 = vsub.f32 %v5269_v2, %v5273_v19  ;;  %v9920_v19 = vld [vmem:[#allocation5 + $0x80] sm:$0xff]  }
0x3600   :  { %v5277_v20 = vpop.xlane.xlu0 %5276 }
0x3601   :  { %v5278_v24 = vmul.f32 0.03125, %v5277_v20 }
0x3603   :  { %v5281_v13 = vsub.f32 %v5278_v24, %v5280_v21 }
0x3605   :  { %v5282_v25 = vadd.f32 1e-05, %v5281_v13 }
0x3607   :  { %9788 = vrsqrt.f32 %v5282_v25 }
0x3614   :  { %v9789_v26 = vpop.eup %9788 }
0x3615   :  { %v5284_v27 = vmul.f32 %v9789_v26, %v5279_v46 }
0x3617   :  { %v5285_v29 = vmul.f32 %v9916_v28, %v5284_v27 }
0x3619   :  { %v10883_v6 = vadd.f32 %v9917_v9, %v5285_v29 }
0x361b   :  { %v5287_v5 = vpack.c.bf16 %v10883_v6, %v10883_v6 }
0x361d   :  { %9320 = vmatmul.mubr.msk.bf16.vlgmr.msra.gmra.mxu0 %vm180_vm2, %v5287_v5 }
0x361e   :  { %9325 = vmatprep.mubr.msk.f32.mxu0 %vm10127_vm0, %v10126_v0 }
0x36dd   :  { %v5325_v18 = vpop.f32.mrf.mxu0 }
0x36de   :  { %v10890_v39 = vadd.f32 %v9918_v30, %v5325_v18 }
0x36df   :  { %v9321_v22 = vpop.f32.mrf.mxu0 }
0x36e0   :  { %5332 = vrot.lane.b32.xlu1 %v10890_v39, %s10129_s4 }
0x36e1   :  { %v5328_v33 = vpop.f32.mrf.mxu0 }
0x36e3   :  { %v9322_v35 = vpop.f32.mrf.mxu0 }
0x36e4   :  { %5497 = vrot.lane.b32.xlu1 %v10890_v39, %s10131_s20 }
0x36e8   :  { %5495 = vrot.lane.b32.xlu1 %v10890_v39, %s10128_s2 }
0x3752   :  { %v5333_v23 = vpop.permute.xlu1 %5332 }
0x3753   :  { %9324 = vmatpush3.xpose.msk.msra.mxu0 %vm227_vm3, %v5333_v23 }
0x3754   :  { %9328 = vmatprep.subr.mxu0 %v10126_v0 }
0x3756   :  { %9326 = vmatmul.mubr.msk.f32.vlgmr.msra.gmra.mxu0 %vm227_vm3, %v10890_v39  ;;  %v5498_v52 = vpop.permute.xlu1 %5497 }
0x3757   :  { %9330 = vmatprep.mubr.msk.f32.mxu0 %vm10127_vm0, %v10126_v0 }
0x375a   :  { %v5496_v54 = vpop.permute.xlu1 %5495 }
0x3816   :  { %v5404_v37 = vpop.f32.mrf.mxu0 }
0x3817   :  { %v5408_v40 = vsel %vm227_vm3, %v5404_v37, -inf }
0x3818   :  { %5409 = vmax.xlane.f32.xlu0 %v5408_v40  ;;  %v9327_v41 = vpop.f32.mrf.mxu0 }
0x38a1   :  { %v5410_v43 = vpop.xlane.xlu0 %5409 }
0x38a2   :  { %v5411_v34 = vsub.f32 %v5404_v37, %v5410_v43 }
0x38a4   :  { %v5412_v38 = vmul.f32 1.442695, %v5411_v34 }
0x38a6   :  { %9790 = vpow2.f32 %v5412_v38 }
0x38b3   :  { %v9791_v44 = vpop.eup %9790 }
0x38b4   :  { %v5414_v11 = vsel %vm227_vm3, %v9791_v44, 0.0 }
0x38b5   :  { %5415 = vadd.xlane.f32.xlu0 %v5414_v11 }
0x38cb   :  { %5419 = vrot.lane.b32.xlu0 %v10890_v39, %s10118_s21 }
0x393e   :  { %v5416_v48 = vpop.xlane.xlu0 %5415 }
0x393f   :  { %9792 = vrcp.f32 %v5416_v48 }
0x3942   :  { %v5420_v50 = vpop.permute.xlu0 %5419 }
0x3943   :  { %9329 = vmatpush3.msra.mxu0 %v5420_v50  ;;  %v9922_v50 = vld [vmem:[#allocation5 + $0x90] sm:$0xff]  }
0x3944   :  { %9333 = vmatprep.subr.mxu0 %v10126_v0 }
0x394c   :  { %v9793_v51 = vpop.eup %9792 }
0x394d   :  { %v5418_v53 = vmul.f32 %v9793_v51, %v9791_v44 }
0x394f   :  { %9331 = vmatmul.mubr.msk.f32.vlgmr.msra.gmra.mxu0 %vm227_vm3, %v5418_v53 }
0x3950   :  { %9334 = vmatpush3.xpose.msk.msra.mxu0 %vm227_vm3, %v5498_v52  ;;  %9335 = vmatprep.mubr.msk.f32.mxu0 %vm10127_vm0, %v10126_v0 }
0x3951   :  { %9338 = vmatprep.subr.mxu0 %v10126_v0 }
0x3953   :  { %9336 = vmatmul.mubr.msk.f32.vlgmr.msra.gmra.mxu0 %vm227_vm3, %v5496_v54 }
0x3954   :  { %9340 = vmatprep.mubr.msk.f32.mxu0 %vm10127_vm0, %v10126_v0 }
0x3a0f   :  { %v10917_v56 = vpop.f32.mrf.mxu0 }
0x3a11   :  { %v9332_v49 = vpop.f32.mrf.mxu0 }
0x3a13   :  { %v5569_v57 = vpop.f32.mrf.mxu0 }
0x3a14   :  { %v5573_v59 = vsel %vm227_vm3, %v5569_v57, -inf }
0x3a15   :  { %5574 = vmax.xlane.f32.xlu1 %v5573_v59  ;;  %v9337_v60 = vpop.f32.mrf.mxu0 }
0x3a26   :  { %5584 = vrot.lane.b32.xlu1 %v10890_v39, %s10135_s26 }
0x3a2a   :  { %5660 = vrot.lane.b32.xlu1 %v10890_v39, %s10133_s24 }
0x3a2e   :  { %5827 = vrot.lane.b32.xlu1 %v10890_v39, %s10132_s23 }
0x3a9e   :  { %v5575_v45 = vpop.xlane.xlu1 %5574 }
0x3a9f   :  { %v5576_v10 = vsub.f32 %v5569_v57, %v5575_v45 }
0x3aa1   :  { %v5577_v61 = vmul.f32 1.442695, %v5576_v10 }
0x3aa2   :  { %v5585_v62 = vpop.permute.xlu1 %5584 }
0x3aa3   :  { %9794 = vpow2.f32 %v5577_v61  ;;  %9339 = vmatpush3.msra.mxu0 %v5585_v62  ;;  %v9923_v62 = vld [vmem:[#allocation5 + $0xd8] sm:$0xff]  }
0x3aa4   :  { %9343 = vmatprep.subr.mxu0 %v10126_v0 }
0x3aa6   :  { %v5661_v47 = vpop.permute.xlu1 %5660 }
0x3aaa   :  { %v5828_v4 = vpop.permute.xlu1 %5827 }
0x3aab   :  { %9354 = vmatpush3.xpose.msk.msra.mxu1 %vm227_vm3, %v5828_v4  ;;  %v9926_v4 = vld [vmem:[#allocation5 + $0xc0] sm:$0xff]  }
0x3aac   :  { %9363 = vmatprep.subr.bf16.mxu1 %v10126_v0 }
0x3ab0   :  { %v9795_v2 = vpop.eup %9794 }
0x3ab1   :  { %v5579_v7 = vsel %vm227_vm3, %v9795_v2, 0.0 }
0x3ab2   :  { %5580 = vadd.xlane.f32.xlu0 %v5579_v7  ;;  %v9928_v7 = vld [vmem:[#allocation5 + $0xb0] sm:$0xff]  }
0x3ac8   :  { %5662 = vrot.lane.b32.xlu0 %v10890_v39, %s10130_s19 }
0x3acc   :  { %5825 = vrot.lane.b32.xlu0 %v10890_v39, %s10134_s25 }
0x3b3b   :  { %v5581_v12 = vpop.xlane.xlu0 %5580 }
0x3b3c   :  { %9796 = vrcp.f32 %v5581_v12  ;;  %v9929_v12 = vld [vmem:[#allocation5 + $0xa8] sm:$0xff]  }
0x3b3f   :  { %v5663_v15 = vpop.permute.xlu0 %5662 }
0x3b43   :  { %v5826_v16 = vpop.permute.xlu0 %5825 }
0x3b44   :  { %9356 = vmatmul.mubr.msk.f32.vlgmr.msra.gmra.mxu1 %vm227_vm3, %v5826_v16 }
0x3b45   :  { %9364 = vmatpush3.bf16.msra.mxu1 %v9919_v14  ;;  %9367 = vmatprep.mubr.msk.bf16.mxu1 %vm10127_vm0, %v10126_v0  ;;  %v9931_v14 = vld [vmem:[#allocation7 + $0x48] ss:$0 sm:$0xff] }
0x3b46   :  { %9365 = vmatprep.subr.bf16.mxu1 %v10126_v0 }
0x3b49   :  { %v9797_v17 = vpop.eup %9796  ;;  %9366 = vmatpush3.bf16.msra.mxu1 %v9920_v19 }
0x3b4a   :  { %v5583_v20 = vmul.f32 %v9797_v17, %v9795_v2  ;;  %9379 = vmatprep.subr.bf16.mxu1 %v10126_v0  ;;  %v9927_v2 = vld [vmem:[#allocation5 + $0xb8] sm:$0xff]  }
0x3b4c   :  { %9341 = vmatmul.mubr.msk.f32.vlgmr.msra.gmra.mxu0 %vm227_vm3, %v5583_v20 }
0x3b4d   :  { %9344 = vmatpush3.xpose.msk.msra.mxu0 %vm227_vm3, %v5663_v15  ;;  %9345 = vmatprep.mubr.msk.f32.mxu0 %vm10127_vm0, %v10126_v0  ;;  %v9930_v15 = vld [vmem:[#allocation5 + $0xa0] sm:$0xff]  }
0x3b4e   :  { %9348 = vmatprep.subr.mxu0 %v10126_v0 }
0x3b50   :  { %9346 = vmatmul.mubr.msk.f32.vlgmr.msra.gmra.mxu0 %vm227_vm3, %v5661_v47  ;;  %v9924_v47 = vld [vmem:[#allocation5 + $0xd0] sm:$0xff]  }
0x3b51   :  { %9350 = vmatprep.mubr.msk.f32.mxu0 %vm10127_vm0, %v10126_v0 }
0x3c04   :  { %v5899_v21 = vpop.f32.mrf.mxu1 }
0x3c05   :  { %v5903_v24 = vsel %vm227_vm3, %v5899_v21, -inf }
0x3c06   :  { %5904 = vmax.xlane.f32.xlu0 %v5903_v24  ;;  %v9357_v13 = vpop.f32.mrf.mxu1 }
0x3c0c   :  { %v5656_v25 = vpop.f32.mrf.mxu0 }
0x3c0e   :  { %v9342_v46 = vpop.f32.mrf.mxu0 }
0x3c10   :  { %v5734_v26 = vpop.f32.mrf.mxu0 }
0x3c11   :  { %v5738_v27 = vsel %vm227_vm3, %v5734_v26, -inf }
0x3c12   :  { %5739 = vmax.xlane.f32.xlu1 %v5738_v27  ;;  %v9347_v28 = vpop.f32.mrf.mxu0 }
0x3c8f   :  { %v5905_v29 = vpop.xlane.xlu0 %5904 }
0x3c90   :  { %v5906_v9 = vsub.f32 %v5899_v21, %v5905_v29 }
0x3c92   :  { %v5907_v5 = vmul.f32 1.442695, %v5906_v9 }
0x3c94   :  { %9798 = vpow2.f32 %v5907_v5 }
0x3c9b   :  { %v5740_v18 = vpop.xlane.xlu1 %5739 }
0x3c9c   :  { %v5741_v30 = vsub.f32 %v5734_v26, %v5740_v18 }
0x3c9e   :  { %v5742_v22 = vmul.f32 1.442695, %v5741_v30 }
0x3ca0   :  { %9800 = vpow2.f32 %v5742_v22 }
0x3ca1   :  { %v9799_v33 = vpop.eup %9798 }
0x3ca2   :  { %v5909_v35 = vsel %vm227_vm3, %v9799_v33, 0.0 }
0x3ca3   :  { %5910 = vadd.xlane.f32.xlu1 %v5909_v35 }
0x3cad   :  { %v9801_v23 = vpop.eup %9800 }
0x3cae   :  { %v5744_v37 = vsel %vm227_vm3, %v9801_v23, 0.0 }
0x3caf   :  { %5745 = vadd.xlane.f32.xlu0 %v5744_v37 }
0x3cb4   :  { %5914 = vrot.lane.b32.xlu1 %v10890_v39, %s10137_s28 }
0x3cb8   :  { %5991 = vrot.lane.b32.xlu1 %v5656_v25, %s10124_s12 }
0x3cc5   :  { %5749 = vrot.lane.b32.xlu0 %v10890_v39, %s10136_s27  ;;  %v9921_v39 = vld [vmem:[#allocation5 + $0x98] sm:$0xff]  }
0x3d2c   :  { %v5911_v40 = vpop.xlane.xlu1 %5910 }
0x3d30   :  { %v5915_v11 = vpop.permute.xlu1 %5914 }
0x3d34   :  { %v5992_v49 = vpop.permute.xlu1 %5991 }
0x3d35   :  { %v6002_v59 = vsel %vm227_vm3, %v10917_v56, %v5992_v49  ;;  %v9925_v56 = vld [vmem:[#allocation5 + $0xc8] sm:$0xff]   ;;  %v9939_v49 = vld [vmem:[#allocation7 + $0x58] ss:$0 sm:$0xff] }
0x3d38   :  { %v5746_v41 = vpop.xlane.xlu0 %5745 }
0x3d39   :  { %9802 = vrcp.f32 %v5746_v41  ;;  %v9934_v41 = vld [vmem:[#allocation8 + $0x28] sm:$0xff]  }
0x3d3a   :  { %9804 = vrcp.f32 %v5911_v40 }
0x3d3c   :  { %v5750_v43 = vpop.permute.xlu0 %5749 }
0x3d3d   :  { %9349 = vmatpush3.msra.mxu0 %v5750_v43  ;;  %v9935_v43 = vld [vmem:[#allocation8 + $0x20] sm:$0xff]  }
0x3d3e   :  { %9358 = vmatprep.subr.mxu0 %v10126_v0 }
0x3d46   :  { %v9803_v34 = vpop.eup %9802 }
0x3d47   :  { %v5748_v38 = vmul.f32 %v9803_v34, %v9801_v23  ;;  %v9805_v44 = vpop.eup %9804  ;;  %v9933_v23 = vld [vmem:[#allocation7 + $0x68] ss:$0 sm:$0xff] }
0x3d48   :  { %v5913_v48 = vmul.f32 %v9805_v44, %v9799_v33  ;;  %v9932_v33 = vld [vmem:[#allocation7 + $0x60] ss:$0 sm:$0xff] }
0x3d49   :  { %9351 = vmatmul.mubr.msk.f32.vlgmr.msra.gmra.mxu0 %vm227_vm3, %v5748_v38  ;;  %v9936_v38 = vld [vmem:[#allocation7 + $0x50] ss:$0 sm:$0xff] }
0x3d4a   :  { %9359 = vmatpush3.msra.mxu0 %v5915_v11  ;;  %9360 = vmatprep.mubr.msk.f32.mxu0 %vm10127_vm0, %v10126_v0 }
0x3d4b   :  { %9371 = vmatprep.subr.bf16.mxu0 %v10126_v0 }
0x3d4d   :  { %9361 = vmatmul.mubr.msk.f32.vlgmr.msra.gmra.mxu0 %vm227_vm3, %v5913_v48 }
0x3d4e   :  { %9372 = vmatpush3.bf16.msra.mxu0 %v9921_v39  ;;  %9375 = vmatprep.mubr.msk.bf16.mxu0 %vm10127_vm0, %v10126_v0 }
0x3d4f   :  { %9373 = vmatprep.subr.bf16.mxu0 %v10126_v0 }
0x3d52   :  { %9374 = vmatpush3.bf16.msra.mxu0 %v9922_v50 }
0x3d53   :  { %9399 = vmatprep.subr.bf16.mxu0 %v10126_v0 }
0x3e09   :  { %v5821_v51 = vpop.f32.mrf.mxu0 }
0x3e0a   :  { %5995 = vrot.lane.b32.xlu0 %v5821_v51, %s10138_s29 }
0x3e0b   :  { %v9352_v52 = vpop.f32.mrf.mxu0 }
0x3e0c   :  { %v9937_v52 = vld [vmem:[#allocation5 + $0x8] sm:$0xff]  }
0x3e0d   :  { %v5986_v53 = vpop.f32.mrf.mxu0 }
0x3e0e   :  { %5999 = vrot.lane.b32.xlu1 %v5986_v53, %s10139_s30  ;;  %v9938_v53 = vld [vmem:[#allocation5] sm:$0xff]  }
0x3e0f   :  { %v9362_v54 = vpop.f32.mrf.mxu0 }
0x3e7c   :  { %v5996_v57 = vpop.permute.xlu0 %5995 }
0x3e7d   :  { %v6003_v60 = vsel %vm109_vm1, %v6002_v59, %v5996_v57 }
0x3e80   :  { %v6000_v45 = vpop.permute.xlu1 %5999 }
0x3e81   :  { %v6004_v10 = vsel %vm898_vm4, %v6003_v60, %v6000_v45 }
0x3e82   :  { %v6005_v61 = vpack.c.bf16 %v6004_v10, %v6004_v10 }
0x3e84   :  { %9368 = vmatmul.mubr.msk.bf16.vlgmr.msra.gmra.mxu1 %vm180_vm2, %v6005_v61 }
0x3e85   :  { %9380 = vmatpush3.bf16.msra.mxu1 %v9923_v62  ;;  %9395 = vmatprep.mubr.msk.bf16.mxu1 %vm10127_vm0, %v10126_v0 }
0x3e86   :  { %9381 = vmatprep.subr.bf16.mxu1 %v10126_v0 }
0x3e89   :  { %9382 = vmatpush3.bf16.msra.mxu1 %v9924_v47 }
0x3e8a   :  { %9383 = vmatprep.subr.bf16.mxu1 %v10126_v0 }
0x3e8d   :  { %9384 = vmatpush3.bf16.msra.mxu1 %v9925_v56 }
0x3e8e   :  { %9385 = vmatprep.subr.bf16.mxu1 %v10126_v0 }
0x3e91   :  { %9386 = vmatpush3.bf16.msra.mxu1 %v9926_v4 }
0x3e92   :  { %9387 = vmatprep.subr.bf16.mxu1 %v10126_v0 }
0x3e95   :  { %9388 = vmatpush3.bf16.msra.mxu1 %v9927_v2 }
0x3e96   :  { %9389 = vmatprep.subr.bf16.mxu1 %v10126_v0 }
0x3e99   :  { %9390 = vmatpush3.bf16.msra.mxu1 %v9928_v7 }
0x3e9a   :  { %9391 = vmatprep.subr.bf16.mxu1 %v10126_v0 }
0x3e9d   :  { %9392 = vmatpush3.bf16.msra.mxu1 %v9929_v12 }
0x3e9e   :  { %9393 = vmatprep.subr.bf16.mxu1 %v10126_v0 }
0x3ea1   :  { %9394 = vmatpush3.bf16.msra.mxu1 %v9930_v15 }
0x3ea2   :  { %9425 = vmatprep.subr.bf16.mxu1 %v10126_v0 }
0x3f44   :  { %v6043_v16 = vpop.f32.mrf.mxu1 }
0x3f45   :  { %v6044_v17 = vadd.f32 %v9931_v14, %v6043_v16 }
0x3f46   :  { %v9369_v19 = vpop.f32.mrf.mxu1 }
0x3f47   :  { %v6049_v20 = vadd.f32 %v6044_v17, %v10883_v6 }
0x3f48   :  { %v6046_v21 = vpop.f32.mrf.mxu1 }
0x3f49   :  { %v6050_v24 = vsel %vm180_vm2, %v6049_v20, 0.0  ;;  %v6054_v13 = vmul.f32 %v6049_v20, %v6049_v20 }
0x3f4a   :  { %6051 = vadd.xlane.f32.xlu0 %v6050_v24  ;;  %v9370_v25 = vpop.f32.mrf.mxu1  ;;  %v9941_v24 = vld [vmem:[#allocation7 + $0x78] ss:$0 sm:$0xff] }
0x3f4b   :  { %v6055_v46 = vsel %vm180_vm2, %v6054_v13, 0.0 }
0x3f4c   :  { %6056 = vadd.xlane.f32.xlu1 %v6055_v46  ;;  %v9681_v46 = vld [vmem:[#allocation8 + $0x68] sm:$0xff]  }
0x3fd3   :  { %v6052_v26 = vpop.xlane.xlu0 %6051 }
0x3fd4   :  { %v6053_v27 = vmul.f32 0.03125, %v6052_v26 }
0x3fd5   :  { %v6057_v28 = vpop.xlane.xlu1 %6056 }
0x3fd6   :  { %v6060_v29 = vmul.f32 %v6053_v27, %v6053_v27  ;;  %v6058_v9 = vmul.f32 0.03125, %v6057_v28  ;;  %v6059_v30 = vsub.f32 %v6049_v20, %v6053_v27  ;;  %v9940_v20 = vld [vmem:[#allocation7 + $0x70] ss:$0 sm:$0xff]  ;;  %v9682_v27 = vld [vmem:[#allocation8 + $0x60] sm:$0xff]   ;;  %v9683_v28 = vld [vmem:[#allocation8 + $0x58] sm:$0xff]  }
0x3fd8   :  { %v6061_v5 = vsub.f32 %v6058_v9, %v6060_v29  ;;  %v9684_v29 = vld [vmem:[#allocation8 + $0x50] sm:$0xff]   ;;  %v9942_v9 = vld [vmem:[#allocation10 + $0x58] ss:$0 sm:$0xff] }
0x3fda   :  { %v6062_v18 = vadd.f32 1e-05, %v6061_v5 }
0x3fdc   :  { %9806 = vrsqrt.f32 %v6062_v18 }
0x3fe9   :  { %v9807_v22 = vpop.eup %9806 }
0x3fea   :  { %v6064_v6 = vmul.f32 %v9807_v22, %v6059_v30 }
0x3fec   :  { %v6065_v35 = vmul.f32 %v9932_v33, %v6064_v6  ;;  %v9685_v6 = vld [vmem:[#allocation8 + $0x18] sm:$0xff]  }
0x3fee   :  { %v6066_v37 = vadd.f32 %v9933_v23, %v6065_v35  ;;  %v8478_v23 = vld [vmem:[#allocation10 + $0x68] ss:$0 sm:$0xff] }
0x3ff0   :  { %v6067_v40 = vpack.c.bf16 %v6066_v37, %v6066_v37 }
0x3ff2   :  { %9376 = vmatmul.mubr.msk.bf16.vlgmr.msra.gmra.mxu0 %vm180_vm2, %v6067_v40 }
0x3ff3   :  { %9400 = vmatpush3.bf16.msra.mxu0 %v9934_v41  ;;  %9403 = vmatprep.mubr.msk.bf16.mxu0 %vm10127_vm0, %v10126_v0 }
0x3ff4   :  { %9401 = vmatprep.subr.bf16.mxu0 %v10126_v0 }
0x3ff7   :  { %9402 = vmatpush3.bf16.msra.mxu0 %v9935_v43 }
0x3ff8   :  { %9407 = vmatprep.subr.bf16.mxu0 %v10126_v0 }
0x40b2   :  { %v6105_v34 = vpop.f32.mrf.mxu0 }
0x40b3   :  { %v6106_v44 = vadd.f32 %v9936_v38, %v6105_v34 }
0x40b4   :  { %v9377_v11 = vpop.f32.mrf.mxu0 }
0x40b5   :  { %v6111_v48 = vmax.f32 %v6106_v44, 0.0 }
0x40b6   :  { %v6108_v39 = vpop.f32.mrf.mxu0 }
0x40b7   :  { %v6112_v50 = vpack.c.bf16 %v6111_v48, %v6111_v48  ;;  %v6351_v39 = vld [vmem:[#allocation10 + $0x38] sm:$0x3] }
0x40b8   :  { %v9378_v51 = vpop.f32.mrf.mxu0 }
0x40b9   :  { %9396 = vmatmul.mubr.bf16.vlgmr.msra.gmra.mxu1 %v6112_v50  ;;  %v8484_v50 = vld [vmem:[#allocation10 + $0x50] ss:$0 sm:$0xff] }
0x40ba   :  { %9426 = vmatpush3.bf16.msra.mxu1 %v9937_v52  ;;  %9429 = vmatprep.mubr.msk.bf16.mxu1 %vm10127_vm0, %v10126_v0  ;;  %v6361_v52 = vrot.slane %v6351_v39, %v10494_v58 }
0x40bb   :  { %9427 = vmatprep.subr.bf16.mxu1 %v10126_v0 }
0x40be   :  { %9428 = vmatpush3.bf16.msra.mxu1 %v9938_v53 }
0x40bf   :  { %9443 = vmatprep.subr.mxu1 %v10126_v0 }
0x4179   :  { %v6147_v54 = vpop.f32.mrf.mxu1 }
0x417a   :  { %v6148_v57 = vadd.f32 %v9939_v49, %v6147_v54  ;;  %v6364_v54 = vld [vmem:[#allocation10 + $0x40] sm:$0x3] }
0x417b   :  { %v9397_v59 = vpop.f32.mrf.mxu1 }
0x417c   :  { %v6153_v60 = vadd.f32 %v6148_v57, %v6066_v37  ;;  %v6362_v57 = vmul.f32 %v6361_v52, %v10498_v63  ;;  %v6368_v59 = vrot.slane %v6364_v54, %v10492_v55  ;;  %v9944_v63 = vld [vmem:[#allocation7] ss:$0 sm:$0xff] }
0x417d   :  { %v6150_v45 = vpop.f32.mrf.mxu1 }
0x417e   :  { %v6154_v10 = vsel %vm180_vm2, %v6153_v60, 0.0  ;;  %v6158_v61 = vmul.f32 %v6153_v60, %v6153_v60  ;;  %v6374_v45 = vrot.slane %v6364_v54, %v10494_v58 }
0x417f   :  { %6155 = vadd.xlane.f32.xlu0 %v6154_v10  ;;  %v9398_v62 = vpop.f32.mrf.mxu1  ;;  %v6369_v10 = vmul.f32 %v6368_v59, %v10767_v32 }
0x4180   :  { %v6159_v47 = vsel %vm180_vm2, %v6158_v61, 0.0  ;;  %v8487_v62 = vld [vmem:[#allocation10 + $0x48] ss:$0 sm:$0xff] }
0x4183   :  { %6160 = vadd.xlane.f32.xlu0 %v6159_v47  ;;  %v6375_v47 = vmul.f32 %v6374_v45, %v10765_v31 }
0x4208   :  { %v6156_v56 = vpop.xlane.xlu0 %6155 }
0x4209   :  { %v6157_v4 = vmul.f32 0.03125, %v6156_v56 }
0x420b   :  { %v6164_v7 = vmul.f32 %v6157_v4, %v6157_v4  ;;  %v6163_v14 = vsub.f32 %v6153_v60, %v6157_v4 }
0x420c   :  { %v6161_v2 = vpop.xlane.xlu0 %6160 }
0x420d   :  { %v6162_v12 = vmul.f32 0.03125, %v6161_v2 }
0x420f   :  { %v6165_v15 = vsub.f32 %v6162_v12, %v6164_v7 }
0x4211   :  { %v6166_v16 = vadd.f32 1e-05, %v6165_v15 }
0x4213   :  { %9808 = vrsqrt.f32 %v6166_v16 }
0x4220   :  { %v9809_v17 = vpop.eup %9808 }
0x4221   :  { %v6168_v19 = vmul.f32 %v9809_v17, %v6163_v14 }
0x4223   :  { %v6169_v21 = vmul.f32 %v9940_v20, %v6168_v19 }
0x4225   :  { %v6170_v13 = vadd.f32 %v9941_v24, %v6169_v21 }
0x4227   :  { %v6171_v25 = vadd.f32 %v6170_v13, %v10771_v36 }
0x4229   :  { %v6172_v26 = vpack.c.bf16 %v6171_v25, %v6171_v25  ;;  %v9945_v25 = vld [vmem:[#allocation5 + $0x18] sm:$0xff]  }
0x422b   :  { %9404 = vmatmul.mubr.msk.bf16.vlgmr.msra.gmra.mxu0 %vm180_vm2, %v6172_v26 }
0x422c   :  { %9408 = vmatpush3.bf16.msra.mxu0 %v9681_v46  ;;  %9415 = vmatprep.mubr.msk.bf16.mxu0 %vm10127_vm0, %v10126_v0  ;;  %v9946_v46 = vld [vmem:[#allocation5 + $0x10] sm:$0xff]  }
0x422d   :  { %9409 = vmatprep.subr.bf16.mxu0 %v10126_v0 }
0x4230   :  { %9410 = vmatpush3.bf16.msra.mxu0 %v9682_v27 }
0x4231   :  { %9411 = vmatprep.subr.bf16.mxu0 %v10126_v0 }
0x4234   :  { %9412 = vmatpush3.bf16.msra.mxu0 %v9683_v28 }
0x4235   :  { %9413 = vmatprep.subr.bf16.mxu0 %v10126_v0 }
0x4238   :  { %9414 = vmatpush3.bf16.msra.mxu0 %v9684_v29 }
0x4239   :  { %9419 = vmatprep.subr.bf16.mxu0 %v10126_v0 }
0x42eb   :  { %v6210_v36 = vpop.f32.mrf.mxu0 }
0x42ec   :  { %v6211_v5 = vadd.f32 %v9942_v9, %v6210_v36 }
0x42ed   :  { %v9405_v18 = vpop.f32.mrf.mxu0 }
0x42ee   :  { %v6216_v30 = vmax.f32 %v6211_v5, 0.0 }
0x42ef   :  { %v6213_v22 = vpop.f32.mrf.mxu0 }
0x42f0   :  { %v6225_v33 = vpack.c.bf16 %v6216_v30, %v6216_v30 }
0x42f1   :  { %v9406_v35 = vpop.f32.mrf.mxu0 }
0x42f2   :  { %9416 = vmatmul.mubr.msk.bf16.vlgmr.msra.gmra.mxu0 %vm2336_vm5, %v6225_v33 }
0x42f3   :  { %9420 = vmatpush3.bf16.msra.mxu0 %v9685_v6  ;;  %9421 = vmatprep.mubr.msk.bf16.mxu0 %vm10127_vm0, %v10126_v0 }
0x42f4   :  { %9433 = vmatprep.subr.mxu0 %v10126_v0 }
0x42fa   :  { %9422 = vmatmul.mubr.msk.bf16.vlgmr.msra.gmra.mxu0 %vm109_vm1, %v10204_v3  ;;  %v6355_v3 = vrot.slane %v6351_v39, %v10492_v55 }
0x42fb   :  { %9435 = vmatprep.mubr.msk.f32.mxu0 %vm10127_vm0, %v10126_v0 }
0x42fc   :  { %v6356_v53 = vmul.f32 %v6355_v3, %v10500_v1  ;;  %v9943_v1 = vld [vmem:[#allocation10] ss:$0 sm:$0xff] }
0x43b2   :  { %v6292_v37 = vpop.f32.mrf.mxu0 }
0x43b3   :  { %v11013_v40 = vadd.f32 %v8478_v23, %v6292_v37 }
0x43b4   :  { %v9417_v41 = vpop.f32.mrf.mxu0 }
0x43b5   :  { %6380 = vperm.xlu1 %9641, %v11013_v40  }
0x43b6   :  { %v6295_v43 = vpop.f32.mrf.mxu0 }
0x43b8   :  { %v9418_v34 = vpop.f32.mrf.mxu0 }
0x43ba   :  { %v6345_v38 = vpop.f32.mrf.mxu0 }
0x43bb   :  { %v6346_v51 = vadd.f32 %v8484_v50, %v6345_v38 }
0x43bc   :  { %v9423_v44 = vpop.f32.mrf.mxu0 }
0x43bd   :  { %v6357_v49 = vadd.f32 %v6356_v53, %v6346_v51 }
0x43be   :  { %v6348_v11 = vpop.f32.mrf.mxu0 }
0x43bf   :  { %v6363_v60 = vadd.f32 %v6362_v57, %v6357_v49 }
0x43c0   :  { %v9424_v48 = vpop.f32.mrf.mxu0 }
0x43c1   :  { %v6370_v61 = vadd.f32 %v6369_v10, %v6363_v60 }
0x43c3   :  { %v6376_v4 = vadd.f32 %v6375_v47, %v6370_v61 }
0x4430   :  { %v6381_v56 = vpop.permute.xlu1 %6380 }
0x4431   :  { %v6387_v2 = vmul.f32 %v8487_v62, %v6381_v56 }
0x4433   :  { %v11024_v7 = vadd.f32 %v6387_v2, %v6376_v4 }
0x4435   :  { %v11027_v12 = vadd.f32 %v9943_v1, %v11024_v7 }
0x4437   :  { %v6390_v55 = vpack.c.bf16 %v11027_v12, %v11027_v12 }
0x4439   :  { %9430 = vmatmul.mubr.msk.bf16.vlgmr.msra.gmra.mxu1 %vm180_vm2, %v6390_v55 }
0x443a   :  { %9445 = vmatprep.mubr.msk.f32.mxu1 %vm10127_vm0, %v10126_v0 }
0x44f9   :  { %v6428_v58 = vpop.f32.mrf.mxu1 }
0x44fa   :  { %v11034_v31 = vadd.f32 %v9944_v63, %v6428_v58 }
0x44fb   :  { %v9431_v32 = vpop.f32.mrf.mxu1 }
0x44fc   :  { %6600 = vrot.lane.b32.xlu1 %v11034_v31, %s10131_s20  ;;  %6435 = vrot.lane.b32.xlu0 %v11034_v31, %s10129_s4 }
0x44fd   :  { %v6431_v15 = vpop.f32.mrf.mxu1 }
0x44ff   :  { %v9432_v16 = vpop.f32.mrf.mxu1 }
0x4500   :  { %6598 = vrot.lane.b32.xlu1 %v11034_v31, %s10128_s2  ;;  %6765 = vrot.lane.b32.xlu0 %v11034_v31, %s10130_s19  ;;  %v9947_v16 = vld [vmem:[#allocation5 + $0x28] sm:$0xff]  }
0x4504   :  { %6763 = vrot.lane.b32.xlu1 %v11034_v31, %s10133_s24  ;;  %6930 = vrot.lane.b32.xlu0 %v11034_v31, %s10132_s23 }
0x4508   :  { %6928 = vrot.lane.b32.xlu1 %v11034_v31, %s10134_s25 }
0x456e   :  { %v6601_v14 = vpop.permute.xlu1 %6600  ;;  %v6436_v17 = vpop.permute.xlu0 %6435 }
0x456f   :  { %9434 = vmatpush3.xpose.msk.msra.mxu0 %vm227_vm3, %v6436_v17  ;;  %9444 = vmatpush3.xpose.msk.msra.mxu1 %vm227_vm3, %v6601_v14  ;;  %v9948_v14 = vld [vmem:[#allocation5 + $0x20] sm:$0xff]  }
0x4570   :  { %9453 = vmatprep.subr.mxu1 %v10126_v0  ;;  %9438 = vmatprep.subr.mxu0 %v10126_v0 }
0x4572   :  { %v6599_v19 = vpop.permute.xlu1 %6598  ;;  %9436 = vmatmul.mubr.msk.f32.vlgmr.msra.gmra.mxu0 %vm227_vm3, %v11034_v31  ;;  %v6766_v20 = vpop.permute.xlu0 %6765 }
0x4573   :  { %9446 = vmatmul.mubr.msk.f32.vlgmr.msra.gmra.mxu1 %vm227_vm3, %v6599_v19  ;;  %9440 = vmatprep.mubr.msk.f32.mxu0 %vm10127_vm0, %v10126_v0 }
0x4574   :  { %9454 = vmatpush3.xpose.msk.msra.mxu1 %vm227_vm3, %v6766_v20  ;;  %9455 = vmatprep.mubr.msk.f32.mxu1 %vm10127_vm0, %v10126_v0 }
0x4575   :  { %9463 = vmatprep.subr.mxu1 %v10126_v0 }
0x4576   :  { %v6764_v21 = vpop.permute.xlu1 %6763  ;;  %v6931_v24 = vpop.permute.xlu0 %6930 }
0x4577   :  { %9456 = vmatmul.mubr.msk.f32.vlgmr.msra.gmra.mxu1 %vm227_vm3, %v6764_v21 }
0x4578   :  { %9464 = vmatpush3.xpose.msk.msra.mxu1 %vm227_vm3, %v6931_v24  ;;  %9465 = vmatprep.mubr.msk.f32.mxu1 %vm10127_vm0, %v10126_v0 }
0x4579   :  { %9473 = vmatprep.subr.bf16.mxu1 %v10126_v0 }
0x457a   :  { %v6929_v13 = vpop.permute.xlu1 %6928 }
0x457b   :  { %9466 = vmatmul.mubr.msk.f32.vlgmr.msra.gmra.mxu1 %vm227_vm3, %v6929_v13 }
0x457c   :  { %9474 = vmatpush3.bf16.msra.mxu1 %v9945_v25  ;;  %9477 = vmatprep.mubr.msk.bf16.mxu1 %vm10127_vm0, %v10126_v0 }
0x457d   :  { %9475 = vmatprep.subr.bf16.mxu1 %v10126_v0 }
0x4580   :  { %9476 = vmatpush3.bf16.msra.mxu1 %v9946_v46 }
0x4581   :  { %9489 = vmatprep.subr.bf16.mxu1 %v10126_v0 }
0x4632   :  { %v6507_v26 = vpop.f32.mrf.mxu0 }
0x4633   :  { %v6672_v27 = vpop.f32.mrf.mxu1  ;;  %v6511_v28 = vsel %vm227_vm3, %v6507_v26, -inf }
0x4634   :  { %6512 = vmax.xlane.f32.xlu0 %v6511_v28  ;;  %v9437_v29 = vpop.f32.mrf.mxu0  ;;  %v6676_v36 = vsel %vm227_vm3, %v6672_v27, -inf }
0x4635   :  { %6677 = vmax.xlane.f32.xlu1 %v6676_v36  ;;  %v9447_v9 = vpop.f32.mrf.mxu1 }
0x4637   :  { %v6837_v5 = vpop.f32.mrf.mxu1 }
0x4638   :  { %v6841_v18 = vsel %vm227_vm3, %v6837_v5, -inf }
0x4639   :  { %v9457_v30 = vpop.f32.mrf.mxu1  ;;  %6842 = vmax.xlane.f32.xlu0 %v6841_v18  ;;  %v9949_v18 = vld [vmem:[#allocation5 + $0x68] sm:$0xff]  }
0x463a   :  { %v9950_v30 = vld [vmem:[#allocation5 + $0x60] sm:$0xff]  }
0x463b   :  { %v7002_v22 = vpop.f32.mrf.mxu1 }
0x463c   :  { %v7006_v6 = vsel %vm227_vm3, %v7002_v22, -inf }
0x463d   :  { %v9467_v33 = vpop.f32.mrf.mxu1  ;;  %7007 = vmax.xlane.f32.xlu0 %v7006_v6  ;;  %v9952_v6 = vld [vmem:[#allocation5 + $0x50] sm:$0xff]  }
0x463e   :  { %v9953_v33 = vld [vmem:[#allocation5 + $0x48] sm:$0xff]  }
0x4646   :  { %6522 = vrot.lane.b32.xlu1 %v11034_v31, %s10118_s21 }
0x46bd   :  { %v6513_v35 = vpop.xlane.xlu0 %6512 }
0x46be   :  { %v6514_v23 = vsub.f32 %v6507_v26, %v6513_v35  ;;  %v6678_v37 = vpop.xlane.xlu1 %6677  ;;  %v9954_v35 = vld [vmem:[#allocation5 + $0x40] sm:$0xff]  }
0x46bf   :  { %v6679_v41 = vsub.f32 %v6672_v27, %v6678_v37  ;;  %v9956_v37 = vld [vmem:[#allocation5 + $0x30] sm:$0xff]  }
0x46c0   :  { %v6515_v43 = vmul.f32 1.442695, %v6514_v23  ;;  %v9955_v23 = vld [vmem:[#allocation5 + $0x38] sm:$0xff]  }
0x46c1   :  { %v6680_v34 = vmul.f32 1.442695, %v6679_v41 }
0x46c2   :  { %9810 = vpow2.f32 %v6515_v43  ;;  %v6523_v38 = vpop.permute.xlu1 %6522  ;;  %v6843_v44 = vpop.xlane.xlu0 %6842  ;;  %v9957_v43 = vld [vmem:[#allocation7 + $0x8] ss:$0 sm:$0xff] }
0x46c3   :  { %9812 = vpow2.f32 %v6680_v34  ;;  %v6844_v11 = vsub.f32 %v6837_v5, %v6843_v44  ;;  %9439 = vmatpush3.msra.mxu0 %v6523_v38 }
0x46c4   :  { %9448 = vmatprep.subr.mxu0 %v10126_v0 }
0x46c5   :  { %v6845_v48 = vmul.f32 1.442695, %v6844_v11 }
0x46c6   :  { %v7008_v39 = vpop.xlane.xlu0 %7007 }
0x46c7   :  { %9814 = vpow2.f32 %v6845_v48  ;;  %v7009_v50 = vsub.f32 %v7002_v22, %v7008_v39  ;;  %v9951_v22 = vld [vmem:[#allocation5 + $0x58] sm:$0xff]  }
0x46c9   :  { %v7010_v3 = vmul.f32 1.442695, %v7009_v50 }
0x46cb   :  { %9816 = vpow2.f32 %v7010_v3 }
0x46cf   :  { %v9811_v51 = vpop.eup %9810 }
0x46d0   :  { %v9813_v52 = vpop.eup %9812  ;;  %v6517_v53 = vsel %vm227_vm3, %v9811_v51, 0.0 }
0x46d1   :  { %6518 = vadd.xlane.f32.xlu1 %v6517_v53  ;;  %v6682_v54 = vsel %vm227_vm3, %v9813_v52, 0.0 }
0x46d2   :  { %6683 = vadd.xlane.f32.xlu0 %v6682_v54 }
0x46d4   :  { %v9815_v49 = vpop.eup %9814 }
0x46d5   :  { %v6847_v57 = vsel %vm227_vm3, %v9815_v49, 0.0 }
0x46d6   :  { %6848 = vadd.xlane.f32.xlu1 %v6847_v57 }
0x46d8   :  { %v9817_v59 = vpop.eup %9816 }
0x46d9   :  { %v7012_v60 = vsel %vm227_vm3, %v9817_v59, 0.0 }
0x46da   :  { %7013 = vadd.xlane.f32.xlu0 %v7012_v60 }
0x46e7   :  { %6852 = vrot.lane.b32.xlu1 %v11034_v31, %s10136_s27 }
0x46eb   :  { %7017 = vrot.lane.b32.xlu1 %v11034_v31, %s10137_s28 }
0x46f0   :  { %6687 = vrot.lane.b32.xlu0 %v11034_v31, %s10135_s26 }
0x475a   :  { %v6519_v45 = vpop.xlane.xlu1 %6518 }
0x475b   :  { %9818 = vrcp.f32 %v6519_v45  ;;  %v6684_v10 = vpop.xlane.xlu0 %6683 }
0x475c   :  { %9820 = vrcp.f32 %v6684_v10  ;;  %v9958_v10 = vld [vmem:[#allocation7 + $0x20] ss:$0 sm:$0xff] }
0x475f   :  { %v6849_v61 = vpop.xlane.xlu1 %6848 }
0x4760   :  { %9822 = vrcp.f32 %v6849_v61 }
0x4763   :  { %v7014_v62 = vpop.xlane.xlu0 %7013  ;;  %v6853_v55 = vpop.permute.xlu1 %6852 }
0x4764   :  { %9824 = vrcp.f32 %v7014_v62  ;;  %v9959_v62 = vld [vmem:[#allocation7 + $0x28] ss:$0 sm:$0xff] }
0x4767   :  { %v6688_v2 = vpop.permute.xlu0 %6687  ;;  %v7018_v32 = vpop.permute.xlu1 %7017 }
0x4768   :  { %v9819_v47 = vpop.eup %9818 }
0x4769   :  { %v6521_v56 = vmul.f32 %v9819_v47, %v9811_v51  ;;  %v9821_v4 = vpop.eup %9820 }
0x476a   :  { %v6686_v1 = vmul.f32 %v9821_v4, %v9813_v52  ;;  %v9960_v4 = vld [vmem:[#allocation5 + $0x78] sm:$0xff]  }
0x476b   :  { %9441 = vmatmul.mubr.msk.f32.vlgmr.msra.gmra.mxu0 %vm227_vm3, %v6521_v56 }
0x476c   :  { %9449 = vmatpush3.msra.mxu0 %v6688_v2  ;;  %9450 = vmatprep.mubr.msk.f32.mxu0 %vm10127_vm0, %v10126_v0  ;;  %v9961_v2 = vld [vmem:[#allocation5 + $0x70] sm:$0xff]  }
0x476d   :  { %9458 = vmatprep.subr.mxu0 %v10126_v0  ;;  %v9823_v58 = vpop.eup %9822 }
0x476e   :  { %v6851_v63 = vmul.f32 %v9823_v58, %v9815_v49 }
0x476f   :  { %9451 = vmatmul.mubr.msk.f32.vlgmr.msra.gmra.mxu0 %vm227_vm3, %v6686_v1 }
0x4770   :  { %9459 = vmatpush3.msra.mxu0 %v6853_v55  ;;  %9460 = vmatprep.mubr.msk.f32.mxu0 %vm10127_vm0, %v10126_v0  ;;  %v9962_v55 = vld [vmem:[#allocation7 + $0x10] ss:$0 sm:$0xff] }
0x4771   :  { %9468 = vmatprep.subr.mxu0 %v10126_v0  ;;  %v9825_v31 = vpop.eup %9824 }
0x4772   :  { %v7016_v15 = vmul.f32 %v9825_v31, %v9817_v59 }
0x4773   :  { %9461 = vmatmul.mubr.msk.f32.vlgmr.msra.gmra.mxu0 %vm227_vm3, %v6851_v63 }
0x4774   :  { %9469 = vmatpush3.msra.mxu0 %v7018_v32  ;;  %9470 = vmatprep.mubr.msk.f32.mxu0 %vm10127_vm0, %v10126_v0 }
0x4775   :  { %9481 = vmatprep.subr.bf16.mxu0 %v10126_v0 }
0x4777   :  { %9471 = vmatmul.mubr.msk.f32.vlgmr.msra.gmra.mxu0 %vm227_vm3, %v7016_v15 }
0x4778   :  { %9482 = vmatpush3.bf16.msra.mxu0 %v9947_v16  ;;  %9485 = vmatprep.mubr.msk.bf16.mxu0 %vm10127_vm0, %v10126_v0 }
0x4779   :  { %9483 = vmatprep.subr.bf16.mxu0 %v10126_v0 }
0x477c   :  { %9484 = vmatpush3.bf16.msra.mxu0 %v9948_v14 }
0x477d   :  { %9509 = vmatprep.subr.bf16.mxu0 %v10126_v0 }
0x482b   :  { %v6594_v17 = vpop.f32.mrf.mxu0 }
0x482d   :  { %v9442_v19 = vpop.f32.mrf.mxu0 }
0x482f   :  { %v6759_v20 = vpop.f32.mrf.mxu0 }
0x4830   :  { %7094 = vrot.lane.b32.xlu0 %v6759_v20, %s10124_s12 }
0x4831   :  { %v9452_v21 = vpop.f32.mrf.mxu0 }
0x4833   :  { %v6924_v24 = vpop.f32.mrf.mxu0 }
0x4834   :  { %7098 = vrot.lane.b32.xlu1 %v6924_v24, %s10138_s29 }
0x4835   :  { %v9462_v13 = vpop.f32.mrf.mxu0 }
0x4837   :  { %v7089_v25 = vpop.f32.mrf.mxu0 }
0x4838   :  { %7102 = vrot.lane.b32.xlu0 %v7089_v25, %s10139_s30 }
0x4839   :  { %v9472_v46 = vpop.f32.mrf.mxu0 }
0x48a2   :  { %v7095_v26 = vpop.permute.xlu0 %7094 }
0x48a3   :  { %v7105_v28 = vsel %vm227_vm3, %v6594_v17, %v7095_v26  ;;  %v9963_v17 = vld [vmem:[#allocation7 + $0x18] ss:$0 sm:$0xff] }
0x48a6   :  { %v7099_v27 = vpop.permute.xlu1 %7098 }
0x48a7   :  { %v7106_v29 = vsel %vm109_vm1, %v7105_v28, %v7099_v27 }
0x48aa   :  { %v7103_v36 = vpop.permute.xlu0 %7102 }
0x48ab   :  { %v7107_v9 = vsel %vm898_vm4, %v7106_v29, %v7103_v36 }
0x48ac   :  { %v7108_v5 = vpack.c.bf16 %v7107_v9, %v7107_v9 }
0x48ae   :  { %9478 = vmatmul.mubr.msk.bf16.vlgmr.msra.gmra.mxu1 %vm180_vm2, %v7108_v5 }
0x48af   :  { %9490 = vmatpush3.bf16.msra.mxu1 %v9949_v18  ;;  %9505 = vmatprep.mubr.msk.bf16.mxu1 %vm10127_vm0, %v10126_v0 }
0x48b0   :  { %9491 = vmatprep.subr.bf16.mxu1 %v10126_v0 }
0x48b3   :  { %9492 = vmatpush3.bf16.msra.mxu1 %v9950_v30 }
0x48b4   :  { %9493 = vmatprep.subr.bf16.mxu1 %v10126_v0 }
0x48b7   :  { %9494 = vmatpush3.bf16.msra.mxu1 %v9951_v22 }
0x48b8   :  { %9495 = vmatprep.subr.bf16.mxu1 %v10126_v0 }
0x48bb   :  { %9496 = vmatpush3.bf16.msra.mxu1 %v9952_v6 }
0x48bc   :  { %9497 = vmatprep.subr.bf16.mxu1 %v10126_v0 }
0x48bf   :  { %9498 = vmatpush3.bf16.msra.mxu1 %v9953_v33  ;;  %v9964_v33 = vld [vmem:[#allocation7 + $0x30] ss:$0 sm:$0xff] }
0x48c0   :  { %9499 = vmatprep.subr.bf16.mxu1 %v10126_v0 }
0x48c3   :  { %9500 = vmatpush3.bf16.msra.mxu1 %v9954_v35 }
0x48c4   :  { %9501 = vmatprep.subr.bf16.mxu1 %v10126_v0 }
0x48c7   :  { %9502 = vmatpush3.bf16.msra.mxu1 %v9955_v23  ;;  %v9965_v23 = vld [vmem:[#allocation7 + $0x38] ss:$0 sm:$0xff] }
0x48c8   :  { %9503 = vmatprep.subr.bf16.mxu1 %v10126_v0 }
0x48cb   :  { %9504 = vmatpush3.bf16.msra.mxu1 %v9956_v37 }
0x48cc   :  { %9547 = vmatprep.subr.mxu1 %v10126_v0 }
0x496e   :  { %v7146_v41 = vpop.f32.mrf.mxu1 }
0x496f   :  { %v7147_v34 = vadd.f32 %v9957_v43, %v7146_v41 }
0x4970   :  { %v9479_v38 = vpop.f32.mrf.mxu1 }
0x4971   :  { %v7152_v44 = vadd.f32 %v7147_v34, %v11027_v12  ;;  %v9966_v34 = vld [vmem:[#allocation7 + $0x40] ss:$0 sm:$0xff] }
0x4972   :  { %v7149_v11 = vpop.f32.mrf.mxu1 }
0x4973   :  { %v7153_v48 = vsel %vm180_vm2, %v7152_v44, 0.0  ;;  %v7157_v39 = vmul.f32 %v7152_v44, %v7152_v44 }
0x4974   :  { %7154 = vadd.xlane.f32.xlu1 %v7153_v48  ;;  %v9480_v50 = vpop.f32.mrf.mxu1 }
0x4975   :  { %v7158_v3 = vsel %vm180_vm2, %v7157_v39, 0.0 }
0x4976   :  { %7159 = vadd.xlane.f32.xlu0 %v7158_v3 }
0x49fd   :  { %v7155_v51 = vpop.xlane.xlu1 %7154 }
0x49fe   :  { %v7156_v52 = vmul.f32 0.03125, %v7155_v51 }
0x49ff   :  { %v7160_v53 = vpop.xlane.xlu0 %7159 }
0x4a00   :  { %v7163_v54 = vmul.f32 %v7156_v52, %v7156_v52  ;;  %v7161_v49 = vmul.f32 0.03125, %v7160_v53  ;;  %v7162_v60 = vsub.f32 %v7152_v44, %v7156_v52 }
0x4a02   :  { %v7164_v57 = vsub.f32 %v7161_v49, %v7163_v54 }
0x4a04   :  { %v7165_v59 = vadd.f32 1e-05, %v7164_v57 }
0x4a06   :  { %9826 = vrsqrt.f32 %v7165_v59 }
0x4a13   :  { %v9827_v45 = vpop.eup %9826 }
0x4a14   :  { %v7167_v12 = vmul.f32 %v9827_v45, %v7162_v60 }
0x4a16   :  { %v7168_v61 = vmul.f32 %v9958_v10, %v7167_v12 }
0x4a18   :  { %v7169_v47 = vadd.f32 %v9959_v62, %v7168_v61 }
0x4a1a   :  { %v7170_v56 = vpack.c.bf16 %v7169_v47, %v7169_v47 }
0x4a1c   :  { %9486 = vmatmul.mubr.msk.bf16.vlgmr.msra.gmra.mxu0 %vm180_vm2, %v7170_v56 }
0x4a1d   :  { %9510 = vmatpush3.bf16.msra.mxu0 %v9960_v4  ;;  %9513 = vmatprep.mubr.msk.bf16.mxu0 %vm10127_vm0, %v10126_v0 }
0x4a1e   :  { %9511 = vmatprep.subr.bf16.mxu0 %v10126_v0 }
0x4a21   :  { %9512 = vmatpush3.bf16.msra.mxu0 %v9961_v2 }
0x4a22   :  { %9517 = vmatprep.subr.mxu0 %v10126_v0 }
0x4adc   :  { %v7208_v1 = vpop.f32.mrf.mxu0 }
0x4add   :  { %v7209_v58 = vadd.f32 %v9962_v55, %v7208_v1 }
0x4ade   :  { %v9487_v63 = vpop.f32.mrf.mxu0 }
0x4adf   :  { %v7214_v31 = vmax.f32 %v7209_v58, 0.0 }
0x4ae0   :  { %v7211_v32 = vpop.f32.mrf.mxu0 }
0x4ae1   :  { %v7215_v15 = vpack.c.bf16 %v7214_v31, %v7214_v31 }
0x4ae2   :  { %v9488_v16 = vpop.f32.mrf.mxu0 }
0x4ae3   :  { %9506 = vmatmul.mubr.bf16.vlgmr.msra.gmra.mxu1 %v7215_v15 }
0x4ae4   :  { %9549 = vmatprep.mubr.msk.f32.mxu1 %vm10127_vm0, %v10126_v0 }
0x4ba3   :  { %v7250_v14 = vpop.f32.mrf.mxu1 }
0x4ba4   :  { %v7251_v19 = vadd.f32 %v9963_v17, %v7250_v14 }
0x4ba5   :  { %v9507_v20 = vpop.f32.mrf.mxu1 }
0x4ba6   :  { %v7256_v21 = vadd.f32 %v7251_v19, %v7169_v47  ;;  %v9967_v20 = vld [vmem:[#allocation5 + $0x88] sm:$0xff]  }
0x4ba7   :  { %v7253_v24 = vpop.f32.mrf.mxu1 }
0x4ba8   :  { %v7257_v13 = vsel %vm180_vm2, %v7256_v21, 0.0  ;;  %v7261_v25 = vmul.f32 %v7256_v21, %v7256_v21 }
0x4ba9   :  { %7258 = vadd.xlane.f32.xlu0 %v7257_v13  ;;  %v9508_v46 = vpop.f32.mrf.mxu1  ;;  %v9968_v13 = vld [vmem:[#allocation5 + $0x80] sm:$0xff]  }
0x4baa   :  { %v7262_v26 = vsel %vm180_vm2, %v7261_v25, 0.0 }
0x4bab   :  { %7263 = vadd.xlane.f32.xlu1 %v7262_v26 }
0x4c32   :  { %v7259_v27 = vpop.xlane.xlu0 %7258 }
0x4c33   :  { %v7260_v28 = vmul.f32 0.03125, %v7259_v27 }
0x4c34   :  { %v7264_v29 = vpop.xlane.xlu1 %7263 }
0x4c35   :  { %v7267_v36 = vmul.f32 %v7260_v28, %v7260_v28  ;;  %v7265_v9 = vmul.f32 0.03125, %v7264_v29  ;;  %v7266_v30 = vsub.f32 %v7256_v21, %v7260_v28 }
0x4c37   :  { %v7268_v5 = vsub.f32 %v7265_v9, %v7267_v36 }
0x4c39   :  { %v7269_v18 = vadd.f32 1e-05, %v7268_v5 }
0x4c3b   :  { %9828 = vrsqrt.f32 %v7269_v18 }
0x4c48   :  { %v9829_v22 = vpop.eup %9828 }
0x4c49   :  { %v7271_v6 = vmul.f32 %v9829_v22, %v7266_v30 }
0x4c4b   :  { %v7272_v35 = vmul.f32 %v9964_v33, %v7271_v6 }
0x4c4d   :  { %v11136_v37 = vadd.f32 %v9965_v23, %v7272_v35 }
0x4c4f   :  { %v7274_v41 = vpack.c.bf16 %v11136_v37, %v11136_v37 }
0x4c51   :  { %9514 = vmatmul.mubr.msk.bf16.vlgmr.msra.gmra.mxu0 %vm180_vm2, %v7274_v41 }
0x4c52   :  { %9519 = vmatprep.mubr.msk.f32.mxu0 %vm10127_vm0, %v10126_v0 }
0x4d11   :  { %v7312_v43 = vpop.f32.mrf.mxu0 }
0x4d12   :  { %v11143_v38 = vadd.f32 %v9966_v34, %v7312_v43 }
0x4d13   :  { %v9515_v44 = vpop.f32.mrf.mxu0 }
0x4d14   :  { %7319 = vrot.lane.b32.xlu0 %v11143_v38, %s10129_s4 }
0x4d15   :  { %v7315_v11 = vpop.f32.mrf.mxu0 }
0x4d17   :  { %v9516_v48 = vpop.f32.mrf.mxu0 }
0x4d18   :  { %7484 = vrot.lane.b32.xlu0 %v11143_v38, %s10131_s20 }
0x4d1c   :  { %7482 = vrot.lane.b32.xlu0 %v11143_v38, %s10128_s2 }
0x4d86   :  { %v7320_v39 = vpop.permute.xlu0 %7319 }
0x4d87   :  { %9518 = vmatpush3.xpose.msk.msra.mxu0 %vm227_vm3, %v7320_v39 }
0x4d88   :  { %9522 = vmatprep.subr.mxu0 %v10126_v0 }
0x4d8a   :  { %9520 = vmatmul.mubr.msk.f32.vlgmr.msra.gmra.mxu0 %vm227_vm3, %v11143_v38  ;;  %v7485_v12 = vpop.permute.xlu0 %7484 }
0x4d8b   :  { %9524 = vmatprep.mubr.msk.f32.mxu0 %vm10127_vm0, %v10126_v0 }
0x4d8e   :  { %v7483_v61 = vpop.permute.xlu0 %7482 }
0x4e4a   :  { %v7391_v50 = vpop.f32.mrf.mxu0 }
0x4e4b   :  { %v7395_v3 = vsel %vm227_vm3, %v7391_v50, -inf }
0x4e4c   :  { %7396 = vmax.xlane.f32.xlu1 %v7395_v3  ;;  %v9521_v51 = vpop.f32.mrf.mxu0 }
0x4ed5   :  { %v7397_v52 = vpop.xlane.xlu1 %7396 }
0x4ed6   :  { %v7398_v53 = vsub.f32 %v7391_v50, %v7397_v52  ;;  %v9970_v52 = vld [vmem:[#allocation5 + $0x90] sm:$0xff]  }
0x4ed8   :  { %v7399_v54 = vmul.f32 1.442695, %v7398_v53 }
0x4eda   :  { %9830 = vpow2.f32 %v7399_v54 }
0x4ee7   :  { %v9831_v49 = vpop.eup %9830 }
0x4ee8   :  { %v7401_v57 = vsel %vm227_vm3, %v9831_v49, 0.0 }
0x4ee9   :  { %7402 = vadd.xlane.f32.xlu1 %v7401_v57 }
0x4efa   :  { %7406 = vrot.lane.b32.xlu1 %v11143_v38, %s10118_s21  ;;  %s10142_s21 = smov 2  }
0x4f72   :  { %v7403_v59 = vpop.xlane.xlu1 %7402 }
0x4f73   :  { %9832 = vrcp.f32 %v7403_v59 }
0x4f76   :  { %v7407_v60 = vpop.permute.xlu1 %7406 }
0x4f77   :  { %9523 = vmatpush3.msra.mxu0 %v7407_v60 }
0x4f78   :  { %9527 = vmatprep.subr.mxu0 %v10126_v0 }
0x4f80   :  { %v9833_v45 = vpop.eup %9832 }
0x4f81   :  { %v7405_v10 = vmul.f32 %v9833_v45, %v9831_v49 }
0x4f83   :  { %9525 = vmatmul.mubr.msk.f32.vlgmr.msra.gmra.mxu0 %vm227_vm3, %v7405_v10 }
0x4f84   :  { %9528 = vmatpush3.xpose.msk.msra.mxu0 %vm227_vm3, %v7485_v12  ;;  %9529 = vmatprep.mubr.msk.f32.mxu0 %vm10127_vm0, %v10126_v0 }
0x4f85   :  { %9532 = vmatprep.subr.mxu0 %v10126_v0 }
0x4f87   :  { %9530 = vmatmul.mubr.msk.f32.vlgmr.msra.gmra.mxu0 %vm227_vm3, %v7483_v61 }
0x4f88   :  { %9534 = vmatprep.mubr.msk.f32.mxu0 %vm10127_vm0, %v10126_v0 }
0x5043   :  { %v11170_v62 = vpop.f32.mrf.mxu0 }
0x5045   :  { %v9526_v47 = vpop.f32.mrf.mxu0 }
0x5047   :  { %v7556_v56 = vpop.f32.mrf.mxu0 }
0x5048   :  { %v7560_v4 = vsel %vm227_vm3, %v7556_v56, -inf }
0x5049   :  { %7561 = vmax.xlane.f32.xlu1 %v7560_v4  ;;  %v9531_v2 = vpop.f32.mrf.mxu0  ;;  %v9972_v4 = vld [vmem:[#allocation5 + $0xd0] sm:$0xff]  }
0x504a   :  { %v9974_v2 = vld [vmem:[#allocation5 + $0xc0] sm:$0xff]  }
0x505a   :  { %7649 = vrot.lane.b32.xlu1 %v11143_v38, %s10130_s19 }
0x505e   :  { %7647 = vrot.lane.b32.xlu1 %v11143_v38, %s10133_s24 }
0x5062   :  { %7812 = vrot.lane.b32.xlu1 %v11143_v38, %s10134_s25 }
0x50d2   :  { %v7562_v1 = vpop.xlane.xlu1 %7561 }
0x50d3   :  { %v7563_v55 = vsub.f32 %v7556_v56, %v7562_v1  ;;  %v9971_v56 = vld [vmem:[#allocation5 + $0xd8] sm:$0xff]  }
0x50d4   :  { %v9975_v1 = vld [vmem:[#allocation5 + $0xb8] sm:$0xff]  }
0x50d5   :  { %v7564_v58 = vmul.f32 1.442695, %v7563_v55  ;;  %v9976_v55 = vld [vmem:[#allocation5 + $0xb0] sm:$0xff]  }
0x50d6   :  { %v7650_v32 = vpop.permute.xlu1 %7649 }
0x50d7   :  { %9834 = vpow2.f32 %v7564_v58  ;;  %v9977_v58 = vld [vmem:[#allocation5 + $0xa8] sm:$0xff]  }
0x50da   :  { %v7648_v14 = vpop.permute.xlu1 %7647 }
0x50de   :  { %v7813_v19 = vpop.permute.xlu1 %7812 }
0x50e4   :  { %v9835_v63 = vpop.eup %9834 }
0x50e5   :  { %v7566_v31 = vsel %vm227_vm3, %v9835_v63, 0.0 }
0x50e6   :  { %7567 = vadd.xlane.f32.xlu0 %v7566_v31 }
0x50fc   :  { %7571 = vrot.lane.b32.xlu0 %v11143_v38, %s10135_s26 }
0x5100   :  { %7814 = vrot.lane.b32.xlu0 %v11143_v38, %s10132_s23 }
0x516f   :  { %v7568_v15 = vpop.xlane.xlu0 %7567 }
0x5170   :  { %9836 = vrcp.f32 %v7568_v15 }
0x5173   :  { %v7572_v16 = vpop.permute.xlu0 %7571 }
0x5174   :  { %9533 = vmatpush3.msra.mxu0 %v7572_v16 }
0x5175   :  { %9537 = vmatprep.subr.mxu0 %v10126_v0 }
0x5177   :  { %v7815_v17 = vpop.permute.xlu0 %7814 }
0x5178   :  { %9548 = vmatpush3.xpose.msk.msra.mxu1 %vm227_vm3, %v7815_v17 }
0x5179   :  { %9557 = vmatprep.subr.bf16.mxu1 %v10126_v0 }
0x517b   :  { %9550 = vmatmul.mubr.msk.f32.vlgmr.msra.gmra.mxu1 %vm227_vm3, %v7813_v19 }
0x517c   :  { %9558 = vmatpush3.bf16.msra.mxu1 %v9967_v20  ;;  %9561 = vmatprep.mubr.msk.bf16.mxu1 %vm10127_vm0, %v10126_v0 }
0x517d   :  { %v9837_v21 = vpop.eup %9836  ;;  %9559 = vmatprep.subr.bf16.mxu1 %v10126_v0 }
0x517e   :  { %v7570_v24 = vmul.f32 %v9837_v21, %v9835_v63  ;;  %v9978_v63 = vld [vmem:[#allocation5 + $0xa0] sm:$0xff]  }
0x5180   :  { %9535 = vmatmul.mubr.msk.f32.vlgmr.msra.gmra.mxu0 %vm227_vm3, %v7570_v24  ;;  %9560 = vmatpush3.bf16.msra.mxu1 %v9968_v13 }
0x5181   :  { %9538 = vmatpush3.xpose.msk.msra.mxu0 %vm227_vm3, %v7650_v32  ;;  %9539 = vmatprep.mubr.msk.f32.mxu0 %vm10127_vm0, %v10126_v0  ;;  %v9979_v32 = vld [vmem:[#allocation7 + $0x48] ss:$0 sm:$0xff] }
0x5182   :  { %9542 = vmatprep.subr.mxu0 %v10126_v0  ;;  %9573 = vmatprep.subr.bf16.mxu1 %v10126_v0 }
0x5184   :  { %9540 = vmatmul.mubr.msk.f32.vlgmr.msra.gmra.mxu0 %vm227_vm3, %v7648_v14 }
0x5185   :  { %9544 = vmatprep.mubr.msk.f32.mxu0 %vm10127_vm0, %v10126_v0 }
0x523b   :  { %v7886_v25 = vpop.f32.mrf.mxu1 }
0x523c   :  { %v7890_v46 = vsel %vm227_vm3, %v7886_v25, -inf }
0x523d   :  { %7891 = vmax.xlane.f32.xlu1 %v7890_v46  ;;  %v9551_v26 = vpop.f32.mrf.mxu1 }
0x5240   :  { %v7643_v27 = vpop.f32.mrf.mxu0 }
0x5242   :  { %v9536_v28 = vpop.f32.mrf.mxu0 }
0x5244   :  { %v7721_v29 = vpop.f32.mrf.mxu0 }
0x5245   :  { %v7725_v36 = vsel %vm227_vm3, %v7721_v29, -inf }
0x5246   :  { %7726 = vmax.xlane.f32.xlu0 %v7725_v36  ;;  %v9541_v9 = vpop.f32.mrf.mxu0 }
0x524e   :  { %7736 = vrot.lane.b32.xlu1 %v11143_v38, %s10136_s27 }
0x5252   :  { %7978 = vrot.lane.b32.xlu1 %v7643_v27, %s10124_s12 }
0x52c6   :  { %v7892_v5 = vpop.xlane.xlu1 %7891 }
0x52c7   :  { %v7893_v18 = vsub.f32 %v7886_v25, %v7892_v5  ;;  %v9980_v5 = vld [vmem:[#allocation7 + $0x60] ss:$0 sm:$0xff] }
0x52c9   :  { %v7894_v30 = vmul.f32 1.442695, %v7893_v18 }
0x52ca   :  { %v7737_v22 = vpop.permute.xlu1 %7736 }
0x52cb   :  { %9838 = vpow2.f32 %v7894_v30  ;;  %9543 = vmatpush3.msra.mxu0 %v7737_v22  ;;  %v9981_v30 = vld [vmem:[#allocation7 + $0x68] ss:$0 sm:$0xff] }
0x52cc   :  { %9552 = vmatprep.subr.mxu0 %v10126_v0 }
0x52ce   :  { %v7979_v59 = vpop.permute.xlu1 %7978 }
0x52cf   :  { %v7727_v6 = vpop.xlane.xlu0 %7726  ;;  %v7989_v45 = vsel %vm227_vm3, %v11170_v62, %v7979_v59  ;;  %v9973_v62 = vld [vmem:[#allocation5 + $0xc8] sm:$0xff]  }
0x52d0   :  { %v7728_v33 = vsub.f32 %v7721_v29, %v7727_v6 }
0x52d2   :  { %v7729_v35 = vmul.f32 1.442695, %v7728_v33  ;;  %v9982_v33 = vld [vmem:[#allocation8 + $0x28] sm:$0xff]  }
0x52d4   :  { %9840 = vpow2.f32 %v7729_v35  ;;  %v9983_v35 = vld [vmem:[#allocation8 + $0x20] sm:$0xff]  }
0x52d8   :  { %v9839_v23 = vpop.eup %9838 }
0x52d9   :  { %v7896_v41 = vsel %vm227_vm3, %v9839_v23, 0.0 }
0x52da   :  { %7897 = vadd.xlane.f32.xlu0 %v7896_v41  ;;  %v9984_v41 = vld [vmem:[#allocation7 + $0x50] ss:$0 sm:$0xff] }
0x52e1   :  { %v9841_v43 = vpop.eup %9840 }
0x52e2   :  { %v7731_v34 = vsel %vm227_vm3, %v9841_v43, 0.0 }
0x52e3   :  { %7732 = vadd.xlane.f32.xlu0 %v7731_v34 }
0x52f9   :  { %7901 = vrot.lane.b32.xlu0 %v11143_v38, %s10137_s28  ;;  %v9969_v38 = vld [vmem:[#allocation5 + $0x98] sm:$0xff]  }
0x5363   :  { %v7898_v44 = vpop.xlane.xlu0 %7897 }
0x536c   :  { %v7733_v11 = vpop.xlane.xlu0 %7732 }
0x536d   :  { %9842 = vrcp.f32 %v7733_v11 }
0x536e   :  { %9844 = vrcp.f32 %v7898_v44 }
0x5370   :  { %v7902_v3 = vpop.permute.xlu0 %7901 }
0x537a   :  { %v9843_v48 = vpop.eup %9842 }
0x537b   :  { %v7735_v39 = vmul.f32 %v9843_v48, %v9841_v43  ;;  %v9845_v50 = vpop.eup %9844 }
0x537c   :  { %v7900_v51 = vmul.f32 %v9845_v50, %v9839_v23 }
0x537d   :  { %9545 = vmatmul.mubr.msk.f32.vlgmr.msra.gmra.mxu0 %vm227_vm3, %v7735_v39 }
0x537e   :  { %9553 = vmatpush3.msra.mxu0 %v7902_v3  ;;  %9554 = vmatprep.mubr.msk.f32.mxu0 %vm10127_vm0, %v10126_v0  ;;  %v9985_v3 = vld [vmem:[#allocation7 + $0x58] ss:$0 sm:$0xff] }
0x537f   :  { %9565 = vmatprep.subr.bf16.mxu0 %v10126_v0 }
0x5381   :  { %9555 = vmatmul.mubr.msk.f32.vlgmr.msra.gmra.mxu0 %vm227_vm3, %v7900_v51 }
0x5382   :  { %9566 = vmatpush3.bf16.msra.mxu0 %v9969_v38  ;;  %9569 = vmatprep.mubr.msk.bf16.mxu0 %vm10127_vm0, %v10126_v0 }
0x5383   :  { %9567 = vmatprep.subr.bf16.mxu0 %v10126_v0 }
0x5386   :  { %9568 = vmatpush3.bf16.msra.mxu0 %v9970_v52 }
0x5387   :  { %9593 = vmatprep.subr.bf16.mxu0 %v10126_v0 }
0x543d   :  { %v7808_v53 = vpop.f32.mrf.mxu0 }
0x543e   :  { %7982 = vrot.lane.b32.xlu1 %v7808_v53, %s10138_s29 }
0x543f   :  { %v9546_v54 = vpop.f32.mrf.mxu0 }
0x5441   :  { %v7973_v49 = vpop.f32.mrf.mxu0 }
0x5442   :  { %7986 = vrot.lane.b32.xlu0 %v7973_v49, %s10139_s30 }
0x5443   :  { %v9556_v57 = vpop.f32.mrf.mxu0 }
0x54b0   :  { %v7983_v60 = vpop.permute.xlu1 %7982 }
0x54b1   :  { %v7990_v12 = vsel %vm109_vm1, %v7989_v45, %v7983_v60 }
0x54b4   :  { %v7987_v10 = vpop.permute.xlu0 %7986 }
0x54b5   :  { %v7991_v61 = vsel %vm898_vm4, %v7990_v12, %v7987_v10 }
0x54b6   :  { %v7992_v47 = vpack.c.bf16 %v7991_v61, %v7991_v61 }
0x54b8   :  { %9562 = vmatmul.mubr.msk.bf16.vlgmr.msra.gmra.mxu1 %vm180_vm2, %v7992_v47 }
0x54b9   :  { %9574 = vmatpush3.bf16.msra.mxu1 %v9971_v56  ;;  %9589 = vmatprep.mubr.msk.bf16.mxu1 %vm10127_vm0, %v10126_v0 }
0x54ba   :  { %9575 = vmatprep.subr.bf16.mxu1 %v10126_v0 }
0x54bd   :  { %9576 = vmatpush3.bf16.msra.mxu1 %v9972_v4 }
0x54be   :  { %9577 = vmatprep.subr.bf16.mxu1 %v10126_v0 }
0x54c1   :  { %9578 = vmatpush3.bf16.msra.mxu1 %v9973_v62 }
0x54c2   :  { %9579 = vmatprep.subr.bf16.mxu1 %v10126_v0 }
0x54c5   :  { %9580 = vmatpush3.bf16.msra.mxu1 %v9974_v2 }
0x54c6   :  { %9581 = vmatprep.subr.bf16.mxu1 %v10126_v0 }
0x54c9   :  { %9582 = vmatpush3.bf16.msra.mxu1 %v9975_v1  ;;  %v9986_v1 = vld [vmem:[#allocation7 + $0x70] ss:$0 sm:$0xff] }
0x54ca   :  { %9583 = vmatprep.subr.bf16.mxu1 %v10126_v0 }
0x54cd   :  { %9584 = vmatpush3.bf16.msra.mxu1 %v9976_v55 }
0x54ce   :  { %9585 = vmatprep.subr.bf16.mxu1 %v10126_v0 }
0x54d1   :  { %9586 = vmatpush3.bf16.msra.mxu1 %v9977_v58  ;;  %v9987_v58 = vld [vmem:[#allocation7 + $0x78] ss:$0 sm:$0xff] }
0x54d2   :  { %9587 = vmatprep.subr.bf16.mxu1 %v10126_v0 }
0x54d5   :  { %9588 = vmatpush3.bf16.msra.mxu1 %v9978_v63 }
0x5578   :  { %v8030_v31 = vpop.f32.mrf.mxu1 }
0x5579   :  { %v8031_v15 = vadd.f32 %v9979_v32, %v8030_v31  ;;  %v9686_v31 = vld [vmem:[#allocation8 + $0x88] sm:$0xff]  }
0x557a   :  { %v9563_v16 = vpop.f32.mrf.mxu1 }
0x557b   :  { %v8036_v14 = vadd.f32 %v8031_v15, %v11136_v37  ;;  %v9688_v15 = vld [vmem:[#allocation8 + $0x78] sm:$0xff]   ;;  %v9689_v16 = vld [vmem:[#allocation8 + $0x70] sm:$0xff]  }
0x557c   :  { %v8033_v17 = vpop.f32.mrf.mxu1 }
0x557d   :  { %v8037_v19 = vsel %vm180_vm2, %v8036_v14, 0.0  ;;  %v8041_v20 = vmul.f32 %v8036_v14, %v8036_v14 }
0x557e   :  { %8038 = vadd.xlane.f32.xlu1 %v8037_v19  ;;  %v9564_v21 = vpop.f32.mrf.mxu1 }
0x557f   :  { %v8042_v24 = vsel %vm180_vm2, %v8041_v20, 0.0 }
0x5580   :  { %8043 = vadd.xlane.f32.xlu0 %v8042_v24 }
0x5607   :  { %v8039_v13 = vpop.xlane.xlu1 %8038 }
0x5608   :  { %v8040_v25 = vmul.f32 0.03125, %v8039_v13 }
0x5609   :  { %v8044_v46 = vpop.xlane.xlu0 %8043 }
0x560a   :  { %v8047_v26 = vmul.f32 %v8040_v25, %v8040_v25  ;;  %v8045_v27 = vmul.f32 0.03125, %v8044_v46  ;;  %v8046_v36 = vsub.f32 %v8036_v14, %v8040_v25  ;;  %v9988_v14 = vld [vmem:[#allocation10 + $0x58] ss:$0 sm:$0xff]  ;;  %v8519_v25 = vld [vmem:[#allocation10 + $0x70] ss:$0 sm:$0xff] }
0x560c   :  { %v8048_v28 = vsub.f32 %v8045_v27, %v8047_v26 }
0x560e   :  { %v8049_v29 = vadd.f32 1e-05, %v8048_v28 }
0x5610   :  { %9846 = vrsqrt.f32 %v8049_v29 }
0x561d   :  { %v9847_v9 = vpop.eup %9846 }
0x561e   :  { %v8051_v37 = vmul.f32 %v9847_v9, %v8046_v36 }
0x5620   :  { %v8052_v18 = vmul.f32 %v9980_v5, %v8051_v37 }
0x5622   :  { %v8053_v22 = vadd.f32 %v9981_v30, %v8052_v18 }
0x5624   :  { %v8054_v6 = vpack.c.bf16 %v8053_v22, %v8053_v22 }
0x5626   :  { %9570 = vmatmul.mubr.msk.bf16.vlgmr.msra.gmra.mxu0 %vm180_vm2, %v8054_v6 }
0x5627   :  { %9594 = vmatpush3.bf16.msra.mxu0 %v9982_v33  ;;  %9597 = vmatprep.mubr.msk.bf16.mxu0 %vm10127_vm0, %v10126_v0 }
0x5628   :  { %9595 = vmatprep.subr.bf16.mxu0 %v10126_v0 }
0x562b   :  { %9596 = vmatpush3.bf16.msra.mxu0 %v9983_v35 }
0x562c   :  { %9601 = vmatprep.subr.bf16.mxu0 %v10126_v0 }
0x56e6   :  { %v8092_v23 = vpop.f32.mrf.mxu0 }
0x56e7   :  { %v8093_v43 = vadd.f32 %v9984_v41, %v8092_v23 }
0x56e8   :  { %v9571_v34 = vpop.f32.mrf.mxu0 }
0x56e9   :  { %v8098_v44 = vmax.f32 %v8093_v43, 0.0 }
0x56ea   :  { %v8095_v11 = vpop.f32.mrf.mxu0 }
0x56eb   :  { %v8099_v48 = vpack.c.bf16 %v8098_v44, %v8098_v44 }
0x56ec   :  { %v9572_v39 = vpop.f32.mrf.mxu0 }
0x56ed   :  { %9590 = vmatmul.mubr.bf16.vlgmr.msra.gmra.mxu1 %v8099_v48 }
0x57ad   :  { %v8134_v50 = vpop.f32.mrf.mxu1 }
0x57ae   :  { %v8135_v51 = vadd.f32 %v9985_v3, %v8134_v50 }
0x57af   :  { %v9591_v38 = vpop.f32.mrf.mxu1 }
0x57b0   :  { %v8140_v52 = vadd.f32 %v8135_v51, %v8053_v22 }
0x57b1   :  { %v8137_v53 = vpop.f32.mrf.mxu1 }
0x57b2   :  { %v8141_v54 = vsel %vm180_vm2, %v8140_v52, 0.0  ;;  %v8145_v49 = vmul.f32 %v8140_v52, %v8140_v52 }
0x57b3   :  { %8142 = vadd.xlane.f32.xlu0 %v8141_v54  ;;  %v9592_v57 = vpop.f32.mrf.mxu1 }
0x57b4   :  { %v8146_v59 = vsel %vm180_vm2, %v8145_v49, 0.0 }
0x57b5   :  { %8147 = vadd.xlane.f32.xlu1 %v8146_v59 }
0x57c6   :  { %8288 = vrot.lane.b32.xlu1 %v11013_v40, %s10119_s22  ;;  %s10143_s22 = smov 5  }
0x57c9   :  { %8285 = vrot.lane.b32.xlu0 %v10754_v8, %s10142_s21  ;;  %v9687_v8 = vld [vmem:[#allocation8 + $0x80] sm:$0xff]  }
0x583c   :  { %v8143_v60 = vpop.xlane.xlu0 %8142 }
0x583d   :  { %v8144_v45 = vmul.f32 0.03125, %v8143_v60 }
0x583e   :  { %v8148_v12 = vpop.xlane.xlu1 %8147 }
0x583f   :  { %v8151_v10 = vmul.f32 %v8144_v45, %v8144_v45  ;;  %v8149_v61 = vmul.f32 0.03125, %v8148_v12  ;;  %v8150_v4 = vsub.f32 %v8140_v52, %v8144_v45 }
0x5840   :  { %v8286_v29 = vpop.permute.xlu0 %8285 }
0x5841   :  { %v8152_v47 = vsub.f32 %v8149_v61, %v8151_v10  ;;  %v8296_v9 = vsel %vm8295_vm6, %v10488_v42, %v8286_v29 }
0x5842   :  { %v8289_v36 = vpop.permute.xlu1 %8288 }
0x5843   :  { %v8153_v56 = vadd.f32 1e-05, %v8152_v47  ;;  %v8298_v37 = vsel %vm8297_vm7, %v8296_v9, %v8289_v36 }
0x5845   :  { %9848 = vrsqrt.f32 %v8153_v56 }
0x5852   :  { %v9849_v62 = vpop.eup %9848 }
0x5853   :  { %v8155_v2 = vmul.f32 %v9849_v62, %v8150_v4 }
0x5855   :  { %v8156_v55 = vmul.f32 %v9986_v1, %v8155_v2 }
0x5857   :  { %v8157_v63 = vadd.f32 %v9987_v58, %v8156_v55 }
0x5859   :  { %v8158_v40 = vadd.f32 %v8157_v63, %v11024_v7 }
0x585b   :  { %v8159_v32 = vpack.c.bf16 %v8158_v40, %v8158_v40 }
0x585d   :  { %9598 = vmatmul.mubr.msk.bf16.vlgmr.msra.gmra.mxu0 %vm180_vm2, %v8159_v32 }
0x585e   :  { %9602 = vmatpush3.bf16.msra.mxu0 %v9686_v31  ;;  %9609 = vmatprep.mubr.msk.bf16.mxu0 %vm10127_vm0, %v10126_v0 }
0x585f   :  { %9603 = vmatprep.subr.bf16.mxu0 %v10126_v0 }
0x5862   :  { %9604 = vmatpush3.bf16.msra.mxu0 %v9687_v8 }
0x5863   :  { %9605 = vmatprep.subr.bf16.mxu0 %v10126_v0 }
0x5866   :  { %9606 = vmatpush3.bf16.msra.mxu0 %v9688_v15 }
0x5867   :  { %9607 = vmatprep.subr.bf16.mxu0 %v10126_v0 }
0x586a   :  { %9608 = vmatpush3.bf16.msra.mxu0 %v9689_v16 }
0x591d   :  { %v8197_v7 = vpop.f32.mrf.mxu0 }
0x591e   :  { %v8198_v17 = vadd.f32 %v9988_v14, %v8197_v7 }
0x591f   :  { %v9599_v19 = vpop.f32.mrf.mxu0 }
0x5920   :  { %v8203_v20 = vmax.f32 %v8198_v17, 0.0 }
0x5921   :  { %v8200_v21 = vpop.f32.mrf.mxu0 }
0x5922   :  { %v8212_v24 = vpack.c.bf16 %v8203_v20, %v8203_v20 }
0x5923   :  { %v9600_v13 = vpop.f32.mrf.mxu0 }
0x5924   :  { %9610 = vmatmul.mubr.msk.bf16.vlgmr.msra.gmra.mxu0 %vm2336_vm5, %v8212_v24 }
0x59e4   :  { %v8279_v46 = vpop.f32.mrf.mxu0 }
0x59e5   :  { %v8280_v26 = vadd.f32 %v8519_v25, %v8279_v46 }
0x59e6   :  { %v9611_v27 = vpop.f32.mrf.mxu0 }
0x59e7   :  { %8292 = vrot.lane.b32.xlu1 %v8280_v26, %s10143_s22 }
0x59e8   :  { %v8282_v28 = vpop.f32.mrf.mxu0 }
0x59ea   :  { %v9612_v0 = vpop.f32.mrf.mxu0 }
0x5a59   :  { %v8293_v5 = vpop.permute.xlu1 %8292 }
0x5a5a   :  { %v8300_v18 = vsel %vm8299_vm8, %v8298_v37, %v8293_v5 }
0x5a5b   :  { %v8302_v30 = vsel %vm8301_vm9, %v8300_v18, 0.0 }
0x5a5c   :  { %8303 = vst [vmem:[#allocation11] sm:$0xff] %v8302_v30 }
0x5a5d   :  { %10100 = shalt.err (!%p10097_p1)
}
0x5a5e   :  { %8313 = dma.vmem_to_hbm [thread:$0]  %s8311_s1, 128, %s11265_s5, [#allocation4]  }
0x5a5f   :  { %10115 = dma.done.wait [#allocation4], 128  }
0x5a60   :  { %10116 = vsyncadd [#allocation4], 4294967168 }
0x5a61   :  { %8317 = vsyncpa [#allocation3], 1 }
0x5a62   :  { %8318 = vsyncpa [#allocation6], 1 }
0x5a63   :  { %8319 = vsyncpa [#allocation9], 1 }
0x5a64   :  { %8320 = vsyncpa [#allocation4], 1 }

</bundles_post_ra>
